<compile_context>
chip_gen: v5e
topology: v5e:2x2
jax: 0.10.0
libtpu: 0.0.40
codegen_flags: <defaults>
</compile_context>

<pallas_src>
import math

import jax
import jax.numpy as jnp
from jax.experimental import pallas as pl
from jax.experimental.pallas import tpu as pltpu

INPUT_DIM = 3
OUTPUT_DIM = 1
HIDDEN_LAYERS = 8            # 1 input linear + 7 hidden linears + 1 output linear
HIDDEN = 256
N_HID = HIDDEN_LAYERS - 1    # 7 hidden (256->256) layers


# ---------------------------------------------------------------------------
# Parameter init (Xavier uniform, gain = calculate_gain('tanh') = 5/3, zero bias)
# ---------------------------------------------------------------------------
def init_params(key):
    gain = 5.0 / 3.0

    def xavier(k, fan_in, fan_out):
        bound = gain * math.sqrt(6.0 / (fan_in + fan_out))
        return jax.random.uniform(k, (fan_in, fan_out), jnp.float32, -bound, bound)

    keys = jax.random.split(key, HIDDEN_LAYERS + 1)

    # input layer (3 -> 256): stays f32, used on the VPU (3 broadcast FMAs)
    w_in = xavier(keys[0], INPUT_DIM, HIDDEN)                  # (3, 256) f32
    b_in = jnp.zeros((1, HIDDEN), jnp.float32)

    # 7 hidden layers (256 -> 256): bf16 weights for native MXU rate, f32 biases
    w_hid = jnp.stack(
        [xavier(keys[1 + l], HIDDEN, HIDDEN) for l in range(N_HID)]
    ).astype(jnp.bfloat16)                                     # (7, 256, 256) bf16
    b_hid = jnp.zeros((N_HID, 1, HIDDEN), jnp.float32)

    # output layer (256 -> 1): stored transposed (1, 256) so the kernel finishes
    # with a VPU multiply + lane reduce (no lane-padded output tile)
    w_out = xavier(keys[HIDDEN_LAYERS], HIDDEN, OUTPUT_DIM).T  # (1, 256) f32
    b_out = jnp.zeros((1, 1), jnp.float32)

    return dict(w_in=w_in, b_in=b_in, w_hid=w_hid, b_hid=b_hid, w_out=w_out, b_out=b_out)


# ---------------------------------------------------------------------------
# Pallas kernel: full MLP forward for one tile of TM points
# ---------------------------------------------------------------------------
def mlp_kernel(x_ref, w_in_ref, b_in_ref, w_hid_ref, b_hid_ref, w_out_ref, b_out_ref, o_ref):
    # First layer (K=3): three broadcast FMAs on the VPU; an MXU matmul with K=3 has
    # near-zero utilization and would force a 128-lane padded input.
    x = x_ref[...]                      # (TM, 3) f32
    w_in = w_in_ref[...]                # (3, 256) f32
    pre = (x[:, 0:1] * w_in[0:1, :]
           + x[:, 1:2] * w_in[1:2, :]
           + x[:, 2:3] * w_in[2:3, :]
           + b_in_ref[...])
    h = jnp.tanh(pre)                   # (TM, 256) f32

    # 7 hidden layers: bf16 operands on the MXU, f32 accumulation, f32 tanh/bias.
    for l in range(N_HID):
        acc = jnp.dot(h.astype(jnp.bfloat16), w_hid_ref[l],
                      preferred_element_type=jnp.float32)
        h = jnp.tanh(acc + b_hid_ref[l])

    # Output layer (256 -> 1): VPU mul + XLU lane-reduce; store a (TM, 1) tile so the
    # HBM writeback is 4 bytes/row instead of a 128-lane padded slab.
    o_ref[...] = jnp.sum(h * w_out_ref[...], axis=-1, keepdims=True) + b_out_ref[...]


def _choose_tm(n):
    """Row tile: big tiles amortize per-step overhead, but keep >=2 grid steps when
    the point count allows so both v7x TensorCores get work."""
    if n >= 1024:
        return 512
    if n >= 512:
        return 256
    return 128


def mlp_forward_flat(points, params):
    """points: [N, INPUT_DIM] float32  ->  [N, OUTPUT_DIM] float32."""
    n = points.shape[0]
    tm = _choose_tm(n)
    n_pad = ((n + tm - 1) // tm) * tm

    x = points.astype(jnp.float32)
    if n_pad != n:
        x = jnp.pad(x, ((0, n_pad - n), (0, 0)))

    grid = (n_pad // tm,)

    out = pl.pallas_call(
        mlp_kernel,
        out_shape=jax.ShapeDtypeStruct((n_pad, OUTPUT_DIM), jnp.float32),
        grid_spec=pltpu.PrefetchScalarGridSpec(
            num_scalar_prefetch=0,
            grid=grid,
            in_specs=[
                pl.BlockSpec((tm, INPUT_DIM), lambda i: (i, 0)),             # x tile [TM,3]
                # Weights/biases use constant index_maps -> resident in VMEM across
                # the grid (not re-DMA'd per tile).
                pl.BlockSpec((INPUT_DIM, HIDDEN), lambda i: (0, 0)),         # W_in  (3,256) f32
                pl.BlockSpec((1, HIDDEN), lambda i: (0, 0)),                 # b_in
                pl.BlockSpec((N_HID, HIDDEN, HIDDEN), lambda i: (0, 0, 0)),  # W_hid (7,256,256) bf16
                pl.BlockSpec((N_HID, 1, HIDDEN), lambda i: (0, 0, 0)),       # b_hid
                pl.BlockSpec((1, HIDDEN), lambda i: (0, 0)),                 # W_out^T (1,256) f32
                pl.BlockSpec((1, 1), lambda i: (0, 0)),                      # b_out
            ],
            out_specs=pl.BlockSpec((tm, OUTPUT_DIM), lambda i: (i, 0)),
        ),
        compiler_params=pltpu.CompilerParams(
            dimension_semantics=("parallel",),
        ),
    )(x, params["w_in"], params["b_in"], params["w_hid"], params["b_hid"],
      params["w_out"], params["b_out"])

    return out[:n, :]


# ---------------------------------------------------------------------------
# Forward wrappers mirroring MLP_PINN.forward
# ---------------------------------------------------------------------------
def predict_coords(coords, params):
    """coords: dict with 'x','y','t', each [..., 1]. Returns [..., OUTPUT_DIM]."""
    model_input = jnp.concatenate([coords["x"], coords["y"], coords["t"]], axis=-1)
    lead_shape = model_input.shape[:-1]
    flat = model_input.reshape(-1, INPUT_DIM)
    h = mlp_forward_flat(flat, params)
    return h.reshape(*lead_shape, OUTPUT_DIM)


def predict_state(initial_state, t_target, params):
    """initial_state: [B, 1, H, W] (NCHW), t_target: scalar. Returns [B, 1, H, W]."""
    b, _, height, width = initial_state.shape
    dtype = initial_state.dtype
    y_coords = jnp.linspace(0.0, 1.0, height, dtype=dtype)
    x_coords = jnp.linspace(0.0, 1.0, width, dtype=dtype)
    grid_y, grid_x = jnp.meshgrid(y_coords, x_coords, indexing="ij")
    x_flat = jnp.broadcast_to(grid_x.reshape(1, -1, 1), (b, height * width, 1))
    y_flat = jnp.broadcast_to(grid_y.reshape(1, -1, 1), (b, height * width, 1))
    t_flat = jnp.full((b, height * width, 1), float(t_target), dtype=dtype)
    coords = {"x": x_flat, "y": y_flat, "t": t_flat}
    h_flat = predict_coords(coords, params)                        # [B, H*W, 1]
    h_grid = jnp.transpose(h_flat, (0, 2, 1)).reshape(b, OUTPUT_DIM, height, width)
    return h_grid


# Plain-JAX reference mirroring the kernel's precision (bf16 dots, f32 accumulation)
def reference_forward_flat(points, params):
    h = jnp.tanh(points.astype(jnp.float32) @ params["w_in"] + params["b_in"])
    for l in range(N_HID):
        acc = jnp.dot(h.astype(jnp.bfloat16), params["w_hid"][l],
                      preferred_element_type=jnp.float32)
        h = jnp.tanh(acc + params["b_hid"][l])
    return jnp.sum(h * params["w_out"], axis=-1, keepdims=True) + params["b_out"]


if __name__ == "__main__":
    key = jax.random.PRNGKey(0)
    pkey, dkey = jax.random.split(key)
    params = init_params(pkey)

    # predict_state mode demo: batch=2, 1 channel, 16x16 grid, t_target=0.5
    # -> 512 points -> TM=256, 2 grid steps (both v7x TCs active).
    initial_state = jax.random.normal(dkey, (2, 1, 16, 16), jnp.float32)
    out_grid = predict_state(initial_state, 0.5, params)
    out_grid = jax.block_until_ready(out_grid)
    assert out_grid.shape == (2, 1, 16, 16), out_grid.shape
    assert bool(jnp.all(jnp.isfinite(out_grid)))

    # predict_coords mode demo + correctness check vs plain-JAX reference
    ckey = jax.random.PRNGKey(1)
    kx, ky, kt = jax.random.split(ckey, 3)
    coords = {
        "x": jax.random.uniform(kx, (2, 8, 1), jnp.float32),
        "y": jax.random.uniform(ky, (2, 8, 1), jnp.float32),
        "t": jax.random.uniform(kt, (2, 8, 1), jnp.float32),
    }
    out_coords = jax.block_until_ready(predict_coords(coords, params))
    flat_in = jnp.concatenate([coords["x"], coords["y"], coords["t"]], -1).reshape(-1, 3)
    ref = reference_forward_flat(flat_in, params).reshape(2, 8, 1)
    assert out_coords.shape == (2, 8, 1)
    assert jnp.allclose(out_coords, ref, atol=1e-2, rtol=1e-2), (
        float(jnp.max(jnp.abs(out_coords - ref))))

    # also check the grid-mode output against the reference
    grid_pts = jnp.concatenate(
        [jnp.broadcast_to(jnp.meshgrid(jnp.linspace(0, 1, 16), jnp.linspace(0, 1, 16),
                                       indexing="ij")[1].reshape(-1, 1), (256, 1)),
         jnp.broadcast_to(jnp.meshgrid(jnp.linspace(0, 1, 16), jnp.linspace(0, 1, 16),
                                       indexing="ij")[0].reshape(-1, 1), (256, 1)),
         jnp.full((256, 1), 0.5)], axis=-1)
    ref_grid = reference_forward_flat(grid_pts, params).reshape(1, 1, 16, 16)
    assert jnp.allclose(out_grid[0:1], ref_grid, atol=1e-2, rtol=1e-2)

    print("KERNEL_OK")
</pallas_src>

<mosaic_0001>
module attributes {stable_mosaic.version = 11 : i64} {
  func.func @mlp_kernel(%arg0: i32, %arg1: memref<256x3xf32, #tpu.memory_space<vmem>>, %arg2: memref<3x256xf32, #tpu.memory_space<vmem>>, %arg3: memref<1x256xf32, #tpu.memory_space<vmem>>, %arg4: memref<7x256x256xbf16, #tpu.memory_space<vmem>>, %arg5: memref<7x1x256xf32, #tpu.memory_space<vmem>>, %arg6: memref<1x256xf32, #tpu.memory_space<vmem>>, %arg7: memref<1x1xf32, #tpu.memory_space<vmem>>, %arg8: memref<256x1xf32, #tpu.memory_space<vmem>>) attributes {dimension_semantics = [#tpu.dimension_semantics<parallel>], iteration_bounds = array<i64: 2>, scalar_prefetch = 0 : i64, scratch_operands = 0 : i64, tpu.core_type = #tpu.core_type<tc>, window_params = [{transform_indices = @transform_0, window_bounds = array<i64: 256, 3>}, {pipeline_mode = #tpu.pipeline_mode<synchronous>, transform_indices = @transform_1, window_bounds = array<i64: 3, 256>}, {pipeline_mode = #tpu.pipeline_mode<synchronous>, transform_indices = @transform_2, window_bounds = array<i64: 1, 256>}, {pipeline_mode = #tpu.pipeline_mode<synchronous>, transform_indices = @transform_3, window_bounds = array<i64: 7, 256, 256>}, {pipeline_mode = #tpu.pipeline_mode<synchronous>, transform_indices = @transform_4, window_bounds = array<i64: 7, 1, 256>}, {pipeline_mode = #tpu.pipeline_mode<synchronous>, transform_indices = @transform_5, window_bounds = array<i64: 1, 256>}, {pipeline_mode = #tpu.pipeline_mode<synchronous>, transform_indices = @transform_6, window_bounds = array<i64: 1, 1>}, {transform_indices = @transform_7, window_bounds = array<i64: 256, 1>}]} {
    %c0 = arith.constant 0 : index
    %c0_0 = arith.constant 0 : index
    %0 = vector.load %arg1[%c0, %c0_0] : memref<256x3xf32, #tpu.memory_space<vmem>>, vector<256x3xf32>
    %c0_1 = arith.constant 0 : index
    %c0_2 = arith.constant 0 : index
    %1 = vector.load %arg2[%c0_1, %c0_2] : memref<3x256xf32, #tpu.memory_space<vmem>>, vector<3x256xf32>
    %2 = vector.extract_strided_slice %0 {offsets = [0, 0], sizes = [256, 1], strides = [1, 1]} : vector<256x3xf32> to vector<256x1xf32>
    %3 = vector.extract_strided_slice %1 {offsets = [0, 0], sizes = [1, 256], strides = [1, 1]} : vector<3x256xf32> to vector<1x256xf32>
    %4 = vector.broadcast %2 : vector<256x1xf32> to vector<256x256xf32>
    %5 = vector.broadcast %3 : vector<1x256xf32> to vector<256x256xf32>
    %6 = arith.mulf %4, %5 : vector<256x256xf32>
    %7 = vector.extract_strided_slice %0 {offsets = [0, 1], sizes = [256, 1], strides = [1, 1]} : vector<256x3xf32> to vector<256x1xf32>
    %8 = vector.extract_strided_slice %1 {offsets = [1, 0], sizes = [1, 256], strides = [1, 1]} : vector<3x256xf32> to vector<1x256xf32>
    %9 = vector.broadcast %7 : vector<256x1xf32> to vector<256x256xf32>
    %10 = vector.broadcast %8 : vector<1x256xf32> to vector<256x256xf32>
    %11 = arith.mulf %9, %10 : vector<256x256xf32>
    %12 = arith.addf %6, %11 : vector<256x256xf32>
    %13 = vector.extract_strided_slice %0 {offsets = [0, 2], sizes = [256, 1], strides = [1, 1]} : vector<256x3xf32> to vector<256x1xf32>
    %14 = vector.extract_strided_slice %1 {offsets = [2, 0], sizes = [1, 256], strides = [1, 1]} : vector<3x256xf32> to vector<1x256xf32>
    %15 = vector.broadcast %13 : vector<256x1xf32> to vector<256x256xf32>
    %16 = vector.broadcast %14 : vector<1x256xf32> to vector<256x256xf32>
    %17 = arith.mulf %15, %16 : vector<256x256xf32>
    %18 = arith.addf %12, %17 : vector<256x256xf32>
    %c0_3 = arith.constant 0 : index
    %c0_4 = arith.constant 0 : index
    %19 = vector.load %arg3[%c0_3, %c0_4] : memref<1x256xf32, #tpu.memory_space<vmem>>, vector<1x256xf32>
    %20 = vector.broadcast %19 : vector<1x256xf32> to vector<256x256xf32>
    %21 = arith.addf %18, %20 : vector<256x256xf32>
    %22 = math.tanh %21 : vector<256x256xf32>
    %23 = arith.truncf %22 : vector<256x256xf32> to vector<256x256xbf16>
    %c0_5 = arith.constant 0 : index
    %c0_6 = arith.constant 0 : index
    %c0_7 = arith.constant 0 : index
    %24 = vector.load %arg4[%c0_5, %c0_6, %c0_7] : memref<7x256x256xbf16, #tpu.memory_space<vmem>>, vector<1x256x256xbf16>
    %25 = vector.shape_cast %24 : vector<1x256x256xbf16> to vector<256x256xbf16>
    %cst = arith.constant dense<0.000000e+00> : vector<256x256xf32>
    %26 = tpu.matmul %23, %25, %cst {dimension_numbers = #tpu.dot_dimension_numbers<[1], [0], [0], [1], [0, 0, 1, 1], [], []>} : vector<256x256xbf16>, vector<256x256xbf16>, vector<256x256xf32> -> vector<256x256xf32>
    %c0_8 = arith.constant 0 : index
    %c0_9 = arith.constant 0 : index
    %c0_10 = arith.constant 0 : index
    %27 = vector.load %arg5[%c0_8, %c0_9, %c0_10] : memref<7x1x256xf32, #tpu.memory_space<vmem>>, vector<1x1x256xf32>
    %28 = vector.shape_cast %27 : vector<1x1x256xf32> to vector<1x256xf32>
    %29 = vector.broadcast %28 : vector<1x256xf32> to vector<256x256xf32>
    %30 = arith.addf %26, %29 : vector<256x256xf32>
    %31 = math.tanh %30 : vector<256x256xf32>
    %32 = arith.truncf %31 : vector<256x256xf32> to vector<256x256xbf16>
    %c1 = arith.constant 1 : index
    %c0_11 = arith.constant 0 : index
    %c0_12 = arith.constant 0 : index
    %33 = vector.load %arg4[%c1, %c0_11, %c0_12] : memref<7x256x256xbf16, #tpu.memory_space<vmem>>, vector<1x256x256xbf16>
    %34 = vector.shape_cast %33 : vector<1x256x256xbf16> to vector<256x256xbf16>
    %cst_13 = arith.constant dense<0.000000e+00> : vector<256x256xf32>
    %35 = tpu.matmul %32, %34, %cst_13 {dimension_numbers = #tpu.dot_dimension_numbers<[1], [0], [0], [1], [0, 0, 1, 1], [], []>} : vector<256x256xbf16>, vector<256x256xbf16>, vector<256x256xf32> -> vector<256x256xf32>
    %c1_14 = arith.constant 1 : index
    %c0_15 = arith.constant 0 : index
    %c0_16 = arith.constant 0 : index
    %36 = vector.load %arg5[%c1_14, %c0_15, %c0_16] : memref<7x1x256xf32, #tpu.memory_space<vmem>>, vector<1x1x256xf32>
    %37 = vector.shape_cast %36 : vector<1x1x256xf32> to vector<1x256xf32>
    %38 = vector.broadcast %37 : vector<1x256xf32> to vector<256x256xf32>
    %39 = arith.addf %35, %38 : vector<256x256xf32>
    %40 = math.tanh %39 : vector<256x256xf32>
    %41 = arith.truncf %40 : vector<256x256xf32> to vector<256x256xbf16>
    %c2 = arith.constant 2 : index
    %c0_17 = arith.constant 0 : index
    %c0_18 = arith.constant 0 : index
    %42 = vector.load %arg4[%c2, %c0_17, %c0_18] : memref<7x256x256xbf16, #tpu.memory_space<vmem>>, vector<1x256x256xbf16>
    %43 = vector.shape_cast %42 : vector<1x256x256xbf16> to vector<256x256xbf16>
    %cst_19 = arith.constant dense<0.000000e+00> : vector<256x256xf32>
    %44 = tpu.matmul %41, %43, %cst_19 {dimension_numbers = #tpu.dot_dimension_numbers<[1], [0], [0], [1], [0, 0, 1, 1], [], []>} : vector<256x256xbf16>, vector<256x256xbf16>, vector<256x256xf32> -> vector<256x256xf32>
    %c2_20 = arith.constant 2 : index
    %c0_21 = arith.constant 0 : index
    %c0_22 = arith.constant 0 : index
    %45 = vector.load %arg5[%c2_20, %c0_21, %c0_22] : memref<7x1x256xf32, #tpu.memory_space<vmem>>, vector<1x1x256xf32>
    %46 = vector.shape_cast %45 : vector<1x1x256xf32> to vector<1x256xf32>
    %47 = vector.broadcast %46 : vector<1x256xf32> to vector<256x256xf32>
    %48 = arith.addf %44, %47 : vector<256x256xf32>
    %49 = math.tanh %48 : vector<256x256xf32>
    %50 = arith.truncf %49 : vector<256x256xf32> to vector<256x256xbf16>
    %c3 = arith.constant 3 : index
    %c0_23 = arith.constant 0 : index
    %c0_24 = arith.constant 0 : index
    %51 = vector.load %arg4[%c3, %c0_23, %c0_24] : memref<7x256x256xbf16, #tpu.memory_space<vmem>>, vector<1x256x256xbf16>
    %52 = vector.shape_cast %51 : vector<1x256x256xbf16> to vector<256x256xbf16>
    %cst_25 = arith.constant dense<0.000000e+00> : vector<256x256xf32>
    %53 = tpu.matmul %50, %52, %cst_25 {dimension_numbers = #tpu.dot_dimension_numbers<[1], [0], [0], [1], [0, 0, 1, 1], [], []>} : vector<256x256xbf16>, vector<256x256xbf16>, vector<256x256xf32> -> vector<256x256xf32>
    %c3_26 = arith.constant 3 : index
    %c0_27 = arith.constant 0 : index
    %c0_28 = arith.constant 0 : index
    %54 = vector.load %arg5[%c3_26, %c0_27, %c0_28] : memref<7x1x256xf32, #tpu.memory_space<vmem>>, vector<1x1x256xf32>
    %55 = vector.shape_cast %54 : vector<1x1x256xf32> to vector<1x256xf32>
    %56 = vector.broadcast %55 : vector<1x256xf32> to vector<256x256xf32>
    %57 = arith.addf %53, %56 : vector<256x256xf32>
    %58 = math.tanh %57 : vector<256x256xf32>
    %59 = arith.truncf %58 : vector<256x256xf32> to vector<256x256xbf16>
    %c4 = arith.constant 4 : index
    %c0_29 = arith.constant 0 : index
    %c0_30 = arith.constant 0 : index
    %60 = vector.load %arg4[%c4, %c0_29, %c0_30] : memref<7x256x256xbf16, #tpu.memory_space<vmem>>, vector<1x256x256xbf16>
    %61 = vector.shape_cast %60 : vector<1x256x256xbf16> to vector<256x256xbf16>
    %cst_31 = arith.constant dense<0.000000e+00> : vector<256x256xf32>
    %62 = tpu.matmul %59, %61, %cst_31 {dimension_numbers = #tpu.dot_dimension_numbers<[1], [0], [0], [1], [0, 0, 1, 1], [], []>} : vector<256x256xbf16>, vector<256x256xbf16>, vector<256x256xf32> -> vector<256x256xf32>
    %c4_32 = arith.constant 4 : index
    %c0_33 = arith.constant 0 : index
    %c0_34 = arith.constant 0 : index
    %63 = vector.load %arg5[%c4_32, %c0_33, %c0_34] : memref<7x1x256xf32, #tpu.memory_space<vmem>>, vector<1x1x256xf32>
    %64 = vector.shape_cast %63 : vector<1x1x256xf32> to vector<1x256xf32>
    %65 = vector.broadcast %64 : vector<1x256xf32> to vector<256x256xf32>
    %66 = arith.addf %62, %65 : vector<256x256xf32>
    %67 = math.tanh %66 : vector<256x256xf32>
    %68 = arith.truncf %67 : vector<256x256xf32> to vector<256x256xbf16>
    %c5 = arith.constant 5 : index
    %c0_35 = arith.constant 0 : index
    %c0_36 = arith.constant 0 : index
    %69 = vector.load %arg4[%c5, %c0_35, %c0_36] : memref<7x256x256xbf16, #tpu.memory_space<vmem>>, vector<1x256x256xbf16>
    %70 = vector.shape_cast %69 : vector<1x256x256xbf16> to vector<256x256xbf16>
    %cst_37 = arith.constant dense<0.000000e+00> : vector<256x256xf32>
    %71 = tpu.matmul %68, %70, %cst_37 {dimension_numbers = #tpu.dot_dimension_numbers<[1], [0], [0], [1], [0, 0, 1, 1], [], []>} : vector<256x256xbf16>, vector<256x256xbf16>, vector<256x256xf32> -> vector<256x256xf32>
    %c5_38 = arith.constant 5 : index
    %c0_39 = arith.constant 0 : index
    %c0_40 = arith.constant 0 : index
    %72 = vector.load %arg5[%c5_38, %c0_39, %c0_40] : memref<7x1x256xf32, #tpu.memory_space<vmem>>, vector<1x1x256xf32>
    %73 = vector.shape_cast %72 : vector<1x1x256xf32> to vector<1x256xf32>
    %74 = vector.broadcast %73 : vector<1x256xf32> to vector<256x256xf32>
    %75 = arith.addf %71, %74 : vector<256x256xf32>
    %76 = math.tanh %75 : vector<256x256xf32>
    %77 = arith.truncf %76 : vector<256x256xf32> to vector<256x256xbf16>
    %c6 = arith.constant 6 : index
    %c0_41 = arith.constant 0 : index
    %c0_42 = arith.constant 0 : index
    %78 = vector.load %arg4[%c6, %c0_41, %c0_42] : memref<7x256x256xbf16, #tpu.memory_space<vmem>>, vector<1x256x256xbf16>
    %79 = vector.shape_cast %78 : vector<1x256x256xbf16> to vector<256x256xbf16>
    %cst_43 = arith.constant dense<0.000000e+00> : vector<256x256xf32>
    %80 = tpu.matmul %77, %79, %cst_43 {dimension_numbers = #tpu.dot_dimension_numbers<[1], [0], [0], [1], [0, 0, 1, 1], [], []>} : vector<256x256xbf16>, vector<256x256xbf16>, vector<256x256xf32> -> vector<256x256xf32>
    %c6_44 = arith.constant 6 : index
    %c0_45 = arith.constant 0 : index
    %c0_46 = arith.constant 0 : index
    %81 = vector.load %arg5[%c6_44, %c0_45, %c0_46] : memref<7x1x256xf32, #tpu.memory_space<vmem>>, vector<1x1x256xf32>
    %82 = vector.shape_cast %81 : vector<1x1x256xf32> to vector<1x256xf32>
    %83 = vector.broadcast %82 : vector<1x256xf32> to vector<256x256xf32>
    %84 = arith.addf %80, %83 : vector<256x256xf32>
    %85 = math.tanh %84 : vector<256x256xf32>
    %c0_47 = arith.constant 0 : index
    %c0_48 = arith.constant 0 : index
    %86 = vector.load %arg6[%c0_47, %c0_48] : memref<1x256xf32, #tpu.memory_space<vmem>>, vector<1x256xf32>
    %87 = vector.broadcast %86 : vector<1x256xf32> to vector<256x256xf32>
    %88 = arith.mulf %85, %87 : vector<256x256xf32>
    %cst_49 = arith.constant dense<0.000000e+00> : vector<256xf32>
    %89 = vector.multi_reduction <add>, %88, %cst_49 [1] : vector<256x256xf32> to vector<256xf32>
    %90 = vector.shape_cast %89 : vector<256xf32> to vector<256x1xf32>
    %c0_50 = arith.constant 0 : index
    %c0_51 = arith.constant 0 : index
    %91 = vector.load %arg7[%c0_50, %c0_51] : memref<1x1xf32, #tpu.memory_space<vmem>>, vector<1x1xf32>
    %92 = vector.broadcast %91 : vector<1x1xf32> to vector<256x1xf32>
    %93 = arith.addf %90, %92 : vector<256x1xf32>
    %c0_52 = arith.constant 0 : index
    %c0_53 = arith.constant 0 : index
    %94 = vector.load %arg8[%c0_52, %c0_53] : memref<256x1xf32, #tpu.memory_space<vmem>>, vector<256x1xf32>
    tpu.vector_store %arg8[%c0_52, %c0_53], %93 {strides = array<i32>} : memref<256x1xf32, #tpu.memory_space<vmem>>, vector<256x1xf32>,
    return
  }
  func.func @transform_0(%arg0: i32) -> (i32, i32) {
    %c0_i32 = arith.constant 0 : i32
    %c0_i32_0 = arith.constant 0 : i32
    return %arg0, %c0_i32 : i32, i32
  }
  func.func @transform_1(%arg0: i32) -> (i32, i32) {
    %c0_i32 = arith.constant 0 : i32
    %c0_i32_0 = arith.constant 0 : i32
    %c0_i32_1 = arith.constant 0 : i32
    return %c0_i32, %c0_i32_0 : i32, i32
  }
  func.func @transform_2(%arg0: i32) -> (i32, i32) {
    %c0_i32 = arith.constant 0 : i32
    %c0_i32_0 = arith.constant 0 : i32
    %c0_i32_1 = arith.constant 0 : i32
    return %c0_i32, %c0_i32_0 : i32, i32
  }
  func.func @transform_3(%arg0: i32) -> (i32, i32, i32) {
    %c0_i32 = arith.constant 0 : i32
    %c0_i32_0 = arith.constant 0 : i32
    %c0_i32_1 = arith.constant 0 : i32
    %c0_i32_2 = arith.constant 0 : i32
    return %c0_i32, %c0_i32_0, %c0_i32_1 : i32, i32, i32
  }
  func.func @transform_4(%arg0: i32) -> (i32, i32, i32) {
    %c0_i32 = arith.constant 0 : i32
    %c0_i32_0 = arith.constant 0 : i32
    %c0_i32_1 = arith.constant 0 : i32
    %c0_i32_2 = arith.constant 0 : i32
    return %c0_i32, %c0_i32_0, %c0_i32_1 : i32, i32, i32
  }
  func.func @transform_5(%arg0: i32) -> (i32, i32) {
    %c0_i32 = arith.constant 0 : i32
    %c0_i32_0 = arith.constant 0 : i32
    %c0_i32_1 = arith.constant 0 : i32
    return %c0_i32, %c0_i32_0 : i32, i32
  }
  func.func @transform_6(%arg0: i32) -> (i32, i32) {
    %c0_i32 = arith.constant 0 : i32
    %c0_i32_0 = arith.constant 0 : i32
    %c0_i32_1 = arith.constant 0 : i32
    return %c0_i32, %c0_i32_0 : i32, i32
  }
  func.func @transform_7(%arg0: i32) -> (i32, i32) {
    %c0_i32 = arith.constant 0 : i32
    %c0_i32_0 = arith.constant 0 : i32
    return %arg0, %c0_i32 : i32, i32
  }
}

</mosaic_0001>

<bundles_post_ra>
// kernel: tpu_custom_call.1
= control target key start
LH: loop header
LB: loop body
LE: loop exit
PB: predicated region body
PF: predicated region fallthrough
CT: control target
= control target key end

     0   :  { %s10634_s0 = inlined_call_operand.vmem [shape: f32[512,3], index: 0, kind: input, shape index: {}]   ;;  %s10635_s1 = inlined_call_operand.vmem [shape: f32[3,256], index: 1, kind: input, shape index: {}]   ;;  %s10636_s2 = inlined_call_operand.vmem [shape: f32[1,256], index: 2, kind: input, shape index: {}]   ;;  %s10637_s3 = inlined_call_operand.hbm [shape: bf16[7,256,256], index: 3, kind: input, shape index: {}]   ;;  %s10638_s4 = inlined_call_operand.vmem [shape: f32[7,1,256], index: 4, kind: input, shape index: {}]   ;;  %s10639_s5 = inlined_call_operand.vmem [shape: f32[1,256], index: 5, kind: input, shape index: {}]   ;;  %s10640_s6 = inlined_call_operand.<no memory space> [shape: f32[1,1], index: 6, kind: input, shape index: {}]   ;;  %s10641_s7 = inlined_call_operand.vmem [shape: f32[512,1], index: 7, kind: output, shape index: {}]  }
   0x1   :  { %v12_v0 = vstv %s10640_s6 }
   0x2   :  { %13 = vst [vmem:[#allocation2] sm:$0x1] %v12_v0 }
   0x3   :  { %14 = vsyncpa [#allocation4], 0  ;;  %s8448_s26 = smov 0  }
   0x4 LB: > { %s220_s29 = sshll.u32 %s10637_s3, 4  ;;  %s6088_s30 = sadd.s32 4294967295, %s8397_s26   ;;  %s8397_s26 = sphi %s8448_s26, %s20_s26   ;;  %s221_s29 = int_to_ptr.hbm [resolvable:$true] %s220_s29 }
   0x5   : > { %p6090_p0 = scmp.ge.s32.totalorder %s8397_s26, 1  ;;  %p203_p1 = scmp.lt.s32.totalorder %s8397_s26, 3 }
   0x6   : > { %p7235_p2 = scmp.eq.s32.totalorder %s6088_s30, 0  ;;  %s8399_s6 = smov [#allocation3]  }
   0x7   : > { %p204_p3 = pnand %p6090_p0, %p203_p1  ;;  %s222_s8 = sshll.u32 %s8399_s6, 4  ;;  %s223_s8 = int_to_ptr.vmem [resolvable:$true] %s222_s8 }
   0x8   : > { %s8400_s9 = smov 128   ;;  %s8401_s10 = smov 8  }
   0x9   : > { %p7231_p4 = pneg %p204_p3  ;;  %256 = sbr.rel (%p204_p3) target bundleno = 2276 (0x8e4), region = 48 }
   0xb   : > { %p7232_p5 = pnand %p7235_p2, %p7231_p4 }
   0xd   : > { %7234 = dma.hbm_to_vmem [thread:$0]  (!%p7232_p5), %s221_s29, 28672, %s223_s8, [#allocation4], %s8400_s9, %s8400_s9, %s8401_s10  }
   0xe   : > { %8392 = dma.done.wait (%p7235_p2), [#allocation4], 28672  }
   0xf   : > { %8394 = vsyncadd (%p7235_p2), [#allocation4], 4294938624  ;;  %s6095_s11 = sshll.u32 %s6088_s30, 5  ;;  %v8402_v1 = vmov 1   ;;  %v8403_v2 = vmov 0   ;;  %v8404_v3 = vmov 2  }
  0x10   : > { %7252 = vset.pattern.permute.xlu1 %v8402_v1  ;;  %7251 = vset.pattern.permute.xlu0 %v8403_v2  ;;  %p290_p6 = scmp.lt.s32.totalorder %s6095_s11, 63  ;;  %v6157_v16 = vld [vmem:[#allocation3 + $0x70] sm:$0xf]  ;;  %v7018_v17 = vld [vmem:[#allocation3 + $0x74] sm:$0xf0]  ;;  %vm5987_vm0 = vcmask 7168  }
  0x11   : > { %7253 = vset.pattern.permute.xlu2 %v8404_v3  ;;  %v6221_v18 = vld [vmem:[#allocation3 + $0xf0] sm:$0xf]  ;;  %v6158_v19 = vor.u32 %v7018_v17, %v6157_v16  ;;  %v7034_v20 = vld [vmem:[#allocation3 + $0xf4] sm:$0xf0]  ;;  %v7017_v21 = vld [vmem:[#allocation3 + $0x74] sm:$0xf] }
  0x12   : > { %s10669_s11 = smov (!%p290_p6, %s6095_s11), 63  ;;  %v6159_v22 = vld [vmem:[#allocation3 + $0x78] sm:$0xf0]  ;;  %v6222_v23 = vor.u32 %v7034_v20, %v6221_v18  ;;  %v7033_v25 = vld [vmem:[#allocation3 + $0xf4] sm:$0xf] }
  0x13   : > { %s6096_s12 = sshll.u32 %s10669_s11, 3  ;;  %v6162_v24 = vor.u32 %v7017_v21, %v6159_v22  ;;  %v6223_v26 = vld [vmem:[#allocation3 + $0xf8] sm:$0xf0]  ;;  %1453 = vmatpush.bf16.msra.mxu0 %v6158_v19  ;;  %v6149_v28 = vld [vmem:[#allocation3 + $0x60] sm:$0xf] }
  0x14   : > { %s8470_s15 = scalar_lea.vmem %s10634_s0, %s6096_s12  ;;  %v6226_v27 = vor.u32 %v7033_v25, %v6223_v26  ;;  %v7016_v29 = vld [vmem:[#allocation3 + $0x64] sm:$0xf0]  ;;  %1542 = vmatpush.bf16.msra.mxu1 %v6222_v23  ;;  %v6213_v31 = vld [vmem:[#allocation3 + $0xe0] sm:$0xf]  ;;  %v7015_v33 = vld [vmem:[#allocation3 + $0x64] sm:$0xf]  ;;  %s10470_s17 = scalar_lea.vmem %s10641_s7, %s6096_s12 }
  0x15   : > { %v301_v4 = vld [vmem:[%s8470_s15] sm:$0xff]  ;;  %v302_v5 = vld [vmem:[%s8470_s15 + $0x8] sm:$0xff]  ;;  %v303_v6 = vld [vmem:[%s8470_s15 + $0x10] sm:$0xff]  ;;  %1631 = vmatpush.bf16.msra.mxu2 %v6162_v24  ;;  %v6150_v30 = vor.u32 %v7016_v29, %v6149_v28 }
  0x16   : > { %566 = vperm.xlu1 %7252, %v301_v4   ;;  %336 = vperm.xlu0 %7251, %v301_v4   ;;  %v304_v7 = vld [vmem:[%s8470_s15 + $0x18] sm:$0xff]  ;;  %v305_v8 = vld [vmem:[%s8470_s15 + $0x20] sm:$0xff]  ;;  %v306_v9 = vld [vmem:[%s8470_s15 + $0x28] sm:$0xff] }
  0x17   : > { %828 = vperm.xlu2 %7253, %v301_v4   ;;  %v307_v10 = vld [vmem:[%s8470_s15 + $0x30] sm:$0xff]  ;;  %v308_v11 = vld [vmem:[%s8470_s15 + $0x38] sm:$0xff]  ;;  %v8493_v12 = vld [vmem:[%s8470_s15 + $0x48] sm:$0xff]  ;;  %1720 = vmatpush.bf16.msra.mxu3 %v6226_v27 }
  0x18   : > { %v8500_v13 = vld [vmem:[%s8470_s15 + $0x50] sm:$0xff]  ;;  %v8505_v14 = vld [vmem:[%s8470_s15 + $0x40] sm:$0xff]  ;;  %v8510_v15 = vld [vmem:[%s8470_s15 + $0x58] sm:$0xff]  ;;  %1454 = vmatpush.bf16.msra.mxu0 %v6150_v30 }
  0x19   : > { %v7032_v32 = vld [vmem:[#allocation3 + $0xe4] sm:$0xf0]  ;;  %v6151_v35 = vld [vmem:[#allocation3 + $0x68] sm:$0xf0]  ;;  %v7031_v36 = vld [vmem:[#allocation3 + $0xe4] sm:$0xf] }
  0x1a   : > { %v6214_v34 = vor.u32 %v7032_v32, %v6213_v31  ;;  %v6154_v37 = vor.u32 %v7015_v33, %v6151_v35  ;;  %v6215_v38 = vld [vmem:[#allocation3 + $0xe8] sm:$0xf0]  ;;  %v6141_v40 = vld [vmem:[#allocation3 + $0x50] sm:$0xf]  ;;  %v8519_v41 = vld [vmem:[%s8470_s15 + $0x60] sm:$0xff] }
  0x1b   : > { %v6218_v39 = vor.u32 %v7031_v36, %v6215_v38  ;;  %v7014_v42 = vld [vmem:[#allocation3 + $0x54] sm:$0xf0]  ;;  %v6205_v44 = vld [vmem:[#allocation3 + $0xd0] sm:$0xf]  ;;  %v7013_v46 = vld [vmem:[#allocation3 + $0x54] sm:$0xf] }
  0x1c   : > { %1543 = vmatpush.bf16.msra.mxu1 %v6214_v34  ;;  %1632 = vmatpush.bf16.msra.mxu2 %v6154_v37  ;;  %v6142_v43 = vor.u32 %v7014_v42, %v6141_v40  ;;  %v7030_v45 = vld [vmem:[#allocation3 + $0xd4] sm:$0xf0]  ;;  %v6143_v48 = vld [vmem:[#allocation3 + $0x58] sm:$0xf0]  ;;  %v7029_v49 = vld [vmem:[#allocation3 + $0xd4] sm:$0xf] }
  0x1d   : > { %1721 = vmatpush.bf16.msra.mxu3 %v6218_v39  ;;  %v6206_v47 = vor.u32 %v7030_v45, %v6205_v44  ;;  %v6207_v50 = vld [vmem:[#allocation3 + $0xd8] sm:$0xf0]  ;;  %v6146_v51 = vor.u32 %v7013_v46, %v6143_v48  ;;  %v6133_v53 = vld [vmem:[#allocation3 + $0x40] sm:$0xf]  ;;  %v7012_v54 = vld [vmem:[#allocation3 + $0x44] sm:$0xf0] }
  0x1e   : > { %570 = vperm.xlu1 %7252, %v302_v5   ;;  %341 = vperm.xlu0 %7251, %v302_v5   ;;  %v6210_v52 = vor.u32 %v7029_v49, %v6207_v50  ;;  %v6197_v55 = vld [vmem:[#allocation3 + $0xc0] sm:$0xf]  ;;  %v6134_v56 = vor.u32 %v7012_v54, %v6133_v53  ;;  %v7028_v57 = vld [vmem:[#allocation3 + $0xc4] sm:$0xf0]  ;;  %v7011_v58 = vld [vmem:[#allocation3 + $0x44] sm:$0xf] }
  0x1f   : > { %832 = vperm.xlu2 %7253, %v302_v5   ;;  %1455 = vmatpush.bf16.msra.mxu0 %v6142_v43  ;;  %v6135_v59 = vld [vmem:[#allocation3 + $0x48] sm:$0xf0]  ;;  %v6198_v60 = vor.u32 %v7028_v57, %v6197_v55  ;;  %v7027_v61 = vld [vmem:[#allocation3 + $0xc4] sm:$0xf]  ;;  %v6125_v5 = vld [vmem:[#allocation3 + $0x30] sm:$0xf] }
  0x20   : > { %1544 = vmatpush.bf16.msra.mxu1 %v6206_v47  ;;  %v6199_v62 = vld [vmem:[#allocation3 + $0xc8] sm:$0xf0]  ;;  %1633 = vmatpush.bf16.msra.mxu2 %v6146_v51  ;;  %v6138_v63 = vor.u32 %v7011_v58, %v6135_v59  ;;  %v7025_v16 = vld [vmem:[#allocation3 + $0xb4] sm:$0xf]  ;;  %v6191_v17 = vld [vmem:[#allocation3 + $0xb8] sm:$0xf0] }
  0x21   : > { %1722 = vmatpush.bf16.msra.mxu3 %v6210_v52  ;;  %v6202_v4 = vor.u32 %v7027_v61, %v6199_v62  ;;  %v6117_v19 = vld [vmem:[#allocation3 + $0x20] sm:$0xf]  ;;  %v7008_v20 = vld [vmem:[#allocation3 + $0x24] sm:$0xf0]  ;;  %v6194_v22 = vor.u32 %v7025_v16, %v6191_v17  ;;  %v7007_v25 = vld [vmem:[#allocation3 + $0x24] sm:$0xf] }
  0x22   : > { %v6181_v21 = vld [vmem:[#allocation3 + $0xa0] sm:$0xf]  ;;  %v6118_v23 = vor.u32 %v7008_v20, %v6117_v19  ;;  %v7024_v24 = vld [vmem:[#allocation3 + $0xa4] sm:$0xf0]  ;;  %v6119_v26 = vld [vmem:[#allocation3 + $0x28] sm:$0xf0] }
  0x23   : > { %1456 = vmatpush.bf16.msra.mxu0 %v6134_v56  ;;  %v6182_v27 = vor.u32 %v7024_v24, %v6181_v21  ;;  %v7023_v28 = vld [vmem:[#allocation3 + $0xa4] sm:$0xf]  ;;  %v6183_v29 = vld [vmem:[#allocation3 + $0xa8] sm:$0xf0]  ;;  %v6122_v31 = vor.u32 %v7007_v25, %v6119_v26  ;;  %v6109_v32 = vld [vmem:[#allocation3 + $0x10] sm:$0xf] }
  0x24   : > { %1545 = vmatpush.bf16.msra.mxu1 %v6198_v60  ;;  %1634 = vmatpush.bf16.msra.mxu2 %v6138_v63  ;;  %v7006_v33 = vld [vmem:[#allocation3 + $0x14] sm:$0xf0]  ;;  %v6173_v34 = vld [vmem:[#allocation3 + $0x90] sm:$0xf]  ;;  %v6186_v35 = vor.u32 %v7023_v28, %v6183_v29  ;;  %v7005_v38 = vld [vmem:[#allocation3 + $0x14] sm:$0xf] }
  0x25   : > { %1723 = vmatpush.bf16.msra.mxu3 %v6202_v4  ;;  %v6110_v36 = vor.u32 %v7006_v33, %v6109_v32  ;;  %v7022_v37 = vld [vmem:[#allocation3 + $0x94] sm:$0xf0]  ;;  %v6111_v40 = vld [vmem:[#allocation3 + $0x18] sm:$0xf0]  ;;  %v7021_v42 = vld [vmem:[#allocation3 + $0x94] sm:$0xf] }
  0x26   : > { %7254 = vset.pattern.permute.xlu1 %v8403_v2  ;;  %346 = vperm.xlu0 %7251, %v303_v6   ;;  %v6174_v39 = vor.u32 %v7022_v37, %v6173_v34  ;;  %v8540_v43 = vld [vmem:[%s8470_s15 + $0x70] sm:$0xff]  ;;  %v6175_v44 = vld [vmem:[#allocation3 + $0x98] sm:$0xf0]  ;;  %v6101_v45 = vld [vmem:[#allocation3] sm:$0xf]  ;;  %v6114_v50 = vor.u32 %v7005_v38, %v6111_v40 }
  0x27   : > { %351 = vperm.xlu1 %7254, %v304_v7   ;;  %7255 = vset.pattern.permute.xlu2 %v8402_v1  ;;  %v7004_v46 = vld [vmem:[#allocation3 + $0x4] sm:$0xf0]  ;;  %v6165_v47 = vld [vmem:[#allocation3 + $0x80] sm:$0xf]  ;;  %v6178_v51 = vor.u32 %v7021_v42, %v6175_v44  ;;  %v7003_v53 = vld [vmem:[#allocation3 + $0x4] sm:$0xf] }
  0x28   : > { %574 = vperm.xlu2 %7255, %v303_v6   ;;  %v7020_v48 = vld [vmem:[#allocation3 + $0x84] sm:$0xf0]  ;;  %v333_v49 = vld [vmem:[%s10635_s1] sm:$0x77]  ;;  %v6102_v52 = vor.u32 %v7004_v46, %v6101_v45  ;;  %v6103_v54 = vld [vmem:[#allocation3 + $0x8] sm:$0xf0] }
  0x29   : > { %1724 = vmatpush.bf16.msra.mxu3 %v6194_v22  ;;  %v6166_v55 = vor.u32 %v7020_v48, %v6165_v47  ;;  %v7019_v56 = vld [vmem:[#allocation3 + $0x84] sm:$0xf]  ;;  %v6167_v57 = vld [vmem:[#allocation3 + $0x88] sm:$0xf0]  ;;  %v693_v58 = vperm.slane %v333_v49, 1  ;;  %v694_v59 = vperm.slane %v333_v49, 5  ;;  %v6106_v63 = vor.u32 %v7003_v53, %v6103_v54 }
  0x2a   : > { %v495_v60 = vperm.slane %v333_v49, 0  ;;  %v496_v61 = vperm.slane %v333_v49, 4  ;;  %v955_v4 = vperm.slane %v333_v49, 2  ;;  %v1089_v24 = vld [vmem:[%s10636_s2] sm:$0x3] }
  0x2b   : > { %v8580_v26 = vperm.slane %v1089_v24, 0  ;;  %v8582_v28 = vperm.slane %v1089_v24, 1 }
  0x2d   : > { %1725 = vmatpush.bf16.msra.mxu3 %v6186_v35 }
  0x2e   : > { %7256 = vset.pattern.permute.xlu0 %v8402_v1 }
  0x2f   : > { %7257 = vset.pattern.permute.xlu1 %v8404_v3  ;;  %578 = vperm.xlu0 %7256, %v304_v7  }
  0x30   : > { %836 = vperm.xlu1 %7257, %v303_v6   ;;  %7258 = vset.pattern.permute.xlu2 %v8404_v3  ;;  %v7010_v6 = vld [vmem:[#allocation3 + $0x34] sm:$0xf0] }
  0x31   : > { %840 = vperm.xlu2 %7258, %v304_v7   ;;  %v6189_v7 = vld [vmem:[#allocation3 + $0xb0] sm:$0xf]  ;;  %1726 = vmatpush.bf16.msra.mxu3 %v6178_v51 }
  0x37   : > { %582 = vperm.xlu0 %7256, %v305_v8  }
  0x38   : > { %7259 = vset.pattern.permute.xlu1 %v8403_v2 }
  0x39   : > { %356 = vperm.xlu1 %7259, %v305_v8   ;;  %7260 = vset.pattern.permute.xlu2 %v8403_v2 }
  0x3a   : > { %361 = vperm.xlu2 %7260, %v306_v9  }
  0x3f   : > { %7263 = vset.pattern.permute.xlu0 %v8404_v3 }
  0x40   : > { %848 = vperm.xlu0 %7263, %v306_v9  }
  0x41   : > { %7261 = vset.pattern.permute.xlu1 %v8402_v1 }
  0x42   : > { %586 = vperm.xlu1 %7261, %v306_v9   ;;  %7262 = vset.pattern.permute.xlu2 %v8404_v3  ;;  %v7026_v9 = vld [vmem:[#allocation3 + $0xb4] sm:$0xf0] }
  0x43   : > { %844 = vperm.xlu2 %7262, %v305_v8   ;;  %v6126_v8 = vor.u32 %v7010_v6, %v6125_v5  ;;  %v6170_v5 = vor.u32 %v7019_v56, %v6167_v57  ;;  %v956_v6 = vperm.slane %v333_v49, 6 }
  0x45   : > { %1457 = vmatpush.bf16.msra.mxu0 %v6126_v8  ;;  %v8557_v8 = vperm.slane %v495_v60, 0  ;;  %1727 = vmatpush.bf16.msra.mxu3 %v6170_v5 }
  0x48   : > { %852 = vperm.xlu0 %7263, %v307_v10  }
  0x49   : > { %1458 = vmatpush.bf16.msra.mxu0 %v6118_v23 }
  0x4a   : > { %7264 = vset.pattern.permute.xlu1 %v8403_v2 }
  0x4b   : > { %366 = vperm.xlu1 %7264, %v307_v10   ;;  %7265 = vset.pattern.permute.xlu2 %v8403_v2 }
  0x4c   : > { %371 = vperm.xlu2 %7265, %v308_v11  }
  0x4d   : > { %1459 = vmatpush.bf16.msra.mxu0 %v6110_v36 }
  0x50   : > { %7270 = vset.pattern.permute.xlu0 %v8403_v2 }
  0x51   : > { %381 = vperm.xlu0 %7270, %v8493_v12   ;;  %1460 = vmatpush.bf16.msra.mxu0 %v6102_v52 }
  0x53   : > { %7266 = vset.pattern.permute.xlu1 %v8402_v1 }
  0x54   : > { %590 = vperm.xlu1 %7266, %v307_v10   ;;  %7267 = vset.pattern.permute.xlu2 %v8402_v1  ;;  %v7009_v10 = vld [vmem:[#allocation3 + $0x34] sm:$0xf] }
  0x55   : > { %594 = vperm.xlu2 %7267, %v308_v11  }
  0x59   : > { %386 = vperm.xlu0 %7270, %v8500_v13  }
  0x5c   : > { %7268 = vset.pattern.permute.xlu1 %v8404_v3 }
  0x5d   : > { %856 = vperm.xlu1 %7268, %v308_v11   ;;  %7269 = vset.pattern.permute.xlu2 %v8403_v2  ;;  %v6127_v11 = vld [vmem:[#allocation3 + $0x38] sm:$0xf0] }
  0x5e   : > { %376 = vperm.xlu2 %7269, %v8505_v14   ;;  %v6130_v18 = vor.u32 %v7009_v10, %v6127_v11  ;;  %v8563_v10 = vperm.slane %v956_v6, 2 }
  0x60   : > { %1635 = vmatpush.bf16.msra.mxu2 %v6130_v18 }
  0x61   : > { %7277 = vset.pattern.permute.xlu0 %v8402_v1 }
  0x62   : > { %610 = vperm.xlu0 %7277, %v8510_v15  }
  0x64   : > { %1636 = vmatpush.bf16.msra.mxu2 %v6122_v31 }
  0x65   : > { %7271 = vset.pattern.permute.xlu1 %v8402_v1 }
  0x66   : > { %598 = vperm.xlu1 %7271, %v8505_v14   ;;  %7272 = vset.pattern.permute.xlu2 %v8402_v1 }
  0x67   : > { %602 = vperm.xlu2 %7272, %v8493_v12  }
  0x68   : > { %1637 = vmatpush.bf16.msra.mxu2 %v6114_v50  ;;  %v8603_v50 = vld [vmem:[%s8470_s15 + $0x78] sm:$0xff] }
  0x6a   : > { %614 = vperm.xlu0 %7277, %v8519_v41  }
  0x6c   : > { %1638 = vmatpush.bf16.msra.mxu2 %v6106_v63 }
  0x6e   : > { %7273 = vset.pattern.permute.xlu1 %v8404_v3 }
  0x6f   : > { %860 = vperm.xlu1 %7273, %v8505_v14   ;;  %7274 = vset.pattern.permute.xlu2 %v8404_v3  ;;  %v6190_v14 = vor.u32 %v7026_v9, %v6189_v7  ;;  %v8555_v7 = vperm.slane %v694_v59, 1  ;;  %v8559_v9 = vperm.slane %v496_v61, 0 }
  0x70   : > { %864 = vperm.xlu2 %7274, %v8493_v12   ;;  %v8529_v12 = vld [vmem:[%s8470_s15 + $0x68] sm:$0xff] }
  0x71   : > { %v8526_v0 = vpop.permute.xlu2 %828  ;;  %1546 = vmatpush.bf16.msra.mxu1 %v6190_v14 }
  0x72   : > { %7284 = vset.pattern.permute.xlu0 %v8404_v3  ;;  %v962_v23 = vmul.f32 %v8563_v10, %v8526_v0 }
  0x73   : > { %880 = vperm.xlu0 %7284, %v8529_v12  }
  0x75   : > { %1547 = vmatpush.bf16.msra.mxu1 %v6182_v27 }
  0x77   : > { %7275 = vset.pattern.permute.xlu1 %v8403_v2 }
  0x78   : > { %391 = vperm.xlu1 %7275, %v8510_v15   ;;  %7276 = vset.pattern.permute.xlu2 %v8402_v1 }
  0x79   : > { %606 = vperm.xlu2 %7276, %v8500_v13   ;;  %v8537_v30 = vpop.permute.xlu2 %832  ;;  %1548 = vmatpush.bf16.msra.mxu1 %v6174_v39 }
  0x7a   : > { %v964_v40 = vmul.f32 %v8563_v10, %v8537_v30 }
  0x7b   : > { %884 = vperm.xlu0 %7284, %v8540_v43  }
  0x7d   : > { %1549 = vmatpush.bf16.msra.mxu1 %v6166_v55 }
  0x80   : > { %7278 = vset.pattern.permute.xlu1 %v8404_v3 }
  0x81   : > { %868 = vperm.xlu1 %7278, %v8500_v13   ;;  %7279 = vset.pattern.permute.xlu2 %v8404_v3  ;;  %v8553_v13 = vperm.slane %v693_v58, 1 }
  0x82   : > { %872 = vperm.xlu2 %7279, %v8510_v15   ;;  %v8550_v62 = vpop.permute.xlu2 %574  ;;  %v8561_v15 = vperm.slane %v955_v4, 2 }
  0x83   : > { %7291 = vset.pattern.permute.xlu0 %v8403_v2  ;;  %v703_v51 = vmul.f32 %v8553_v13, %v8550_v62  ;;  %v704_v52 = vmul.f32 %v8555_v7, %v8550_v62 }
  0x84   : > { %v961_v20 = vmul.f32 %v8561_v15, %v8526_v0  ;;  %v963_v37 = vmul.f32 %v8561_v15, %v8537_v30  ;;  %v8606_v30 = vld [vmem:[%s8470_s15 + $0x88] sm:$0xff] }
  0x85   : > { %421 = vperm.xlu0 %7291, %v8606_v30  }
  0x88   : > { %v567_v11 = vpop.permute.xlu1 %566  ;;  %v337_v14 = vpop.permute.xlu0 %336 }
  0x89   : > { %v699_v16 = vmul.f32 %v8553_v13, %v567_v11  ;;  %v700_v17 = vmul.f32 %v8555_v7, %v567_v11  ;;  %v501_v18 = vmul.f32 %v8557_v8, %v337_v14  ;;  %v502_v19 = vmul.f32 %v8559_v9, %v337_v14  ;;  %7280 = vset.pattern.permute.xlu1 %v8403_v2  ;;  %v8623_v11 = vld [vmem:[%s8470_s15 + $0x90] sm:$0xff] }
  0x8a   : > { %396 = vperm.xlu1 %7280, %v8519_v41   ;;  %7281 = vset.pattern.permute.xlu2 %v8403_v2 }
  0x8b   : > { %v763_v21 = vadd.f32 %v699_v16, %v501_v18  ;;  %401 = vperm.xlu2 %7281, %v8529_v12   ;;  %v841_v22 = vpop.permute.xlu2 %840  ;;  %v764_v25 = vadd.f32 %v700_v17, %v502_v19 }
  0x8c   : > { %v967_v59 = vmul.f32 %v8561_v15, %v841_v22  ;;  %v968_v60 = vmul.f32 %v8563_v10, %v841_v22 }
  0x8d   : > { %v1025_v27 = vadd.f32 %v961_v20, %v763_v21  ;;  %v1026_v29 = vadd.f32 %v962_v23, %v764_v25  ;;  %426 = vperm.xlu0 %7291, %v8623_v11  }
  0x8f   : > { %v1095_v36 = vadd.f32 %v8580_v26, %v1025_v27  ;;  %v1096_v39 = vadd.f32 %v8582_v28, %v1026_v29 }
  0x90   : > { %v571_v31 = vpop.permute.xlu1 %570  ;;  %v342_v32 = vpop.permute.xlu0 %341 }
  0x91   : > { %v701_v33 = vmul.f32 %v8553_v13, %v571_v31  ;;  %v702_v34 = vmul.f32 %v8555_v7, %v571_v31  ;;  %v503_v35 = vmul.f32 %v8557_v8, %v342_v32  ;;  %v504_v0 = vmul.f32 %v8559_v9, %v342_v32 }
  0x92   : > { %7282 = vset.pattern.permute.xlu1 %v8402_v1  ;;  %7333 = vtanh.f32 %v1095_v36  ;;  %v8643_v36 = vld [vmem:[%s8470_s15 + $0x98] sm:$0xff] }
  0x93   : > { %v765_v38 = vadd.f32 %v701_v33, %v503_v35  ;;  %618 = vperm.xlu1 %7282, %v8529_v12   ;;  %7283 = vset.pattern.permute.xlu2 %v8404_v3  ;;  %v766_v42 = vadd.f32 %v702_v34, %v504_v0  ;;  %7335 = vtanh.f32 %v1096_v39 }
  0x94   : > { %876 = vperm.xlu2 %7283, %v8519_v41   ;;  %v8598_v44 = vpop.permute.xlu2 %361 }
  0x95   : > { %v1027_v45 = vadd.f32 %v963_v37, %v765_v38  ;;  %v1028_v46 = vadd.f32 %v964_v40, %v766_v42  ;;  %7298 = vset.pattern.permute.xlu0 %v8402_v1  ;;  %v317_v40 = vld [vmem:[%s8470_s15 + $0x80] sm:$0xff] }
  0x96   : > { %642 = vperm.xlu0 %7298, %v8643_v36  }
  0x97   : > { %v1097_v47 = vadd.f32 %v8580_v26, %v1027_v45  ;;  %v1098_v12 = vadd.f32 %v8582_v28, %v1028_v46 }
  0x98   : > { %v347_v48 = vpop.permute.xlu0 %346  ;;  %v7334_v41 = vpop.eup %7333 }
  0x99   : > { %7337 = vtanh.f32 %v1097_v47  ;;  %v352_v49 = vpop.permute.xlu1 %351  ;;  %v505_v53 = vmul.f32 %v8557_v8, %v347_v48  ;;  %v506_v54 = vmul.f32 %v8559_v9, %v347_v48  ;;  %v7336_v55 = vpop.eup %7335 }
  0x9a   : > { %7339 = vtanh.f32 %v1098_v12  ;;  %v507_v63 = vmul.f32 %v8557_v8, %v352_v49  ;;  %v508_v14 = vmul.f32 %v8559_v9, %v352_v49 }
  0x9b   : > { %7285 = vset.pattern.permute.xlu1 %v8403_v2  ;;  %v767_v4 = vadd.f32 %v703_v51, %v505_v53  ;;  %v768_v62 = vadd.f32 %v704_v52, %v506_v54 }
  0x9c   : > { %406 = vperm.xlu1 %7285, %v8540_v43   ;;  %7286 = vset.pattern.permute.xlu2 %v8403_v2 }
  0x9d   : > { %411 = vperm.xlu2 %7286, %v8603_v50   ;;  %v845_v56 = vpop.permute.xlu2 %844 }
  0x9e   : > { %v969_v46 = vmul.f32 %v8561_v15, %v845_v56  ;;  %v970_v49 = vmul.f32 %v8563_v10, %v845_v56 }
  0x9f   : > { %v7338_v57 = vpop.eup %7337 }
  0xa0   : > { %v7340_v58 = vpop.eup %7339  ;;  %v1223_v61 = vpack.c.bf16 %v7338_v57, %v7334_v41  ;;  %v512_v57 = vmul.f32 %v8559_v9, %v8598_v44 }
  0xa1   : > { %v579_v5 = vpop.permute.xlu0 %578  ;;  %v1224_v6 = vpack.c.bf16 %v7340_v58, %v7336_v55  ;;  %v511_v55 = vmul.f32 %v8557_v8, %v8598_v44 }
  0xa2   : > { %v705_v16 = vmul.f32 %v8553_v13, %v579_v5  ;;  %v706_v17 = vmul.f32 %v8555_v7, %v579_v5  ;;  %v837_v18 = vpop.permute.xlu1 %836  ;;  %1461 = vmatmul.bf16.vlgmr.msra.gmra.mxu0 %v1223_v61  ;;  %1639 = vmatmul.bf16.vlgmr.msra.gmra.mxu2 %v1223_v61 }
  0xa3   : > { %v965_v19 = vmul.f32 %v8561_v15, %v837_v18  ;;  %v966_v20 = vmul.f32 %v8563_v10, %v837_v18  ;;  %1550 = vmatmul.bf16.vlgmr.msra.gmra.mxu1 %v1224_v6  ;;  %1728 = vmatmul.bf16.vlgmr.msra.gmra.mxu3 %v1224_v6 }
  0xa4   : > { %v769_v21 = vadd.f32 %v705_v16, %v507_v63  ;;  %v770_v22 = vadd.f32 %v706_v17, %v508_v14  ;;  %7287 = vset.pattern.permute.xlu1 %v8402_v1 }
  0xa5   : > { %v1029_v23 = vadd.f32 %v965_v19, %v767_v4  ;;  %v1030_v24 = vadd.f32 %v966_v20, %v768_v62  ;;  %622 = vperm.xlu1 %7287, %v8540_v43   ;;  %7288 = vset.pattern.permute.xlu2 %v8402_v1  ;;  %v8676_v19 = vld [vmem:[%s8470_s15 + $0xa0] sm:$0xff] }
  0xa6   : > { %v1031_v25 = vadd.f32 %v967_v59, %v769_v21  ;;  %v1032_v27 = vadd.f32 %v968_v60, %v770_v22  ;;  %626 = vperm.xlu2 %7288, %v8603_v50   ;;  %v8635_v29 = vpop.permute.xlu2 %371  ;;  %646 = vperm.xlu0 %7298, %v8676_v19  }
  0xa7   : > { %v1099_v31 = vadd.f32 %v8580_v26, %v1029_v23  ;;  %v1100_v34 = vadd.f32 %v8582_v28, %v1030_v24 }
  0xa8   : > { %v1101_v32 = vadd.f32 %v8580_v26, %v1031_v25  ;;  %v1102_v33 = vadd.f32 %v8582_v28, %v1032_v27 }
  0xa9   : > { %7341 = vtanh.f32 %v1099_v31  ;;  %v583_v43 = vpop.permute.xlu0 %582 }
  0xaa   : > { %7343 = vtanh.f32 %v1101_v32  ;;  %v707_v0 = vmul.f32 %v8553_v13, %v583_v43  ;;  %v708_v39 = vmul.f32 %v8555_v7, %v583_v43 }
  0xab   : > { %7345 = vtanh.f32 %v1102_v33  ;;  %v357_v35 = vpop.permute.xlu1 %356 }
  0xac   : > { %7347 = vtanh.f32 %v1100_v34  ;;  %v509_v37 = vmul.f32 %v8557_v8, %v357_v35  ;;  %v510_v38 = vmul.f32 %v8559_v9, %v357_v35 }
  0xad   : > { %7289 = vset.pattern.permute.xlu1 %v8404_v3 }
  0xae   : > { %888 = vperm.xlu1 %7289, %v8603_v50   ;;  %7290 = vset.pattern.permute.xlu2 %v8403_v2  ;;  %v771_v45 = vadd.f32 %v707_v0, %v509_v37  ;;  %v772_v48 = vadd.f32 %v708_v39, %v510_v38  ;;  %v8690_v0 = vld [vmem:[%s8470_s15 + $0xa8] sm:$0xff] }
  0xaf   : > { %v7342_v42 = vpop.eup %7341  ;;  %416 = vperm.xlu2 %7290, %v317_v40   ;;  %v8655_v47 = vpop.permute.xlu2 %594  ;;  %7305 = vset.pattern.permute.xlu0 %v8404_v3 }
  0xb0   : > { %v7344_v12 = vpop.eup %7343  ;;  %v1033_v54 = vadd.f32 %v969_v46, %v771_v45  ;;  %v1034_v58 = vadd.f32 %v970_v49, %v772_v48  ;;  %912 = vperm.xlu0 %7305, %v8690_v0   ;;  %v6288_v45 = vld [vmem:[#allocation3 + $0x178] sm:$0xf0]  ;;  %v7065_v46 = vld [vmem:[#allocation3 + $0x1f4] sm:$0xf]  ;;  %v6286_v49 = vld [vmem:[#allocation3 + $0x170] sm:$0xf] }
  0xb1   : > { %v7346_v41 = vpop.eup %7345  ;;  %v1225_v51 = vpack.c.bf16 %v7344_v12, %v7342_v42  ;;  %v7049_v42 = vld [vmem:[#allocation3 + $0x174] sm:$0xf]  ;;  %v6352_v48 = vld [vmem:[#allocation3 + $0x1f8] sm:$0xf0] }
  0xb2   : > { %v7348_v52 = vpop.eup %7347  ;;  %v849_v53 = vpop.permute.xlu0 %848  ;;  %v1103_v4 = vadd.f32 %v8580_v26, %v1033_v54  ;;  %v1104_v44 = vadd.f32 %v8582_v28, %v1034_v58  ;;  %v6291_v12 = vor.u32 %v7049_v42, %v6288_v45  ;;  %v714_v54 = vmul.f32 %v8555_v7, %v8655_v47 }
  0xb3   : > { %1466 = vmatmul.bf16.gmra.mxu0 %v1225_v51  ;;  %v1226_v50 = vpack.c.bf16 %v7346_v41, %v7348_v52  ;;  %1644 = vmatmul.bf16.gmra.mxu2 %v1225_v51  ;;  %v971_v60 = vmul.f32 %v8561_v15, %v849_v53  ;;  %v972_v63 = vmul.f32 %v8563_v10, %v849_v53  ;;  %v7050_v41 = vld [vmem:[#allocation3 + $0x174] sm:$0xf0] }
  0xb4   : > { %v587_v59 = vpop.permute.xlu1 %586  ;;  %7349 = vtanh.f32 %v1103_v4  ;;  %v515_v51 = vmul.f32 %v8557_v8, %v8635_v29  ;;  %v516_v52 = vmul.f32 %v8559_v9, %v8635_v29  ;;  %v713_v53 = vmul.f32 %v8553_v13, %v8655_v47  ;;  %2283 = vmatpush.bf16.msrb.mxu2 %v6291_v12 }
  0xb5   : > { %1555 = vmatmul.bf16.gmra.mxu1 %v1226_v50  ;;  %1733 = vmatmul.bf16.gmra.mxu3 %v1226_v50  ;;  %v709_v56 = vmul.f32 %v8553_v13, %v587_v59  ;;  %v710_v61 = vmul.f32 %v8555_v7, %v587_v59  ;;  %7351 = vtanh.f32 %v1104_v44  ;;  %v6355_v59 = vor.u32 %v7065_v46, %v6352_v48 }
  0xb6   : > { %7292 = vset.pattern.permute.xlu1 %v8402_v1  ;;  %v778_v29 = vadd.f32 %v714_v54, %v516_v52 }
  0xb7   : > { %v773_v62 = vadd.f32 %v709_v56, %v511_v55  ;;  %v774_v5 = vadd.f32 %v710_v61, %v512_v57  ;;  %630 = vperm.xlu1 %7292, %v317_v40   ;;  %7293 = vset.pattern.permute.xlu2 %v8402_v1  ;;  %v6350_v55 = vld [vmem:[#allocation3 + $0x1f0] sm:$0xf]  ;;  %v7066_v57 = vld [vmem:[#allocation3 + $0x1f4] sm:$0xf0] }
  0xb8   : > { %634 = vperm.xlu2 %7293, %v8606_v30   ;;  %v8671_v6 = vpop.permute.xlu2 %376  ;;  %2372 = vmatpush.bf16.msrb.mxu3 %v6355_v59  ;;  %v6351_v61 = vor.u32 %v7066_v57, %v6350_v55 }
  0xb9   : > { %v1035_v14 = vadd.f32 %v971_v60, %v773_v62  ;;  %v1036_v16 = vadd.f32 %v972_v63, %v774_v5  ;;  %v6287_v60 = vor.u32 %v7050_v41, %v6286_v49  ;;  %v777_v63 = vadd.f32 %v713_v53, %v515_v51  ;;  %v8708_v62 = vld [vmem:[%s8470_s15 + $0xb0] sm:$0xff] }
  0xba   : > { %v7350_v21 = vpop.eup %7349  ;;  %v853_v32 = vpop.permute.xlu0 %852  ;;  %2194 = vmatpush.bf16.msrb.mxu1 %v6351_v61  ;;  %916 = vperm.xlu0 %7305, %v8708_v62   ;;  %v517_v48 = vmul.f32 %v8557_v8, %v8671_v6  ;;  %v518_v49 = vmul.f32 %v8559_v9, %v8671_v6  ;;  %v6280_v61 = vld [vmem:[#allocation3 + $0x168] sm:$0xf0] }
  0xbb   : > { %v1105_v17 = vadd.f32 %v8580_v26, %v1035_v14  ;;  %v1106_v18 = vadd.f32 %v8582_v28, %v1036_v16  ;;  %v7352_v23 = vpop.eup %7351  ;;  %v973_v37 = vmul.f32 %v8561_v15, %v853_v32  ;;  %2105 = vmatpush.bf16.msrb.mxu0 %v6287_v60 }
  0xbd   : > { %7353 = vtanh.f32 %v1105_v17  ;;  %v367_v20 = vpop.permute.xlu1 %366 }
  0xbe   : > { %7355 = vtanh.f32 %v1106_v18  ;;  %v513_v33 = vmul.f32 %v8557_v8, %v367_v20  ;;  %v514_v43 = vmul.f32 %v8559_v9, %v367_v20 }
  0xbf   : > { %7294 = vset.pattern.permute.xlu1 %v8404_v3 }
  0xc0   : > { %892 = vperm.xlu1 %7294, %v317_v40   ;;  %7295 = vset.pattern.permute.xlu2 %v8404_v3  ;;  %v974_v40 = vmul.f32 %v8563_v10, %v853_v32 }
  0xc1   : > { %896 = vperm.xlu2 %7295, %v8606_v30   ;;  %v8682_v22 = vpop.permute.xlu2 %602 }
  0xc2   : > { %7312 = vset.pattern.permute.xlu0 %v8403_v2 }
  0xc3   : > { %v7354_v24 = vpop.eup %7353  ;;  %v382_v18 = vpop.permute.xlu0 %381 }
  0xc4   : > { %v7356_v25 = vpop.eup %7355  ;;  %v1227_v27 = vpack.c.bf16 %v7354_v24, %v7350_v21  ;;  %v519_v24 = vmul.f32 %v8557_v8, %v382_v18 }
  0xc5   : > { %v1228_v31 = vpack.c.bf16 %v7356_v25, %v7352_v23  ;;  %v717_v23 = vmul.f32 %v8553_v13, %v8682_v22 }
  0xc6   : > { %v591_v34 = vpop.permute.xlu1 %590  ;;  %1471 = vmatmul.bf16.gmra.mxu0 %v1227_v27  ;;  %1649 = vmatmul.bf16.gmra.mxu2 %v1227_v27 }
  0xc7   : > { %v711_v30 = vmul.f32 %v8553_v13, %v591_v34  ;;  %v712_v35 = vmul.f32 %v8555_v7, %v591_v34  ;;  %1560 = vmatmul.bf16.gmra.mxu1 %v1228_v31  ;;  %1738 = vmatmul.bf16.gmra.mxu3 %v1228_v31  ;;  %v781_v31 = vadd.f32 %v717_v23, %v519_v24 }
  0xc8   : > { %7296 = vset.pattern.permute.xlu1 %v8403_v2 }
  0xc9   : > { %v775_v38 = vadd.f32 %v711_v30, %v513_v33  ;;  %v776_v39 = vadd.f32 %v712_v35, %v514_v43  ;;  %431 = vperm.xlu1 %7296, %v8643_v36   ;;  %7297 = vset.pattern.permute.xlu2 %v8402_v1 }
  0xca   : > { %638 = vperm.xlu2 %7297, %v8623_v11   ;;  %v865_v50 = vpop.permute.xlu2 %864 }
  0xcb   : > { %v1037_v58 = vadd.f32 %v973_v37, %v775_v38  ;;  %v1038_v56 = vadd.f32 %v974_v40, %v776_v39  ;;  %v979_v32 = vmul.f32 %v8561_v15, %v865_v50  ;;  %v980_v30 = vmul.f32 %v8563_v10, %v865_v50  ;;  %v8735_v35 = vpop.permute.xlu0 %386 }
  0xcd   : > { %v1107_v5 = vadd.f32 %v8580_v26, %v1037_v58  ;;  %v1108_v14 = vadd.f32 %v8582_v28, %v1038_v56  ;;  %v1043_v38 = vadd.f32 %v979_v32, %v781_v31  ;;  %v7047_v56 = vld [vmem:[#allocation3 + $0x164] sm:$0xf]  ;;  %v521_v31 = vmul.f32 %v8557_v8, %v8735_v35 }
  0xce   : > { %v522_v32 = vmul.f32 %v8559_v9, %v8735_v35 }
  0xcf   : > { %v857_v4 = vpop.permute.xlu1 %856  ;;  %7357 = vtanh.f32 %v1107_v5  ;;  %v1113_v41 = vadd.f32 %v8580_v26, %v1043_v38  ;;  %v6342_v38 = vld [vmem:[#allocation3 + $0x1e0] sm:$0xf] }
  0xd0   : > { %v975_v47 = vmul.f32 %v8561_v15, %v857_v4  ;;  %v976_v44 = vmul.f32 %v8563_v10, %v857_v4  ;;  %7359 = vtanh.f32 %v1108_v14  ;;  %v6283_v4 = vor.u32 %v7047_v56, %v6280_v61 }
  0xd1   : > { %7299 = vset.pattern.permute.xlu1 %v8404_v3 }
  0xd2   : > { %v1039_v16 = vadd.f32 %v975_v47, %v777_v63  ;;  %v1040_v17 = vadd.f32 %v976_v44, %v778_v29  ;;  %900 = vperm.xlu1 %7299, %v8623_v11   ;;  %7300 = vset.pattern.permute.xlu2 %v8404_v3  ;;  %v718_v11 = vmul.f32 %v8555_v7, %v8682_v22  ;;  %v7063_v63 = vld [vmem:[#allocation3 + $0x1e4] sm:$0xf] }
  0xd3   : > { %904 = vperm.xlu2 %7300, %v8643_v36   ;;  %v8724_v25 = vpop.permute.xlu2 %606  ;;  %v520_v36 = vmul.f32 %v8559_v9, %v382_v18  ;;  %2284 = vmatpush.bf16.msrb.mxu2 %v6283_v4  ;;  %v8764_v18 = vld [vmem:[%s8470_s15 + $0xc8] sm:$0xff] }
  0xd4   : > { %v1109_v20 = vadd.f32 %v8580_v26, %v1039_v16  ;;  %v1110_v21 = vadd.f32 %v8582_v28, %v1040_v17  ;;  %v611_v60 = vpop.permute.xlu0 %610  ;;  %v8761_v17 = vld [vmem:[%s8470_s15 + $0xb8] sm:$0xff]  ;;  %461 = vperm.xlu0 %7312, %v8764_v18  }
  0xd5   : > { %v7358_v33 = vpop.eup %7357  ;;  %v782_v43 = vadd.f32 %v718_v11, %v520_v36  ;;  %v722_v47 = vmul.f32 %v8555_v7, %v611_v60 }
  0xd6   : > { %7361 = vtanh.f32 %v1109_v20  ;;  %v7360_v34 = vpop.eup %7359 }
  0xd7   : > { %7363 = vtanh.f32 %v1110_v21  ;;  %v1044_v46 = vadd.f32 %v980_v30, %v782_v43 }
  0xd8   : > { %v599_v27 = vpop.permute.xlu1 %598  ;;  %7365 = vtanh.f32 %v1113_v41 }
  0xd9   : > { %v715_v40 = vmul.f32 %v8553_v13, %v599_v27  ;;  %v716_v42 = vmul.f32 %v8555_v7, %v599_v27  ;;  %v1114_v55 = vadd.f32 %v8582_v28, %v1044_v46 }
  0xda   : > { %7301 = vset.pattern.permute.xlu1 %v8403_v2 }
  0xdb   : > { %436 = vperm.xlu1 %7301, %v8676_v19   ;;  %7302 = vset.pattern.permute.xlu2 %v8403_v2  ;;  %v779_v52 = vadd.f32 %v715_v40, %v517_v48  ;;  %v780_v53 = vadd.f32 %v716_v42, %v518_v49  ;;  %7367 = vtanh.f32 %v1114_v55  ;;  %v8782_v48 = vld [vmem:[%s8470_s15 + $0xd0] sm:$0xff] }
  0xdc   : > { %v7362_v22 = vpop.eup %7361  ;;  %441 = vperm.xlu2 %7302, %v8690_v0   ;;  %v873_v12 = vpop.permute.xlu2 %872  ;;  %466 = vperm.xlu0 %7312, %v8782_v48  }
  0xdd   : > { %v7364_v37 = vpop.eup %7363  ;;  %v1229_v39 = vpack.c.bf16 %v7362_v22, %v7358_v33  ;;  %v983_v21 = vmul.f32 %v8561_v15, %v873_v12  ;;  %v984_v36 = vmul.f32 %v8563_v10, %v873_v12  ;;  %v719_v33 = vmul.f32 %v8553_v13, %v8724_v25  ;;  %v6278_v22 = vld [vmem:[#allocation3 + $0x160] sm:$0xf] }
  0xde   : > { %v1230_v45 = vpack.c.bf16 %v7364_v37, %v7360_v34  ;;  %v7366_v20 = vpop.eup %7365  ;;  %v720_v34 = vmul.f32 %v8555_v7, %v8724_v25  ;;  %v7048_v37 = vld [vmem:[#allocation3 + $0x164] sm:$0xf0] }
  0xdf   : > { %1476 = vmatmul.bf16.gmra.mxu0 %v1229_v39  ;;  %1654 = vmatmul.bf16.gmra.mxu2 %v1229_v39  ;;  %v6279_v42 = vor.u32 %v7048_v37, %v6278_v22  ;;  %v783_v25 = vadd.f32 %v719_v33, %v521_v31 }
  0xe0   : > { %1565 = vmatmul.bf16.gmra.mxu1 %v1230_v45  ;;  %1743 = vmatmul.bf16.gmra.mxu3 %v1230_v45  ;;  %v7064_v45 = vld [vmem:[#allocation3 + $0x1e4] sm:$0xf0]  ;;  %v784_v49 = vadd.f32 %v720_v34, %v522_v32 }
  0xe1   : > { %v861_v51 = vpop.permute.xlu1 %860  ;;  %v7368_v23 = vpop.eup %7367  ;;  %v6343_v12 = vor.u32 %v7064_v45, %v6342_v38  ;;  %2106 = vmatpush.bf16.msrb.mxu0 %v6279_v42  ;;  %v7061_v42 = vld [vmem:[#allocation3 + $0x1d4] sm:$0xf] }
  0xe2   : > { %v977_v54 = vmul.f32 %v8561_v15, %v861_v51  ;;  %v978_v50 = vmul.f32 %v8563_v10, %v861_v51 }
  0xe3   : > { %7303 = vset.pattern.permute.xlu1 %v8402_v1  ;;  %2195 = vmatpush.bf16.msrb.mxu1 %v6343_v12 }
  0xe4   : > { %v1041_v57 = vadd.f32 %v977_v54, %v779_v52  ;;  %v1042_v58 = vadd.f32 %v978_v50, %v780_v53  ;;  %650 = vperm.xlu1 %7303, %v8690_v0   ;;  %7304 = vset.pattern.permute.xlu2 %v8404_v3  ;;  %v6344_v0 = vld [vmem:[#allocation3 + $0x1e8] sm:$0xf0] }
  0xe5   : > { %908 = vperm.xlu2 %7304, %v8676_v19   ;;  %v8754_v29 = vpop.permute.xlu2 %401  ;;  %v6347_v5 = vor.u32 %v7063_v63, %v6344_v0  ;;  %v721_v19 = vmul.f32 %v8553_v13, %v611_v60  ;;  %7319 = vset.pattern.permute.xlu0 %v8402_v1 }
  0xe6   : > { %v1111_v6 = vadd.f32 %v8580_v26, %v1041_v57  ;;  %v1112_v59 = vadd.f32 %v8582_v28, %v1042_v58  ;;  %v528_v31 = vmul.f32 %v8559_v9, %v8754_v29 }
  0xe7   : > { %2373 = vmatpush.bf16.msrb.mxu3 %v6347_v5 }
  0xe8   : > { %7369 = vtanh.f32 %v1111_v6  ;;  %v615_v6 = vpop.permute.xlu0 %614 }
  0xe9   : > { %7371 = vtanh.f32 %v1112_v59  ;;  %v723_v56 = vmul.f32 %v8553_v13, %v615_v6  ;;  %v724_v4 = vmul.f32 %v8555_v7, %v615_v6 }
  0xea   : > { %v392_v44 = vpop.permute.xlu1 %391 }
  0xeb   : > { %v523_v14 = vmul.f32 %v8557_v8, %v392_v44  ;;  %v524_v16 = vmul.f32 %v8559_v9, %v392_v44 }
  0xec   : > { %7306 = vset.pattern.permute.xlu1 %v8403_v2 }
  0xed   : > { %v785_v24 = vadd.f32 %v721_v19, %v523_v14  ;;  %v786_v11 = vadd.f32 %v722_v47, %v524_v16  ;;  %446 = vperm.xlu1 %7306, %v8708_v62   ;;  %7307 = vset.pattern.permute.xlu2 %v8403_v2  ;;  %v325_v19 = vld [vmem:[%s8470_s15 + $0xc0] sm:$0xff] }
  0xee   : > { %v7370_v27 = vpop.eup %7369  ;;  %451 = vperm.xlu2 %7307, %v8761_v17   ;;  %v877_v35 = vpop.permute.xlu2 %876 }
  0xef   : > { %v7372_v43 = vpop.eup %7371  ;;  %v1231_v30 = vpack.c.bf16 %v7366_v20, %v7370_v27  ;;  %v1047_v39 = vadd.f32 %v983_v21, %v785_v24  ;;  %v1048_v46 = vadd.f32 %v984_v36, %v786_v11  ;;  %v985_v14 = vmul.f32 %v8561_v15, %v877_v35 }
  0xf0   : > { %v1232_v40 = vpack.c.bf16 %v7368_v23, %v7372_v43  ;;  %v986_v21 = vmul.f32 %v8563_v10, %v877_v35  ;;  %v881_v11 = vpop.permute.xlu0 %880  ;;  %v527_v27 = vmul.f32 %v8557_v8, %v8754_v29  ;;  %v7045_v29 = vld [vmem:[#allocation3 + $0x154] sm:$0xf]  ;;  %v6336_v35 = vld [vmem:[#allocation3 + $0x1d8] sm:$0xf0] }
  0xf1   : > { %1481 = vmatmul.bf16.gmra.mxu0 %v1231_v30  ;;  %1659 = vmatmul.bf16.gmra.mxu2 %v1231_v30  ;;  %v1117_v51 = vadd.f32 %v8580_v26, %v1047_v39  ;;  %v1118_v54 = vadd.f32 %v8582_v28, %v1048_v46  ;;  %v987_v30 = vmul.f32 %v8561_v15, %v881_v11 }
  0xf2   : > { %1570 = vmatmul.bf16.gmra.mxu1 %v1232_v40  ;;  %1748 = vmatmul.bf16.gmra.mxu3 %v1232_v40  ;;  %v988_v22 = vmul.f32 %v8563_v10, %v881_v11  ;;  %v6272_v40 = vld [vmem:[#allocation3 + $0x158] sm:$0xf0] }
  0xf3   : > { %v869_v41 = vpop.permute.xlu1 %868  ;;  %7373 = vtanh.f32 %v1117_v51  ;;  %v6275_v46 = vor.u32 %v7045_v29, %v6272_v40 }
  0xf4   : > { %v981_v52 = vmul.f32 %v8561_v15, %v869_v41  ;;  %v982_v53 = vmul.f32 %v8563_v10, %v869_v41  ;;  %7375 = vtanh.f32 %v1118_v54  ;;  %v6334_v54 = vld [vmem:[#allocation3 + $0x1d0] sm:$0xf] }
  0xf5   : > { %7308 = vset.pattern.permute.xlu1 %v8402_v1  ;;  %2285 = vmatpush.bf16.msrb.mxu2 %v6275_v46 }
  0xf6   : > { %v1045_v50 = vadd.f32 %v981_v52, %v783_v25  ;;  %v1046_v55 = vadd.f32 %v982_v53, %v784_v49  ;;  %654 = vperm.xlu1 %7308, %v8708_v62   ;;  %7309 = vset.pattern.permute.xlu2 %v8402_v1  ;;  %v8800_v62 = vld [vmem:[%s8470_s15 + $0xd8] sm:$0xff]  ;;  %v6339_v49 = vor.u32 %v7061_v42, %v6336_v35  ;;  %v6270_v52 = vld [vmem:[#allocation3 + $0x150] sm:$0xf] }
  0xf7   : > { %658 = vperm.xlu2 %7309, %v8761_v17   ;;  %v8795_v59 = vpop.permute.xlu2 %411  ;;  %674 = vperm.xlu0 %7319, %v8800_v62   ;;  %v7046_v53 = vld [vmem:[#allocation3 + $0x154] sm:$0xf0]  ;;  %v8868_v42 = vld [vmem:[%s8470_s15 + $0xf0] sm:$0xff] }
  0xf8   : > { %v1115_v57 = vadd.f32 %v8580_v26, %v1045_v50  ;;  %v1116_v58 = vadd.f32 %v8582_v28, %v1046_v55  ;;  %2374 = vmatpush.bf16.msrb.mxu3 %v6339_v49  ;;  %v6271_v55 = vor.u32 %v7046_v53, %v6270_v52 }
  0xf9   : > { %v7374_v0 = vpop.eup %7373 }
  0xfa   : > { %7377 = vtanh.f32 %v1115_v57  ;;  %v7376_v5 = vpop.eup %7375  ;;  %v7062_v57 = vld [vmem:[#allocation3 + $0x1d4] sm:$0xf0]  ;;  %2107 = vmatpush.bf16.msrb.mxu0 %v6271_v55 }
  0xfb   : > { %7379 = vtanh.f32 %v1116_v58  ;;  %v8832_v58 = vld [vmem:[%s8470_s15 + $0xe0] sm:$0xff] }
  0xfc   : > { %v397_v60 = vpop.permute.xlu1 %396 }
  0xfd   : > { %v525_v61 = vmul.f32 %v8557_v8, %v397_v60  ;;  %v526_v63 = vmul.f32 %v8559_v9, %v397_v60  ;;  %v6335_v60 = vor.u32 %v7062_v57, %v6334_v54 }
  0xfe   : > { %7310 = vset.pattern.permute.xlu1 %v8404_v3 }
  0xff   : > { %920 = vperm.xlu1 %7310, %v8761_v17   ;;  %7311 = vset.pattern.permute.xlu2 %v8403_v2  ;;  %v787_v44 = vadd.f32 %v723_v56, %v525_v61  ;;  %v788_v20 = vadd.f32 %v724_v4, %v526_v63 }
 0x100   : > { %v7378_v47 = vpop.eup %7377  ;;  %456 = vperm.xlu2 %7311, %v325_v19   ;;  %v8812_v36 = vpop.permute.xlu2 %626  ;;  %678 = vperm.xlu0 %7319, %v8832_v58  }
 0x101   : > { %v7380_v16 = vpop.eup %7379  ;;  %v1233_v23 = vpack.c.bf16 %v7374_v0, %v7378_v47  ;;  %v1049_v17 = vadd.f32 %v985_v14, %v787_v44  ;;  %v1050_v32 = vadd.f32 %v986_v21, %v788_v20  ;;  %2196 = vmatpush.bf16.msrb.mxu1 %v6335_v60  ;;  %v885_v47 = vpop.permute.xlu0 %884  ;;  %v8844_v21 = vld [vmem:[%s8470_s15 + $0xe8] sm:$0xff] }
 0x102   : > { %v1234_v24 = vpack.c.bf16 %v7376_v5, %v7380_v16  ;;  %v6264_v60 = vld [vmem:[#allocation3 + $0x148] sm:$0xf0] }
 0x103   : > { %1486 = vmatmul.bf16.gmra.mxu0 %v1233_v23  ;;  %1664 = vmatmul.bf16.gmra.mxu2 %v1233_v23  ;;  %v1119_v37 = vadd.f32 %v8580_v26, %v1049_v17  ;;  %v1120_v45 = vadd.f32 %v8582_v28, %v1050_v32  ;;  %v989_v23 = vmul.f32 %v8561_v15, %v885_v47 }
 0x104   : > { %1575 = vmatmul.bf16.gmra.mxu1 %v1234_v24  ;;  %1753 = vmatmul.bf16.gmra.mxu3 %v1234_v24  ;;  %v1287_v24 = vld [vmem:[%s10638_s4] sm:$0x3]  ;;  %v729_v32 = vmul.f32 %v8553_v13, %v8812_v36 }
 0x105   : > { %v619_v33 = vpop.permute.xlu1 %618  ;;  %7381 = vtanh.f32 %v1119_v37  ;;  %v8878_v49 = vperm.slane %v1287_v24, 1 }
 0x106   : > { %v725_v34 = vmul.f32 %v8553_v13, %v619_v33  ;;  %v726_v43 = vmul.f32 %v8555_v7, %v619_v33  ;;  %7383 = vtanh.f32 %v1120_v45  ;;  %v8860_v33 = vperm.slane %v1287_v24, 0 }
 0x107   : > { %7313 = vset.pattern.permute.xlu1 %v8402_v1 }
 0x108   : > { %v789_v38 = vadd.f32 %v725_v34, %v527_v27  ;;  %v790_v39 = vadd.f32 %v726_v43, %v528_v31  ;;  %662 = vperm.xlu1 %7313, %v325_v19   ;;  %7314 = vset.pattern.permute.xlu2 %v8402_v1  ;;  %v990_v27 = vmul.f32 %v8563_v10, %v885_v47 }
 0x109   : > { %666 = vperm.xlu2 %7314, %v8764_v18   ;;  %v8829_v50 = vpop.permute.xlu2 %416  ;;  %7326 = vset.pattern.permute.xlu0 %v8404_v3  ;;  %v531_v31 = vmul.f32 %v8557_v8, %v8795_v59  ;;  %v532_v34 = vmul.f32 %v8559_v9, %v8795_v59  ;;  %v730_v43 = vmul.f32 %v8555_v7, %v8812_v36  ;;  %v422_v52 = vpop.permute.xlu0 %421 }
 0x10a   : > { %v1051_v12 = vadd.f32 %v987_v30, %v789_v38  ;;  %v1052_v25 = vadd.f32 %v988_v22, %v790_v39  ;;  %944 = vperm.xlu0 %7326, %v8844_v21   ;;  %v535_v57 = vmul.f32 %v8557_v8, %v422_v52  ;;  %v536_v47 = vmul.f32 %v8559_v9, %v422_v52 }
 0x10b   : > { %v7382_v56 = vpop.eup %7381  ;;  %v793_v38 = vadd.f32 %v729_v32, %v531_v31  ;;  %v794_v45 = vadd.f32 %v730_v43, %v532_v34  ;;  %v6262_v31 = vld [vmem:[#allocation3 + $0x140] sm:$0xf]  ;;  %v7044_v32 = vld [vmem:[#allocation3 + $0x144] sm:$0xf0]  ;;  %v534_v52 = vmul.f32 %v8559_v9, %v8829_v50 }
 0x10c   : > { %v1121_v41 = vadd.f32 %v8580_v26, %v1051_v12  ;;  %v1122_v51 = vadd.f32 %v8582_v28, %v1052_v25  ;;  %v7384_v61 = vpop.eup %7383 }
 0x10e   : > { %7385 = vtanh.f32 %v1121_v41  ;;  %v407_v6 = vpop.permute.xlu1 %406 }
 0x10f   : > { %7387 = vtanh.f32 %v1122_v51  ;;  %v529_v44 = vmul.f32 %v8557_v8, %v407_v6  ;;  %v530_v16 = vmul.f32 %v8559_v9, %v407_v6  ;;  %v7043_v6 = vld [vmem:[#allocation3 + $0x144] sm:$0xf] }
 0x110   : > { %7315 = vset.pattern.permute.xlu1 %v8404_v3 }
 0x111   : > { %924 = vperm.xlu1 %7315, %v325_v19   ;;  %7316 = vset.pattern.permute.xlu2 %v8404_v3 }
 0x112   : > { %928 = vperm.xlu2 %7316, %v8764_v18   ;;  %v635_v19 = vpop.permute.xlu2 %634  ;;  %948 = vperm.xlu0 %7326, %v8868_v42  }
 0x114   : > { %v7386_v63 = vpop.eup %7385 }
 0x115   : > { %v7388_v4 = vpop.eup %7387  ;;  %v1235_v0 = vpack.c.bf16 %v7386_v63, %v7382_v56  ;;  %v733_v56 = vmul.f32 %v8553_v13, %v635_v19  ;;  %v6267_v63 = vor.u32 %v7043_v6, %v6264_v60 }
 0x116   : > { %v1236_v5 = vpack.c.bf16 %v7388_v4, %v7384_v61 }
 0x117   : > { %v623_v14 = vpop.permute.xlu1 %622  ;;  %1491 = vmatmul.bf16.gmra.mxu0 %v1235_v0  ;;  %1669 = vmatmul.bf16.gmra.mxu2 %v1235_v0 }
 0x118   : > { %v727_v20 = vmul.f32 %v8553_v13, %v623_v14  ;;  %v728_v18 = vmul.f32 %v8555_v7, %v623_v14  ;;  %1580 = vmatmul.bf16.gmra.mxu1 %v1236_v5  ;;  %1758 = vmatmul.bf16.gmra.mxu3 %v1236_v5  ;;  %v6328_v14 = vld [vmem:[#allocation3 + $0x1c8] sm:$0xf0] }
 0x119   : > { %7317 = vset.pattern.permute.xlu1 %v8403_v2  ;;  %2286 = vmatpush.bf16.msrb.mxu2 %v6267_v63 }
 0x11a   : > { %v791_v11 = vadd.f32 %v727_v20, %v529_v44  ;;  %v792_v17 = vadd.f32 %v728_v18, %v530_v16  ;;  %471 = vperm.xlu1 %7317, %v8800_v62   ;;  %7318 = vset.pattern.permute.xlu2 %v8402_v1  ;;  %v7059_v44 = vld [vmem:[#allocation3 + $0x1c4] sm:$0xf]  ;;  %v797_v18 = vadd.f32 %v733_v56, %v535_v57 }
 0x11b   : > { %670 = vperm.xlu2 %7318, %v8782_v48   ;;  %v897_v12 = vpop.permute.xlu2 %896  ;;  %v6331_v20 = vor.u32 %v7059_v44, %v6328_v14 }
 0x11c   : > { %v1053_v30 = vadd.f32 %v989_v23, %v791_v11  ;;  %v1054_v22 = vadd.f32 %v990_v27, %v792_v17  ;;  %v995_v23 = vmul.f32 %v8561_v15, %v897_v12  ;;  %v996_v27 = vmul.f32 %v8563_v10, %v897_v12 }
 0x11d   : > { %2375 = vmatpush.bf16.msrb.mxu3 %v6331_v20 }
 0x11e   : > { %v1123_v46 = vadd.f32 %v8580_v26, %v1053_v30  ;;  %v1124_v36 = vadd.f32 %v8582_v28, %v1054_v22  ;;  %v8905_v30 = vpop.permute.xlu0 %426  ;;  %v6263_v22 = vor.u32 %v7044_v32, %v6262_v31 }
 0x11f   : > { %v1462_v37 = vpop.f32.mrf.mxu0 }
 0x120   : > { %v1463_v39 = vadd.f32 %v1462_v37, %v8860_v33  ;;  %v1551_v29 = vpop.f32.mrf.mxu1  ;;  %v889_v40 = vpop.permute.xlu1 %888  ;;  %7389 = vtanh.f32 %v1123_v46  ;;  %v7060_v46 = vld [vmem:[#allocation3 + $0x1c4] sm:$0xf0]  ;;  %2108 = vmatpush.bf16.msrb.mxu0 %v6263_v22 }
 0x121   : > { %v991_v35 = vmul.f32 %v8561_v15, %v889_v40  ;;  %v992_v59 = vmul.f32 %v8563_v10, %v889_v40  ;;  %7391 = vtanh.f32 %v1124_v36  ;;  %v533_v36 = vmul.f32 %v8557_v8, %v8829_v50 }
 0x122   : > { %v8875_v25 = vadd.f32 %v1551_v29, %v1463_v39  ;;  %7320 = vset.pattern.permute.xlu1 %v8404_v3  ;;  %v1059_v39 = vadd.f32 %v995_v23, %v797_v18 }
 0x123   : > { %v1055_v41 = vadd.f32 %v991_v35, %v793_v38  ;;  %v1056_v51 = vadd.f32 %v992_v59, %v794_v45  ;;  %932 = vperm.xlu1 %7320, %v8782_v48   ;;  %7321 = vset.pattern.permute.xlu2 %v8404_v3  ;;  %v6326_v45 = vld [vmem:[#allocation3 + $0x1c0] sm:$0xf] }
 0x124   : > { %936 = vperm.xlu2 %7321, %v8800_v62   ;;  %v734_v62 = vmul.f32 %v8555_v7, %v635_v19  ;;  %v8898_v11 = vpop.permute.xlu2 %638  ;;  %v6327_v12 = vor.u32 %v7060_v46, %v6326_v45  ;;  %v8947_v46 = vld [vmem:[%s8470_s15 + $0xf8] sm:$0xff] }
 0x125   : > { %v1125_v53 = vadd.f32 %v8580_v26, %v1055_v41  ;;  %v1126_v54 = vadd.f32 %v8582_v28, %v1056_v51  ;;  %v1640_v55 = vpop.f32.mrf.mxu2 }
 0x126   : > { %v1641_v48 = vadd.f32 %v1640_v55, %v8878_v49  ;;  %v1729_v61 = vpop.f32.mrf.mxu3  ;;  %v7390_v24 = vpop.eup %7389  ;;  %v798_v17 = vadd.f32 %v734_v62, %v536_v47  ;;  %v1129_v55 = vadd.f32 %v8580_v26, %v1059_v39  ;;  %2197 = vmatpush.bf16.msrb.mxu1 %v6327_v12  ;;  %v538_v12 = vmul.f32 %v8559_v9, %v8905_v30 }
 0x127   : > { %7393 = vtanh.f32 %v1125_v53  ;;  %v8888_v4 = vpop.f32.mrf.mxu0  ;;  %v7392_v19 = vpop.eup %7391 }
 0x128   : > { %7395 = vtanh.f32 %v1126_v54  ;;  %v8891_v0 = vadd.f32 %v1729_v61, %v1641_v48  ;;  %v8893_v5 = vpop.f32.mrf.mxu1  ;;  %v1060_v41 = vadd.f32 %v996_v27, %v798_v17  ;;  %v643_v18 = vpop.permute.xlu0 %642 }
 0x129   : > { %v631_v16 = vpop.permute.xlu1 %630  ;;  %7397 = vtanh.f32 %v1129_v55 }
 0x12a   : > { %v731_v38 = vmul.f32 %v8553_v13, %v631_v16  ;;  %v732_v35 = vmul.f32 %v8555_v7, %v631_v16  ;;  %v1130_v63 = vadd.f32 %v8582_v28, %v1060_v41  ;;  %v736_v41 = vmul.f32 %v8555_v7, %v8898_v11 }
 0x12b   : > { %7322 = vset.pattern.permute.xlu1 %v8403_v2 }
 0x12c   : > { %476 = vperm.xlu1 %7322, %v8832_v58   ;;  %7323 = vset.pattern.permute.xlu2 %v8403_v2  ;;  %v795_v54 = vadd.f32 %v731_v38, %v533_v36  ;;  %v796_v60 = vadd.f32 %v732_v35, %v534_v52  ;;  %7399 = vtanh.f32 %v1130_v63  ;;  %v735_v36 = vmul.f32 %v8553_v13, %v8898_v11 }
 0x12d   : > { %v7394_v34 = vpop.eup %7393  ;;  %v8903_v43 = vpop.f32.mrf.mxu2  ;;  %481 = vperm.xlu2 %7323, %v8844_v21  }
 0x12e   : > { %v7396_v37 = vpop.eup %7395  ;;  %v8909_v29 = vpop.f32.mrf.mxu3  ;;  %v1237_v40 = vpack.c.bf16 %v7394_v34, %v7390_v24 }
 0x12f   : > { %v1238_v59 = vpack.c.bf16 %v7396_v37, %v7392_v19  ;;  %v905_v47 = vpop.permute.xlu2 %904  ;;  %v738_v19 = vmul.f32 %v8555_v7, %v643_v18  ;;  %v7398_v32 = vpop.eup %7397 }
 0x130   : > { %v1467_v51 = vpop.f32.mrf.mxu0  ;;  %1496 = vmatmul.bf16.gmra.mxu0 %v1237_v40  ;;  %1674 = vmatmul.bf16.gmra.mxu2 %v1237_v40  ;;  %v999_v22 = vmul.f32 %v8561_v15, %v905_v47  ;;  %v1000_v45 = vmul.f32 %v8563_v10, %v905_v47 }
 0x131   : > { %v1468_v53 = vadd.f32 %v1467_v51, %v8860_v33  ;;  %1585 = vmatmul.bf16.gmra.mxu1 %v1238_v59  ;;  %1763 = vmatmul.bf16.gmra.mxu3 %v1238_v59  ;;  %v537_v59 = vmul.f32 %v8557_v8, %v8905_v30 }
 0x132   : > { %v1556_v57 = vpop.f32.mrf.mxu1  ;;  %v893_v6 = vpop.permute.xlu1 %892 }
 0x133   : > { %v8918_v56 = vadd.f32 %v1556_v57, %v1468_v53  ;;  %v993_v48 = vmul.f32 %v8561_v15, %v893_v6  ;;  %v994_v61 = vmul.f32 %v8563_v10, %v893_v6  ;;  %v7400_v38 = vpop.eup %7399  ;;  %v799_v57 = vadd.f32 %v735_v36, %v537_v59 }
 0x134   : > { %7324 = vset.pattern.permute.xlu1 %v8402_v1  ;;  %v800_v6 = vadd.f32 %v736_v41, %v538_v12 }
 0x135   : > { %v1057_v50 = vadd.f32 %v993_v48, %v795_v54  ;;  %v1058_v62 = vadd.f32 %v994_v61, %v796_v60  ;;  %682 = vperm.xlu1 %7324, %v8844_v21   ;;  %7325 = vset.pattern.permute.xlu2 %v8404_v3  ;;  %v737_v21 = vmul.f32 %v8553_v13, %v643_v18  ;;  %v7041_v18 = vld [vmem:[#allocation3 + $0x134] sm:$0xf] }
 0x136   : > { %v1645_v44 = vpop.f32.mrf.mxu2  ;;  %940 = vperm.xlu2 %7325, %v8832_v58  }
 0x137   : > { %v1127_v14 = vadd.f32 %v8580_v26, %v1057_v50  ;;  %v1128_v16 = vadd.f32 %v8582_v28, %v1058_v62  ;;  %v1646_v20 = vadd.f32 %v1645_v44, %v8878_v49  ;;  %v8942_v37 = vpop.permute.xlu2 %441 }
 0x138   : > { %v1734_v23 = vpop.f32.mrf.mxu3  ;;  %v8934_v58 = vpop.f32.mrf.mxu0 }
 0x139   : > { %7401 = vtanh.f32 %v1127_v14  ;;  %v8930_v24 = vadd.f32 %v1734_v23, %v1646_v20  ;;  %v6256_v23 = vld [vmem:[#allocation3 + $0x138] sm:$0xf0] }
 0x13a   : > { %7403 = vtanh.f32 %v1128_v16  ;;  %v8938_v34 = vpop.f32.mrf.mxu1 }
 0x13b   : > { %v432_v17 = vpop.permute.xlu1 %431 }
 0x13c   : > { %v539_v27 = vmul.f32 %v8557_v8, %v432_v17  ;;  %v540_v31 = vmul.f32 %v8559_v9, %v432_v17 }
 0x13d   : > { %7327 = vset.pattern.permute.xlu1 %v8403_v2 }
 0x13e   : > { %v801_v39 = vadd.f32 %v737_v21, %v539_v27  ;;  %v802_v40 = vadd.f32 %v738_v19, %v540_v31  ;;  %486 = vperm.xlu1 %7327, %v8868_v42   ;;  %7328 = vset.pattern.permute.xlu2 %v8403_v2  ;;  %v8959_v54 = vpop.f32.mrf.mxu2  ;;  %v6259_v21 = vor.u32 %v7041_v18, %v6256_v23  ;;  %v7057_v31 = vld [vmem:[#allocation3 + $0x1b4] sm:$0xf] }
 0x13f   : > { %v7402_v35 = vpop.eup %7401  ;;  %491 = vperm.xlu2 %7328, %v8947_v46   ;;  %v909_v20 = vpop.permute.xlu2 %908  ;;  %v544_v18 = vmul.f32 %v8559_v9, %v8942_v37 }
 0x140   : > { %v7404_v51 = vpop.eup %7403  ;;  %v1239_v52 = vpack.c.bf16 %v7398_v32, %v7402_v35  ;;  %v1063_v53 = vadd.f32 %v999_v22, %v801_v39  ;;  %v1064_v55 = vadd.f32 %v1000_v45, %v802_v40  ;;  %v8961_v30 = vpop.f32.mrf.mxu3  ;;  %v6320_v32 = vld [vmem:[#allocation3 + $0x1b8] sm:$0xf0]  ;;  %v6254_v22 = vld [vmem:[#allocation3 + $0x130] sm:$0xf]  ;;  %2287 = vmatpush.bf16.msrb.mxu2 %v6259_v21  ;;  %v7042_v39 = vld [vmem:[#allocation3 + $0x134] sm:$0xf0] }
 0x141   : > { %v1240_v2 = vpack.c.bf16 %v7400_v38, %v7404_v51  ;;  %v647_v38 = vpop.permute.xlu0 %646  ;;  %v6255_v45 = vor.u32 %v7042_v39, %v6254_v22 }
 0x142   : > { %1501 = vmatmul.bf16.gmra.mxu0 %v1239_v52  ;;  %1679 = vmatmul.bf16.gmra.mxu2 %v1239_v52  ;;  %v1133_v61 = vadd.f32 %v8580_v26, %v1063_v53  ;;  %v1134_v47 = vadd.f32 %v8582_v28, %v1064_v55  ;;  %v739_v12 = vmul.f32 %v8553_v13, %v647_v38  ;;  %v7058_v55 = vld [vmem:[#allocation3 + $0x1b4] sm:$0xf0] }
 0x143   : > { %1590 = vmatmul.bf16.gmra.mxu1 %v1240_v2  ;;  %1768 = vmatmul.bf16.gmra.mxu3 %v1240_v2  ;;  %v1472_v60 = vpop.f32.mrf.mxu0  ;;  %v740_v51 = vmul.f32 %v8555_v7, %v647_v38  ;;  %v6318_v2 = vld [vmem:[#allocation3 + $0x1b0] sm:$0xf] }
 0x144   : > { %v1473_v11 = vadd.f32 %v1472_v60, %v8860_v33  ;;  %v901_v48 = vpop.permute.xlu1 %900  ;;  %v1561_v63 = vpop.f32.mrf.mxu1  ;;  %7405 = vtanh.f32 %v1133_v61  ;;  %2109 = vmatpush.bf16.msrb.mxu0 %v6255_v45 }
 0x145   : > { %v997_v50 = vmul.f32 %v8561_v15, %v901_v48  ;;  %v998_v62 = vmul.f32 %v8563_v10, %v901_v48  ;;  %7407 = vtanh.f32 %v1134_v47  ;;  %v1001_v48 = vmul.f32 %v8561_v15, %v909_v20 }
 0x146   : > { %v8968_v44 = vadd.f32 %v1561_v63, %v1473_v11  ;;  %7329 = vset.pattern.permute.xlu1 %v8402_v1 }
 0x147   : > { %v1061_v14 = vadd.f32 %v997_v50, %v799_v57  ;;  %v1062_v16 = vadd.f32 %v998_v62, %v800_v6  ;;  %686 = vperm.xlu1 %7329, %v8868_v42   ;;  %7330 = vset.pattern.permute.xlu2 %v8402_v1  ;;  %v6323_v1 = vor.u32 %v7057_v31, %v6320_v32 }
 0x148   : > { %690 = vperm.xlu2 %7330, %v8947_v46   ;;  %v8984_v53 = vpop.permute.xlu2 %451  ;;  %v6319_v6 = vor.u32 %v7058_v55, %v6318_v2  ;;  %v1002_v50 = vmul.f32 %v8563_v10, %v909_v20 }
 0x149   : > { %v1131_v19 = vadd.f32 %v8580_v26, %v1061_v14  ;;  %v1132_v17 = vadd.f32 %v8582_v28, %v1062_v16  ;;  %v1650_v27 = vpop.f32.mrf.mxu2  ;;  %2376 = vmatpush.bf16.msrb.mxu3 %v6323_v1  ;;  %v913_v14 = vpop.permute.xlu0 %912 }
 0x14a   : > { %v1651_v42 = vadd.f32 %v1650_v27, %v8878_v49  ;;  %v1739_v40 = vpop.f32.mrf.mxu3  ;;  %v7406_v52 = vpop.eup %7405  ;;  %2198 = vmatpush.bf16.msrb.mxu1 %v6319_v6  ;;  %v1003_v27 = vmul.f32 %v8561_v15, %v913_v14  ;;  %v1004_v31 = vmul.f32 %v8563_v10, %v913_v14 }
 0x14b   : > { %7409 = vtanh.f32 %v1131_v19  ;;  %v7408_v57 = vpop.eup %7407 }
 0x14c   : > { %7411 = vtanh.f32 %v1132_v17  ;;  %v8977_v35 = vadd.f32 %v1739_v40, %v1651_v42  ;;  %v8995_v23 = vpop.f32.mrf.mxu1 }
 0x14d   : > { %v437_v59 = vpop.permute.xlu1 %436 }
 0x14e   : > { %v541_v36 = vmul.f32 %v8557_v8, %v437_v59  ;;  %v542_v41 = vmul.f32 %v8559_v9, %v437_v59 }
 0x14f   : > { %7331 = vset.pattern.permute.xlu1 %v8404_v3  ;;  %v8989_v3 = vpop.f32.mrf.mxu0 }
 0x150   : > { %952 = vperm.xlu1 %7331, %v8947_v46   ;;  %v803_v11 = vadd.f32 %v739_v12, %v541_v36  ;;  %v804_v63 = vadd.f32 %v740_v51, %v542_v41  ;;  %v543_v46 = vmul.f32 %v8557_v8, %v8942_v37 }
 0x151   : > { %v7410_v60 = vpop.eup %7409  ;;  %v659_v38 = vpop.permute.xlu2 %658 }
 0x152   : > { %v7412_v61 = vpop.eup %7411  ;;  %v1241_v62 = vpack.c.bf16 %v7406_v52, %v7410_v60  ;;  %v1065_v16 = vadd.f32 %v1001_v48, %v803_v11  ;;  %v1066_v20 = vadd.f32 %v1002_v50, %v804_v63  ;;  %v9003_v37 = vpop.f32.mrf.mxu2  ;;  %v7039_v50 = vld [vmem:[#allocation3 + $0x124] sm:$0xf] }
 0x153   : > { %v1242_v47 = vpack.c.bf16 %v7408_v57, %v7412_v61  ;;  %v9005_v45 = vpop.f32.mrf.mxu3 }
 0x154   : > { %1506 = vmatmul.bf16.gmra.mxu0 %v1241_v62  ;;  %1684 = vmatmul.bf16.gmra.mxu2 %v1241_v62  ;;  %v1135_v32 = vadd.f32 %v8580_v26, %v1065_v16  ;;  %v1136_v1 = vadd.f32 %v8582_v28, %v1066_v20  ;;  %v6248_v62 = vld [vmem:[#allocation3 + $0x128] sm:$0xf0]  ;;  %v917_v20 = vpop.permute.xlu0 %916 }
 0x155   : > { %1595 = vmatmul.bf16.gmra.mxu1 %v1242_v47  ;;  %1773 = vmatmul.bf16.gmra.mxu3 %v1242_v47 }
 0x156   : > { %v651_v21 = vpop.permute.xlu1 %650  ;;  %7413 = vtanh.f32 %v1135_v32 }
 0x157   : > { %v741_v19 = vmul.f32 %v8553_v13, %v651_v21  ;;  %v742_v17 = vmul.f32 %v8555_v7, %v651_v21  ;;  %7415 = vtanh.f32 %v1136_v1 }
 0x159   : > { %v805_v22 = vadd.f32 %v741_v19, %v543_v46  ;;  %v806_v42 = vadd.f32 %v742_v17, %v544_v18  ;;  %v6251_v46 = vor.u32 %v7039_v50, %v6248_v62 }
 0x15a   : > { %v9013_v60 = vpop.permute.xlu2 %456 }
 0x15b   : > { %v1067_v39 = vadd.f32 %v1003_v27, %v805_v22  ;;  %v1068_v40 = vadd.f32 %v1004_v31, %v806_v42  ;;  %v1005_v22 = vmul.f32 %v8561_v15, %v917_v20  ;;  %2288 = vmatpush.bf16.msrb.mxu2 %v6251_v46 }
 0x15c   : > { %v1477_v59 = vpop.f32.mrf.mxu0  ;;  %v7414_v57 = vpop.eup %7413 }
 0x15d   : > { %v1137_v12 = vadd.f32 %v8580_v26, %v1067_v39  ;;  %v1138_v36 = vadd.f32 %v8582_v28, %v1068_v40  ;;  %v1478_v41 = vadd.f32 %v1477_v59, %v8860_v33  ;;  %v1566_v51 = vpop.f32.mrf.mxu1  ;;  %v7416_v11 = vpop.eup %7415  ;;  %v1006_v39 = vmul.f32 %v8563_v10, %v917_v20  ;;  %v7055_v40 = vld [vmem:[#allocation3 + $0x1a4] sm:$0xf]  ;;  %v6312_v59 = vld [vmem:[#allocation3 + $0x1a8] sm:$0xf0] }
 0x15f   : > { %7417 = vtanh.f32 %v1137_v12  ;;  %v9010_v52 = vadd.f32 %v1566_v51, %v1478_v41  ;;  %v447_v2 = vpop.permute.xlu1 %446  ;;  %v547_v41 = vmul.f32 %v8557_v8, %v8984_v53  ;;  %v745_v51 = vmul.f32 %v8553_v13, %v659_v38 }
 0x160   : > { %7419 = vtanh.f32 %v1138_v36  ;;  %v545_v21 = vmul.f32 %v8557_v8, %v447_v2  ;;  %v546_v27 = vmul.f32 %v8559_v9, %v447_v2  ;;  %v6315_v36 = vor.u32 %v7055_v40, %v6312_v59 }
 0x162   : > { %v1655_v55 = vpop.f32.mrf.mxu2  ;;  %2377 = vmatpush.bf16.msrb.mxu3 %v6315_v36 }
 0x163   : > { %v1656_v6 = vadd.f32 %v1655_v55, %v8878_v49  ;;  %v1744_v48 = vpop.f32.mrf.mxu3  ;;  %v667_v2 = vpop.permute.xlu2 %666  ;;  %v6246_v55 = vld [vmem:[#allocation3 + $0x120] sm:$0xf] }
 0x164   : > { %v9017_v14 = vpop.f32.mrf.mxu0 }
 0x165   : > { %v7418_v61 = vpop.eup %7417  ;;  %v9015_v63 = vadd.f32 %v1744_v48, %v1656_v6  ;;  %v9020_v19 = vpop.f32.mrf.mxu1  ;;  %v6310_v6 = vld [vmem:[#allocation3 + $0x1a0] sm:$0xf]  ;;  %v746_v48 = vmul.f32 %v8555_v7, %v659_v38 }
 0x166   : > { %v7420_v47 = vpop.eup %7419  ;;  %v1243_v16 = vpack.c.bf16 %v7418_v61, %v7414_v57  ;;  %v7040_v57 = vld [vmem:[#allocation3 + $0x124] sm:$0xf0] }
 0x167   : > { %v1244_v18 = vpack.c.bf16 %v7420_v47, %v7416_v11  ;;  %v548_v11 = vmul.f32 %v8559_v9, %v8984_v53  ;;  %v6247_v47 = vor.u32 %v7040_v57, %v6246_v55 }
 0x168   : > { %v655_v17 = vpop.permute.xlu1 %654  ;;  %1511 = vmatmul.bf16.gmra.mxu0 %v1243_v16  ;;  %1689 = vmatmul.bf16.gmra.mxu2 %v1243_v16  ;;  %v7056_v16 = vld [vmem:[#allocation3 + $0x1a4] sm:$0xf0] }
 0x169   : > { %v743_v31 = vmul.f32 %v8553_v13, %v655_v17  ;;  %v744_v32 = vmul.f32 %v8555_v7, %v655_v17  ;;  %1600 = vmatmul.bf16.gmra.mxu1 %v1244_v18  ;;  %1778 = vmatmul.bf16.gmra.mxu3 %v1244_v18  ;;  %v809_v17 = vadd.f32 %v745_v51, %v547_v41 }
 0x16a   : > { %v9027_v12 = vpop.f32.mrf.mxu2  ;;  %2110 = vmatpush.bf16.msrb.mxu0 %v6247_v47  ;;  %v810_v53 = vadd.f32 %v746_v48, %v548_v11 }
 0x16b   : > { %v807_v42 = vadd.f32 %v743_v31, %v545_v21  ;;  %v808_v1 = vadd.f32 %v744_v32, %v546_v27  ;;  %v9035_v61 = vpop.f32.mrf.mxu3  ;;  %v6311_v21 = vor.u32 %v7056_v16, %v6310_v6  ;;  %v749_v6 = vmul.f32 %v8553_v13, %v667_v2 }
 0x16c   : > { %v929_v48 = vpop.permute.xlu2 %928 }
 0x16d   : > { %v1069_v50 = vadd.f32 %v1005_v22, %v807_v42  ;;  %v1070_v46 = vadd.f32 %v1006_v39, %v808_v1  ;;  %2199 = vmatpush.bf16.msrb.mxu1 %v6311_v21  ;;  %v462_v1 = vpop.permute.xlu0 %461 }
 0x16e   : > { %v1482_v62 = vpop.f32.mrf.mxu0  ;;  %v551_v11 = vmul.f32 %v8557_v8, %v462_v1  ;;  %v552_v47 = vmul.f32 %v8559_v9, %v462_v1 }
 0x16f   : > { %v1483_v18 = vadd.f32 %v1482_v62, %v8860_v33  ;;  %v1571_v20 = vpop.f32.mrf.mxu1  ;;  %v1139_v38 = vadd.f32 %v8580_v26, %v1069_v50  ;;  %v1140_v42 = vadd.f32 %v8582_v28, %v1070_v46  ;;  %v750_v62 = vmul.f32 %v8555_v7, %v667_v2 }
 0x171   : > { %v9038_v27 = vadd.f32 %v1571_v20, %v1483_v18  ;;  %v921_v31 = vpop.permute.xlu1 %920  ;;  %7421 = vtanh.f32 %v1139_v38  ;;  %v813_v18 = vadd.f32 %v749_v6, %v551_v11  ;;  %v1011_v20 = vmul.f32 %v8561_v15, %v929_v48 }
 0x172   : > { %v1007_v32 = vmul.f32 %v8561_v15, %v921_v31  ;;  %v1008_v22 = vmul.f32 %v8563_v10, %v921_v31  ;;  %7423 = vtanh.f32 %v1140_v42  ;;  %v814_v31 = vadd.f32 %v750_v62, %v552_v47 }
 0x173   : > { %v1075_v2 = vadd.f32 %v1011_v20, %v813_v18  ;;  %v549_v11 = vmul.f32 %v8557_v8, %v9013_v60 }
 0x174   : > { %v1071_v39 = vadd.f32 %v1007_v32, %v809_v17  ;;  %v1072_v40 = vadd.f32 %v1008_v22, %v810_v53  ;;  %v1660_v59 = vpop.f32.mrf.mxu2  ;;  %v1012_v53 = vmul.f32 %v8563_v10, %v929_v48  ;;  %v550_v48 = vmul.f32 %v8559_v9, %v9013_v60 }
 0x175   : > { %v1661_v36 = vadd.f32 %v1660_v59, %v8878_v49  ;;  %v1749_v55 = vpop.f32.mrf.mxu3  ;;  %v9059_v38 = vpop.permute.xlu0 %466  ;;  %v1145_v47 = vadd.f32 %v8580_v26, %v1075_v2 }
 0x176   : > { %v1141_v41 = vadd.f32 %v8580_v26, %v1071_v39  ;;  %v1142_v51 = vadd.f32 %v8582_v28, %v1072_v40  ;;  %v9051_v50 = vpop.f32.mrf.mxu0  ;;  %v671_v6 = vpop.permute.xlu2 %670 }
 0x177   : > { %v9047_v57 = vadd.f32 %v1749_v55, %v1661_v36  ;;  %v9055_v16 = vpop.f32.mrf.mxu1  ;;  %v7422_v21 = vpop.eup %7421 }
 0x178   : > { %7425 = vtanh.f32 %v1141_v41  ;;  %v7424_v17 = vpop.eup %7423 }
 0x179   : > { %10642 = vst [vmem:[#allocation6_spill] sm:$0xff] %v9047_v57  ;;  %7427 = vtanh.f32 %v1142_v51  ;;  %v1076_v51 = vadd.f32 %v1012_v53, %v814_v31 }
 0x17a   : > { %v663_v46 = vpop.permute.xlu1 %662  ;;  %7429 = vtanh.f32 %v1145_v47 }
 0x17b   : > { %v747_v1 = vmul.f32 %v8553_v13, %v663_v46  ;;  %v748_v40 = vmul.f32 %v8555_v7, %v663_v46  ;;  %v1146_v53 = vadd.f32 %v8582_v28, %v1076_v51 }
 0x17c   : > { %v9061_v22 = vpop.f32.mrf.mxu2 }
 0x17d   : > { %v9065_v59 = vpop.f32.mrf.mxu3  ;;  %v811_v20 = vadd.f32 %v747_v1, %v549_v11  ;;  %7431 = vtanh.f32 %v1146_v53  ;;  %v6240_v11 = vld [vmem:[#allocation3 + $0x118] sm:$0xf0] }
 0x17e   : > { %v7426_v32 = vpop.eup %7425 }
 0x17f   : > { %v7428_v42 = vpop.eup %7427  ;;  %v1245_v39 = vpack.c.bf16 %v7426_v32, %v7422_v21  ;;  %v812_v21 = vadd.f32 %v748_v40, %v550_v48  ;;  %v7037_v40 = vld [vmem:[#allocation3 + $0x114] sm:$0xf] }
 0x180   : > { %v1487_v36 = vpop.f32.mrf.mxu0  ;;  %v1246_v41 = vpack.c.bf16 %v7428_v42, %v7424_v17  ;;  %v7053_v48 = vld [vmem:[#allocation3 + $0x194] sm:$0xf] }
 0x181   : > { %v1488_v55 = vadd.f32 %v1487_v36, %v8860_v33  ;;  %1516 = vmatmul.bf16.gmra.mxu0 %v1245_v39  ;;  %1694 = vmatmul.bf16.gmra.mxu2 %v1245_v39  ;;  %v1576_v62 = vpop.f32.mrf.mxu1  ;;  %v675_v36 = vpop.permute.xlu0 %674 }
 0x182   : > { %1605 = vmatmul.bf16.gmra.mxu1 %v1246_v41  ;;  %1783 = vmatmul.bf16.gmra.mxu3 %v1246_v41  ;;  %v753_v51 = vmul.f32 %v8553_v13, %v675_v36  ;;  %v754_v47 = vmul.f32 %v8555_v7, %v675_v36 }
 0x183   : > { %v9073_v46 = vadd.f32 %v1576_v62, %v1488_v55  ;;  %v925_v18 = vpop.permute.xlu1 %924  ;;  %v6243_v62 = vor.u32 %v7037_v40, %v6240_v11 }
 0x184   : > { %v1009_v17 = vmul.f32 %v8561_v15, %v925_v18  ;;  %v1010_v31 = vmul.f32 %v8563_v10, %v925_v18  ;;  %v6304_v18 = vld [vmem:[#allocation3 + $0x198] sm:$0xf0] }
 0x185   : > { %10643 = vst [vmem:[#allocation7_spill] sm:$0xff] %v9073_v46  ;;  %2289 = vmatpush.bf16.msrb.mxu2 %v6243_v62  ;;  %v553_v62 = vmul.f32 %v8557_v8, %v9059_v38  ;;  %v752_v46 = vmul.f32 %v8555_v7, %v671_v6 }
 0x186   : > { %v1073_v32 = vadd.f32 %v1009_v17, %v811_v20  ;;  %v1074_v42 = vadd.f32 %v1010_v31, %v812_v21  ;;  %v1665_v39 = vpop.f32.mrf.mxu2  ;;  %v6238_v20 = vld [vmem:[#allocation3 + $0x110] sm:$0xf]  ;;  %v7038_v21 = vld [vmem:[#allocation3 + $0x114] sm:$0xf0]  ;;  %v937_v17 = vpop.permute.xlu2 %936  ;;  %v6307_v31 = vor.u32 %v7053_v48, %v6304_v18 }
 0x187   : > { %v1666_v60 = vadd.f32 %v1665_v39, %v8878_v49  ;;  %v1754_v55 = vpop.f32.mrf.mxu3  ;;  %v1016_v48 = vmul.f32 %v8563_v10, %v937_v17 }
 0x188   : > { %v1143_v2 = vadd.f32 %v8580_v26, %v1073_v32  ;;  %v1144_v41 = vadd.f32 %v8582_v28, %v1074_v42  ;;  %v6239_v32 = vor.u32 %v7038_v21, %v6238_v20  ;;  %v9085_v42 = vpop.f32.mrf.mxu0  ;;  %2378 = vmatpush.bf16.msrb.mxu3 %v6307_v31  ;;  %v554_v21 = vmul.f32 %v8559_v9, %v9059_v38 }
 0x189   : > { %v9081_v1 = vadd.f32 %v1754_v55, %v1666_v60  ;;  %10645 = vst [vmem:[#allocation9_spill] sm:$0xff] %v9085_v42  ;;  %v9089_v55 = vpop.f32.mrf.mxu1  ;;  %v751_v31 = vmul.f32 %v8553_v13, %v671_v6 }
 0x18a   : > { %7433 = vtanh.f32 %v1143_v2  ;;  %2111 = vmatpush.bf16.msrb.mxu0 %v6239_v32  ;;  %v7430_v2 = vpop.eup %7429  ;;  %10646 = vst [vmem:[#allocation10_spill] sm:$0xff] %v9089_v55  ;;  %v816_v6 = vadd.f32 %v752_v46, %v554_v21  ;;  %v679_v46 = vpop.permute.xlu0 %678 }
 0x18b   : > { %10644 = vst [vmem:[#allocation8_spill] sm:$0xff] %v9081_v1  ;;  %7435 = vtanh.f32 %v1144_v41  ;;  %v1015_v41 = vmul.f32 %v8561_v15, %v937_v17  ;;  %v7432_v40 = vpop.eup %7431  ;;  %v7054_v1 = vld [vmem:[#allocation3 + $0x194] sm:$0xf0]  ;;  %v815_v57 = vadd.f32 %v751_v31, %v553_v62 }
 0x18c   : > { %v472_v53 = vpop.permute.xlu1 %471 }
 0x18d   : > { %v555_v39 = vmul.f32 %v8557_v8, %v472_v53  ;;  %v556_v60 = vmul.f32 %v8559_v9, %v472_v53  ;;  %v6302_v53 = vld [vmem:[#allocation3 + $0x190] sm:$0xf] }
 0x18e   : > { %v6303_v17 = vor.u32 %v7054_v1, %v6302_v53 }
 0x18f   : > { %v817_v36 = vadd.f32 %v753_v51, %v555_v39  ;;  %v818_v11 = vadd.f32 %v754_v47, %v556_v60  ;;  %v9099_v51 = vpop.f32.mrf.mxu2  ;;  %v482_v60 = vpop.permute.xlu2 %481 }
 0x190   : > { %v7434_v18 = vpop.eup %7433  ;;  %v9101_v42 = vpop.f32.mrf.mxu3  ;;  %2200 = vmatpush.bf16.msrb.mxu1 %v6303_v17  ;;  %v755_v17 = vmul.f32 %v8553_v13, %v679_v46 }
 0x191   : > { %v7436_v20 = vpop.eup %7435  ;;  %v1247_v32 = vpack.c.bf16 %v7430_v2, %v7434_v18  ;;  %v1079_v55 = vadd.f32 %v1015_v41, %v817_v36  ;;  %v1080_v39 = vadd.f32 %v1016_v48, %v818_v11  ;;  %10647 = vst [vmem:[#allocation11_spill] sm:$0xff] %v9101_v42 }
 0x192   : > { %v1248_v47 = vpack.c.bf16 %v7432_v40, %v7436_v20 }
 0x193   : > { %1521 = vmatmul.bf16.gmra.mxu0 %v1247_v32  ;;  %1699 = vmatmul.bf16.gmra.mxu2 %v1247_v32  ;;  %v1149_v41 = vadd.f32 %v8580_v26, %v1079_v55  ;;  %v1150_v11 = vadd.f32 %v8582_v28, %v1080_v39 }
 0x194   : > { %1610 = vmatmul.bf16.gmra.mxu1 %v1248_v47  ;;  %1788 = vmatmul.bf16.gmra.mxu3 %v1248_v47  ;;  %v1492_v38 = vpop.f32.mrf.mxu0 }
 0x195   : > { %v1493_v2 = vadd.f32 %v1492_v38, %v8860_v33  ;;  %v933_v18 = vpop.permute.xlu1 %932  ;;  %v1581_v36 = vpop.f32.mrf.mxu1  ;;  %7437 = vtanh.f32 %v1149_v41 }
 0x196   : > { %v1013_v1 = vmul.f32 %v8561_v15, %v933_v18  ;;  %v1014_v40 = vmul.f32 %v8563_v10, %v933_v18  ;;  %7439 = vtanh.f32 %v1150_v11  ;;  %v756_v18 = vmul.f32 %v8555_v7, %v679_v46  ;;  %v945_v46 = vpop.permute.xlu0 %944 }
 0x197   : > { %v9108_v48 = vadd.f32 %v1581_v36, %v1493_v2 }
 0x198   : > { %v1077_v20 = vadd.f32 %v1013_v1, %v815_v57  ;;  %v1078_v32 = vadd.f32 %v1014_v40, %v816_v6  ;;  %v941_v57 = vpop.permute.xlu2 %940 }
 0x199   : > { %10648 = vst [vmem:[#allocation12_spill] sm:$0xff] %v9108_v48  ;;  %v1017_v1 = vmul.f32 %v8561_v15, %v941_v57 }
 0x19a   : > { %v1147_v62 = vadd.f32 %v8580_v26, %v1077_v20  ;;  %v1148_v31 = vadd.f32 %v8582_v28, %v1078_v32  ;;  %v1670_v53 = vpop.f32.mrf.mxu2  ;;  %v1018_v32 = vmul.f32 %v8563_v10, %v941_v57 }
 0x19b   : > { %v1671_v55 = vadd.f32 %v1670_v53, %v8878_v49  ;;  %v1759_v21 = vpop.f32.mrf.mxu3  ;;  %v7438_v6 = vpop.eup %7437  ;;  %v7035_v53 = vld [vmem:[#allocation3 + $0x104] sm:$0xf] }
 0x19c   : > { %7441 = vtanh.f32 %v1147_v62  ;;  %v7440_v41 = vpop.eup %7439 }
 0x19d   : > { %7443 = vtanh.f32 %v1148_v31  ;;  %v9113_v47 = vadd.f32 %v1759_v21, %v1671_v55  ;;  %v6232_v55 = vld [vmem:[#allocation3 + $0x108] sm:$0xf0]  ;;  %v9121_v21 = vpop.f32.mrf.mxu0 }
 0x19e   : > { %v477_v39 = vpop.permute.xlu1 %476  ;;  %10650 = vst [vmem:[#allocation14_spill] sm:$0xff] %v9121_v21  ;;  %v6294_v21 = vld [vmem:[#allocation3 + $0x180] sm:$0xf] }
 0x19f   : > { %10649 = vst [vmem:[#allocation13_spill] sm:$0xff] %v9113_v47  ;;  %v557_v38 = vmul.f32 %v8557_v8, %v477_v39  ;;  %v558_v2 = vmul.f32 %v8559_v9, %v477_v39  ;;  %v559_v39 = vmul.f32 %v8557_v8, %v482_v60 }
 0x1a1   : > { %v819_v36 = vadd.f32 %v755_v17, %v557_v38  ;;  %v820_v20 = vadd.f32 %v756_v18, %v558_v2  ;;  %v6235_v17 = vor.u32 %v7035_v53, %v6232_v55  ;;  %v560_v38 = vmul.f32 %v8559_v9, %v482_v60  ;;  %v9125_v2 = vpop.f32.mrf.mxu1  ;;  %v6296_v53 = vld [vmem:[#allocation3 + $0x188] sm:$0xf0] }
 0x1a2   : > { %v7442_v40 = vpop.eup %7441  ;;  %10651 = vst [vmem:[#allocation15_spill] sm:$0xff] %v9125_v2  ;;  %v9133_v55 = vpop.f32.mrf.mxu2  ;;  %v6230_v2 = vld [vmem:[#allocation3 + $0x100] sm:$0xf] }
 0x1a3   : > { %v7444_v11 = vpop.eup %7443  ;;  %v1249_v62 = vpack.c.bf16 %v7438_v6, %v7442_v40  ;;  %v1081_v47 = vadd.f32 %v1017_v1, %v819_v36  ;;  %v1082_v57 = vadd.f32 %v1018_v32, %v820_v20  ;;  %v1019_v36 = vmul.f32 %v8561_v15, %v945_v46  ;;  %2290 = vmatpush.bf16.msrb.mxu2 %v6235_v17  ;;  %v9135_v42 = vpop.f32.mrf.mxu3  ;;  %v7052_v17 = vld [vmem:[#allocation3 + $0x184] sm:$0xf0] }
 0x1a4   : > { %v1250_v31 = vpack.c.bf16 %v7440_v41, %v7444_v11  ;;  %v1020_v1 = vmul.f32 %v8563_v10, %v945_v46 }
 0x1a5   : > { %1526 = vmatmul.bf16.gmra.mxu0 %v1249_v62  ;;  %1704 = vmatmul.bf16.gmra.mxu2 %v1249_v62  ;;  %v1151_v40 = vadd.f32 %v8580_v26, %v1081_v47  ;;  %v1152_v60 = vadd.f32 %v8582_v28, %v1082_v57 }
 0x1a6   : > { %1615 = vmatmul.bf16.gmra.mxu1 %v1250_v31  ;;  %1793 = vmatmul.bf16.gmra.mxu3 %v1250_v31  ;;  %v7051_v31 = vld [vmem:[#allocation3 + $0x184] sm:$0xf] }
 0x1a7   : > { %v683_v18 = vpop.permute.xlu1 %682  ;;  %v6299_v20 = vor.u32 %v7051_v31, %v6296_v53  ;;  %7445 = vtanh.f32 %v1151_v40  ;;  %v492_v40 = vpop.permute.xlu2 %491 }
 0x1a8   : > { %v757_v6 = vmul.f32 %v8553_v13, %v683_v18  ;;  %v758_v41 = vmul.f32 %v8555_v7, %v683_v18  ;;  %v7036_v18 = vld [vmem:[#allocation3 + $0x104] sm:$0xf0]  ;;  %7447 = vtanh.f32 %v1152_v60 }
 0x1a9   : > { %2379 = vmatpush.bf16.msrb.mxu3 %v6299_v20  ;;  %v6231_v47 = vor.u32 %v7036_v18, %v6230_v2 }
 0x1aa   : > { %v821_v11 = vadd.f32 %v757_v6, %v559_v39  ;;  %v822_v62 = vadd.f32 %v758_v41, %v560_v38  ;;  %v6295_v6 = vor.u32 %v7052_v17, %v6294_v21 }
 0x1ab   : > { %2112 = vmatpush.bf16.msrb.mxu0 %v6231_v47 }
 0x1ac   : > { %v1083_v32 = vadd.f32 %v1019_v36, %v821_v11  ;;  %v1084_v48 = vadd.f32 %v1020_v1, %v822_v62  ;;  %2201 = vmatpush.bf16.msrb.mxu1 %v6295_v6 }
 0x1ad   : > { %v1497_v46 = vpop.f32.mrf.mxu0  ;;  %v7446_v11 = vpop.eup %7445 }
 0x1ae   : > { %v1153_v39 = vadd.f32 %v8580_v26, %v1083_v32  ;;  %v1154_v38 = vadd.f32 %v8582_v28, %v1084_v48  ;;  %v1498_v57 = vadd.f32 %v1497_v46, %v8860_v33  ;;  %v1586_v41 = vpop.f32.mrf.mxu1  ;;  %v7448_v31 = vpop.eup %7447 }
 0x1b0   : > { %7449 = vtanh.f32 %v1153_v39  ;;  %v9140_v36 = vadd.f32 %v1586_v41, %v1498_v57  ;;  %v487_v1 = vpop.permute.xlu1 %486  ;;  %v691_v41 = vpop.permute.xlu2 %690 }
 0x1b1   : > { %7451 = vtanh.f32 %v1154_v38  ;;  %v561_v46 = vmul.f32 %v8557_v8, %v487_v1  ;;  %v562_v39 = vmul.f32 %v8559_v9, %v487_v1  ;;  %v949_v38 = vpop.permute.xlu0 %948  ;;  %v761_v1 = vmul.f32 %v8553_v13, %v691_v41 }
 0x1b2   : > { %10652 = vst [vmem:[#allocation16_spill] sm:$0xff] %v9140_v36 }
 0x1b3   : > { %v1675_v2 = vpop.f32.mrf.mxu2 }
 0x1b4   : > { %v1676_v62 = vadd.f32 %v1675_v2, %v8878_v49  ;;  %v1764_v53 = vpop.f32.mrf.mxu3 }
 0x1b5   : > { %v9145_v60 = vpop.f32.mrf.mxu0 }
 0x1b6   : > { %v7450_v48 = vpop.eup %7449  ;;  %v9143_v20 = vadd.f32 %v1764_v53, %v1676_v62  ;;  %v9148_v47 = vpop.f32.mrf.mxu1  ;;  %v1021_v62 = vmul.f32 %v8561_v15, %v949_v38  ;;  %v563_v53 = vmul.f32 %v8557_v8, %v492_v40 }
 0x1b7   : > { %v7452_v21 = vpop.eup %7451  ;;  %v1251_v32 = vpack.c.bf16 %v7450_v48, %v7446_v11  ;;  %10654 = vst [vmem:[#allocation18_spill] sm:$0xff] %v9148_v47  ;;  %v1022_v48 = vmul.f32 %v8563_v10, %v949_v38 }
 0x1b8   : > { %10653 = vst [vmem:[#allocation17_spill] sm:$0xff] %v9143_v20  ;;  %v1252_v18 = vpack.c.bf16 %v7452_v21, %v7448_v31  ;;  %v564_v21 = vmul.f32 %v8559_v9, %v492_v40  ;;  %v7081_v40 = vld [vmem:[#allocation3 + $0x274] sm:$0xf] }
 0x1b9   : > { %v687_v17 = vpop.permute.xlu1 %686  ;;  %1531 = vmatmul.bf16.gmra.mxu0 %v1251_v32  ;;  %1709 = vmatmul.bf16.gmra.mxu2 %v1251_v32  ;;  %v762_v32 = vmul.f32 %v8555_v7, %v691_v41  ;;  %v6417_v41 = vld [vmem:[#allocation3 + $0x278] sm:$0xf0] }
 0x1ba   : > { %v759_v57 = vmul.f32 %v8553_v13, %v687_v17  ;;  %v760_v6 = vmul.f32 %v8555_v7, %v687_v17  ;;  %1620 = vmatmul.bf16.gmra.mxu1 %v1252_v18  ;;  %1798 = vmatmul.bf16.gmra.mxu3 %v1252_v18 }
 0x1bb   : > { %v9154_v31 = vpop.f32.mrf.mxu2  ;;  %v826_v47 = vadd.f32 %v762_v32, %v564_v21 }
 0x1bc   : > { %v823_v2 = vadd.f32 %v759_v57, %v561_v46  ;;  %v824_v11 = vadd.f32 %v760_v6, %v562_v39  ;;  %v9161_v20 = vpop.f32.mrf.mxu3  ;;  %v825_v6 = vadd.f32 %v761_v1, %v563_v53  ;;  %v6481_v53 = vld [vmem:[#allocation3 + $0x2f8] sm:$0xf0] }
 0x1be   : > { %v1085_v17 = vadd.f32 %v1021_v62, %v823_v2  ;;  %v1086_v46 = vadd.f32 %v1022_v48, %v824_v11  ;;  %v7097_v2 = vld [vmem:[#allocation3 + $0x2f4] sm:$0xf] }
 0x1bf   : > { %v1502_v18 = vpop.f32.mrf.mxu0 }
 0x1c0   : > { %v1503_v39 = vadd.f32 %v1502_v18, %v8860_v33  ;;  %v1591_v57 = vpop.f32.mrf.mxu1  ;;  %v1155_v38 = vadd.f32 %v8580_v26, %v1085_v17  ;;  %v1156_v7 = vadd.f32 %v8582_v28, %v1086_v46  ;;  %v6420_v18 = vor.u32 %v7081_v40, %v6417_v41  ;;  %v7082_v46 = vld [vmem:[#allocation3 + $0x274] sm:$0xf0] }
 0x1c2   : > { %v9164_v36 = vadd.f32 %v1591_v57, %v1503_v39  ;;  %v953_v8 = vpop.permute.xlu1 %952  ;;  %v6484_v39 = vor.u32 %v7097_v2, %v6481_v53  ;;  %7453 = vtanh.f32 %v1155_v38  ;;  %2935 = vmatpush.bf16.msra.mxu2 %v6420_v18  ;;  %v6479_v57 = vld [vmem:[#allocation3 + $0x2f0] sm:$0xf]  ;;  %v7098_v38 = vld [vmem:[#allocation3 + $0x2f4] sm:$0xf0]  ;;  %v1643_v2 = vadd.f32 %v8903_v43, %v8878_v49 }
 0x1c3   : > { %v1023_v13 = vmul.f32 %v8561_v15, %v953_v8  ;;  %v1024_v9 = vmul.f32 %v8563_v10, %v953_v8  ;;  %7455 = vtanh.f32 %v1156_v7  ;;  %v1465_v7 = vadd.f32 %v8888_v4, %v8860_v33 }
 0x1c4   : > { %3024 = vmatpush.bf16.msra.mxu3 %v6484_v39  ;;  %v1732_v4 = vadd.f32 %v8909_v29, %v1643_v2  ;;  %v1470_v29 = vadd.f32 %v8934_v58, %v8860_v33 }
 0x1c5   : > { %v1087_v11 = vadd.f32 %v1023_v13, %v825_v6  ;;  %v1088_v62 = vadd.f32 %v1024_v9, %v826_v47  ;;  %v1680_v48 = vpop.f32.mrf.mxu2  ;;  %v6415_v47 = vld [vmem:[#allocation3 + $0x270] sm:$0xf] }
 0x1c6   : > { %v1681_v1 = vadd.f32 %v1680_v48, %v8878_v49  ;;  %v1769_v32 = vpop.f32.mrf.mxu3  ;;  %v6416_v8 = vor.u32 %v7082_v46, %v6415_v47 }
 0x1c7   : > { %v1157_v21 = vadd.f32 %v8580_v26, %v1087_v11  ;;  %v1158_v15 = vadd.f32 %v8582_v28, %v1088_v62  ;;  %v9175_v17 = vpop.f32.mrf.mxu0  ;;  %v6480_v26 = vor.u32 %v7098_v38, %v6479_v57 }
 0x1c8   : > { %v9173_v10 = vadd.f32 %v1769_v32, %v1681_v1  ;;  %v9177_v6 = vpop.f32.mrf.mxu1  ;;  %v7454_v13 = vpop.eup %7453  ;;  %2757 = vmatpush.bf16.msra.mxu0 %v6416_v8  ;;  %v1554_v1 = vadd.f32 %v8893_v5, %v1465_v7  ;;  %v7079_v7 = vld [vmem:[#allocation3 + $0x264] sm:$0xf] }
 0x1c9   : > { %7457 = vtanh.f32 %v1157_v21  ;;  %v7456_v28 = vpop.eup %7455  ;;  %2846 = vmatpush.bf16.msra.mxu1 %v6480_v26 }
 0x1ca   : > { %7459 = vtanh.f32 %v1158_v15 }
 0x1cb   : > { %7461 = vtanh.f32 %v1554_v1  ;;  %v6473_v1 = vld [vmem:[#allocation3 + $0x2e8] sm:$0xf0] }
 0x1cc   : > { %7463 = vtanh.f32 %v1732_v4  ;;  %v6407_v4 = vld [vmem:[#allocation3 + $0x260] sm:$0xf] }
 0x1cd   : > { %v9181_v40 = vpop.f32.mrf.mxu2  ;;  %7465 = vtanh.f32 %v8875_v25 }
 0x1ce   : > { %v9185_v62 = vpop.f32.mrf.mxu3  ;;  %7467 = vtanh.f32 %v8891_v0  ;;  %v1559_v0 = vadd.f32 %v8938_v34, %v1470_v29  ;;  %v7095_v34 = vld [vmem:[#allocation3 + $0x2e4] sm:$0xf] }
 0x1cf   : > { %v7458_v9 = vpop.eup %7457 }
 0x1d0   : > { %v7460_v41 = vpop.eup %7459  ;;  %v1253_v11 = vpack.c.bf16 %v7458_v9, %v7454_v13  ;;  %v1648_v13 = vadd.f32 %v8959_v54, %v8878_v49  ;;  %7469 = vtanh.f32 %v1559_v0  ;;  %v1653_v0 = vadd.f32 %v9003_v37, %v8878_v49 }
 0x1d1   : > { %v1507_v48 = vpop.f32.mrf.mxu0  ;;  %v1254_v18 = vpack.c.bf16 %v7460_v41, %v7456_v28  ;;  %v7462_v5 = vpop.eup %7461  ;;  %v6409_v41 = vld [vmem:[#allocation3 + $0x268] sm:$0xf0] }
 0x1d2   : > { %v1508_v53 = vadd.f32 %v1507_v48, %v8860_v33  ;;  %1536 = vmatmul.bf16.gmra.mxu0 %v1253_v11  ;;  %1714 = vmatmul.bf16.gmra.mxu2 %v1253_v11  ;;  %v1596_v39 = vpop.f32.mrf.mxu1  ;;  %v7464_v57 = vpop.eup %7463  ;;  %v1737_v58 = vadd.f32 %v8961_v30, %v1648_v13  ;;  %v6412_v2 = vor.u32 %v7079_v7, %v6409_v41 }
 0x1d3   : > { %1625 = vmatmul.bf16.gmra.mxu1 %v1254_v18  ;;  %1803 = vmatmul.bf16.gmra.mxu3 %v1254_v18  ;;  %v7466_v8 = vpop.eup %7465 }
 0x1d4   : > { %v9190_v21 = vadd.f32 %v1596_v39, %v1508_v53  ;;  %v7468_v26 = vpop.eup %7467  ;;  %v1873_v25 = vpack.c.bf16 %v7462_v5, %v7466_v8  ;;  %2936 = vmatpush.bf16.msra.mxu2 %v6412_v2  ;;  %7471 = vtanh.f32 %v1737_v58  ;;  %v6476_v39 = vor.u32 %v7095_v34, %v6473_v1 }
 0x1d5   : > { %v1874_v28 = vpack.c.bf16 %v7464_v57, %v7468_v26  ;;  %7473 = vtanh.f32 %v8918_v56  ;;  %v7096_v57 = vld [vmem:[#allocation3 + $0x2e4] sm:$0xf0]  ;;  %v1742_v2 = vadd.f32 %v9005_v45, %v1653_v0  ;;  %v1480_v45 = vadd.f32 %v9017_v14, %v8860_v33 }
 0x1d6   : > { %7475 = vtanh.f32 %v8930_v24  ;;  %3025 = vmatpush.bf16.msra.mxu3 %v6476_v39  ;;  %v7470_v8 = vpop.eup %7469  ;;  %v1475_v24 = vadd.f32 %v8989_v3, %v8860_v33 }
 0x1d7   : > { %v1685_v43 = vpop.f32.mrf.mxu2 }
 0x1d8   : > { %v1686_v15 = vadd.f32 %v1685_v43, %v8878_v49  ;;  %v1774_v32 = vpop.f32.mrf.mxu3  ;;  %v7080_v43 = vld [vmem:[#allocation3 + $0x264] sm:$0xf0]  ;;  %v1564_v58 = vadd.f32 %v8995_v23, %v1475_v24 }
 0x1d9   : > { %v9197_v46 = vpop.f32.mrf.mxu0  ;;  %v6408_v5 = vor.u32 %v7080_v43, %v6407_v4  ;;  %v1658_v4 = vadd.f32 %v9027_v12, %v8878_v49  ;;  %v7077_v12 = vld [vmem:[#allocation3 + $0x254] sm:$0xf] }
 0x1da   : > { %v9195_v47 = vadd.f32 %v1774_v32, %v1686_v15  ;;  %v9201_v38 = vpop.f32.mrf.mxu1  ;;  %v6471_v15 = vld [vmem:[#allocation3 + $0x2e0] sm:$0xf]  ;;  %v7472_v13 = vpop.eup %7471  ;;  %7477 = vtanh.f32 %v1564_v58 }
 0x1db   : > { %v6472_v26 = vor.u32 %v7096_v57, %v6471_v15  ;;  %2758 = vmatpush.bf16.msra.mxu0 %v6408_v5  ;;  %v7474_v56 = vpop.eup %7473  ;;  %7479 = vtanh.f32 %v1742_v2  ;;  %v1747_v5 = vadd.f32 %v9035_v61, %v1658_v4 }
 0x1dc   : > { %v1875_v7 = vpack.c.bf16 %v7470_v8, %v7474_v56  ;;  %7481 = vtanh.f32 %v8968_v44 }
 0x1dd   : > { %2847 = vmatpush.bf16.msra.mxu1 %v6472_v26  ;;  %7483 = vtanh.f32 %v8977_v35  ;;  %v6401_v26 = vld [vmem:[#allocation3 + $0x258] sm:$0xf0] }
 0x1de   : > { %v6404_v24 = vor.u32 %v7077_v12, %v6401_v26  ;;  %v10655_v26 = vld [vmem:[#allocation6_spill] sm:$0xff] }
 0x1df   : > { %v9206_v9 = vpop.f32.mrf.mxu2 }
 0x1e0   : > { %v9209_v11 = vpop.f32.mrf.mxu3  ;;  %2937 = vmatpush.bf16.msra.mxu2 %v6404_v24 }
 0x1e2   : > { %2113 = vmatmul.bf16.vlgmr.msrb.gmra.mxu0 %v1873_v25  ;;  %2291 = vmatmul.bf16.vlgmr.msrb.gmra.mxu2 %v1873_v25 }
 0x1e3   : > { %2202 = vmatmul.bf16.vlgmr.msrb.gmra.mxu1 %v1874_v28  ;;  %2380 = vmatmul.bf16.vlgmr.msrb.gmra.mxu3 %v1874_v28  ;;  %v7476_v28 = vpop.eup %7475 }
 0x1e4   : > { %v1876_v41 = vpack.c.bf16 %v7472_v13, %v7476_v28  ;;  %v7093_v13 = vld [vmem:[#allocation3 + $0x2d4] sm:$0xf]  ;;  %v6465_v28 = vld [vmem:[#allocation3 + $0x2d8] sm:$0xf0] }
 0x1e5   : > { %v1512_v48 = vpop.f32.mrf.mxu0 }
 0x1e6   : > { %v1513_v54 = vadd.f32 %v1512_v48, %v8860_v33  ;;  %v1601_v18 = vpop.f32.mrf.mxu1 }
 0x1e8   : > { %v9212_v53 = vadd.f32 %v1601_v18, %v1513_v54  ;;  %v7478_v54 = vpop.eup %7477 }
 0x1e9   : > { %v7480_v23 = vpop.eup %7479 }
 0x1ea   : > { %v7482_v1 = vpop.eup %7481 }
 0x1eb   : > { %v1690_v30 = vpop.f32.mrf.mxu2  ;;  %v1877_v43 = vpack.c.bf16 %v7478_v54, %v7482_v1 }
 0x1ec   : > { %v1691_v32 = vadd.f32 %v1690_v30, %v8878_v49  ;;  %v1779_v29 = vpop.f32.mrf.mxu3  ;;  %v7484_v30 = vpop.eup %7483 }
 0x1ed   : > { %v9225_v48 = vpop.f32.mrf.mxu0  ;;  %v1878_v15 = vpack.c.bf16 %v7480_v23, %v7484_v30 }
 0x1ee   : > { %v9217_v25 = vadd.f32 %v1779_v29, %v1691_v32  ;;  %v9227_v3 = vpop.f32.mrf.mxu1  ;;  %v1569_v32 = vadd.f32 %v9020_v19, %v1480_v45  ;;  %v6468_v19 = vor.u32 %v7093_v13, %v6465_v28  ;;  %v7094_v45 = vld [vmem:[#allocation3 + $0x2d4] sm:$0xf0] }
 0x1f0   : > { %7485 = vtanh.f32 %v1569_v32  ;;  %3026 = vmatpush.bf16.msra.mxu3 %v6468_v19  ;;  %v10656_v19 = vld [vmem:[#allocation9_spill] sm:$0xff] }
 0x1f1   : > { %7487 = vtanh.f32 %v1747_v5 }
 0x1f2   : > { %2118 = vmatmul.bf16.gmra.mxu0 %v1875_v7  ;;  %2296 = vmatmul.bf16.gmra.mxu2 %v1875_v7  ;;  %7489 = vtanh.f32 %v9010_v52  ;;  %v6399_v7 = vld [vmem:[#allocation3 + $0x250] sm:$0xf] }
 0x1f3   : > { %2207 = vmatmul.bf16.gmra.mxu1 %v1876_v41  ;;  %2385 = vmatmul.bf16.gmra.mxu3 %v1876_v41  ;;  %v9231_v37 = vpop.f32.mrf.mxu2  ;;  %7491 = vtanh.f32 %v9015_v63  ;;  %v7078_v41 = vld [vmem:[#allocation3 + $0x254] sm:$0xf0]  ;;  %v6463_v52 = vld [vmem:[#allocation3 + $0x2d0] sm:$0xf] }
 0x1f4   : > { %v9233_v18 = vpop.f32.mrf.mxu3  ;;  %v6400_v54 = vor.u32 %v7078_v41, %v6399_v7  ;;  %v1668_v41 = vadd.f32 %v9099_v51, %v8878_v49 }
 0x1f6   : > { %v7486_v0 = vpop.eup %7485  ;;  %2759 = vmatpush.bf16.msra.mxu0 %v6400_v54 }
 0x1f7   : > { %v7488_v58 = vpop.eup %7487 }
 0x1f8   : > { %v7490_v23 = vpop.eup %7489 }
 0x1f9   : > { %v7492_v63 = vpop.eup %7491  ;;  %v1879_v4 = vpack.c.bf16 %v7486_v0, %v7490_v23  ;;  %v1490_v0 = vadd.f32 %v10656_v19, %v8860_v33  ;;  %v6455_v19 = vld [vmem:[#allocation3 + $0x2c0] sm:$0xf] }
 0x1fe   : > { %v1517_v34 = vpop.f32.mrf.mxu0 }
 0x1ff   : > { %v1518_v39 = vadd.f32 %v1517_v34, %v8860_v33  ;;  %v1606_v44 = vpop.f32.mrf.mxu1  ;;  %v1485_v34 = vadd.f32 %v9051_v50, %v8860_v33 }
 0x201   : > { %v9240_v35 = vadd.f32 %v1606_v44, %v1518_v39  ;;  %v1663_v39 = vadd.f32 %v9061_v22, %v8878_v49  ;;  %v6464_v44 = vor.u32 %v7094_v45, %v6463_v52  ;;  %v1574_v50 = vadd.f32 %v9055_v16, %v1485_v34  ;;  %v10657_v52 = vld [vmem:[#allocation10_spill] sm:$0xff] }
 0x202   : > { %2123 = vmatmul.bf16.gmra.mxu0 %v1877_v43  ;;  %2301 = vmatmul.bf16.gmra.mxu2 %v1877_v43  ;;  %v1579_v45 = vadd.f32 %v10657_v52, %v1490_v0  ;;  %v7092_v0 = vld [vmem:[#allocation3 + $0x2c4] sm:$0xf0] }
 0x203   : > { %2212 = vmatmul.bf16.gmra.mxu1 %v1878_v15  ;;  %2390 = vmatmul.bf16.gmra.mxu3 %v1878_v15  ;;  %v1880_v15 = vpack.c.bf16 %v7488_v58, %v7492_v63  ;;  %7493 = vtanh.f32 %v1574_v50  ;;  %v10659_v50 = vld [vmem:[#allocation7_spill] sm:$0xff] }
 0x204   : > { %v1695_v14 = vpop.f32.mrf.mxu2  ;;  %2848 = vmatpush.bf16.msra.mxu1 %v6464_v44 }
 0x205   : > { %v1696_v57 = vadd.f32 %v1695_v14, %v8878_v49  ;;  %v1784_v8 = vpop.f32.mrf.mxu3  ;;  %v1752_v14 = vadd.f32 %v9065_v59, %v1663_v39  ;;  %v7075_v39 = vld [vmem:[#allocation3 + $0x244] sm:$0xf] }
 0x206   : > { %v9247_v56 = vpop.f32.mrf.mxu0 }
 0x207   : > { %v9245_v29 = vadd.f32 %v1784_v8, %v1696_v57  ;;  %v9251_v61 = vpop.f32.mrf.mxu1  ;;  %7495 = vtanh.f32 %v1752_v14 }
 0x208   : > { %7497 = vtanh.f32 %v9038_v27 }
 0x209   : > { %7499 = vtanh.f32 %v10655_v26  ;;  %v7494_v24 = vpop.eup %7493  ;;  %v6391_v26 = vld [vmem:[#allocation3 + $0x240] sm:$0xf] }
 0x20a   : > { %7501 = vtanh.f32 %v1579_v45 }
 0x20c   : > { %v9253_v2 = vpop.f32.mrf.mxu2 }
 0x20d   : > { %v9257_v1 = vpop.f32.mrf.mxu3  ;;  %v7496_v28 = vpop.eup %7495 }
 0x20e   : > { %v7498_v59 = vpop.eup %7497 }
 0x20f   : > { %v7500_v7 = vpop.eup %7499  ;;  %v1881_v27 = vpack.c.bf16 %v7494_v24, %v7498_v59  ;;  %v10660_v24 = vld [vmem:[#allocation8_spill] sm:$0xff]  ;;  %v7076_v59 = vld [vmem:[#allocation3 + $0x244] sm:$0xf0] }
 0x210   : > { %v1522_v30 = vpop.f32.mrf.mxu0  ;;  %v1882_v23 = vpack.c.bf16 %v7496_v28, %v7500_v7 }
 0x211   : > { %v1523_v43 = vadd.f32 %v1522_v30, %v8860_v33  ;;  %v1611_v32 = vpop.f32.mrf.mxu1  ;;  %v6393_v30 = vld [vmem:[#allocation3 + $0x248] sm:$0xf0] }
 0x212   : > { %2128 = vmatmul.bf16.gmra.mxu0 %v1879_v4  ;;  %2306 = vmatmul.bf16.gmra.mxu2 %v1879_v4  ;;  %v10658_v4 = vld [vmem:[#allocation11_spill] sm:$0xff] }
 0x213   : > { %v9263_v5 = vadd.f32 %v1611_v32, %v1523_v43  ;;  %2217 = vmatmul.bf16.gmra.mxu1 %v1880_v15  ;;  %2395 = vmatmul.bf16.gmra.mxu3 %v1880_v15  ;;  %v1757_v44 = vadd.f32 %v10658_v4, %v1668_v41  ;;  %v6396_v43 = vor.u32 %v7075_v39, %v6393_v30 }
 0x214   : > { %v6392_v41 = vor.u32 %v7076_v59, %v6391_v26  ;;  %v1673_v4 = vadd.f32 %v9133_v55, %v8878_v49  ;;  %v10663_v59 = vld [vmem:[#allocation12_spill] sm:$0xff] }
 0x215   : > { %2938 = vmatpush.bf16.msra.mxu2 %v6396_v43  ;;  %7503 = vtanh.f32 %v1757_v44 }
 0x216   : > { %v1700_v22 = vpop.f32.mrf.mxu2  ;;  %7505 = vtanh.f32 %v10659_v50  ;;  %2760 = vmatpush.bf16.msra.mxu0 %v6392_v41  ;;  %v1762_v26 = vadd.f32 %v9135_v42, %v1673_v4  ;;  %v10664_v41 = vld [vmem:[#allocation13_spill] sm:$0xff]  ;;  %v1678_v4 = vadd.f32 %v9154_v31, %v8878_v49 }
 0x217   : > { %v1701_v57 = vadd.f32 %v1700_v22, %v8878_v49  ;;  %v1789_v8 = vpop.f32.mrf.mxu3  ;;  %7507 = vtanh.f32 %v10660_v24 }
 0x218   : > { %v9271_v16 = vpop.f32.mrf.mxu0 }
 0x219   : > { %v9268_v12 = vadd.f32 %v1789_v8, %v1701_v57  ;;  %v9273_v13 = vpop.f32.mrf.mxu1  ;;  %v7091_v57 = vld [vmem:[#allocation3 + $0x2c4] sm:$0xf]  ;;  %v6457_v8 = vld [vmem:[#allocation3 + $0x2c8] sm:$0xf0] }
 0x21a   : > { %v6460_v28 = vor.u32 %v7091_v57, %v6457_v8 }
 0x21c   : > { %3027 = vmatpush.bf16.msra.mxu3 %v6460_v28 }
 0x21e   : > { %v9279_v58 = vpop.f32.mrf.mxu2 }
 0x21f   : > { %v9281_v54 = vpop.f32.mrf.mxu3 }
 0x222   : > { %v1527_v34 = vpop.f32.mrf.mxu0  ;;  %2133 = vmatmul.bf16.gmra.mxu0 %v1881_v27  ;;  %2311 = vmatmul.bf16.gmra.mxu2 %v1881_v27  ;;  %v6456_v27 = vor.u32 %v7092_v0, %v6455_v19 }
 0x223   : > { %v1528_v63 = vadd.f32 %v1527_v34, %v8860_v33  ;;  %2222 = vmatmul.bf16.gmra.mxu1 %v1882_v23  ;;  %2400 = vmatmul.bf16.gmra.mxu3 %v1882_v23  ;;  %v1616_v51 = vpop.f32.mrf.mxu1  ;;  %v7502_v23 = vpop.eup %7501 }
 0x224   : > { %2849 = vmatpush.bf16.msra.mxu1 %v6456_v27  ;;  %v7504_v34 = vpop.eup %7503 }
 0x225   : > { %v9286_v15 = vadd.f32 %v1616_v51, %v1528_v63  ;;  %v7506_v45 = vpop.eup %7505  ;;  %v10661_v63 = vld [vmem:[#allocation14_spill] sm:$0xff] }
 0x226   : > { %v1495_v39 = vadd.f32 %v10661_v63, %v8860_v33  ;;  %v7508_v30 = vpop.eup %7507  ;;  %v1883_v43 = vpack.c.bf16 %v7502_v23, %v7506_v45 }
 0x227   : > { %v1884_v50 = vpack.c.bf16 %v7504_v34, %v7508_v30 }
 0x228   : > { %v1705_v32 = vpop.f32.mrf.mxu2 }
 0x229   : > { %v1706_v14 = vadd.f32 %v1705_v32, %v8878_v49  ;;  %v1794_v22 = vpop.f32.mrf.mxu3 }
 0x22a   : > { %v9291_v52 = vpop.f32.mrf.mxu0 }
 0x22b   : > { %v1795_v7 = vadd.f32 %v1794_v22, %v1706_v14  ;;  %v9297_v44 = vpop.f32.mrf.mxu1  ;;  %v10662_v22 = vld [vmem:[#allocation15_spill] sm:$0xff] }
 0x22c   : > { %v1584_v57 = vadd.f32 %v10662_v22, %v1495_v39  ;;  %v1500_v39 = vadd.f32 %v9145_v60, %v8860_v33  ;;  %v7089_v60 = vld [vmem:[#allocation3 + $0x2b4] sm:$0xf] }
 0x22d   : > { %7509 = vtanh.f32 %v1795_v7 }
 0x230   : > { %v1707_v51 = vpop.f32.mrf.mxu2 }
 0x231   : > { %v1708_v32 = vadd.f32 %v1707_v51, %v8878_v49  ;;  %v1796_v14 = vpop.f32.mrf.mxu3 }
 0x232   : > { %2138 = vmatmul.bf16.gmra.mxu0 %v1883_v43  ;;  %2316 = vmatmul.bf16.gmra.mxu2 %v1883_v43 }
 0x233   : > { %v1797_v8 = vadd.f32 %v1796_v14, %v1708_v32  ;;  %2227 = vmatmul.bf16.gmra.mxu1 %v1884_v50  ;;  %2405 = vmatmul.bf16.gmra.mxu3 %v1884_v50  ;;  %v7510_v0 = vpop.eup %7509  ;;  %v10665_v14 = vld [vmem:[#allocation18_spill] sm:$0xff] }
 0x234   : > { %v1589_v22 = vadd.f32 %v10665_v14, %v1500_v39 }
 0x235   : > { %7511 = vtanh.f32 %v1797_v8 }
 0x236   : > { %v1532_v55 = vpop.f32.mrf.mxu0  ;;  %7513 = vtanh.f32 %v1584_v57  ;;  %v1767_v57 = vadd.f32 %v9161_v20, %v1678_v4  ;;  %v1505_v4 = vadd.f32 %v9175_v17, %v8860_v33  ;;  %v6383_v17 = vld [vmem:[#allocation3 + $0x230] sm:$0xf] }
 0x237   : > { %v1533_v24 = vadd.f32 %v1532_v55, %v8860_v33  ;;  %7515 = vtanh.f32 %v1762_v26  ;;  %v1621_v28 = vpop.f32.mrf.mxu1  ;;  %v7073_v26 = vld [vmem:[#allocation3 + $0x234] sm:$0xf]  ;;  %v6385_v55 = vld [vmem:[#allocation3 + $0x238] sm:$0xf0] }
 0x238   : > { %7517 = vtanh.f32 %v10663_v59  ;;  %v6449_v59 = vld [vmem:[#allocation3 + $0x2b8] sm:$0xf0] }
 0x239   : > { %v9304_v19 = vadd.f32 %v1621_v28, %v1533_v24  ;;  %7519 = vtanh.f32 %v10664_v41  ;;  %v10666_v24 = vld [vmem:[#allocation16_spill] sm:$0xff]  ;;  %v6388_v28 = vor.u32 %v7073_v26, %v6385_v55  ;;  %v6452_v41 = vor.u32 %v7089_v60, %v6449_v59  ;;  %v7074_v60 = vld [vmem:[#allocation3 + $0x234] sm:$0xf0] }
 0x23a   : > { %7521 = vtanh.f32 %v10666_v24  ;;  %v1594_v55 = vadd.f32 %v9177_v6, %v1505_v4  ;;  %v6447_v24 = vld [vmem:[#allocation3 + $0x2b0] sm:$0xf] }
 0x23b   : > { %v7512_v27 = vpop.eup %7511  ;;  %7523 = vtanh.f32 %v1589_v22  ;;  %2939 = vmatpush.bf16.msra.mxu2 %v6388_v28  ;;  %3028 = vmatpush.bf16.msra.mxu3 %v6452_v41  ;;  %v7090_v28 = vld [vmem:[#allocation3 + $0x2b4] sm:$0xf0] }
 0x23c   : > { %v1710_v23 = vpop.f32.mrf.mxu2  ;;  %v9307_v34 = vpack.c.bf16 %v7512_v27, %v7510_v0  ;;  %v7514_v42 = vpop.eup %7513  ;;  %7525 = vtanh.f32 %v1767_v57 }
 0x23d   : > { %v1711_v7 = vadd.f32 %v1710_v23, %v8878_v49  ;;  %v1799_v45 = vpop.f32.mrf.mxu3  ;;  %v7516_v63 = vpop.eup %7515 }
 0x23e   : > { %v7518_v30 = vpop.eup %7517  ;;  %v9318_v27 = vpop.f32.mrf.mxu0 }
 0x23f   : > { %v1800_v51 = vadd.f32 %v1799_v45, %v1711_v7  ;;  %v7520_v43 = vpop.eup %7519  ;;  %v1885_v32 = vpack.c.bf16 %v7514_v42, %v7518_v30  ;;  %v9320_v20 = vpop.f32.mrf.mxu1  ;;  %v10667_v42 = vld [vmem:[#allocation17_spill] sm:$0xff] }
 0x240   : > { %v1886_v50 = vpack.c.bf16 %v7516_v63, %v7520_v43  ;;  %v7522_v7 = vpop.eup %7521 }
 0x241   : > { %7527 = vtanh.f32 %v1800_v51  ;;  %v7524_v45 = vpop.eup %7523 }
 0x242   : > { %2143 = vmatmul.bf16.gmra.mxu0 %v1885_v32  ;;  %2321 = vmatmul.bf16.gmra.mxu2 %v1885_v32  ;;  %v7526_v63 = vpop.eup %7525  ;;  %v1887_v22 = vpack.c.bf16 %v7524_v45, %v7522_v7 }
 0x243   : > { %2232 = vmatmul.bf16.gmra.mxu1 %v1886_v50  ;;  %2410 = vmatmul.bf16.gmra.mxu3 %v1886_v50  ;;  %v1683_v50 = vadd.f32 %v9181_v40, %v8878_v49  ;;  %v6384_v40 = vor.u32 %v7074_v60, %v6383_v17 }
 0x244   : > { %v1712_v8 = vpop.f32.mrf.mxu2 }
 0x245   : > { %v1713_v31 = vadd.f32 %v1712_v8, %v8878_v49  ;;  %v1801_v0 = vpop.f32.mrf.mxu3  ;;  %2761 = vmatpush.bf16.msra.mxu0 %v6384_v40 }
 0x247   : > { %v1802_v23 = vadd.f32 %v1801_v0, %v1713_v31  ;;  %v7528_v39 = vpop.eup %7527  ;;  %v1772_v31 = vadd.f32 %v9185_v62, %v1683_v50  ;;  %v6448_v0 = vor.u32 %v7090_v28, %v6447_v24  ;;  %v6227_v62 = vld [vmem:[%s10638_s4 + $0x2] sm:$0x3] }
 0x248   : > { %v9347_v28 = vperm.slane %v6227_v62, 1 }
 0x249   : > { %7529 = vtanh.f32 %v1802_v23  ;;  %2850 = vmatpush.bf16.msra.mxu1 %v6448_v0  ;;  %v7071_v0 = vld [vmem:[#allocation3 + $0x224] sm:$0xf] }
 0x24a   : > { %7531 = vtanh.f32 %v10667_v42 }
 0x24b   : > { %7533 = vtanh.f32 %v1594_v55 }
 0x24c   : > { %7535 = vtanh.f32 %v1772_v31 }
 0x24d   : > { %7537 = vtanh.f32 %v9164_v36  ;;  %v1510_v36 = vadd.f32 %v9197_v46, %v8860_v33 }
 0x24e   : > { %7539 = vtanh.f32 %v9173_v10  ;;  %v1688_v10 = vadd.f32 %v9206_v9, %v8878_v49 }
 0x24f   : > { %v7530_v30 = vpop.eup %7529  ;;  %v1537_v43 = vpop.f32.mrf.mxu0  ;;  %v1599_v46 = vadd.f32 %v9201_v38, %v1510_v36  ;;  %v6375_v36 = vld [vmem:[#allocation3 + $0x220] sm:$0xf] }
 0x250   : > { %v7532_v32 = vpop.eup %7531  ;;  %v1538_v51 = vadd.f32 %v1537_v43, %v8860_v33  ;;  %v1626_v14 = vpop.f32.mrf.mxu1  ;;  %v9328_v57 = vpack.c.bf16 %v7530_v30, %v7528_v39  ;;  %v9339_v39 = vperm.slane %v6227_v62, 0 }
 0x251   : > { %v1888_v8 = vpack.c.bf16 %v7526_v63, %v7532_v32  ;;  %v7534_v30 = vpop.eup %7533 }
 0x252   : > { %v1627_v26 = vadd.f32 %v1626_v14, %v1538_v51  ;;  %2148 = vmatmul.bf16.gmra.mxu0 %v1887_v22  ;;  %2326 = vmatmul.bf16.gmra.mxu2 %v1887_v22  ;;  %v7536_v43 = vpop.eup %7535 }
 0x253   : > { %2237 = vmatmul.bf16.gmra.mxu1 %v1888_v8  ;;  %2415 = vmatmul.bf16.gmra.mxu3 %v1888_v8  ;;  %v7538_v51 = vpop.eup %7537 }
 0x254   : > { %7541 = vtanh.f32 %v1627_v26  ;;  %v7540_v22 = vpop.eup %7539  ;;  %v1889_v17 = vpack.c.bf16 %v7534_v30, %v7538_v51 }
 0x255   : > { %v1715_v59 = vpop.f32.mrf.mxu2  ;;  %v1890_v24 = vpack.c.bf16 %v7536_v43, %v7540_v22  ;;  %v6439_v22 = vld [vmem:[#allocation3 + $0x2a0] sm:$0xf] }
 0x256   : > { %v1716_v41 = vadd.f32 %v1715_v59, %v8878_v49  ;;  %v1804_v23 = vpop.f32.mrf.mxu3  ;;  %v1777_v59 = vadd.f32 %v9209_v11, %v1688_v10 }
 0x257   : > { %v1539_v42 = vpop.f32.mrf.mxu0 }
 0x258   : > { %v1805_v6 = vadd.f32 %v1804_v23, %v1716_v41  ;;  %v1540_v7 = vadd.f32 %v1539_v42, %v8860_v33  ;;  %v1628_v45 = vpop.f32.mrf.mxu1  ;;  %v6377_v41 = vld [vmem:[#allocation3 + $0x228] sm:$0xf0]  ;;  %v7087_v23 = vld [vmem:[#allocation3 + $0x2a4] sm:$0xf] }
 0x25a   : > { %v1629_v63 = vadd.f32 %v1628_v45, %v1540_v7  ;;  %v7542_v60 = vpop.eup %7541  ;;  %v6441_v7 = vld [vmem:[#allocation3 + $0x2a8] sm:$0xf0] }
 0x25b   : > { %v6444_v30 = vor.u32 %v7087_v23, %v6441_v7 }
 0x25c   : > { %7543 = vtanh.f32 %v1629_v63 }
 0x25d   : > { %v1717_v4 = vpop.f32.mrf.mxu2  ;;  %7545 = vtanh.f32 %v1805_v6  ;;  %v6380_v6 = vor.u32 %v7071_v0, %v6377_v41  ;;  %3029 = vmatpush.bf16.msra.mxu3 %v6444_v30 }
 0x25e   : > { %v1718_v32 = vadd.f32 %v1717_v4, %v8878_v49  ;;  %v1806_v50 = vpop.f32.mrf.mxu3 }
 0x25f   : > { %v2114_v14 = vpop.f32.mrf.mxu0  ;;  %2940 = vmatpush.bf16.msra.mxu2 %v6380_v6 }
 0x260   : > { %v1807_v8 = vadd.f32 %v1806_v50, %v1718_v32  ;;  %v2115_v26 = vadd.f32 %v2114_v14, %v9339_v39  ;;  %v2203_v55 = vpop.f32.mrf.mxu1  ;;  %v7072_v14 = vld [vmem:[#allocation3 + $0x224] sm:$0xf0] }
 0x262   : > { %v7544_v31 = vpop.eup %7543  ;;  %7547 = vtanh.f32 %v1807_v8  ;;  %v2204_v40 = vadd.f32 %v2203_v55, %v2115_v26  ;;  %2153 = vmatmul.bf16.gmra.mxu0 %v1889_v17  ;;  %2331 = vmatmul.bf16.gmra.mxu2 %v1889_v17  ;;  %v6376_v26 = vor.u32 %v7072_v14, %v6375_v36  ;;  %v7088_v55 = vld [vmem:[#allocation3 + $0x2a4] sm:$0xf0] }
 0x263   : > { %2242 = vmatmul.bf16.gmra.mxu1 %v1890_v24  ;;  %2420 = vmatmul.bf16.gmra.mxu3 %v1890_v24  ;;  %v9350_v9 = vpack.c.bf16 %v7544_v31, %v7542_v60  ;;  %v7546_v62 = vpop.eup %7545  ;;  %7549 = vtanh.f32 %v1599_v46  ;;  %v6440_v31 = vor.u32 %v7088_v55, %v6439_v22  ;;  %v1515_v46 = vadd.f32 %v9225_v48, %v8860_v33 }
 0x264   : > { %7551 = vtanh.f32 %v1777_v59  ;;  %2762 = vmatpush.bf16.msra.mxu0 %v6376_v26  ;;  %v1693_v59 = vadd.f32 %v9231_v37, %v8878_v49 }
 0x265   : > { %v2292_v42 = vpop.f32.mrf.mxu2  ;;  %7553 = vtanh.f32 %v9190_v21  ;;  %2851 = vmatpush.bf16.msra.mxu1 %v6440_v31  ;;  %v1604_v48 = vadd.f32 %v9227_v3, %v1515_v46 }
 0x266   : > { %v2293_v45 = vadd.f32 %v2292_v42, %v9347_v28  ;;  %v2381_v63 = vpop.f32.mrf.mxu3  ;;  %7555 = vtanh.f32 %v9195_v47  ;;  %v1782_v37 = vadd.f32 %v9233_v18, %v1693_v59 }
 0x267   : > { %v2116_v4 = vpop.f32.mrf.mxu0  ;;  %7557 = vtanh.f32 %v2204_v40 }
 0x268   : > { %v7548_v38 = vpop.eup %7547  ;;  %v2382_v43 = vadd.f32 %v2381_v63, %v2293_v45  ;;  %v2117_v32 = vadd.f32 %v2116_v4, %v9339_v39  ;;  %v2205_v11 = vpop.f32.mrf.mxu1 }
 0x269   : > { %v9356_v50 = vpack.c.bf16 %v7548_v38, %v7546_v62  ;;  %v7550_v10 = vpop.eup %7549 }
 0x26a   : > { %v2206_v51 = vadd.f32 %v2205_v11, %v2117_v32  ;;  %v7552_v17 = vpop.eup %7551 }
 0x26b   : > { %v7554_v21 = vpop.eup %7553 }
 0x26c   : > { %7559 = vtanh.f32 %v2206_v51  ;;  %v7556_v40 = vpop.eup %7555  ;;  %v1891_v42 = vpack.c.bf16 %v7550_v10, %v7554_v21 }
 0x26d   : > { %v2294_v8 = vpop.f32.mrf.mxu2  ;;  %v7558_v6 = vpop.eup %7557  ;;  %7561 = vtanh.f32 %v2382_v43  ;;  %v1892_v7 = vpack.c.bf16 %v7552_v17, %v7556_v40 }
 0x26e   : > { %v2295_v60 = vadd.f32 %v2294_v8, %v9347_v28  ;;  %v2383_v24 = vpop.f32.mrf.mxu3 }
 0x26f   : > { %v2119_v47 = vpop.f32.mrf.mxu0 }
 0x270   : > { %v2384_v0 = vadd.f32 %v2383_v24, %v2295_v60  ;;  %v2120_v41 = vadd.f32 %v2119_v47, %v9339_v39  ;;  %v2208_v23 = vpop.f32.mrf.mxu1  ;;  %v1520_v60 = vadd.f32 %v9247_v56, %v8860_v33 }
 0x272   : > { %v7560_v45 = vpop.eup %7559  ;;  %7563 = vtanh.f32 %v2384_v0  ;;  %v2209_v63 = vadd.f32 %v2208_v23, %v2120_v41  ;;  %2158 = vmatmul.bf16.gmra.mxu0 %v1891_v42  ;;  %2336 = vmatmul.bf16.gmra.mxu2 %v1891_v42  ;;  %v1609_v56 = vadd.f32 %v9251_v61, %v1520_v60  ;;  %v7069_v42 = vld [vmem:[#allocation3 + $0x214] sm:$0xf] }
 0x273   : > { %v9366_v30 = vpack.c.bf16 %v7560_v45, %v7558_v6  ;;  %2247 = vmatmul.bf16.gmra.mxu1 %v1892_v7  ;;  %2425 = vmatmul.bf16.gmra.mxu3 %v1892_v7  ;;  %v7562_v32 = vpop.eup %7561  ;;  %7565 = vtanh.f32 %v1604_v48  ;;  %v6369_v6 = vld [vmem:[#allocation3 + $0x218] sm:$0xf0]  ;;  %v7085_v7 = vld [vmem:[#allocation3 + $0x294] sm:$0xf] }
 0x274   : > { %7567 = vtanh.f32 %v1782_v37  ;;  %v6433_v48 = vld [vmem:[#allocation3 + $0x298] sm:$0xf0] }
 0x275   : > { %v2297_v62 = vpop.f32.mrf.mxu2  ;;  %7569 = vtanh.f32 %v9212_v53  ;;  %v1698_v53 = vadd.f32 %v9253_v2, %v8878_v49 }
 0x276   : > { %v2298_v4 = vadd.f32 %v2297_v62, %v9347_v28  ;;  %v2386_v38 = vpop.f32.mrf.mxu3  ;;  %7571 = vtanh.f32 %v9217_v25 }
 0x277   : > { %v2121_v43 = vpop.f32.mrf.mxu0  ;;  %7573 = vtanh.f32 %v2209_v63  ;;  %v1787_v2 = vadd.f32 %v9257_v1, %v1698_v53  ;;  %v6372_v63 = vor.u32 %v7069_v42, %v6369_v6  ;;  %v1525_v53 = vadd.f32 %v9271_v16, %v8860_v33 }
 0x278   : > { %v7564_v11 = vpop.eup %7563  ;;  %v2387_v51 = vadd.f32 %v2386_v38, %v2298_v4  ;;  %v2122_v36 = vadd.f32 %v2121_v43, %v9339_v39  ;;  %v2210_v14 = vpop.f32.mrf.mxu1  ;;  %v6436_v4 = vor.u32 %v7085_v7, %v6433_v48 }
 0x279   : > { %v9372_v3 = vpack.c.bf16 %v7564_v11, %v7562_v32  ;;  %v7566_v22 = vpop.eup %7565  ;;  %2941 = vmatpush.bf16.msra.mxu2 %v6372_v63  ;;  %v1614_v16 = vadd.f32 %v9273_v13, %v1525_v53 }
 0x27a   : > { %v2211_v18 = vadd.f32 %v2210_v14, %v2122_v36  ;;  %v7568_v8 = vpop.eup %7567  ;;  %3030 = vmatpush.bf16.msra.mxu3 %v6436_v4  ;;  %v6367_v14 = vld [vmem:[#allocation3 + $0x210] sm:$0xf] }
 0x27b   : > { %v7570_v17 = vpop.eup %7569 }
 0x27c   : > { %7575 = vtanh.f32 %v2211_v18  ;;  %v7572_v31 = vpop.eup %7571  ;;  %v1893_v47 = vpack.c.bf16 %v7566_v22, %v7570_v17  ;;  %v7070_v18 = vld [vmem:[#allocation3 + $0x214] sm:$0xf0]  ;;  %v6431_v22 = vld [vmem:[#allocation3 + $0x290] sm:$0xf] }
 0x27d   : > { %v2299_v10 = vpop.f32.mrf.mxu2  ;;  %v7574_v40 = vpop.eup %7573  ;;  %7577 = vtanh.f32 %v2387_v51  ;;  %v1894_v59 = vpack.c.bf16 %v7568_v8, %v7572_v31 }
 0x27e   : > { %v2300_v26 = vadd.f32 %v2299_v10, %v9347_v28  ;;  %v2388_v55 = vpop.f32.mrf.mxu3 }
 0x27f   : > { %v2124_v24 = vpop.f32.mrf.mxu0 }
 0x280   : > { %v2389_v21 = vadd.f32 %v2388_v55, %v2300_v26  ;;  %v2125_v25 = vadd.f32 %v2124_v24, %v9339_v39  ;;  %v2213_v46 = vpop.f32.mrf.mxu1  ;;  %v6368_v26 = vor.u32 %v7070_v18, %v6367_v14  ;;  %v7086_v55 = vld [vmem:[#allocation3 + $0x294] sm:$0xf0] }
 0x281   : > { %v6432_v31 = vor.u32 %v7086_v55, %v6431_v22 }
 0x282   : > { %v7576_v0 = vpop.eup %7575  ;;  %7579 = vtanh.f32 %v2389_v21  ;;  %v2214_v41 = vadd.f32 %v2213_v46, %v2125_v25  ;;  %2163 = vmatmul.bf16.gmra.mxu0 %v1893_v47  ;;  %2341 = vmatmul.bf16.gmra.mxu2 %v1893_v47  ;;  %v1703_v25 = vadd.f32 %v9279_v58, %v8878_v49 }
 0x283   : > { %2252 = vmatmul.bf16.gmra.mxu1 %v1894_v59  ;;  %2430 = vmatmul.bf16.gmra.mxu3 %v1894_v59  ;;  %v9382_v23 = vpack.c.bf16 %v7576_v0, %v7574_v40  ;;  %v7578_v38 = vpop.eup %7577  ;;  %7581 = vtanh.f32 %v1609_v56 }
 0x284   : > { %7583 = vtanh.f32 %v1787_v2  ;;  %2763 = vmatpush.bf16.msra.mxu0 %v6368_v26  ;;  %2852 = vmatpush.bf16.msra.mxu1 %v6432_v31  ;;  %v1792_v49 = vadd.f32 %v9281_v54, %v1703_v25  ;;  %v6361_v31 = vld [vmem:[#allocation3 + $0x208] sm:$0xf0] }
 0x285   : > { %v2302_v45 = vpop.f32.mrf.mxu2  ;;  %7585 = vtanh.f32 %v9240_v35 }
 0x286   : > { %v2303_v37 = vadd.f32 %v2302_v45, %v9347_v28  ;;  %v2391_v62 = vpop.f32.mrf.mxu3  ;;  %7587 = vtanh.f32 %v9245_v29 }
 0x287   : > { %v2126_v32 = vpop.f32.mrf.mxu0  ;;  %7589 = vtanh.f32 %v2214_v41 }
 0x288   : > { %v7580_v61 = vpop.eup %7579  ;;  %v2392_v43 = vadd.f32 %v2391_v62, %v2303_v37  ;;  %v2127_v11 = vadd.f32 %v2126_v32, %v9339_v39  ;;  %v2215_v1 = vpop.f32.mrf.mxu1 }
 0x289   : > { %v9388_v51 = vpack.c.bf16 %v7580_v61, %v7578_v38  ;;  %v7582_v10 = vpop.eup %7581 }
 0x28a   : > { %v2216_v36 = vadd.f32 %v2215_v1, %v2127_v11  ;;  %v7584_v17 = vpop.eup %7583 }
 0x28b   : > { %v7586_v35 = vpop.eup %7585 }
 0x28c   : > { %7591 = vtanh.f32 %v2216_v36  ;;  %v7588_v21 = vpop.eup %7587  ;;  %v1895_v59 = vpack.c.bf16 %v7582_v10, %v7586_v35  ;;  %v1530_v36 = vadd.f32 %v9291_v52, %v8860_v33  ;;  %v7083_v35 = vld [vmem:[#allocation3 + $0x284] sm:$0xf] }
 0x28d   : > { %v2304_v8 = vpop.f32.mrf.mxu2  ;;  %v7590_v0 = vpop.eup %7589  ;;  %7593 = vtanh.f32 %v2392_v43  ;;  %v1896_v41 = vpack.c.bf16 %v7584_v17, %v7588_v21  ;;  %v6425_v21 = vld [vmem:[#allocation3 + $0x288] sm:$0xf0] }
 0x28e   : > { %v2305_v60 = vadd.f32 %v2304_v8, %v9347_v28  ;;  %v2393_v24 = vpop.f32.mrf.mxu3 }
 0x28f   : > { %v2129_v29 = vpop.f32.mrf.mxu0 }
 0x290   : > { %v2394_v46 = vadd.f32 %v2393_v24, %v2305_v60  ;;  %v2130_v47 = vadd.f32 %v2129_v29, %v9339_v39  ;;  %v2218_v40 = vpop.f32.mrf.mxu1  ;;  %v1619_v60 = vadd.f32 %v9297_v44, %v1530_v36  ;;  %v7067_v24 = vld [vmem:[#allocation3 + $0x204] sm:$0xf] }
 0x291   : > { %v6364_v29 = vor.u32 %v7067_v24, %v6361_v31 }
 0x292   : > { %v7592_v56 = vpop.eup %7591  ;;  %7595 = vtanh.f32 %v2394_v46  ;;  %v2219_v2 = vadd.f32 %v2218_v40, %v2130_v47  ;;  %2168 = vmatmul.bf16.gmra.mxu0 %v1895_v59  ;;  %2346 = vmatmul.bf16.gmra.mxu2 %v1895_v59  ;;  %v6428_v47 = vor.u32 %v7083_v35, %v6425_v21 }
 0x293   : > { %2257 = vmatmul.bf16.gmra.mxu1 %v1896_v41  ;;  %2435 = vmatmul.bf16.gmra.mxu3 %v1896_v41  ;;  %v9398_v42 = vpack.c.bf16 %v7592_v56, %v7590_v0  ;;  %v7594_v45 = vpop.eup %7593  ;;  %7597 = vtanh.f32 %v1614_v16 }
 0x294   : > { %7599 = vtanh.f32 %v1792_v49  ;;  %2942 = vmatpush.bf16.msra.mxu2 %v6364_v29  ;;  %3031 = vmatpush.bf16.msra.mxu3 %v6428_v47  ;;  %v6359_v49 = vld [vmem:[#allocation3 + $0x200] sm:$0xf] }
 0x295   : > { %v2307_v58 = vpop.f32.mrf.mxu2  ;;  %7601 = vtanh.f32 %v9263_v5 }
 0x296   : > { %v2308_v6 = vadd.f32 %v2307_v58, %v9347_v28  ;;  %v2396_v7 = vpop.f32.mrf.mxu3  ;;  %7603 = vtanh.f32 %v9268_v12  ;;  %v7068_v58 = vld [vmem:[#allocation3 + $0x204] sm:$0xf0] }
 0x297   : > { %v2131_v63 = vpop.f32.mrf.mxu0  ;;  %7605 = vtanh.f32 %v2219_v2 }
 0x298   : > { %v7596_v48 = vpop.eup %7595  ;;  %v2397_v37 = vadd.f32 %v2396_v7, %v2308_v6  ;;  %v2132_v62 = vadd.f32 %v2131_v63, %v9339_v39  ;;  %v2220_v4 = vpop.f32.mrf.mxu1  ;;  %v6423_v6 = vld [vmem:[#allocation3 + $0x280] sm:$0xf]  ;;  %v6360_v63 = vor.u32 %v7068_v58, %v6359_v49  ;;  %v6610_v58 = vld [vmem:[#allocation3 + $0x3f8] sm:$0xf0] }
 0x299   : > { %v9404_v13 = vpack.c.bf16 %v7596_v48, %v7594_v45  ;;  %v7598_v38 = vpop.eup %7597  ;;  %v7084_v48 = vld [vmem:[#allocation3 + $0x284] sm:$0xf0] }
 0x29a   : > { %v2221_v54 = vadd.f32 %v2220_v4, %v2132_v62  ;;  %v7600_v61 = vpop.eup %7599  ;;  %v6424_v4 = vor.u32 %v7084_v48, %v6423_v6  ;;  %2764 = vmatpush.bf16.msra.mxu0 %v6360_v63 }
 0x29b   : > { %v7602_v1 = vpop.eup %7601 }
 0x29c   : > { %7607 = vtanh.f32 %v2221_v54  ;;  %v7604_v18 = vpop.eup %7603  ;;  %v1897_v12 = vpack.c.bf16 %v7598_v38, %v7602_v1  ;;  %2853 = vmatpush.bf16.msra.mxu1 %v6424_v4 }
 0x29d   : > { %v2309_v32 = vpop.f32.mrf.mxu2  ;;  %v7606_v8 = vpop.eup %7605  ;;  %7609 = vtanh.f32 %v2397_v37  ;;  %v1898_v26 = vpack.c.bf16 %v7600_v61, %v7604_v18 }
 0x29e   : > { %v2310_v43 = vadd.f32 %v2309_v32, %v9347_v28  ;;  %v2398_v11 = vpop.f32.mrf.mxu3 }
 0x29f   : > { %v2134_v14 = vpop.f32.mrf.mxu0 }
 0x2a0   : > { %v2399_v5 = vadd.f32 %v2398_v11, %v2310_v43  ;;  %v2135_v22 = vadd.f32 %v2134_v14, %v9339_v39  ;;  %v2223_v10 = vpop.f32.mrf.mxu1 }
 0x2a2   : > { %v7608_v55 = vpop.eup %7607  ;;  %7611 = vtanh.f32 %v2399_v5  ;;  %v2224_v17 = vadd.f32 %v2223_v10, %v2135_v22  ;;  %2173 = vmatmul.bf16.gmra.mxu0 %v1897_v12  ;;  %2351 = vmatmul.bf16.gmra.mxu2 %v1897_v12 }
 0x2a3   : > { %2262 = vmatmul.bf16.gmra.mxu1 %v1898_v26  ;;  %2440 = vmatmul.bf16.gmra.mxu3 %v1898_v26  ;;  %v9412_v52 = vpack.c.bf16 %v7608_v55, %v7606_v8  ;;  %v7610_v40 = vpop.eup %7609  ;;  %7613 = vtanh.f32 %v1619_v60 }
 0x2a4   : > { %7615 = vtanh.f32 %v9286_v15  ;;  %v1535_v15 = vadd.f32 %v9318_v27, %v8860_v33 }
 0x2a5   : > { %v2312_v53 = vpop.f32.mrf.mxu2  ;;  %7617 = vtanh.f32 %v2224_v17 }
 0x2a6   : > { %v2313_v25 = vadd.f32 %v2312_v53, %v9347_v28  ;;  %v2401_v46 = vpop.f32.mrf.mxu3  ;;  %v1624_v18 = vadd.f32 %v9320_v20, %v1535_v15 }
 0x2a7   : > { %v2136_v59 = vpop.f32.mrf.mxu0 }
 0x2a8   : > { %v7612_v0 = vpop.eup %7611  ;;  %v2402_v44 = vadd.f32 %v2401_v46, %v2313_v25  ;;  %v2137_v41 = vadd.f32 %v2136_v59, %v9339_v39  ;;  %v2225_v56 = vpop.f32.mrf.mxu1 }
 0x2a9   : > { %v9417_v2 = vpack.c.bf16 %v7612_v0, %v7610_v40  ;;  %v7614_v7 = vpop.eup %7613 }
 0x2aa   : > { %v2226_v16 = vadd.f32 %v2225_v56, %v2137_v41  ;;  %v7616_v54 = vpop.eup %7615  ;;  %v6546_v41 = vld [vmem:[#allocation3 + $0x378] sm:$0xf0]  ;;  %v7129_v56 = vld [vmem:[#allocation3 + $0x3f4] sm:$0xf] }
 0x2ab   : > { %v1899_v11 = vpack.c.bf16 %v7614_v7, %v7616_v54  ;;  %v7618_v1 = vpop.eup %7617 }
 0x2ac   : > { %7619 = vtanh.f32 %v2226_v16 }
 0x2ad   : > { %v2314_v45 = vpop.f32.mrf.mxu2  ;;  %7621 = vtanh.f32 %v2402_v44  ;;  %v7113_v44 = vld [vmem:[#allocation3 + $0x374] sm:$0xf] }
 0x2ae   : > { %v2315_v37 = vadd.f32 %v2314_v45, %v9347_v28  ;;  %v2403_v62 = vpop.f32.mrf.mxu3  ;;  %v6549_v49 = vor.u32 %v7113_v44, %v6546_v41  ;;  %v6613_v45 = vor.u32 %v7129_v56, %v6610_v58  ;;  %v7111_v58 = vld [vmem:[#allocation3 + $0x364] sm:$0xf] }
 0x2af   : > { %v2139_v38 = vpop.f32.mrf.mxu0 }
 0x2b0   : > { %v2404_v32 = vadd.f32 %v2403_v62, %v2315_v37  ;;  %v2140_v61 = vadd.f32 %v2139_v38, %v9339_v39  ;;  %v2228_v43 = vpop.f32.mrf.mxu1  ;;  %3587 = vmatpush.bf16.msrb.mxu2 %v6549_v49  ;;  %3676 = vmatpush.bf16.msrb.mxu3 %v6613_v45  ;;  %v6544_v38 = vld [vmem:[#allocation3 + $0x370] sm:$0xf] }
 0x2b2   : > { %v7620_v36 = vpop.eup %7619  ;;  %7623 = vtanh.f32 %v2404_v32  ;;  %v2229_v14 = vadd.f32 %v2228_v43, %v2140_v61  ;;  %2178 = vmatmul.bf16.gmra.mxu0 %v1899_v11  ;;  %2356 = vmatmul.bf16.gmra.mxu2 %v1899_v11  ;;  %v7114_v32 = vld [vmem:[#allocation3 + $0x374] sm:$0xf0]  ;;  %v6608_v61 = vld [vmem:[#allocation3 + $0x3f0] sm:$0xf] }
 0x2b3   : > { %2267 = vmatmul.bf16.gmra.mxu1 %v9307_v34  ;;  %2445 = vmatmul.bf16.gmra.mxu3 %v9307_v34  ;;  %v9426_v33 = vpack.c.bf16 %v7620_v36, %v7618_v1  ;;  %v7622_v10 = vpop.eup %7621  ;;  %7625 = vtanh.f32 %v1624_v18  ;;  %v6545_v11 = vor.u32 %v7114_v32, %v6544_v38  ;;  %v7130_v1 = vld [vmem:[#allocation3 + $0x3f4] sm:$0xf0] }
 0x2b4   : > { %7627 = vtanh.f32 %v9304_v19  ;;  %v6609_v18 = vor.u32 %v7130_v1, %v6608_v61  ;;  %v7112_v1 = vld [vmem:[#allocation3 + $0x364] sm:$0xf0] }
 0x2b5   : > { %v2317_v27 = vpop.f32.mrf.mxu2  ;;  %7629 = vtanh.f32 %v2229_v14  ;;  %3409 = vmatpush.bf16.msrb.mxu0 %v6545_v11  ;;  %v6536_v11 = vld [vmem:[#allocation3 + $0x360] sm:$0xf] }
 0x2b6   : > { %v2318_v5 = vadd.f32 %v2317_v27, %v9347_v28  ;;  %v2406_v22 = vpop.f32.mrf.mxu3  ;;  %3498 = vmatpush.bf16.msrb.mxu1 %v6609_v18  ;;  %v6537_v18 = vor.u32 %v7112_v1, %v6536_v11 }
 0x2b7   : > { %v2141_v12 = vpop.f32.mrf.mxu0 }
 0x2b8   : > { %v7624_v8 = vpop.eup %7623  ;;  %v2407_v26 = vadd.f32 %v2406_v22, %v2318_v5  ;;  %v2142_v55 = vadd.f32 %v2141_v12, %v9339_v39  ;;  %v2230_v17 = vpop.f32.mrf.mxu1 }
 0x2b9   : > { %v9431_v20 = vpack.c.bf16 %v7624_v8, %v7622_v10  ;;  %v7626_v34 = vpop.eup %7625  ;;  %3410 = vmatpush.bf16.msrb.mxu0 %v6537_v18  ;;  %v6528_v18 = vld [vmem:[#allocation3 + $0x350] sm:$0xf] }
 0x2ba   : > { %v2231_v60 = vadd.f32 %v2230_v17, %v2142_v55  ;;  %v7628_v53 = vpop.eup %7627 }
 0x2bb   : > { %v1901_v47 = vpack.c.bf16 %v7626_v34, %v7628_v53  ;;  %v7630_v40 = vpop.eup %7629 }
 0x2bc   : > { %7631 = vtanh.f32 %v2231_v60 }
 0x2bd   : > { %v2319_v24 = vpop.f32.mrf.mxu2  ;;  %7633 = vtanh.f32 %v2407_v26 }
 0x2be   : > { %v2320_v31 = vadd.f32 %v2319_v24, %v9347_v28  ;;  %v2408_v35 = vpop.f32.mrf.mxu3 }
 0x2bf   : > { %v2144_v29 = vpop.f32.mrf.mxu0 }
 0x2c0   : > { %v2409_v21 = vadd.f32 %v2408_v35, %v2320_v31  ;;  %v2145_v25 = vadd.f32 %v2144_v29, %v9339_v39  ;;  %v2233_v46 = vpop.f32.mrf.mxu1 }
 0x2c2   : > { %v7632_v19 = vpop.eup %7631  ;;  %7635 = vtanh.f32 %v2409_v21  ;;  %v2234_v59 = vadd.f32 %v2233_v46, %v2145_v25  ;;  %2183 = vmatmul.bf16.gmra.mxu0 %v1901_v47  ;;  %2361 = vmatmul.bf16.gmra.mxu2 %v1901_v47 }
 0x2c3   : > { %2272 = vmatmul.bf16.gmra.mxu1 %v9328_v57  ;;  %2450 = vmatmul.bf16.gmra.mxu3 %v9328_v57  ;;  %v9437_v0 = vpack.c.bf16 %v7632_v19, %v7630_v40  ;;  %v7634_v63 = vpop.eup %7633 }
 0x2c4   : > { %7637 = vtanh.f32 %v2234_v59 }
 0x2c5   : > { %v2322_v16 = vpop.f32.mrf.mxu2 }
 0x2c6   : > { %v2323_v6 = vadd.f32 %v2322_v16, %v9347_v28  ;;  %v2411_v7 = vpop.f32.mrf.mxu3 }
 0x2c7   : > { %v2146_v48 = vpop.f32.mrf.mxu0 }
 0x2c8   : > { %v7636_v37 = vpop.eup %7635  ;;  %v2412_v62 = vadd.f32 %v2411_v7, %v2323_v6  ;;  %v2147_v4 = vadd.f32 %v2146_v48, %v9339_v39  ;;  %v2235_v57 = vpop.f32.mrf.mxu1  ;;  %v6538_v6 = vld [vmem:[#allocation3 + $0x368] sm:$0xf0]  ;;  %v7127_v7 = vld [vmem:[#allocation3 + $0x3e4] sm:$0xf] }
 0x2c9   : > { %v9441_v54 = vpack.c.bf16 %v7636_v37, %v7634_v63  ;;  %v6541_v63 = vor.u32 %v7111_v58, %v6538_v6  ;;  %v6602_v48 = vld [vmem:[#allocation3 + $0x3e8] sm:$0xf0] }
 0x2ca   : > { %v2236_v15 = vadd.f32 %v2235_v57, %v2147_v4  ;;  %v7638_v12 = vpop.eup %7637  ;;  %v6605_v4 = vor.u32 %v7127_v7, %v6602_v48  ;;  %v7109_v48 = vld [vmem:[#allocation3 + $0x354] sm:$0xf] }
 0x2cb   : > { %3588 = vmatpush.bf16.msrb.mxu2 %v6541_v63 }
 0x2cc   : > { %7639 = vtanh.f32 %v2236_v15  ;;  %3677 = vmatpush.bf16.msrb.mxu3 %v6605_v4 }
 0x2cd   : > { %v2324_v43 = vpop.f32.mrf.mxu2  ;;  %7641 = vtanh.f32 %v2412_v62 }
 0x2ce   : > { %v2325_v36 = vadd.f32 %v2324_v43, %v9347_v28  ;;  %v2413_v14 = vpop.f32.mrf.mxu3 }
 0x2cf   : > { %v2149_v27 = vpop.f32.mrf.mxu0 }
 0x2d0   : > { %v2414_v5 = vadd.f32 %v2413_v14, %v2325_v36  ;;  %v2150_v22 = vadd.f32 %v2149_v27, %v9339_v39  ;;  %v2238_v10 = vpop.f32.mrf.mxu1  ;;  %v6600_v36 = vld [vmem:[#allocation3 + $0x3e0] sm:$0xf]  ;;  %v7128_v27 = vld [vmem:[#allocation3 + $0x3e4] sm:$0xf0] }
 0x2d2   : > { %v7640_v8 = vpop.eup %7639  ;;  %7643 = vtanh.f32 %v2414_v5  ;;  %v2239_v26 = vadd.f32 %v2238_v10, %v2150_v22  ;;  %2188 = vmatmul.bf16.gmra.mxu0 %v9350_v9  ;;  %2366 = vmatmul.bf16.gmra.mxu2 %v9350_v9  ;;  %v6601_v10 = vor.u32 %v7128_v27, %v6600_v36  ;;  %v7110_v27 = vld [vmem:[#allocation3 + $0x354] sm:$0xf0] }
 0x2d3   : > { %2277 = vmatmul.bf16.gmra.mxu1 %v9356_v50  ;;  %2455 = vmatmul.bf16.gmra.mxu3 %v9356_v50  ;;  %v9449_v55 = vpack.c.bf16 %v7640_v8, %v7638_v12  ;;  %v7642_v24 = vpop.eup %7641 }
 0x2d4   : > { %7645 = vtanh.f32 %v2239_v26  ;;  %3499 = vmatpush.bf16.msrb.mxu1 %v6601_v10  ;;  %v6529_v10 = vor.u32 %v7110_v27, %v6528_v18 }
 0x2d5   : > { %v2327_v17 = vpop.f32.mrf.mxu2 }
 0x2d6   : > { %v2328_v60 = vadd.f32 %v2327_v17, %v9347_v28  ;;  %v2416_v34 = vpop.f32.mrf.mxu3  ;;  %3411 = vmatpush.bf16.msrb.mxu0 %v6529_v10  ;;  %v6520_v10 = vld [vmem:[#allocation3 + $0x340] sm:$0xf] }
 0x2d7   : > { %v2151_v31 = vpop.f32.mrf.mxu0 }
 0x2d8   : > { %v7644_v35 = vpop.eup %7643  ;;  %v2417_v53 = vadd.f32 %v2416_v34, %v2328_v60  ;;  %v2152_v29 = vadd.f32 %v2151_v31, %v9339_v39  ;;  %v2240_v21 = vpop.f32.mrf.mxu1 }
 0x2d9   : > { %v9453_v25 = vpack.c.bf16 %v7644_v35, %v7642_v24 }
 0x2da   : > { %v2241_v9 = vadd.f32 %v2240_v21, %v2152_v29  ;;  %v7646_v41 = vpop.eup %7645 }
 0x2dc   : > { %7647 = vtanh.f32 %v2241_v9 }
 0x2dd   : > { %v2329_v46 = vpop.f32.mrf.mxu2  ;;  %7649 = vtanh.f32 %v2417_v53 }
 0x2de   : > { %v2330_v50 = vadd.f32 %v2329_v46, %v9347_v28  ;;  %v2418_v47 = vpop.f32.mrf.mxu3 }
 0x2df   : > { %v2154_v40 = vpop.f32.mrf.mxu0 }
 0x2e0   : > { %v2419_v19 = vadd.f32 %v2418_v47, %v2330_v50  ;;  %v2155_v59 = vadd.f32 %v2154_v40, %v9339_v39  ;;  %v2243_v44 = vpop.f32.mrf.mxu1 }
 0x2e2   : > { %v7648_v56 = vpop.eup %7647  ;;  %7651 = vtanh.f32 %v2419_v19  ;;  %v2244_v16 = vadd.f32 %v2243_v44, %v2155_v59  ;;  %2765 = vmatmul.bf16.vlgmr.msra.gmra.mxu0 %v9366_v30  ;;  %2943 = vmatmul.bf16.vlgmr.msra.gmra.mxu2 %v9366_v30 }
 0x2e3   : > { %2854 = vmatmul.bf16.vlgmr.msra.gmra.mxu1 %v9372_v3  ;;  %3032 = vmatmul.bf16.vlgmr.msra.gmra.mxu3 %v9372_v3  ;;  %v9461_v49 = vpack.c.bf16 %v7648_v56, %v7646_v41  ;;  %v7650_v57 = vpop.eup %7649 }
 0x2e4   : > { %7653 = vtanh.f32 %v2244_v16 }
 0x2e5   : > { %v2332_v45 = vpop.f32.mrf.mxu2 }
 0x2e6   : > { %v2333_v37 = vadd.f32 %v2332_v45, %v9347_v28  ;;  %v2421_v62 = vpop.f32.mrf.mxu3 }
 0x2e7   : > { %v2156_v15 = vpop.f32.mrf.mxu0 }
 0x2e8   : > { %v7652_v30 = vpop.eup %7651  ;;  %v2422_v38 = vadd.f32 %v2421_v62, %v2333_v37  ;;  %v2157_v32 = vadd.f32 %v2156_v15, %v9339_v39  ;;  %v2245_v3 = vpop.f32.mrf.mxu1  ;;  %v6530_v37 = vld [vmem:[#allocation3 + $0x358] sm:$0xf0]  ;;  %v7125_v62 = vld [vmem:[#allocation3 + $0x3d4] sm:$0xf] }
 0x2e9   : > { %v9465_v61 = vpack.c.bf16 %v7652_v30, %v7650_v57  ;;  %v6533_v57 = vor.u32 %v7109_v48, %v6530_v37  ;;  %v6594_v15 = vld [vmem:[#allocation3 + $0x3d8] sm:$0xf0] }
 0x2ea   : > { %v2246_v43 = vadd.f32 %v2245_v3, %v2157_v32  ;;  %v7654_v60 = vpop.eup %7653  ;;  %v6597_v32 = vor.u32 %v7125_v62, %v6594_v15  ;;  %v7107_v15 = vld [vmem:[#allocation3 + $0x344] sm:$0xf] }
 0x2eb   : > { %3589 = vmatpush.bf16.msrb.mxu2 %v6533_v57 }
 0x2ec   : > { %7655 = vtanh.f32 %v2246_v43  ;;  %3678 = vmatpush.bf16.msrb.mxu3 %v6597_v32 }
 0x2ed   : > { %v2334_v14 = vpop.f32.mrf.mxu2  ;;  %7657 = vtanh.f32 %v2422_v38 }
 0x2ee   : > { %v2335_v5 = vadd.f32 %v2334_v14, %v9347_v28  ;;  %v2423_v22 = vpop.f32.mrf.mxu3 }
 0x2ef   : > { %v2159_v12 = vpop.f32.mrf.mxu0 }
 0x2f0   : > { %v2424_v8 = vadd.f32 %v2423_v22, %v2335_v5  ;;  %v2160_v26 = vadd.f32 %v2159_v12, %v9339_v39  ;;  %v2248_v17 = vpop.f32.mrf.mxu1  ;;  %v6592_v5 = vld [vmem:[#allocation3 + $0x3d0] sm:$0xf]  ;;  %v7126_v12 = vld [vmem:[#allocation3 + $0x3d4] sm:$0xf0] }
 0x2f2   : > { %v7656_v34 = vpop.eup %7655  ;;  %7659 = vtanh.f32 %v2424_v8  ;;  %v2249_v24 = vadd.f32 %v2248_v17, %v2160_v26  ;;  %2770 = vmatmul.bf16.gmra.mxu0 %v9382_v23  ;;  %2948 = vmatmul.bf16.gmra.mxu2 %v9382_v23  ;;  %v6593_v17 = vor.u32 %v7126_v12, %v6592_v5  ;;  %v7108_v12 = vld [vmem:[#allocation3 + $0x344] sm:$0xf0] }
 0x2f3   : > { %2859 = vmatmul.bf16.gmra.mxu1 %v9388_v51  ;;  %3037 = vmatmul.bf16.gmra.mxu3 %v9388_v51  ;;  %v9473_v31 = vpack.c.bf16 %v7656_v34, %v7654_v60  ;;  %v7658_v21 = vpop.eup %7657 }
 0x2f4   : > { %7661 = vtanh.f32 %v2249_v24  ;;  %3500 = vmatpush.bf16.msrb.mxu1 %v6593_v17  ;;  %v6521_v17 = vor.u32 %v7108_v12, %v6520_v10 }
 0x2f5   : > { %v2337_v35 = vpop.f32.mrf.mxu2 }
 0x2f6   : > { %v2338_v53 = vadd.f32 %v2337_v35, %v9347_v28  ;;  %v2426_v29 = vpop.f32.mrf.mxu3  ;;  %3412 = vmatpush.bf16.msrb.mxu0 %v6521_v17 }
 0x2f7   : > { %v2161_v9 = vpop.f32.mrf.mxu0 }
 0x2f8   : > { %v7660_v46 = vpop.eup %7659  ;;  %v2427_v50 = vadd.f32 %v2426_v29, %v2338_v53  ;;  %v2162_v47 = vadd.f32 %v2161_v9, %v9339_v39  ;;  %v2250_v40 = vpop.f32.mrf.mxu1 }
 0x2f9   : > { %v9477_v19 = vpack.c.bf16 %v7660_v46, %v7658_v21 }
 0x2fa   : > { %v2251_v23 = vadd.f32 %v2250_v40, %v2162_v47  ;;  %v7662_v6 = vpop.eup %7661 }
 0x2fc   : > { %7663 = vtanh.f32 %v2251_v23 }
 0x2fd   : > { %v2339_v59 = vpop.f32.mrf.mxu2  ;;  %7665 = vtanh.f32 %v2427_v50 }
 0x2fe   : > { %v2340_v51 = vadd.f32 %v2339_v59, %v9347_v28  ;;  %v2428_v44 = vpop.f32.mrf.mxu3 }
 0x2ff   : > { %v2164_v41 = vpop.f32.mrf.mxu0 }
 0x300   : > { %v2429_v56 = vadd.f32 %v2428_v44, %v2340_v51  ;;  %v2165_v16 = vadd.f32 %v2164_v41, %v9339_v39  ;;  %v2253_v58 = vpop.f32.mrf.mxu1 }
 0x302   : > { %v7664_v7 = vpop.eup %7663  ;;  %7667 = vtanh.f32 %v2429_v56  ;;  %v2254_v45 = vadd.f32 %v2253_v58, %v2165_v16  ;;  %2775 = vmatmul.bf16.gmra.mxu0 %v9398_v42  ;;  %2953 = vmatmul.bf16.gmra.mxu2 %v9398_v42 }
 0x303   : > { %2864 = vmatmul.bf16.gmra.mxu1 %v9404_v13  ;;  %3042 = vmatmul.bf16.gmra.mxu3 %v9404_v13  ;;  %v9485_v63 = vpack.c.bf16 %v7664_v7, %v7662_v6  ;;  %v7666_v3 = vpop.eup %7665 }
 0x304   : > { %7669 = vtanh.f32 %v2254_v45 }
 0x305   : > { %v2342_v4 = vpop.f32.mrf.mxu2 }
 0x306   : > { %v2343_v30 = vadd.f32 %v2342_v4, %v9347_v28  ;;  %v2431_v38 = vpop.f32.mrf.mxu3 }
 0x307   : > { %v2166_v43 = vpop.f32.mrf.mxu0 }
 0x308   : > { %v7668_v42 = vpop.eup %7667  ;;  %v2432_v11 = vadd.f32 %v2431_v38, %v2343_v30  ;;  %v2167_v1 = vadd.f32 %v2166_v43, %v9339_v39  ;;  %v2255_v13 = vpop.f32.mrf.mxu1  ;;  %v6522_v30 = vld [vmem:[#allocation3 + $0x348] sm:$0xf0]  ;;  %v7123_v38 = vld [vmem:[#allocation3 + $0x3c4] sm:$0xf] }
 0x309   : > { %v9489_v36 = vpack.c.bf16 %v7668_v42, %v7666_v3  ;;  %v6525_v3 = vor.u32 %v7107_v15, %v6522_v30  ;;  %v6586_v43 = vld [vmem:[#allocation3 + $0x3c8] sm:$0xf0] }
 0x30a   : > { %v2256_v14 = vadd.f32 %v2255_v13, %v2167_v1  ;;  %v7670_v53 = vpop.eup %7669  ;;  %v6589_v1 = vor.u32 %v7123_v38, %v6586_v43  ;;  %v7105_v43 = vld [vmem:[#allocation3 + $0x334] sm:$0xf] }
 0x30b   : > { %3590 = vmatpush.bf16.msrb.mxu2 %v6525_v3 }
 0x30c   : > { %7671 = vtanh.f32 %v2256_v14  ;;  %3679 = vmatpush.bf16.msrb.mxu3 %v6589_v1 }
 0x30d   : > { %v2344_v22 = vpop.f32.mrf.mxu2  ;;  %7673 = vtanh.f32 %v2432_v11 }
 0x30e   : > { %v2345_v8 = vadd.f32 %v2344_v22, %v9347_v28  ;;  %v2433_v26 = vpop.f32.mrf.mxu3 }
 0x30f   : > { %v2169_v60 = vpop.f32.mrf.mxu0 }
 0x310   : > { %v2434_v34 = vadd.f32 %v2433_v26, %v2345_v8  ;;  %v2170_v24 = vadd.f32 %v2169_v60, %v9339_v39  ;;  %v2258_v35 = vpop.f32.mrf.mxu1  ;;  %v6584_v8 = vld [vmem:[#allocation3 + $0x3c0] sm:$0xf]  ;;  %v7124_v60 = vld [vmem:[#allocation3 + $0x3c4] sm:$0xf0] }
 0x312   : > { %v7672_v29 = vpop.eup %7671  ;;  %7675 = vtanh.f32 %v2434_v34  ;;  %v2259_v21 = vadd.f32 %v2258_v35, %v2170_v24  ;;  %2780 = vmatmul.bf16.gmra.mxu0 %v9412_v52  ;;  %2958 = vmatmul.bf16.gmra.mxu2 %v9412_v52  ;;  %v6585_v35 = vor.u32 %v7124_v60, %v6584_v8 }
 0x313   : > { %2869 = vmatmul.bf16.gmra.mxu1 %v9417_v2  ;;  %3047 = vmatmul.bf16.gmra.mxu3 %v9417_v2  ;;  %v9497_v9 = vpack.c.bf16 %v7672_v29, %v7670_v53  ;;  %v7674_v40 = vpop.eup %7673 }
 0x314   : > { %7677 = vtanh.f32 %v2259_v21  ;;  %3501 = vmatpush.bf16.msrb.mxu1 %v6585_v35 }
 0x315   : > { %v2347_v46 = vpop.f32.mrf.mxu2 }
 0x316   : > { %v2348_v50 = vadd.f32 %v2347_v46, %v9347_v28  ;;  %v2436_v47 = vpop.f32.mrf.mxu3 }
 0x317   : > { %v2171_v23 = vpop.f32.mrf.mxu0 }
 0x318   : > { %v7676_v59 = vpop.eup %7675  ;;  %v2437_v51 = vadd.f32 %v2436_v47, %v2348_v50  ;;  %v2172_v44 = vadd.f32 %v2171_v23, %v9339_v39  ;;  %v2260_v41 = vpop.f32.mrf.mxu1 }
 0x319   : > { %v9501_v56 = vpack.c.bf16 %v7676_v59, %v7674_v40 }
 0x31a   : > { %v2261_v52 = vadd.f32 %v2260_v41, %v2172_v44  ;;  %v7678_v37 = vpop.eup %7677 }
 0x31c   : > { %7679 = vtanh.f32 %v2261_v52 }
 0x31d   : > { %v2349_v16 = vpop.f32.mrf.mxu2  ;;  %7681 = vtanh.f32 %v2437_v51 }
 0x31e   : > { %v2350_v2 = vadd.f32 %v2349_v16, %v9347_v28  ;;  %v2438_v58 = vpop.f32.mrf.mxu3 }
 0x31f   : > { %v2174_v6 = vpop.f32.mrf.mxu0 }
 0x320   : > { %v2439_v7 = vadd.f32 %v2438_v58, %v2350_v2  ;;  %v2175_v45 = vadd.f32 %v2174_v6, %v9339_v39  ;;  %v2263_v48 = vpop.f32.mrf.mxu1 }
 0x322   : > { %v7680_v62 = vpop.eup %7679  ;;  %7683 = vtanh.f32 %v2439_v7  ;;  %v2264_v4 = vadd.f32 %v2263_v48, %v2175_v45  ;;  %2785 = vmatmul.bf16.gmra.mxu0 %v9426_v33  ;;  %2963 = vmatmul.bf16.gmra.mxu2 %v9426_v33 }
 0x323   : > { %2874 = vmatmul.bf16.gmra.mxu1 %v9431_v20  ;;  %3052 = vmatmul.bf16.gmra.mxu3 %v9431_v20  ;;  %v9509_v57 = vpack.c.bf16 %v7680_v62, %v7678_v37  ;;  %v7682_v13 = vpop.eup %7681 }
 0x324   : > { %7685 = vtanh.f32 %v2264_v4 }
 0x325   : > { %v2352_v32 = vpop.f32.mrf.mxu2 }
 0x326   : > { %v2353_v42 = vadd.f32 %v2352_v32, %v9347_v28  ;;  %v2441_v11 = vpop.f32.mrf.mxu3 }
 0x327   : > { %v2176_v14 = vpop.f32.mrf.mxu0 }
 0x328   : > { %v7684_v33 = vpop.eup %7683  ;;  %v2442_v18 = vadd.f32 %v2441_v11, %v2353_v42  ;;  %v2177_v27 = vadd.f32 %v2176_v14, %v9339_v39  ;;  %v2265_v20 = vpop.f32.mrf.mxu1  ;;  %v6514_v42 = vld [vmem:[#allocation3 + $0x338] sm:$0xf0]  ;;  %v7121_v11 = vld [vmem:[#allocation3 + $0x3b4] sm:$0xf] }
 0x329   : > { %v9513_v5 = vpack.c.bf16 %v7684_v33, %v7682_v13  ;;  %v6517_v13 = vor.u32 %v7105_v43, %v6514_v42  ;;  %v6578_v14 = vld [vmem:[#allocation3 + $0x3b8] sm:$0xf0] }
 0x32a   : > { %v2266_v22 = vadd.f32 %v2265_v20, %v2177_v27  ;;  %v7686_v50 = vpop.eup %7685  ;;  %v6581_v27 = vor.u32 %v7121_v11, %v6578_v14 }
 0x32b   : > { %3591 = vmatpush.bf16.msrb.mxu2 %v6517_v13 }
 0x32c   : > { %7687 = vtanh.f32 %v2266_v22  ;;  %3680 = vmatpush.bf16.msrb.mxu3 %v6581_v27  ;;  %v7119_v27 = vld [vmem:[#allocation3 + $0x3a4] sm:$0xf] }
 0x32d   : > { %v2354_v26 = vpop.f32.mrf.mxu2  ;;  %7689 = vtanh.f32 %v2442_v18 }
 0x32e   : > { %v2355_v34 = vadd.f32 %v2354_v26, %v9347_v28  ;;  %v2443_v24 = vpop.f32.mrf.mxu3 }
 0x32f   : > { %v2179_v53 = vpop.f32.mrf.mxu0 }
 0x330   : > { %v2444_v29 = vadd.f32 %v2443_v24, %v2355_v34  ;;  %v2180_v21 = vadd.f32 %v2179_v53, %v9339_v39  ;;  %v2268_v46 = vpop.f32.mrf.mxu1 }
 0x332   : > { %v7688_v47 = vpop.eup %7687  ;;  %7691 = vtanh.f32 %v2444_v29  ;;  %v2269_v40 = vadd.f32 %v2268_v46, %v2180_v21  ;;  %2790 = vmatmul.bf16.gmra.mxu0 %v9437_v0  ;;  %2968 = vmatmul.bf16.gmra.mxu2 %v9437_v0 }
 0x333   : > { %2879 = vmatmul.bf16.gmra.mxu1 %v9441_v54  ;;  %3057 = vmatmul.bf16.gmra.mxu3 %v9441_v54  ;;  %v9521_v23 = vpack.c.bf16 %v7688_v47, %v7686_v50  ;;  %v7690_v41 = vpop.eup %7689  ;;  %v6512_v47 = vld [vmem:[#allocation3 + $0x330] sm:$0xf] }
 0x334   : > { %7693 = vtanh.f32 %v2269_v40  ;;  %v7106_v40 = vld [vmem:[#allocation3 + $0x334] sm:$0xf0] }
 0x335   : > { %v2357_v59 = vpop.f32.mrf.mxu2 }
 0x336   : > { %v2358_v51 = vadd.f32 %v2357_v59, %v9347_v28  ;;  %v2446_v44 = vpop.f32.mrf.mxu3  ;;  %v6576_v59 = vld [vmem:[#allocation3 + $0x3b0] sm:$0xf] }
 0x337   : > { %v2181_v52 = vpop.f32.mrf.mxu0 }
 0x338   : > { %v7692_v16 = vpop.eup %7691  ;;  %v2447_v2 = vadd.f32 %v2446_v44, %v2358_v51  ;;  %v2182_v58 = vadd.f32 %v2181_v52, %v9339_v39  ;;  %v2270_v6 = vpop.f32.mrf.mxu1  ;;  %v6513_v44 = vor.u32 %v7106_v40, %v6512_v47  ;;  %v7120_v47 = vld [vmem:[#allocation3 + $0x3a4] sm:$0xf0] }
 0x339   : > { %v9525_v7 = vpack.c.bf16 %v7692_v16, %v7690_v41  ;;  %v7122_v41 = vld [vmem:[#allocation3 + $0x3b4] sm:$0xf0] }
 0x33a   : > { %v2271_v0 = vadd.f32 %v2270_v6, %v2182_v58  ;;  %v7694_v30 = vpop.eup %7693  ;;  %v6577_v16 = vor.u32 %v7122_v41, %v6576_v59  ;;  %3413 = vmatpush.bf16.msrb.mxu0 %v6513_v44 }
 0x33c   : > { %7695 = vtanh.f32 %v2271_v0  ;;  %3502 = vmatpush.bf16.msrb.mxu1 %v6577_v16 }
 0x33d   : > { %v2359_v45 = vpop.f32.mrf.mxu2  ;;  %7697 = vtanh.f32 %v2447_v2 }
 0x33e   : > { %v2360_v54 = vadd.f32 %v2359_v45, %v9347_v28  ;;  %v2448_v48 = vpop.f32.mrf.mxu3 }
 0x33f   : > { %v2184_v37 = vpop.f32.mrf.mxu0 }
 0x340   : > { %v2449_v62 = vadd.f32 %v2448_v48, %v2360_v54  ;;  %v2185_v4 = vadd.f32 %v2184_v37, %v9339_v39  ;;  %v2273_v15 = vpop.f32.mrf.mxu1  ;;  %v6356_v48 = vld [vmem:[%s10638_s4 + $0x4] sm:$0x3] }
 0x341   : > { %v9560_v14 = vperm.slane %v6356_v48, 1 }
 0x342   : > { %v7696_v38 = vpop.eup %7695  ;;  %7699 = vtanh.f32 %v2449_v62  ;;  %v2274_v32 = vadd.f32 %v2273_v15, %v2185_v4  ;;  %2795 = vmatmul.bf16.gmra.mxu0 %v9449_v55  ;;  %2973 = vmatmul.bf16.gmra.mxu2 %v9449_v55  ;;  %v9554_v4 = vperm.slane %v6356_v48, 0 }
 0x343   : > { %2884 = vmatmul.bf16.gmra.mxu1 %v9453_v25  ;;  %3062 = vmatmul.bf16.gmra.mxu3 %v9453_v25  ;;  %v9533_v3 = vpack.c.bf16 %v7696_v38, %v7694_v30  ;;  %v7698_v20 = vpop.eup %7697 }
 0x344   : > { %7701 = vtanh.f32 %v2274_v32 }
 0x345   : > { %v2362_v1 = vpop.f32.mrf.mxu2 }
 0x346   : > { %v2363_v33 = vadd.f32 %v2362_v1, %v9347_v28  ;;  %v2451_v18 = vpop.f32.mrf.mxu3 }
 0x347   : > { %v2186_v22 = vpop.f32.mrf.mxu0 }
 0x348   : > { %v7700_v55 = vpop.eup %7699  ;;  %v2452_v10 = vadd.f32 %v2451_v18, %v2363_v33  ;;  %v2187_v12 = vadd.f32 %v2186_v22, %v9339_v39  ;;  %v2275_v25 = vpop.f32.mrf.mxu1  ;;  %v7103_v33 = vld [vmem:[#allocation3 + $0x324] sm:$0xf]  ;;  %v6506_v18 = vld [vmem:[#allocation3 + $0x328] sm:$0xf0] }
 0x349   : > { %v9537_v8 = vpack.c.bf16 %v7700_v55, %v7698_v20  ;;  %v6509_v22 = vor.u32 %v7103_v33, %v6506_v18  ;;  %v6570_v55 = vld [vmem:[#allocation3 + $0x3a8] sm:$0xf0] }
 0x34a   : > { %v2276_v26 = vadd.f32 %v2275_v25, %v2187_v12  ;;  %v7702_v21 = vpop.eup %7701  ;;  %v6573_v25 = vor.u32 %v7119_v27, %v6570_v55  ;;  %v7101_v55 = vld [vmem:[#allocation3 + $0x314] sm:$0xf] }
 0x34b   : > { %3592 = vmatpush.bf16.msrb.mxu2 %v6509_v22 }
 0x34c   : > { %7703 = vtanh.f32 %v2276_v26  ;;  %3681 = vmatpush.bf16.msrb.mxu3 %v6573_v25 }
 0x34d   : > { %v2364_v17 = vpop.f32.mrf.mxu2  ;;  %7705 = vtanh.f32 %v2452_v10 }
 0x34e   : > { %v2365_v60 = vadd.f32 %v2364_v17, %v9347_v28  ;;  %v2453_v34 = vpop.f32.mrf.mxu3 }
 0x34f   : > { %v2189_v24 = vpop.f32.mrf.mxu0 }
 0x350   : > { %v2454_v35 = vadd.f32 %v2453_v34, %v2365_v60  ;;  %v2190_v53 = vadd.f32 %v2189_v24, %v9339_v39  ;;  %v2278_v29 = vpop.f32.mrf.mxu1 }
 0x352   : > { %v7704_v46 = vpop.eup %7703  ;;  %7707 = vtanh.f32 %v2454_v35  ;;  %v2279_v50 = vadd.f32 %v2278_v29, %v2190_v53  ;;  %2800 = vmatmul.bf16.gmra.mxu0 %v9461_v49  ;;  %2978 = vmatmul.bf16.gmra.mxu2 %v9461_v49  ;;  %v6504_v53 = vld [vmem:[#allocation3 + $0x320] sm:$0xf]  ;;  %v7104_v29 = vld [vmem:[#allocation3 + $0x324] sm:$0xf0] }
 0x353   : > { %2889 = vmatmul.bf16.gmra.mxu1 %v9465_v61  ;;  %3067 = vmatmul.bf16.gmra.mxu3 %v9465_v61  ;;  %v9545_v51 = vpack.c.bf16 %v7704_v46, %v7702_v21  ;;  %v7706_v6 = vpop.eup %7705  ;;  %v6568_v21 = vld [vmem:[#allocation3 + $0x3a0] sm:$0xf] }
 0x354   : > { %7709 = vtanh.f32 %v2279_v50  ;;  %v6505_v50 = vor.u32 %v7104_v29, %v6504_v53  ;;  %v6569_v44 = vor.u32 %v7120_v47, %v6568_v21  ;;  %v7102_v47 = vld [vmem:[#allocation3 + $0x314] sm:$0xf0] }
 0x355   : > { %v2367_v52 = vpop.f32.mrf.mxu2 }
 0x356   : > { %v2368_v2 = vadd.f32 %v2367_v52, %v9347_v28  ;;  %v2456_v58 = vpop.f32.mrf.mxu3  ;;  %3414 = vmatpush.bf16.msrb.mxu0 %v6505_v50  ;;  %3503 = vmatpush.bf16.msrb.mxu1 %v6569_v44  ;;  %v6496_v50 = vld [vmem:[#allocation3 + $0x310] sm:$0xf] }
 0x357   : > { %v2191_v0 = vpop.f32.mrf.mxu0  ;;  %v6497_v44 = vor.u32 %v7102_v47, %v6496_v50 }
 0x358   : > { %v7708_v49 = vpop.eup %7707  ;;  %v2457_v45 = vadd.f32 %v2456_v58, %v2368_v2  ;;  %v2192_v61 = vadd.f32 %v2191_v0, %v9339_v39  ;;  %v2280_v54 = vpop.f32.mrf.mxu1 }
 0x359   : > { %v9552_v37 = vpack.c.bf16 %v7708_v49, %v7706_v6 }
 0x35a   : > { %v2281_v62 = vadd.f32 %v2280_v54, %v2192_v61  ;;  %v7710_v11 = vpop.eup %7709  ;;  %3415 = vmatpush.bf16.msrb.mxu0 %v6497_v44  ;;  %v6488_v44 = vld [vmem:[#allocation3 + $0x300] sm:$0xf] }
 0x35c   : > { %7711 = vtanh.f32 %v2281_v62 }
 0x35d   : > { %v2369_v15 = vpop.f32.mrf.mxu2  ;;  %7713 = vtanh.f32 %v2457_v45 }
 0x35e   : > { %v2370_v30 = vadd.f32 %v2369_v15, %v9347_v28  ;;  %v2458_v38 = vpop.f32.mrf.mxu3 }
 0x35f   : > { %v2766_v32 = vpop.f32.mrf.mxu0 }
 0x360   : > { %v2459_v43 = vadd.f32 %v2458_v38, %v2370_v30  ;;  %v2767_v39 = vadd.f32 %v2766_v32, %v9554_v4  ;;  %v2855_v42 = vpop.f32.mrf.mxu1 }
 0x362   : > { %v7712_v1 = vpop.eup %7711  ;;  %7715 = vtanh.f32 %v2459_v43  ;;  %v2856_v13 = vadd.f32 %v2855_v42, %v2767_v39  ;;  %2805 = vmatmul.bf16.gmra.mxu0 %v9473_v31  ;;  %2983 = vmatmul.bf16.gmra.mxu2 %v9473_v31 }
 0x363   : > { %2894 = vmatmul.bf16.gmra.mxu1 %v9477_v19  ;;  %3072 = vmatmul.bf16.gmra.mxu3 %v9477_v19  ;;  %v9564_v28 = vpack.c.bf16 %v7712_v1, %v7710_v11  ;;  %v7714_v26 = vpop.eup %7713 }
 0x364   : > { %7717 = vtanh.f32 %v2856_v13 }
 0x365   : > { %v2944_v20 = vpop.f32.mrf.mxu2 }
 0x366   : > { %v2945_v10 = vadd.f32 %v2944_v20, %v9560_v14  ;;  %v3033_v12 = vpop.f32.mrf.mxu3 }
 0x367   : > { %v2768_v31 = vpop.f32.mrf.mxu0 }
 0x368   : > { %v7716_v17 = vpop.eup %7715  ;;  %v3034_v60 = vadd.f32 %v3033_v12, %v2945_v10  ;;  %v2769_v34 = vadd.f32 %v2768_v31, %v9554_v4  ;;  %v2857_v19 = vpop.f32.mrf.mxu1  ;;  %v6498_v10 = vld [vmem:[#allocation3 + $0x318] sm:$0xf0]  ;;  %v7117_v12 = vld [vmem:[#allocation3 + $0x394] sm:$0xf] }
 0x369   : > { %v9568_v24 = vpack.c.bf16 %v7716_v17, %v7714_v26  ;;  %v6501_v26 = vor.u32 %v7101_v55, %v6498_v10  ;;  %v6562_v31 = vld [vmem:[#allocation3 + $0x398] sm:$0xf0] }
 0x36a   : > { %v2858_v35 = vadd.f32 %v2857_v19, %v2769_v34  ;;  %v7718_v58 = vpop.eup %7717  ;;  %v6565_v34 = vor.u32 %v7117_v12, %v6562_v31  ;;  %v7099_v31 = vld [vmem:[#allocation3 + $0x304] sm:$0xf] }
 0x36b   : > { %3593 = vmatpush.bf16.msrb.mxu2 %v6501_v26 }
 0x36c   : > { %7719 = vtanh.f32 %v2858_v35  ;;  %3682 = vmatpush.bf16.msrb.mxu3 %v6565_v34 }
 0x36d   : > { %v2946_v46 = vpop.f32.mrf.mxu2  ;;  %7721 = vtanh.f32 %v3034_v60 }
 0x36e   : > { %v2947_v40 = vadd.f32 %v2946_v46, %v9560_v14  ;;  %v3035_v59 = vpop.f32.mrf.mxu3 }
 0x36f   : > { %v2771_v41 = vpop.f32.mrf.mxu0 }
 0x370   : > { %v3036_v52 = vadd.f32 %v3035_v59, %v2947_v40  ;;  %v2772_v16 = vadd.f32 %v2771_v41, %v9554_v4  ;;  %v2860_v2 = vpop.f32.mrf.mxu1  ;;  %v6560_v40 = vld [vmem:[#allocation3 + $0x390] sm:$0xf]  ;;  %v7118_v41 = vld [vmem:[#allocation3 + $0x394] sm:$0xf0] }
 0x372   : > { %v7720_v6 = vpop.eup %7719  ;;  %7723 = vtanh.f32 %v3036_v52  ;;  %v2861_v0 = vadd.f32 %v2860_v2, %v2772_v16  ;;  %2810 = vmatmul.bf16.gmra.mxu0 %v9485_v63  ;;  %2988 = vmatmul.bf16.gmra.mxu2 %v9485_v63  ;;  %v6561_v2 = vor.u32 %v7118_v41, %v6560_v40  ;;  %v7100_v41 = vld [vmem:[#allocation3 + $0x304] sm:$0xf0] }
 0x373   : > { %v9574_v49 = vpack.c.bf16 %v7720_v6, %v7718_v58  ;;  %2899 = vmatmul.bf16.gmra.mxu1 %v9489_v36  ;;  %3077 = vmatmul.bf16.gmra.mxu3 %v9489_v36  ;;  %v7722_v48 = vpop.eup %7721 }
 0x374   : > { %7725 = vtanh.f32 %v2861_v0  ;;  %3504 = vmatpush.bf16.msrb.mxu1 %v6561_v2  ;;  %v6489_v2 = vor.u32 %v7100_v41, %v6488_v44 }
 0x375   : > { %v2949_v45 = vpop.f32.mrf.mxu2 }
 0x376   : > { %v2950_v61 = vadd.f32 %v2949_v45, %v9560_v14  ;;  %v3038_v54 = vpop.f32.mrf.mxu3  ;;  %3416 = vmatpush.bf16.msrb.mxu0 %v6489_v2  ;;  %v6673_v2 = vld [vmem:[#allocation3 + $0x470] sm:$0xf] }
 0x377   : > { %v2773_v62 = vpop.f32.mrf.mxu0 }
 0x378   : > { %v7724_v15 = vpop.eup %7723  ;;  %v3039_v30 = vadd.f32 %v3038_v54, %v2950_v61  ;;  %v2774_v38 = vadd.f32 %v2773_v62, %v9554_v4  ;;  %v2862_v32 = vpop.f32.mrf.mxu1 }
 0x379   : > { %v9580_v43 = vpack.c.bf16 %v7724_v15, %v7722_v48 }
 0x37a   : > { %v2863_v63 = vadd.f32 %v2862_v32, %v2774_v38  ;;  %v7726_v18 = vpop.eup %7725 }
 0x37c   : > { %7727 = vtanh.f32 %v2863_v63 }
 0x37d   : > { %v2951_v39 = vpop.f32.mrf.mxu2  ;;  %7729 = vtanh.f32 %v3039_v30 }
 0x37e   : > { %v2952_v42 = vadd.f32 %v2951_v39, %v9560_v14  ;;  %v3040_v36 = vpop.f32.mrf.mxu3 }
 0x37f   : > { %v2776_v11 = vpop.f32.mrf.mxu0 }
 0x380   : > { %v3041_v1 = vadd.f32 %v3040_v36, %v2952_v42  ;;  %v2777_v13 = vadd.f32 %v2776_v11, %v9554_v4  ;;  %v2865_v33 = vpop.f32.mrf.mxu1 }
 0x382   : > { %v7728_v27 = vpop.eup %7727  ;;  %7731 = vtanh.f32 %v3041_v1  ;;  %v2866_v20 = vadd.f32 %v2865_v33, %v2777_v13  ;;  %2815 = vmatmul.bf16.gmra.mxu0 %v9497_v9  ;;  %2993 = vmatmul.bf16.gmra.mxu2 %v9497_v9 }
 0x383   : > { %2904 = vmatmul.bf16.gmra.mxu1 %v9501_v56  ;;  %3082 = vmatmul.bf16.gmra.mxu3 %v9501_v56  ;;  %v9588_v22 = vpack.c.bf16 %v7728_v27, %v7726_v18  ;;  %v7730_v19 = vpop.eup %7729 }
 0x384   : > { %7733 = vtanh.f32 %v2866_v20 }
 0x385   : > { %v2954_v25 = vpop.f32.mrf.mxu2 }
 0x386   : > { %v2955_v17 = vadd.f32 %v2954_v25, %v9560_v14  ;;  %v3043_v60 = vpop.f32.mrf.mxu3 }
 0x387   : > { %v2778_v35 = vpop.f32.mrf.mxu0 }
 0x388   : > { %v7732_v9 = vpop.eup %7731  ;;  %v3044_v53 = vadd.f32 %v3043_v60, %v2955_v17  ;;  %v2779_v29 = vadd.f32 %v2778_v35, %v9554_v4  ;;  %v2867_v56 = vpop.f32.mrf.mxu1  ;;  %v6490_v17 = vld [vmem:[#allocation3 + $0x308] sm:$0xf0]  ;;  %v7115_v60 = vld [vmem:[#allocation3 + $0x384] sm:$0xf] }
 0x389   : > { %v9592_v21 = vpack.c.bf16 %v7732_v9, %v7730_v19  ;;  %v6493_v19 = vor.u32 %v7099_v31, %v6490_v17  ;;  %v6554_v35 = vld [vmem:[#allocation3 + $0x388] sm:$0xf0] }
 0x38a   : > { %v2868_v46 = vadd.f32 %v2867_v56, %v2779_v29  ;;  %v7734_v61 = vpop.eup %7733  ;;  %v6557_v29 = vor.u32 %v7115_v60, %v6554_v35  ;;  %v7145_v35 = vld [vmem:[#allocation3 + $0x474] sm:$0xf] }
 0x38b   : > { %3594 = vmatpush.bf16.msrb.mxu2 %v6493_v19 }
 0x38c   : > { %7735 = vtanh.f32 %v2868_v46  ;;  %3683 = vmatpush.bf16.msrb.mxu3 %v6557_v29 }
 0x38d   : > { %v2956_v59 = vpop.f32.mrf.mxu2  ;;  %7737 = vtanh.f32 %v3044_v53 }
 0x38e   : > { %v2957_v52 = vadd.f32 %v2956_v59, %v9560_v14  ;;  %v3045_v16 = vpop.f32.mrf.mxu3 }
 0x38f   : > { %v2781_v58 = vpop.f32.mrf.mxu0 }
 0x390   : > { %v3046_v6 = vadd.f32 %v3045_v16, %v2957_v52  ;;  %v2782_v0 = vadd.f32 %v2781_v58, %v9554_v4  ;;  %v2870_v45 = vpop.f32.mrf.mxu1  ;;  %v6552_v52 = vld [vmem:[#allocation3 + $0x380] sm:$0xf]  ;;  %v7116_v58 = vld [vmem:[#allocation3 + $0x384] sm:$0xf0] }
 0x392   : > { %v7736_v54 = vpop.eup %7735  ;;  %7739 = vtanh.f32 %v3046_v6  ;;  %v2871_v48 = vadd.f32 %v2870_v45, %v2782_v0  ;;  %2820 = vmatmul.bf16.gmra.mxu0 %v9509_v57  ;;  %2998 = vmatmul.bf16.gmra.mxu2 %v9509_v57  ;;  %v6553_v45 = vor.u32 %v7116_v58, %v6552_v52  ;;  %v7146_v58 = vld [vmem:[#allocation3 + $0x474] sm:$0xf0] }
 0x393   : > { %2909 = vmatmul.bf16.gmra.mxu1 %v9513_v5  ;;  %3087 = vmatmul.bf16.gmra.mxu3 %v9513_v5  ;;  %v9600_v62 = vpack.c.bf16 %v7736_v54, %v7734_v61  ;;  %v7738_v32 = vpop.eup %7737 }
 0x394   : > { %7741 = vtanh.f32 %v2871_v48  ;;  %3505 = vmatpush.bf16.msrb.mxu1 %v6553_v45  ;;  %v6674_v45 = vor.u32 %v7146_v58, %v6673_v2 }
 0x395   : > { %v2959_v15 = vpop.f32.mrf.mxu2 }
 0x396   : > { %v2960_v30 = vadd.f32 %v2959_v15, %v9560_v14  ;;  %v3048_v38 = vpop.f32.mrf.mxu3  ;;  %4061 = vmatpush.bf16.msra.mxu0 %v6674_v45  ;;  %v6665_v45 = vld [vmem:[#allocation3 + $0x460] sm:$0xf] }
 0x397   : > { %v2783_v63 = vpop.f32.mrf.mxu0 }
 0x398   : > { %v7740_v39 = vpop.eup %7739  ;;  %v3049_v42 = vadd.f32 %v3048_v38, %v2960_v30  ;;  %v2784_v36 = vadd.f32 %v2783_v63, %v9554_v4  ;;  %v2872_v11 = vpop.f32.mrf.mxu1 }
 0x399   : > { %v9604_v1 = vpack.c.bf16 %v7740_v39, %v7738_v32 }
 0x39a   : > { %v2873_v57 = vadd.f32 %v2872_v11, %v2784_v36  ;;  %v7742_v10 = vpop.eup %7741 }
 0x39c   : > { %7743 = vtanh.f32 %v2873_v57 }
 0x39d   : > { %v2961_v13 = vpop.f32.mrf.mxu2  ;;  %7745 = vtanh.f32 %v3049_v42 }
 0x39e   : > { %v2962_v5 = vadd.f32 %v2961_v13, %v9560_v14  ;;  %v3050_v33 = vpop.f32.mrf.mxu3 }
 0x39f   : > { %v2786_v18 = vpop.f32.mrf.mxu0 }
 0x3a0   : > { %v3051_v27 = vadd.f32 %v3050_v33, %v2962_v5  ;;  %v2787_v20 = vadd.f32 %v2786_v18, %v9554_v4  ;;  %v2875_v55 = vpop.f32.mrf.mxu1 }
 0x3a2   : > { %v7744_v12 = vpop.eup %7743  ;;  %7747 = vtanh.f32 %v3051_v27  ;;  %v2876_v25 = vadd.f32 %v2875_v55, %v2787_v20  ;;  %2825 = vmatmul.bf16.gmra.mxu0 %v9521_v23  ;;  %3003 = vmatmul.bf16.gmra.mxu2 %v9521_v23 }
 0x3a3   : > { %2914 = vmatmul.bf16.gmra.mxu1 %v9525_v7  ;;  %3092 = vmatmul.bf16.gmra.mxu3 %v9525_v7  ;;  %v9612_v26 = vpack.c.bf16 %v7744_v12, %v7742_v10  ;;  %v7746_v56 = vpop.eup %7745 }
 0x3a4   : > { %7749 = vtanh.f32 %v2876_v25 }
 0x3a5   : > { %v2964_v34 = vpop.f32.mrf.mxu2 }
 0x3a6   : > { %v2965_v9 = vadd.f32 %v2964_v34, %v9560_v14  ;;  %v3053_v53 = vpop.f32.mrf.mxu3 }
 0x3a7   : > { %v2788_v46 = vpop.f32.mrf.mxu0 }
 0x3a8   : > { %v7748_v23 = vpop.eup %7747  ;;  %v3054_v50 = vadd.f32 %v3053_v53, %v2965_v9  ;;  %v2789_v47 = vadd.f32 %v2788_v46, %v9554_v4  ;;  %v2877_v7 = vpop.f32.mrf.mxu1  ;;  %v6675_v9 = vld [vmem:[#allocation3 + $0x478] sm:$0xf0]  ;;  %v7161_v53 = vld [vmem:[#allocation3 + $0x4f4] sm:$0xf] }
 0x3a9   : > { %v9616_v40 = vpack.c.bf16 %v7748_v23, %v7746_v56  ;;  %v6678_v56 = vor.u32 %v7145_v35, %v6675_v9  ;;  %v6739_v46 = vld [vmem:[#allocation3 + $0x4f8] sm:$0xf0] }
 0x3aa   : > { %v2878_v59 = vadd.f32 %v2877_v7, %v2789_v47  ;;  %v7750_v30 = vpop.eup %7749  ;;  %v6742_v47 = vor.u32 %v7161_v53, %v6739_v46  ;;  %v7143_v46 = vld [vmem:[#allocation3 + $0x464] sm:$0xf] }
 0x3ab   : > { %4239 = vmatpush.bf16.msra.mxu2 %v6678_v56 }
 0x3ac   : > { %7751 = vtanh.f32 %v2878_v59  ;;  %4328 = vmatpush.bf16.msra.mxu3 %v6742_v47 }
 0x3ad   : > { %v2966_v16 = vpop.f32.mrf.mxu2  ;;  %7753 = vtanh.f32 %v3054_v50 }
 0x3ae   : > { %v2967_v6 = vadd.f32 %v2966_v16, %v9560_v14  ;;  %v3055_v0 = vpop.f32.mrf.mxu3 }
 0x3af   : > { %v2791_v61 = vpop.f32.mrf.mxu0 }
 0x3b0   : > { %v3056_v54 = vadd.f32 %v3055_v0, %v2967_v6  ;;  %v2792_v48 = vadd.f32 %v2791_v61, %v9554_v4  ;;  %v2880_v15 = vpop.f32.mrf.mxu1  ;;  %v6737_v6 = vld [vmem:[#allocation3 + $0x4f0] sm:$0xf]  ;;  %v7162_v61 = vld [vmem:[#allocation3 + $0x4f4] sm:$0xf0] }
 0x3b2   : > { %v7752_v38 = vpop.eup %7751  ;;  %7755 = vtanh.f32 %v3056_v54  ;;  %v2881_v32 = vadd.f32 %v2880_v15, %v2792_v48  ;;  %2830 = vmatmul.bf16.gmra.mxu0 %v9533_v3  ;;  %3008 = vmatmul.bf16.gmra.mxu2 %v9533_v3  ;;  %v6738_v15 = vor.u32 %v7162_v61, %v6737_v6  ;;  %v7144_v61 = vld [vmem:[#allocation3 + $0x464] sm:$0xf0] }
 0x3b3   : > { %2919 = vmatmul.bf16.gmra.mxu1 %v9537_v8  ;;  %3097 = vmatmul.bf16.gmra.mxu3 %v9537_v8  ;;  %v9624_v63 = vpack.c.bf16 %v7752_v38, %v7750_v30  ;;  %v7754_v11 = vpop.eup %7753 }
 0x3b4   : > { %7757 = vtanh.f32 %v2881_v32  ;;  %4150 = vmatpush.bf16.msra.mxu1 %v6738_v15  ;;  %v6666_v15 = vor.u32 %v7144_v61, %v6665_v45 }
 0x3b5   : > { %v2969_v39 = vpop.f32.mrf.mxu2 }
 0x3b6   : > { %v2970_v42 = vadd.f32 %v2969_v39, %v9560_v14  ;;  %v3058_v36 = vpop.f32.mrf.mxu3  ;;  %4062 = vmatpush.bf16.msra.mxu0 %v6666_v15  ;;  %v6657_v15 = vld [vmem:[#allocation3 + $0x450] sm:$0xf] }
 0x3b7   : > { %v2793_v57 = vpop.f32.mrf.mxu0 }
 0x3b8   : > { %v7756_v13 = vpop.eup %7755  ;;  %v3059_v5 = vadd.f32 %v3058_v36, %v2970_v42  ;;  %v2794_v33 = vadd.f32 %v2793_v57, %v9554_v4  ;;  %v2882_v18 = vpop.f32.mrf.mxu1 }
 0x3b9   : > { %v9628_v27 = vpack.c.bf16 %v7756_v13, %v7754_v11 }
 0x3ba   : > { %v2883_v3 = vadd.f32 %v2882_v18, %v2794_v33  ;;  %v7758_v17 = vpop.eup %7757 }
 0x3bc   : > { %7759 = vtanh.f32 %v2883_v3 }
 0x3bd   : > { %v2971_v20 = vpop.f32.mrf.mxu2  ;;  %7761 = vtanh.f32 %v3059_v5 }
 0x3be   : > { %v2972_v8 = vadd.f32 %v2971_v20, %v9560_v14  ;;  %v3060_v55 = vpop.f32.mrf.mxu3 }
 0x3bf   : > { %v2796_v10 = vpop.f32.mrf.mxu0 }
 0x3c0   : > { %v3061_v12 = vadd.f32 %v3060_v55, %v2972_v8  ;;  %v2797_v25 = vadd.f32 %v2796_v10, %v9554_v4  ;;  %v2885_v31 = vpop.f32.mrf.mxu1 }
 0x3c2   : > { %v7760_v60 = vpop.eup %7759  ;;  %7763 = vtanh.f32 %v3061_v12  ;;  %v2886_v34 = vadd.f32 %v2885_v31, %v2797_v25  ;;  %2835 = vmatmul.bf16.gmra.mxu0 %v9545_v51  ;;  %3013 = vmatmul.bf16.gmra.mxu2 %v9545_v51 }
 0x3c3   : > { %2924 = vmatmul.bf16.gmra.mxu1 %v9552_v37  ;;  %3102 = vmatmul.bf16.gmra.mxu3 %v9552_v37  ;;  %v9636_v19 = vpack.c.bf16 %v7760_v60, %v7758_v17  ;;  %v7762_v7 = vpop.eup %7761 }
 0x3c4   : > { %7765 = vtanh.f32 %v2886_v34 }
 0x3c5   : > { %v2974_v29 = vpop.f32.mrf.mxu2 }
 0x3c6   : > { %v2975_v23 = vadd.f32 %v2974_v29, %v9560_v14  ;;  %v3063_v50 = vpop.f32.mrf.mxu3 }
 0x3c7   : > { %v2798_v59 = vpop.f32.mrf.mxu0 }
 0x3c8   : > { %v7764_v51 = vpop.eup %7763  ;;  %v3064_v44 = vadd.f32 %v3063_v50, %v2975_v23  ;;  %v2799_v41 = vadd.f32 %v2798_v59, %v9554_v4  ;;  %v2887_v37 = vpop.f32.mrf.mxu1  ;;  %v6667_v23 = vld [vmem:[#allocation3 + $0x468] sm:$0xf0]  ;;  %v7159_v50 = vld [vmem:[#allocation3 + $0x4e4] sm:$0xf] }
 0x3c9   : > { %v9640_v52 = vpack.c.bf16 %v7764_v51, %v7762_v7  ;;  %v6670_v7 = vor.u32 %v7143_v46, %v6667_v23  ;;  %v6731_v59 = vld [vmem:[#allocation3 + $0x4e8] sm:$0xf0] }
 0x3ca   : > { %v2888_v16 = vadd.f32 %v2887_v37, %v2799_v41  ;;  %v7766_v42 = vpop.eup %7765  ;;  %v6734_v41 = vor.u32 %v7159_v50, %v6731_v59  ;;  %v7141_v59 = vld [vmem:[#allocation3 + $0x454] sm:$0xf] }
 0x3cb   : > { %4240 = vmatpush.bf16.msra.mxu2 %v6670_v7 }
 0x3cc   : > { %7767 = vtanh.f32 %v2888_v16  ;;  %4329 = vmatpush.bf16.msra.mxu3 %v6734_v41 }
 0x3cd   : > { %v2976_v0 = vpop.f32.mrf.mxu2  ;;  %7769 = vtanh.f32 %v3064_v44 }
 0x3ce   : > { %v2977_v54 = vadd.f32 %v2976_v0, %v9560_v14  ;;  %v3065_v48 = vpop.f32.mrf.mxu3 }
 0x3cf   : > { %v2801_v30 = vpop.f32.mrf.mxu0 }
 0x3d0   : > { %v3066_v38 = vadd.f32 %v3065_v48, %v2977_v54  ;;  %v2802_v32 = vadd.f32 %v2801_v30, %v9554_v4  ;;  %v2890_v39 = vpop.f32.mrf.mxu1  ;;  %v6729_v54 = vld [vmem:[#allocation3 + $0x4e0] sm:$0xf]  ;;  %v7160_v30 = vld [vmem:[#allocation3 + $0x4e4] sm:$0xf0] }
 0x3d2   : > { %v7768_v36 = vpop.eup %7767  ;;  %7771 = vtanh.f32 %v3066_v38  ;;  %v2891_v11 = vadd.f32 %v2890_v39, %v2802_v32  ;;  %2840 = vmatmul.bf16.gmra.mxu0 %v9564_v28  ;;  %3018 = vmatmul.bf16.gmra.mxu2 %v9564_v28  ;;  %v6730_v39 = vor.u32 %v7160_v30, %v6729_v54  ;;  %v7142_v30 = vld [vmem:[#allocation3 + $0x454] sm:$0xf0] }
 0x3d3   : > { %2929 = vmatmul.bf16.gmra.mxu1 %v9568_v24  ;;  %3107 = vmatmul.bf16.gmra.mxu3 %v9568_v24  ;;  %v9648_v57 = vpack.c.bf16 %v7768_v36, %v7766_v42  ;;  %v7770_v18 = vpop.eup %7769 }
 0x3d4   : > { %7773 = vtanh.f32 %v2891_v11  ;;  %4151 = vmatpush.bf16.msra.mxu1 %v6730_v39  ;;  %v6658_v39 = vor.u32 %v7142_v30, %v6657_v15 }
 0x3d5   : > { %v2979_v13 = vpop.f32.mrf.mxu2 }
 0x3d6   : > { %v2980_v5 = vadd.f32 %v2979_v13, %v9560_v14  ;;  %v3068_v33 = vpop.f32.mrf.mxu3  ;;  %4063 = vmatpush.bf16.msra.mxu0 %v6658_v39  ;;  %v6649_v39 = vld [vmem:[#allocation3 + $0x440] sm:$0xf] }
 0x3d7   : > { %v2803_v3 = vpop.f32.mrf.mxu0 }
 0x3d8   : > { %v7772_v20 = vpop.eup %7771  ;;  %v3069_v8 = vadd.f32 %v3068_v33, %v2980_v5  ;;  %v2804_v55 = vadd.f32 %v2803_v3, %v9554_v4  ;;  %v2892_v10 = vpop.f32.mrf.mxu1 }
 0x3d9   : > { %v9652_v12 = vpack.c.bf16 %v7772_v20, %v7770_v18 }
 0x3da   : > { %v2893_v28 = vadd.f32 %v2892_v10, %v2804_v55  ;;  %v7774_v9 = vpop.eup %7773 }
 0x3dc   : > { %7775 = vtanh.f32 %v2893_v28 }
 0x3dd   : > { %v2981_v25 = vpop.f32.mrf.mxu2  ;;  %7777 = vtanh.f32 %v3069_v8 }
 0x3de   : > { %v2982_v24 = vadd.f32 %v2981_v25, %v9560_v14  ;;  %v3070_v31 = vpop.f32.mrf.mxu3 }
 0x3df   : > { %v2806_v17 = vpop.f32.mrf.mxu0 }
 0x3e0   : > { %v3071_v60 = vadd.f32 %v3070_v31, %v2982_v24  ;;  %v2807_v34 = vadd.f32 %v2806_v17, %v9554_v4  ;;  %v2895_v35 = vpop.f32.mrf.mxu1 }
 0x3e2   : > { %v7776_v53 = vpop.eup %7775  ;;  %7779 = vtanh.f32 %v3071_v60  ;;  %v2896_v29 = vadd.f32 %v2895_v35, %v2807_v34  ;;  %3417 = vmatmul.bf16.vlgmr.msrb.gmra.mxu0 %v9574_v49  ;;  %3595 = vmatmul.bf16.vlgmr.msrb.gmra.mxu2 %v9574_v49 }
 0x3e3   : > { %3506 = vmatmul.bf16.vlgmr.msrb.gmra.mxu1 %v9580_v43  ;;  %3684 = vmatmul.bf16.vlgmr.msrb.gmra.mxu3 %v9580_v43  ;;  %v9660_v56 = vpack.c.bf16 %v7776_v53, %v7774_v9  ;;  %v7778_v37 = vpop.eup %7777 }
 0x3e4   : > { %7781 = vtanh.f32 %v2896_v29 }
 0x3e5   : > { %v2984_v47 = vpop.f32.mrf.mxu2 }
 0x3e6   : > { %v2985_v51 = vadd.f32 %v2984_v47, %v9560_v14  ;;  %v3073_v44 = vpop.f32.mrf.mxu3 }
 0x3e7   : > { %v2808_v16 = vpop.f32.mrf.mxu0 }
 0x3e8   : > { %v7780_v49 = vpop.eup %7779  ;;  %v3074_v2 = vadd.f32 %v3073_v44, %v2985_v51  ;;  %v2809_v58 = vadd.f32 %v2808_v16, %v9554_v4  ;;  %v2897_v43 = vpop.f32.mrf.mxu1  ;;  %v6659_v51 = vld [vmem:[#allocation3 + $0x458] sm:$0xf0]  ;;  %v7157_v44 = vld [vmem:[#allocation3 + $0x4d4] sm:$0xf] }
 0x3e9   : > { %v9664_v6 = vpack.c.bf16 %v7780_v49, %v7778_v37  ;;  %v6662_v37 = vor.u32 %v7141_v59, %v6659_v51  ;;  %v6723_v16 = vld [vmem:[#allocation3 + $0x4d8] sm:$0xf0] }
 0x3ea   : > { %v2898_v0 = vadd.f32 %v2897_v43, %v2809_v58  ;;  %v7782_v5 = vpop.eup %7781  ;;  %v6726_v58 = vor.u32 %v7157_v44, %v6723_v16  ;;  %v7139_v16 = vld [vmem:[#allocation3 + $0x444] sm:$0xf] }
 0x3eb   : > { %4241 = vmatpush.bf16.msra.mxu2 %v6662_v37 }
 0x3ec   : > { %7783 = vtanh.f32 %v2898_v0  ;;  %4330 = vmatpush.bf16.msra.mxu3 %v6726_v58 }
 0x3ed   : > { %v2986_v48 = vpop.f32.mrf.mxu2  ;;  %7785 = vtanh.f32 %v3074_v2 }
 0x3ee   : > { %v2987_v38 = vadd.f32 %v2986_v48, %v9560_v14  ;;  %v3075_v32 = vpop.f32.mrf.mxu3 }
 0x3ef   : > { %v2811_v42 = vpop.f32.mrf.mxu0 }
 0x3f0   : > { %v3076_v36 = vadd.f32 %v3075_v32, %v2987_v38  ;;  %v2812_v11 = vadd.f32 %v2811_v42, %v9554_v4  ;;  %v2900_v13 = vpop.f32.mrf.mxu1  ;;  %v6721_v38 = vld [vmem:[#allocation3 + $0x4d0] sm:$0xf]  ;;  %v7158_v42 = vld [vmem:[#allocation3 + $0x4d4] sm:$0xf0] }
 0x3f2   : > { %v7784_v33 = vpop.eup %7783  ;;  %7787 = vtanh.f32 %v3076_v36  ;;  %v2901_v18 = vadd.f32 %v2900_v13, %v2812_v11  ;;  %3422 = vmatmul.bf16.gmra.mxu0 %v9588_v22  ;;  %3600 = vmatmul.bf16.gmra.mxu2 %v9588_v22  ;;  %v6722_v13 = vor.u32 %v7158_v42, %v6721_v38  ;;  %v7140_v42 = vld [vmem:[#allocation3 + $0x444] sm:$0xf0] }
 0x3f3   : > { %3511 = vmatmul.bf16.gmra.mxu1 %v9592_v21  ;;  %3689 = vmatmul.bf16.gmra.mxu3 %v9592_v21  ;;  %v9672_v3 = vpack.c.bf16 %v7784_v33, %v7782_v5  ;;  %v7786_v10 = vpop.eup %7785 }
 0x3f4   : > { %7789 = vtanh.f32 %v2901_v18  ;;  %4152 = vmatpush.bf16.msra.mxu1 %v6722_v13  ;;  %v6650_v13 = vor.u32 %v7140_v42, %v6649_v39 }
 0x3f5   : > { %v2989_v20 = vpop.f32.mrf.mxu2 }
 0x3f6   : > { %v2990_v8 = vadd.f32 %v2989_v20, %v9560_v14  ;;  %v3078_v55 = vpop.f32.mrf.mxu3  ;;  %4064 = vmatpush.bf16.msra.mxu0 %v6650_v13 }
 0x3f7   : > { %v2813_v28 = vpop.f32.mrf.mxu0 }
 0x3f8   : > { %v7788_v25 = vpop.eup %7787  ;;  %v3079_v24 = vadd.f32 %v3078_v55, %v2990_v8  ;;  %v2814_v31 = vadd.f32 %v2813_v28, %v9554_v4  ;;  %v2902_v17 = vpop.f32.mrf.mxu1 }
 0x3f9   : > { %v9676_v60 = vpack.c.bf16 %v7788_v25, %v7786_v10 }
 0x3fa   : > { %v2903_v22 = vadd.f32 %v2902_v17, %v2814_v31  ;;  %v7790_v23 = vpop.eup %7789 }
 0x3fc   : > { %7791 = vtanh.f32 %v2903_v22 }
 0x3fd   : > { %v2991_v34 = vpop.f32.mrf.mxu2  ;;  %7793 = vtanh.f32 %v3079_v24 }
 0x3fe   : > { %v2992_v21 = vadd.f32 %v2991_v34, %v9560_v14  ;;  %v3080_v35 = vpop.f32.mrf.mxu3 }
 0x3ff   : > { %v2816_v9 = vpop.f32.mrf.mxu0 }
 0x400   : > { %v3081_v53 = vadd.f32 %v3080_v35, %v2992_v21  ;;  %v2817_v29 = vadd.f32 %v2816_v9, %v9554_v4  ;;  %v2905_v46 = vpop.f32.mrf.mxu1 }
 0x402   : > { %v7792_v50 = vpop.eup %7791  ;;  %7795 = vtanh.f32 %v3081_v53  ;;  %v2906_v47 = vadd.f32 %v2905_v46, %v2817_v29  ;;  %3427 = vmatmul.bf16.gmra.mxu0 %v9600_v62  ;;  %3605 = vmatmul.bf16.gmra.mxu2 %v9600_v62 }
 0x403   : > { %3516 = vmatmul.bf16.gmra.mxu1 %v9604_v1  ;;  %3694 = vmatmul.bf16.gmra.mxu3 %v9604_v1  ;;  %v9684_v7 = vpack.c.bf16 %v7792_v50, %v7790_v23  ;;  %v7794_v43 = vpop.eup %7793 }
 0x404   : > { %7797 = vtanh.f32 %v2906_v47 }
 0x405   : > { %v2994_v41 = vpop.f32.mrf.mxu2 }
 0x406   : > { %v2995_v49 = vadd.f32 %v2994_v41, %v9560_v14  ;;  %v3083_v2 = vpop.f32.mrf.mxu3 }
 0x407   : > { %v2818_v0 = vpop.f32.mrf.mxu0 }
 0x408   : > { %v7796_v62 = vpop.eup %7795  ;;  %v3084_v45 = vadd.f32 %v3083_v2, %v2995_v49  ;;  %v2819_v61 = vadd.f32 %v2818_v0, %v9554_v4  ;;  %v2907_v1 = vpop.f32.mrf.mxu1  ;;  %v6651_v49 = vld [vmem:[#allocation3 + $0x448] sm:$0xf0]  ;;  %v7155_v2 = vld [vmem:[#allocation3 + $0x4c4] sm:$0xf] }
 0x409   : > { %v9688_v54 = vpack.c.bf16 %v7796_v62, %v7794_v43  ;;  %v6654_v43 = vor.u32 %v7139_v16, %v6651_v49  ;;  %v6715_v0 = vld [vmem:[#allocation3 + $0x4c8] sm:$0xf0] }
 0x40a   : > { %v2908_v48 = vadd.f32 %v2907_v1, %v2819_v61  ;;  %v7798_v8 = vpop.eup %7797  ;;  %v6718_v61 = vor.u32 %v7155_v2, %v6715_v0  ;;  %v7137_v0 = vld [vmem:[#allocation3 + $0x434] sm:$0xf] }
 0x40b   : > { %4242 = vmatpush.bf16.msra.mxu2 %v6654_v43 }
 0x40c   : > { %7799 = vtanh.f32 %v2908_v48  ;;  %4331 = vmatpush.bf16.msra.mxu3 %v6718_v61 }
 0x40d   : > { %v2996_v32 = vpop.f32.mrf.mxu2  ;;  %7801 = vtanh.f32 %v3084_v45 }
 0x40e   : > { %v2997_v36 = vadd.f32 %v2996_v32, %v9560_v14  ;;  %v3085_v11 = vpop.f32.mrf.mxu3 }
 0x40f   : > { %v2821_v5 = vpop.f32.mrf.mxu0 }
 0x410   : > { %v3086_v33 = vadd.f32 %v3085_v11, %v2997_v36  ;;  %v2822_v18 = vadd.f32 %v2821_v5, %v9554_v4  ;;  %v2910_v20 = vpop.f32.mrf.mxu1  ;;  %v6713_v36 = vld [vmem:[#allocation3 + $0x4c0] sm:$0xf]  ;;  %v7156_v5 = vld [vmem:[#allocation3 + $0x4c4] sm:$0xf0] }
 0x412   : > { %v7800_v55 = vpop.eup %7799  ;;  %7803 = vtanh.f32 %v3086_v33  ;;  %v2911_v10 = vadd.f32 %v2910_v20, %v2822_v18  ;;  %3432 = vmatmul.bf16.gmra.mxu0 %v9612_v26  ;;  %3610 = vmatmul.bf16.gmra.mxu2 %v9612_v26  ;;  %v6714_v20 = vor.u32 %v7156_v5, %v6713_v36 }
 0x413   : > { %3521 = vmatmul.bf16.gmra.mxu1 %v9616_v40  ;;  %3699 = vmatmul.bf16.gmra.mxu3 %v9616_v40  ;;  %v9696_v28 = vpack.c.bf16 %v7800_v55, %v7798_v8  ;;  %v7802_v17 = vpop.eup %7801 }
 0x414   : > { %7805 = vtanh.f32 %v2911_v10  ;;  %4153 = vmatpush.bf16.msra.mxu1 %v6714_v20 }
 0x415   : > { %v2999_v25 = vpop.f32.mrf.mxu2 }
 0x416   : > { %v3000_v24 = vadd.f32 %v2999_v25, %v9560_v14  ;;  %v3088_v31 = vpop.f32.mrf.mxu3 }
 0x417   : > { %v2823_v22 = vpop.f32.mrf.mxu0 }
 0x418   : > { %v7804_v34 = vpop.eup %7803  ;;  %v3089_v21 = vadd.f32 %v3088_v31, %v3000_v24  ;;  %v2824_v35 = vadd.f32 %v2823_v22, %v9554_v4  ;;  %v2912_v9 = vpop.f32.mrf.mxu1 }
 0x419   : > { %v9700_v53 = vpack.c.bf16 %v7804_v34, %v7802_v17 }
 0x41a   : > { %v2913_v26 = vadd.f32 %v2912_v9, %v2824_v35  ;;  %v7806_v51 = vpop.eup %7805 }
 0x41c   : > { %7807 = vtanh.f32 %v2913_v26 }
 0x41d   : > { %v3001_v29 = vpop.f32.mrf.mxu2  ;;  %7809 = vtanh.f32 %v3089_v21 }
 0x41e   : > { %v3002_v40 = vadd.f32 %v3001_v29, %v9560_v14  ;;  %v3090_v46 = vpop.f32.mrf.mxu3 }
 0x41f   : > { %v2826_v23 = vpop.f32.mrf.mxu0 }
 0x420   : > { %v3091_v50 = vadd.f32 %v3090_v46, %v3002_v40  ;;  %v2827_v47 = vadd.f32 %v2826_v23, %v9554_v4  ;;  %v2915_v59 = vpop.f32.mrf.mxu1 }
 0x422   : > { %v7808_v44 = vpop.eup %7807  ;;  %7811 = vtanh.f32 %v3091_v50  ;;  %v2916_v41 = vadd.f32 %v2915_v59, %v2827_v47  ;;  %3437 = vmatmul.bf16.gmra.mxu0 %v9624_v63  ;;  %3615 = vmatmul.bf16.gmra.mxu2 %v9624_v63 }
 0x423   : > { %3526 = vmatmul.bf16.gmra.mxu1 %v9628_v27  ;;  %3704 = vmatmul.bf16.gmra.mxu3 %v9628_v27  ;;  %v9708_v37 = vpack.c.bf16 %v7808_v44, %v7806_v51  ;;  %v7810_v1 = vpop.eup %7809 }
 0x424   : > { %7813 = vtanh.f32 %v2916_v41 }
 0x425   : > { %v3004_v58 = vpop.f32.mrf.mxu2 }
 0x426   : > { %v3005_v62 = vadd.f32 %v3004_v58, %v9560_v14  ;;  %v3093_v45 = vpop.f32.mrf.mxu3 }
 0x427   : > { %v2828_v48 = vpop.f32.mrf.mxu0 }
 0x428   : > { %v7812_v63 = vpop.eup %7811  ;;  %v3094_v15 = vadd.f32 %v3093_v45, %v3005_v62  ;;  %v2829_v30 = vadd.f32 %v2828_v48, %v9554_v4  ;;  %v2917_v27 = vpop.f32.mrf.mxu1  ;;  %v6643_v62 = vld [vmem:[#allocation3 + $0x438] sm:$0xf0]  ;;  %v7153_v45 = vld [vmem:[#allocation3 + $0x4b4] sm:$0xf] }
 0x429   : > { %v9712_v38 = vpack.c.bf16 %v7812_v63, %v7810_v1  ;;  %v6646_v1 = vor.u32 %v7137_v0, %v6643_v62  ;;  %v6707_v48 = vld [vmem:[#allocation3 + $0x4b8] sm:$0xf0] }
 0x42a   : > { %v2918_v32 = vadd.f32 %v2917_v27, %v2829_v30  ;;  %v7814_v24 = vpop.eup %7813  ;;  %v6710_v30 = vor.u32 %v7153_v45, %v6707_v48 }
 0x42b   : > { %4243 = vmatpush.bf16.msra.mxu2 %v6646_v1 }
 0x42c   : > { %7815 = vtanh.f32 %v2918_v32  ;;  %4332 = vmatpush.bf16.msra.mxu3 %v6710_v30  ;;  %v7151_v30 = vld [vmem:[#allocation3 + $0x4a4] sm:$0xf] }
 0x42d   : > { %v3006_v11 = vpop.f32.mrf.mxu2  ;;  %7817 = vtanh.f32 %v3094_v15 }
 0x42e   : > { %v3007_v33 = vadd.f32 %v3006_v11, %v9560_v14  ;;  %v3095_v18 = vpop.f32.mrf.mxu3 }
 0x42f   : > { %v2831_v8 = vpop.f32.mrf.mxu0 }
 0x430   : > { %v3096_v55 = vadd.f32 %v3095_v18, %v3007_v33  ;;  %v2832_v10 = vadd.f32 %v2831_v8, %v9554_v4  ;;  %v2920_v25 = vpop.f32.mrf.mxu1 }
 0x432   : > { %v7816_v31 = vpop.eup %7815  ;;  %7819 = vtanh.f32 %v3096_v55  ;;  %v2921_v17 = vadd.f32 %v2920_v25, %v2832_v10  ;;  %3442 = vmatmul.bf16.gmra.mxu0 %v9636_v19  ;;  %3620 = vmatmul.bf16.gmra.mxu2 %v9636_v19 }
 0x433   : > { %3531 = vmatmul.bf16.gmra.mxu1 %v9640_v52  ;;  %3709 = vmatmul.bf16.gmra.mxu3 %v9640_v52  ;;  %v9720_v22 = vpack.c.bf16 %v7816_v31, %v7814_v24  ;;  %v7818_v9 = vpop.eup %7817  ;;  %v6641_v31 = vld [vmem:[#allocation3 + $0x430] sm:$0xf] }
 0x434   : > { %7821 = vtanh.f32 %v2921_v17  ;;  %v7138_v17 = vld [vmem:[#allocation3 + $0x434] sm:$0xf0] }
 0x435   : > { %v3009_v34 = vpop.f32.mrf.mxu2 }
 0x436   : > { %v3010_v21 = vadd.f32 %v3009_v34, %v9560_v14  ;;  %v3098_v35 = vpop.f32.mrf.mxu3  ;;  %v6705_v34 = vld [vmem:[#allocation3 + $0x4b0] sm:$0xf] }
 0x437   : > { %v2833_v26 = vpop.f32.mrf.mxu0 }
 0x438   : > { %v7820_v29 = vpop.eup %7819  ;;  %v3099_v40 = vadd.f32 %v3098_v35, %v3010_v21  ;;  %v2834_v46 = vadd.f32 %v2833_v26, %v9554_v4  ;;  %v2922_v23 = vpop.f32.mrf.mxu1  ;;  %v6642_v35 = vor.u32 %v7138_v17, %v6641_v31  ;;  %v7152_v31 = vld [vmem:[#allocation3 + $0x4a4] sm:$0xf0] }
 0x439   : > { %v9724_v50 = vpack.c.bf16 %v7820_v29, %v7818_v9  ;;  %v7154_v9 = vld [vmem:[#allocation3 + $0x4b4] sm:$0xf0] }
 0x43a   : > { %v2923_v19 = vadd.f32 %v2922_v23, %v2834_v46  ;;  %v7822_v49 = vpop.eup %7821  ;;  %v6706_v29 = vor.u32 %v7154_v9, %v6705_v34  ;;  %4065 = vmatpush.bf16.msra.mxu0 %v6642_v35 }
 0x43c   : > { %7823 = vtanh.f32 %v2923_v19  ;;  %4154 = vmatpush.bf16.msra.mxu1 %v6706_v29 }
 0x43d   : > { %v3011_v47 = vpop.f32.mrf.mxu2  ;;  %7825 = vtanh.f32 %v3099_v40 }
 0x43e   : > { %v3012_v52 = vadd.f32 %v3011_v47, %v9560_v14  ;;  %v3100_v59 = vpop.f32.mrf.mxu3 }
 0x43f   : > { %v2836_v51 = vpop.f32.mrf.mxu0 }
 0x440   : > { %v3101_v44 = vadd.f32 %v3100_v59, %v3012_v52  ;;  %v2837_v41 = vadd.f32 %v2836_v51, %v9554_v4  ;;  %v2925_v16 = vpop.f32.mrf.mxu1  ;;  %v6485_v59 = vld [vmem:[%s10638_s4 + $0x6] sm:$0x3] }
 0x441   : > { %v9759_v48 = vperm.slane %v6485_v59, 1 }
 0x442   : > { %v7824_v2 = vpop.eup %7823  ;;  %7827 = vtanh.f32 %v3101_v44  ;;  %v2926_v58 = vadd.f32 %v2925_v16, %v2837_v41  ;;  %3447 = vmatmul.bf16.gmra.mxu0 %v9648_v57  ;;  %3625 = vmatmul.bf16.gmra.mxu2 %v9648_v57  ;;  %v9753_v41 = vperm.slane %v6485_v59, 0 }
 0x443   : > { %3536 = vmatmul.bf16.gmra.mxu1 %v9652_v12  ;;  %3714 = vmatmul.bf16.gmra.mxu3 %v9652_v12  ;;  %v9732_v43 = vpack.c.bf16 %v7824_v2, %v7822_v49  ;;  %v7826_v27 = vpop.eup %7825 }
 0x444   : > { %7829 = vtanh.f32 %v2926_v58 }
 0x445   : > { %v3014_v61 = vpop.f32.mrf.mxu2 }
 0x446   : > { %v3015_v63 = vadd.f32 %v3014_v61, %v9560_v14  ;;  %v3103_v15 = vpop.f32.mrf.mxu3 }
 0x447   : > { %v2838_v32 = vpop.f32.mrf.mxu0 }
 0x448   : > { %v7828_v57 = vpop.eup %7827  ;;  %v3104_v39 = vadd.f32 %v3103_v15, %v3015_v63  ;;  %v2839_v42 = vadd.f32 %v2838_v32, %v9554_v4  ;;  %v2927_v12 = vpop.f32.mrf.mxu1  ;;  %v7135_v63 = vld [vmem:[#allocation3 + $0x424] sm:$0xf]  ;;  %v6635_v15 = vld [vmem:[#allocation3 + $0x428] sm:$0xf0] }
 0x449   : > { %v9736_v36 = vpack.c.bf16 %v7828_v57, %v7826_v27  ;;  %v6638_v32 = vor.u32 %v7135_v63, %v6635_v15  ;;  %v6699_v57 = vld [vmem:[#allocation3 + $0x4a8] sm:$0xf0] }
 0x44a   : > { %v2928_v11 = vadd.f32 %v2927_v12, %v2839_v42  ;;  %v7830_v10 = vpop.eup %7829  ;;  %v6702_v12 = vor.u32 %v7151_v30, %v6699_v57  ;;  %v7133_v57 = vld [vmem:[#allocation3 + $0x414] sm:$0xf] }
 0x44b   : > { %4244 = vmatpush.bf16.msra.mxu2 %v6638_v32 }
 0x44c   : > { %7831 = vtanh.f32 %v2928_v11  ;;  %4333 = vmatpush.bf16.msra.mxu3 %v6702_v12 }
 0x44d   : > { %v3016_v13 = vpop.f32.mrf.mxu2  ;;  %7833 = vtanh.f32 %v3104_v39 }
 0x44e   : > { %v3017_v5 = vadd.f32 %v3016_v13, %v9560_v14  ;;  %v3105_v33 = vpop.f32.mrf.mxu3 }
 0x44f   : > { %v2841_v18 = vpop.f32.mrf.mxu0 }
 0x450   : > { %v3106_v20 = vadd.f32 %v3105_v33, %v3017_v5  ;;  %v2842_v8 = vadd.f32 %v2841_v18, %v9554_v4  ;;  %v2930_v55 = vpop.f32.mrf.mxu1 }
 0x452   : > { %v7832_v25 = vpop.eup %7831  ;;  %7835 = vtanh.f32 %v3106_v20  ;;  %v2931_v24 = vadd.f32 %v2930_v55, %v2842_v8  ;;  %3452 = vmatmul.bf16.gmra.mxu0 %v9660_v56  ;;  %3630 = vmatmul.bf16.gmra.mxu2 %v9660_v56  ;;  %v6633_v8 = vld [vmem:[#allocation3 + $0x420] sm:$0xf]  ;;  %v7136_v55 = vld [vmem:[#allocation3 + $0x424] sm:$0xf0] }
 0x453   : > { %3541 = vmatmul.bf16.gmra.mxu1 %v9664_v6  ;;  %3719 = vmatmul.bf16.gmra.mxu3 %v9664_v6  ;;  %v9744_v21 = vpack.c.bf16 %v7832_v25, %v7830_v10  ;;  %v7834_v23 = vpop.eup %7833  ;;  %v6697_v10 = vld [vmem:[#allocation3 + $0x4a0] sm:$0xf] }
 0x454   : > { %7837 = vtanh.f32 %v2931_v24  ;;  %v6634_v24 = vor.u32 %v7136_v55, %v6633_v8  ;;  %v6698_v35 = vor.u32 %v7152_v31, %v6697_v10  ;;  %v7134_v31 = vld [vmem:[#allocation3 + $0x414] sm:$0xf0] }
 0x455   : > { %v3019_v26 = vpop.f32.mrf.mxu2 }
 0x456   : > { %v3020_v40 = vadd.f32 %v3019_v26, %v9560_v14  ;;  %v3108_v46 = vpop.f32.mrf.mxu3  ;;  %4066 = vmatpush.bf16.msra.mxu0 %v6634_v24  ;;  %4155 = vmatpush.bf16.msra.mxu1 %v6698_v35  ;;  %v6625_v24 = vld [vmem:[#allocation3 + $0x410] sm:$0xf] }
 0x457   : > { %v2843_v19 = vpop.f32.mrf.mxu0  ;;  %v6626_v35 = vor.u32 %v7134_v31, %v6625_v24 }
 0x458   : > { %v7836_v56 = vpop.eup %7835  ;;  %v3109_v47 = vadd.f32 %v3108_v46, %v3020_v40  ;;  %v2844_v6 = vadd.f32 %v2843_v19, %v9554_v4  ;;  %v2932_v52 = vpop.f32.mrf.mxu1 }
 0x459   : > { %v9751_v51 = vpack.c.bf16 %v7836_v56, %v7834_v23 }
 0x45a   : > { %v2933_v44 = vadd.f32 %v2932_v52, %v2844_v6  ;;  %v7838_v45 = vpop.eup %7837  ;;  %4067 = vmatpush.bf16.msra.mxu0 %v6626_v35  ;;  %v6617_v35 = vld [vmem:[#allocation3 + $0x400] sm:$0xf] }
 0x45c   : > { %7839 = vtanh.f32 %v2933_v44 }
 0x45d   : > { %v3021_v16 = vpop.f32.mrf.mxu2  ;;  %7841 = vtanh.f32 %v3109_v47 }
 0x45e   : > { %v3022_v49 = vadd.f32 %v3021_v16, %v9560_v14  ;;  %v3110_v2 = vpop.f32.mrf.mxu3 }
 0x45f   : > { %v3418_v58 = vpop.f32.mrf.mxu0 }
 0x460   : > { %v3111_v0 = vadd.f32 %v3110_v2, %v3022_v49  ;;  %v3419_v4 = vadd.f32 %v3418_v58, %v9753_v41  ;;  %v3507_v62 = vpop.f32.mrf.mxu1 }
 0x462   : > { %v7840_v61 = vpop.eup %7839  ;;  %7843 = vtanh.f32 %v3111_v0  ;;  %v3508_v1 = vadd.f32 %v3507_v62, %v3419_v4  ;;  %3457 = vmatmul.bf16.gmra.mxu0 %v9672_v3  ;;  %3635 = vmatmul.bf16.gmra.mxu2 %v9672_v3 }
 0x463   : > { %3546 = vmatmul.bf16.gmra.mxu1 %v9676_v60  ;;  %3724 = vmatmul.bf16.gmra.mxu3 %v9676_v60  ;;  %v9763_v14 = vpack.c.bf16 %v7840_v61, %v7838_v45  ;;  %v7842_v11 = vpop.eup %7841 }
 0x464   : > { %7845 = vtanh.f32 %v3508_v1 }
 0x465   : > { %v3596_v27 = vpop.f32.mrf.mxu2 }
 0x466   : > { %v3597_v39 = vadd.f32 %v3596_v27, %v9759_v48  ;;  %v3685_v42 = vpop.f32.mrf.mxu3 }
 0x467   : > { %v3420_v3 = vpop.f32.mrf.mxu0 }
 0x468   : > { %v7844_v13 = vpop.eup %7843  ;;  %v3686_v5 = vadd.f32 %v3685_v42, %v3597_v39  ;;  %v3421_v33 = vadd.f32 %v3420_v3, %v9753_v41  ;;  %v3509_v60 = vpop.f32.mrf.mxu1  ;;  %v6627_v39 = vld [vmem:[#allocation3 + $0x418] sm:$0xf0]  ;;  %v7149_v42 = vld [vmem:[#allocation3 + $0x494] sm:$0xf] }
 0x469   : > { %v9767_v18 = vpack.c.bf16 %v7844_v13, %v7842_v11  ;;  %v6630_v11 = vor.u32 %v7133_v57, %v6627_v39  ;;  %v6691_v3 = vld [vmem:[#allocation3 + $0x498] sm:$0xf0] }
 0x46a   : > { %v3510_v20 = vadd.f32 %v3509_v60, %v3421_v33  ;;  %v7846_v46 = vpop.eup %7845  ;;  %v6694_v33 = vor.u32 %v7149_v42, %v6691_v3  ;;  %v7131_v3 = vld [vmem:[#allocation3 + $0x404] sm:$0xf] }
 0x46b   : > { %4245 = vmatpush.bf16.msra.mxu2 %v6630_v11 }
 0x46c   : > { %7847 = vtanh.f32 %v3510_v20  ;;  %4334 = vmatpush.bf16.msra.mxu3 %v6694_v33 }
 0x46d   : > { %v3598_v25 = vpop.f32.mrf.mxu2  ;;  %7849 = vtanh.f32 %v3686_v5 }
 0x46e   : > { %v3599_v17 = vadd.f32 %v3598_v25, %v9759_v48  ;;  %v3687_v34 = vpop.f32.mrf.mxu3 }
 0x46f   : > { %v3423_v9 = vpop.f32.mrf.mxu0 }
 0x470   : > { %v3688_v26 = vadd.f32 %v3687_v34, %v3599_v17  ;;  %v3424_v29 = vadd.f32 %v3423_v9, %v9753_v41  ;;  %v3512_v40 = vpop.f32.mrf.mxu1  ;;  %v6689_v17 = vld [vmem:[#allocation3 + $0x490] sm:$0xf]  ;;  %v7150_v9 = vld [vmem:[#allocation3 + $0x494] sm:$0xf0] }
 0x472   : > { %v7848_v23 = vpop.eup %7847  ;;  %7851 = vtanh.f32 %v3688_v26  ;;  %v3513_v19 = vadd.f32 %v3512_v40, %v3424_v29  ;;  %3462 = vmatmul.bf16.gmra.mxu0 %v9684_v7  ;;  %3640 = vmatmul.bf16.gmra.mxu2 %v9684_v7  ;;  %v6690_v40 = vor.u32 %v7150_v9, %v6689_v17  ;;  %v7132_v9 = vld [vmem:[#allocation3 + $0x404] sm:$0xf0] }
 0x473   : > { %v9773_v56 = vpack.c.bf16 %v7848_v23, %v7846_v46  ;;  %3551 = vmatmul.bf16.gmra.mxu1 %v9688_v54  ;;  %3729 = vmatmul.bf16.gmra.mxu3 %v9688_v54  ;;  %v7850_v59 = vpop.eup %7849 }
 0x474   : > { %7853 = vtanh.f32 %v3513_v19  ;;  %4156 = vmatpush.bf16.msra.mxu1 %v6690_v40  ;;  %v6618_v40 = vor.u32 %v7132_v9, %v6617_v35 }
 0x475   : > { %v3601_v47 = vpop.f32.mrf.mxu2 }
 0x476   : > { %v3602_v6 = vadd.f32 %v3601_v47, %v9759_v48  ;;  %v3690_v52 = vpop.f32.mrf.mxu3  ;;  %4068 = vmatpush.bf16.msra.mxu0 %v6618_v40  ;;  %v6802_v40 = vld [vmem:[#allocation3 + $0x570] sm:$0xf] }
 0x477   : > { %v3425_v44 = vpop.f32.mrf.mxu0 }
 0x478   : > { %v7852_v16 = vpop.eup %7851  ;;  %v3691_v49 = vadd.f32 %v3690_v52, %v3602_v6  ;;  %v3426_v2 = vadd.f32 %v3425_v44, %v9753_v41  ;;  %v3514_v58 = vpop.f32.mrf.mxu1 }
 0x479   : > { %v9779_v0 = vpack.c.bf16 %v7852_v16, %v7850_v59 }
 0x47a   : > { %v3515_v7 = vadd.f32 %v3514_v58, %v3426_v2  ;;  %v7854_v15 = vpop.eup %7853 }
 0x47c   : > { %7855 = vtanh.f32 %v3515_v7 }
 0x47d   : > { %v3603_v4 = vpop.f32.mrf.mxu2  ;;  %7857 = vtanh.f32 %v3691_v49 }
 0x47e   : > { %v3604_v62 = vadd.f32 %v3603_v4, %v9759_v48  ;;  %v3692_v54 = vpop.f32.mrf.mxu3 }
 0x47f   : > { %v3428_v45 = vpop.f32.mrf.mxu0 }
 0x480   : > { %v3693_v61 = vadd.f32 %v3692_v54, %v3604_v62  ;;  %v3429_v1 = vadd.f32 %v3428_v45, %v9753_v41  ;;  %v3517_v63 = vpop.f32.mrf.mxu1 }
 0x482   : > { %v7856_v30 = vpop.eup %7855  ;;  %7859 = vtanh.f32 %v3693_v61  ;;  %v3518_v27 = vadd.f32 %v3517_v63, %v3429_v1  ;;  %3467 = vmatmul.bf16.gmra.mxu0 %v9696_v28  ;;  %3645 = vmatmul.bf16.gmra.mxu2 %v9696_v28 }
 0x483   : > { %3556 = vmatmul.bf16.gmra.mxu1 %v9700_v53  ;;  %3734 = vmatmul.bf16.gmra.mxu3 %v9700_v53  ;;  %v9787_v32 = vpack.c.bf16 %v7856_v30, %v7854_v15  ;;  %v7858_v60 = vpop.eup %7857 }
 0x484   : > { %7861 = vtanh.f32 %v3518_v27 }
 0x485   : > { %v3606_v12 = vpop.f32.mrf.mxu2 }
 0x486   : > { %v3607_v13 = vadd.f32 %v3606_v12, %v9759_v48  ;;  %v3695_v5 = vpop.f32.mrf.mxu3 }
 0x487   : > { %v3430_v20 = vpop.f32.mrf.mxu0 }
 0x488   : > { %v7860_v28 = vpop.eup %7859  ;;  %v3696_v8 = vadd.f32 %v3695_v5, %v3607_v13  ;;  %v3431_v55 = vadd.f32 %v3430_v20, %v9753_v41  ;;  %v3519_v53 = vpop.f32.mrf.mxu1  ;;  %v6619_v13 = vld [vmem:[#allocation3 + $0x408] sm:$0xf0]  ;;  %v7147_v5 = vld [vmem:[#allocation3 + $0x484] sm:$0xf] }
 0x489   : > { %v9791_v10 = vpack.c.bf16 %v7860_v28, %v7858_v60  ;;  %v6622_v60 = vor.u32 %v7131_v3, %v6619_v13  ;;  %v6683_v20 = vld [vmem:[#allocation3 + $0x488] sm:$0xf0] }
 0x48a   : > { %v3520_v25 = vadd.f32 %v3519_v53, %v3431_v55  ;;  %v7862_v6 = vpop.eup %7861  ;;  %v6686_v55 = vor.u32 %v7147_v5, %v6683_v20  ;;  %v7177_v20 = vld [vmem:[#allocation3 + $0x574] sm:$0xf] }
 0x48b   : > { %4246 = vmatpush.bf16.msra.mxu2 %v6622_v60 }
 0x48c   : > { %7863 = vtanh.f32 %v3520_v25  ;;  %4335 = vmatpush.bf16.msra.mxu3 %v6686_v55 }
 0x48d   : > { %v3608_v34 = vpop.f32.mrf.mxu2  ;;  %7865 = vtanh.f32 %v3696_v8 }
 0x48e   : > { %v3609_v26 = vadd.f32 %v3608_v34, %v9759_v48  ;;  %v3697_v29 = vpop.f32.mrf.mxu3 }
 0x48f   : > { %v3433_v46 = vpop.f32.mrf.mxu0 }
 0x490   : > { %v3698_v23 = vadd.f32 %v3697_v29, %v3609_v26  ;;  %v3434_v19 = vadd.f32 %v3433_v46, %v9753_v41  ;;  %v3522_v47 = vpop.f32.mrf.mxu1  ;;  %v6681_v26 = vld [vmem:[#allocation3 + $0x480] sm:$0xf]  ;;  %v7148_v46 = vld [vmem:[#allocation3 + $0x484] sm:$0xf0] }
 0x492   : > { %v7864_v52 = vpop.eup %7863  ;;  %7867 = vtanh.f32 %v3698_v23  ;;  %v3523_v59 = vadd.f32 %v3522_v47, %v3434_v19  ;;  %3472 = vmatmul.bf16.gmra.mxu0 %v9708_v37  ;;  %3650 = vmatmul.bf16.gmra.mxu2 %v9708_v37  ;;  %v6682_v47 = vor.u32 %v7148_v46, %v6681_v26  ;;  %v7178_v46 = vld [vmem:[#allocation3 + $0x574] sm:$0xf0] }
 0x493   : > { %3561 = vmatmul.bf16.gmra.mxu1 %v9712_v38  ;;  %3739 = vmatmul.bf16.gmra.mxu3 %v9712_v38  ;;  %v9799_v44 = vpack.c.bf16 %v7864_v52, %v7862_v6  ;;  %v7866_v58 = vpop.eup %7865 }
 0x494   : > { %7869 = vtanh.f32 %v3523_v59  ;;  %4157 = vmatpush.bf16.msra.mxu1 %v6682_v47  ;;  %v6803_v47 = vor.u32 %v7178_v46, %v6802_v40 }
 0x495   : > { %v3611_v16 = vpop.f32.mrf.mxu2 }
 0x496   : > { %v3612_v49 = vadd.f32 %v3611_v16, %v9759_v48  ;;  %v3700_v2 = vpop.f32.mrf.mxu3  ;;  %4713 = vmatpush.bf16.msrb.mxu0 %v6803_v47  ;;  %v6794_v47 = vld [vmem:[#allocation3 + $0x560] sm:$0xf] }
 0x497   : > { %v3435_v7 = vpop.f32.mrf.mxu0 }
 0x498   : > { %v7868_v4 = vpop.eup %7867  ;;  %v3701_v62 = vadd.f32 %v3700_v2, %v3612_v49  ;;  %v3436_v54 = vadd.f32 %v3435_v7, %v9753_v41  ;;  %v3524_v45 = vpop.f32.mrf.mxu1 }
 0x499   : > { %v9803_v61 = vpack.c.bf16 %v7868_v4, %v7866_v58 }
 0x49a   : > { %v3525_v37 = vadd.f32 %v3524_v45, %v3436_v54  ;;  %v7870_v39 = vpop.eup %7869 }
 0x49c   : > { %7871 = vtanh.f32 %v3525_v37 }
 0x49d   : > { %v3613_v1 = vpop.f32.mrf.mxu2  ;;  %7873 = vtanh.f32 %v3701_v62 }
 0x49e   : > { %v3614_v38 = vadd.f32 %v3613_v1, %v9759_v48  ;;  %v3702_v63 = vpop.f32.mrf.mxu3 }
 0x49f   : > { %v3438_v15 = vpop.f32.mrf.mxu0 }
 0x4a0   : > { %v3703_v30 = vadd.f32 %v3702_v63, %v3614_v38  ;;  %v3439_v27 = vadd.f32 %v3438_v15, %v9753_v41  ;;  %v3527_v57 = vpop.f32.mrf.mxu1 }
 0x4a2   : > { %v7872_v42 = vpop.eup %7871  ;;  %7875 = vtanh.f32 %v3703_v30  ;;  %v3528_v12 = vadd.f32 %v3527_v57, %v3439_v27  ;;  %3477 = vmatmul.bf16.gmra.mxu0 %v9720_v22  ;;  %3655 = vmatmul.bf16.gmra.mxu2 %v9720_v22 }
 0x4a3   : > { %3566 = vmatmul.bf16.gmra.mxu1 %v9724_v50  ;;  %3744 = vmatmul.bf16.gmra.mxu3 %v9724_v50  ;;  %v9811_v11 = vpack.c.bf16 %v7872_v42, %v7870_v39  ;;  %v7874_v53 = vpop.eup %7873 }
 0x4a4   : > { %7877 = vtanh.f32 %v3528_v12 }
 0x4a5   : > { %v3616_v33 = vpop.f32.mrf.mxu2 }
 0x4a6   : > { %v3617_v28 = vadd.f32 %v3616_v33, %v9759_v48  ;;  %v3705_v8 = vpop.f32.mrf.mxu3 }
 0x4a7   : > { %v3440_v25 = vpop.f32.mrf.mxu0 }
 0x4a8   : > { %v7876_v22 = vpop.eup %7875  ;;  %v3706_v24 = vadd.f32 %v3705_v8, %v3617_v28  ;;  %v3441_v31 = vadd.f32 %v3440_v25, %v9753_v41  ;;  %v3529_v50 = vpop.f32.mrf.mxu1  ;;  %v6804_v28 = vld [vmem:[#allocation3 + $0x578] sm:$0xf0]  ;;  %v7193_v8 = vld [vmem:[#allocation3 + $0x5f4] sm:$0xf] }
 0x4a9   : > { %v9815_v17 = vpack.c.bf16 %v7876_v22, %v7874_v53  ;;  %v6807_v53 = vor.u32 %v7177_v20, %v6804_v28  ;;  %v6868_v25 = vld [vmem:[#allocation3 + $0x5f8] sm:$0xf0] }
 0x4aa   : > { %v3530_v34 = vadd.f32 %v3529_v50, %v3441_v31  ;;  %v7878_v49 = vpop.eup %7877  ;;  %v6871_v31 = vor.u32 %v7193_v8, %v6868_v25  ;;  %v7175_v25 = vld [vmem:[#allocation3 + $0x564] sm:$0xf] }
 0x4ab   : > { %4891 = vmatpush.bf16.msrb.mxu2 %v6807_v53 }
 0x4ac   : > { %7879 = vtanh.f32 %v3530_v34  ;;  %4980 = vmatpush.bf16.msrb.mxu3 %v6871_v31 }
 0x4ad   : > { %v3618_v29 = vpop.f32.mrf.mxu2  ;;  %7881 = vtanh.f32 %v3706_v24 }
 0x4ae   : > { %v3619_v23 = vadd.f32 %v3618_v29, %v9759_v48  ;;  %v3707_v19 = vpop.f32.mrf.mxu3 }
 0x4af   : > { %v3443_v6 = vpop.f32.mrf.mxu0 }
 0x4b0   : > { %v3708_v52 = vadd.f32 %v3707_v19, %v3619_v23  ;;  %v3444_v59 = vadd.f32 %v3443_v6, %v9753_v41  ;;  %v3532_v16 = vpop.f32.mrf.mxu1  ;;  %v6866_v23 = vld [vmem:[#allocation3 + $0x5f0] sm:$0xf]  ;;  %v7194_v6 = vld [vmem:[#allocation3 + $0x5f4] sm:$0xf0] }
 0x4b2   : > { %v7880_v2 = vpop.eup %7879  ;;  %7883 = vtanh.f32 %v3708_v52  ;;  %v3533_v58 = vadd.f32 %v3532_v16, %v3444_v59  ;;  %3482 = vmatmul.bf16.gmra.mxu0 %v9732_v43  ;;  %3660 = vmatmul.bf16.gmra.mxu2 %v9732_v43  ;;  %v6867_v16 = vor.u32 %v7194_v6, %v6866_v23  ;;  %v7176_v6 = vld [vmem:[#allocation3 + $0x564] sm:$0xf0] }
 0x4b3   : > { %3571 = vmatmul.bf16.gmra.mxu1 %v9736_v36  ;;  %3749 = vmatmul.bf16.gmra.mxu3 %v9736_v36  ;;  %v9823_v7 = vpack.c.bf16 %v7880_v2, %v7878_v49  ;;  %v7882_v45 = vpop.eup %7881 }
 0x4b4   : > { %7885 = vtanh.f32 %v3533_v58  ;;  %4802 = vmatpush.bf16.msrb.mxu1 %v6867_v16  ;;  %v6795_v16 = vor.u32 %v7176_v6, %v6794_v47 }
 0x4b5   : > { %v3621_v4 = vpop.f32.mrf.mxu2 }
 0x4b6   : > { %v3622_v62 = vadd.f32 %v3621_v4, %v9759_v48  ;;  %v3710_v54 = vpop.f32.mrf.mxu3  ;;  %4714 = vmatpush.bf16.msrb.mxu0 %v6795_v16  ;;  %v6786_v16 = vld [vmem:[#allocation3 + $0x550] sm:$0xf] }
 0x4b7   : > { %v3445_v37 = vpop.f32.mrf.mxu0 }
 0x4b8   : > { %v7884_v1 = vpop.eup %7883  ;;  %v3711_v38 = vadd.f32 %v3710_v54, %v3622_v62  ;;  %v3446_v63 = vadd.f32 %v3445_v37, %v9753_v41  ;;  %v3534_v15 = vpop.f32.mrf.mxu1 }
 0x4b9   : > { %v9827_v30 = vpack.c.bf16 %v7884_v1, %v7882_v45 }
 0x4ba   : > { %v3535_v43 = vadd.f32 %v3534_v15, %v3446_v63  ;;  %v7886_v13 = vpop.eup %7885 }
 0x4bc   : > { %7887 = vtanh.f32 %v3535_v43 }
 0x4bd   : > { %v3623_v27 = vpop.f32.mrf.mxu2  ;;  %7889 = vtanh.f32 %v3711_v38 }
 0x4be   : > { %v3624_v36 = vadd.f32 %v3623_v27, %v9759_v48  ;;  %v3712_v57 = vpop.f32.mrf.mxu3 }
 0x4bf   : > { %v3448_v39 = vpop.f32.mrf.mxu0 }
 0x4c0   : > { %v3713_v42 = vadd.f32 %v3712_v57, %v3624_v36  ;;  %v3449_v12 = vadd.f32 %v3448_v39, %v9753_v41  ;;  %v3537_v3 = vpop.f32.mrf.mxu1 }
 0x4c2   : > { %v7888_v5 = vpop.eup %7887  ;;  %7891 = vtanh.f32 %v3713_v42  ;;  %v3538_v33 = vadd.f32 %v3537_v3, %v3449_v12  ;;  %3487 = vmatmul.bf16.gmra.mxu0 %v9744_v21  ;;  %3665 = vmatmul.bf16.gmra.mxu2 %v9744_v21 }
 0x4c3   : > { %3576 = vmatmul.bf16.gmra.mxu1 %v9751_v51  ;;  %3754 = vmatmul.bf16.gmra.mxu3 %v9751_v51  ;;  %v9835_v60 = vpack.c.bf16 %v7888_v5, %v7886_v13  ;;  %v7890_v50 = vpop.eup %7889 }
 0x4c4   : > { %7893 = vtanh.f32 %v3538_v33 }
 0x4c5   : > { %v3626_v55 = vpop.f32.mrf.mxu2 }
 0x4c6   : > { %v3627_v22 = vadd.f32 %v3626_v55, %v9759_v48  ;;  %v3715_v24 = vpop.f32.mrf.mxu3 }
 0x4c7   : > { %v3450_v34 = vpop.f32.mrf.mxu0 }
 0x4c8   : > { %v7892_v21 = vpop.eup %7891  ;;  %v3716_v35 = vadd.f32 %v3715_v24, %v3627_v22  ;;  %v3451_v9 = vadd.f32 %v3450_v34, %v9753_v41  ;;  %v3539_v51 = vpop.f32.mrf.mxu1  ;;  %v6796_v22 = vld [vmem:[#allocation3 + $0x568] sm:$0xf0]  ;;  %v7191_v24 = vld [vmem:[#allocation3 + $0x5e4] sm:$0xf] }
 0x4c9   : > { %v9839_v26 = vpack.c.bf16 %v7892_v21, %v7890_v50  ;;  %v6799_v50 = vor.u32 %v7175_v25, %v6796_v22  ;;  %v6860_v34 = vld [vmem:[#allocation3 + $0x5e8] sm:$0xf0] }
 0x4ca   : > { %v3540_v29 = vadd.f32 %v3539_v51, %v3451_v9  ;;  %v7894_v62 = vpop.eup %7893  ;;  %v6863_v9 = vor.u32 %v7191_v24, %v6860_v34  ;;  %v7173_v34 = vld [vmem:[#allocation3 + $0x554] sm:$0xf] }
 0x4cb   : > { %4892 = vmatpush.bf16.msrb.mxu2 %v6799_v50 }
 0x4cc   : > { %7895 = vtanh.f32 %v3540_v29  ;;  %4981 = vmatpush.bf16.msrb.mxu3 %v6863_v9 }
 0x4cd   : > { %v3628_v19 = vpop.f32.mrf.mxu2  ;;  %7897 = vtanh.f32 %v3716_v35 }
 0x4ce   : > { %v3629_v52 = vadd.f32 %v3628_v19, %v9759_v48  ;;  %v3717_v59 = vpop.f32.mrf.mxu3 }
 0x4cf   : > { %v3453_v49 = vpop.f32.mrf.mxu0 }
 0x4d0   : > { %v3718_v2 = vadd.f32 %v3717_v59, %v3629_v52  ;;  %v3454_v58 = vadd.f32 %v3453_v49, %v9753_v41  ;;  %v3542_v4 = vpop.f32.mrf.mxu1  ;;  %v6858_v52 = vld [vmem:[#allocation3 + $0x5e0] sm:$0xf]  ;;  %v7192_v49 = vld [vmem:[#allocation3 + $0x5e4] sm:$0xf0] }
 0x4d2   : > { %v7896_v54 = vpop.eup %7895  ;;  %7899 = vtanh.f32 %v3718_v2  ;;  %v3543_v45 = vadd.f32 %v3542_v4, %v3454_v58  ;;  %3492 = vmatmul.bf16.gmra.mxu0 %v9763_v14  ;;  %3670 = vmatmul.bf16.gmra.mxu2 %v9763_v14  ;;  %v6859_v4 = vor.u32 %v7192_v49, %v6858_v52  ;;  %v7174_v49 = vld [vmem:[#allocation3 + $0x554] sm:$0xf0] }
 0x4d3   : > { %3581 = vmatmul.bf16.gmra.mxu1 %v9767_v18  ;;  %3759 = vmatmul.bf16.gmra.mxu3 %v9767_v18  ;;  %v9847_v37 = vpack.c.bf16 %v7896_v54, %v7894_v62  ;;  %v7898_v15 = vpop.eup %7897 }
 0x4d4   : > { %7901 = vtanh.f32 %v3543_v45  ;;  %4803 = vmatpush.bf16.msrb.mxu1 %v6859_v4  ;;  %v6787_v4 = vor.u32 %v7174_v49, %v6786_v16 }
 0x4d5   : > { %v3631_v1 = vpop.f32.mrf.mxu2 }
 0x4d6   : > { %v3632_v38 = vadd.f32 %v3631_v1, %v9759_v48  ;;  %v3720_v63 = vpop.f32.mrf.mxu3  ;;  %4715 = vmatpush.bf16.msrb.mxu0 %v6787_v4  ;;  %v6778_v4 = vld [vmem:[#allocation3 + $0x540] sm:$0xf] }
 0x4d7   : > { %v3455_v43 = vpop.f32.mrf.mxu0 }
 0x4d8   : > { %v7900_v27 = vpop.eup %7899  ;;  %v3721_v36 = vadd.f32 %v3720_v63, %v3632_v38  ;;  %v3456_v57 = vadd.f32 %v3455_v43, %v9753_v41  ;;  %v3544_v39 = vpop.f32.mrf.mxu1 }
 0x4d9   : > { %v9851_v42 = vpack.c.bf16 %v7900_v27, %v7898_v15 }
 0x4da   : > { %v3545_v14 = vadd.f32 %v3544_v39, %v3456_v57  ;;  %v7902_v28 = vpop.eup %7901 }
 0x4dc   : > { %7903 = vtanh.f32 %v3545_v14 }
 0x4dd   : > { %v3633_v12 = vpop.f32.mrf.mxu2  ;;  %7905 = vtanh.f32 %v3721_v36 }
 0x4de   : > { %v3634_v18 = vadd.f32 %v3633_v12, %v9759_v48  ;;  %v3722_v3 = vpop.f32.mrf.mxu3 }
 0x4df   : > { %v3458_v13 = vpop.f32.mrf.mxu0 }
 0x4e0   : > { %v3723_v5 = vadd.f32 %v3722_v3, %v3634_v18  ;;  %v3459_v33 = vadd.f32 %v3458_v13, %v9753_v41  ;;  %v3547_v20 = vpop.f32.mrf.mxu1 }
 0x4e2   : > { %v7904_v8 = vpop.eup %7903  ;;  %7907 = vtanh.f32 %v3723_v5  ;;  %v3548_v55 = vadd.f32 %v3547_v20, %v3459_v33  ;;  %4069 = vmatmul.bf16.vlgmr.msra.gmra.mxu0 %v9773_v56  ;;  %4247 = vmatmul.bf16.vlgmr.msra.gmra.mxu2 %v9773_v56 }
 0x4e3   : > { %4158 = vmatmul.bf16.vlgmr.msra.gmra.mxu1 %v9779_v0  ;;  %4336 = vmatmul.bf16.vlgmr.msra.gmra.mxu3 %v9779_v0  ;;  %v9859_v53 = vpack.c.bf16 %v7904_v8, %v7902_v28  ;;  %v7906_v51 = vpop.eup %7905 }
 0x4e4   : > { %7909 = vtanh.f32 %v3548_v55 }
 0x4e5   : > { %v3636_v31 = vpop.f32.mrf.mxu2 }
 0x4e6   : > { %v3637_v21 = vadd.f32 %v3636_v31, %v9759_v48  ;;  %v3725_v35 = vpop.f32.mrf.mxu3 }
 0x4e7   : > { %v3460_v29 = vpop.f32.mrf.mxu0 }
 0x4e8   : > { %v7908_v56 = vpop.eup %7907  ;;  %v3726_v40 = vadd.f32 %v3725_v35, %v3637_v21  ;;  %v3461_v46 = vadd.f32 %v3460_v29, %v9753_v41  ;;  %v3549_v0 = vpop.f32.mrf.mxu1  ;;  %v6788_v21 = vld [vmem:[#allocation3 + $0x558] sm:$0xf0]  ;;  %v7189_v35 = vld [vmem:[#allocation3 + $0x5d4] sm:$0xf] }
 0x4e9   : > { %v9863_v23 = vpack.c.bf16 %v7908_v56, %v7906_v51  ;;  %v6791_v51 = vor.u32 %v7173_v34, %v6788_v21  ;;  %v6852_v29 = vld [vmem:[#allocation3 + $0x5d8] sm:$0xf0] }
 0x4ea   : > { %v3550_v19 = vadd.f32 %v3549_v0, %v3461_v46  ;;  %v7910_v38 = vpop.eup %7909  ;;  %v6855_v46 = vor.u32 %v7189_v35, %v6852_v29  ;;  %v7171_v29 = vld [vmem:[#allocation3 + $0x544] sm:$0xf] }
 0x4eb   : > { %4893 = vmatpush.bf16.msrb.mxu2 %v6791_v51 }
 0x4ec   : > { %7911 = vtanh.f32 %v3550_v19  ;;  %4982 = vmatpush.bf16.msrb.mxu3 %v6855_v46 }
 0x4ed   : > { %v3638_v59 = vpop.f32.mrf.mxu2  ;;  %7913 = vtanh.f32 %v3726_v40 }
 0x4ee   : > { %v3639_v2 = vadd.f32 %v3638_v59, %v9759_v48  ;;  %v3727_v58 = vpop.f32.mrf.mxu3 }
 0x4ef   : > { %v3463_v62 = vpop.f32.mrf.mxu0 }
 0x4f0   : > { %v3728_v54 = vadd.f32 %v3727_v58, %v3639_v2  ;;  %v3464_v45 = vadd.f32 %v3463_v62, %v9753_v41  ;;  %v3552_v1 = vpop.f32.mrf.mxu1  ;;  %v6850_v2 = vld [vmem:[#allocation3 + $0x5d0] sm:$0xf]  ;;  %v7190_v62 = vld [vmem:[#allocation3 + $0x5d4] sm:$0xf0] }
 0x4f2   : > { %v7912_v63 = vpop.eup %7911  ;;  %7915 = vtanh.f32 %v3728_v54  ;;  %v3553_v15 = vadd.f32 %v3552_v1, %v3464_v45  ;;  %4074 = vmatmul.bf16.gmra.mxu0 %v9787_v32  ;;  %4252 = vmatmul.bf16.gmra.mxu2 %v9787_v32  ;;  %v6851_v1 = vor.u32 %v7190_v62, %v6850_v2  ;;  %v7172_v62 = vld [vmem:[#allocation3 + $0x544] sm:$0xf0] }
 0x4f3   : > { %4163 = vmatmul.bf16.gmra.mxu1 %v9791_v10  ;;  %4341 = vmatmul.bf16.gmra.mxu3 %v9791_v10  ;;  %v9871_v43 = vpack.c.bf16 %v7912_v63, %v7910_v38  ;;  %v7914_v39 = vpop.eup %7913 }
 0x4f4   : > { %7917 = vtanh.f32 %v3553_v15  ;;  %4804 = vmatpush.bf16.msrb.mxu1 %v6851_v1  ;;  %v6779_v1 = vor.u32 %v7172_v62, %v6778_v4 }
 0x4f5   : > { %v3641_v27 = vpop.f32.mrf.mxu2 }
 0x4f6   : > { %v3642_v36 = vadd.f32 %v3641_v27, %v9759_v48  ;;  %v3730_v57 = vpop.f32.mrf.mxu3  ;;  %4716 = vmatpush.bf16.msrb.mxu0 %v6779_v1 }
 0x4f7   : > { %v3465_v14 = vpop.f32.mrf.mxu0 }
 0x4f8   : > { %v7916_v12 = vpop.eup %7915  ;;  %v3731_v18 = vadd.f32 %v3730_v57, %v3642_v36  ;;  %v3466_v3 = vadd.f32 %v3465_v14, %v9753_v41  ;;  %v3554_v13 = vpop.f32.mrf.mxu1 }
 0x4f9   : > { %v9875_v5 = vpack.c.bf16 %v7916_v12, %v7914_v39 }
 0x4fa   : > { %v3555_v32 = vadd.f32 %v3554_v13, %v3466_v3  ;;  %v7918_v22 = vpop.eup %7917 }
 0x4fc   : > { %7919 = vtanh.f32 %v3555_v32 }
 0x4fd   : > { %v3643_v33 = vpop.f32.mrf.mxu2  ;;  %7921 = vtanh.f32 %v3731_v18 }
 0x4fe   : > { %v3644_v10 = vadd.f32 %v3643_v33, %v9759_v48  ;;  %v3732_v20 = vpop.f32.mrf.mxu3 }
 0x4ff   : > { %v3468_v28 = vpop.f32.mrf.mxu0 }
 0x500   : > { %v3733_v8 = vadd.f32 %v3732_v20, %v3644_v10  ;;  %v3469_v55 = vadd.f32 %v3468_v28, %v9753_v41  ;;  %v3557_v25 = vpop.f32.mrf.mxu1 }
 0x502   : > { %v7920_v24 = vpop.eup %7919  ;;  %7923 = vtanh.f32 %v3733_v8  ;;  %v3558_v31 = vadd.f32 %v3557_v25, %v3469_v55  ;;  %4079 = vmatmul.bf16.gmra.mxu0 %v9799_v44  ;;  %4257 = vmatmul.bf16.gmra.mxu2 %v9799_v44 }
 0x503   : > { %4168 = vmatmul.bf16.gmra.mxu1 %v9803_v61  ;;  %4346 = vmatmul.bf16.gmra.mxu3 %v9803_v61  ;;  %v9883_v50 = vpack.c.bf16 %v7920_v24, %v7918_v22  ;;  %v7922_v0 = vpop.eup %7921 }
 0x504   : > { %7925 = vtanh.f32 %v3558_v31 }
 0x505   : > { %v3646_v9 = vpop.f32.mrf.mxu2 }
 0x506   : > { %v3647_v56 = vadd.f32 %v3646_v9, %v9759_v48  ;;  %v3735_v40 = vpop.f32.mrf.mxu3 }
 0x507   : > { %v3470_v19 = vpop.f32.mrf.mxu0 }
 0x508   : > { %v7924_v44 = vpop.eup %7923  ;;  %v3736_v47 = vadd.f32 %v3735_v40, %v3647_v56  ;;  %v3471_v6 = vadd.f32 %v3470_v19, %v9753_v41  ;;  %v3559_v61 = vpop.f32.mrf.mxu1  ;;  %v6780_v56 = vld [vmem:[#allocation3 + $0x548] sm:$0xf0]  ;;  %v7187_v40 = vld [vmem:[#allocation3 + $0x5c4] sm:$0xf] }
 0x509   : > { %v9887_v52 = vpack.c.bf16 %v7924_v44, %v7922_v0  ;;  %v6783_v0 = vor.u32 %v7171_v29, %v6780_v56  ;;  %v6844_v19 = vld [vmem:[#allocation3 + $0x5c8] sm:$0xf0] }
 0x50a   : > { %v3560_v59 = vadd.f32 %v3559_v61, %v3471_v6  ;;  %v7926_v36 = vpop.eup %7925  ;;  %v6847_v6 = vor.u32 %v7187_v40, %v6844_v19  ;;  %v7169_v19 = vld [vmem:[#allocation3 + $0x534] sm:$0xf] }
 0x50b   : > { %4894 = vmatpush.bf16.msrb.mxu2 %v6783_v0 }
 0x50c   : > { %7927 = vtanh.f32 %v3560_v59  ;;  %4983 = vmatpush.bf16.msrb.mxu3 %v6847_v6 }
 0x50d   : > { %v3648_v58 = vpop.f32.mrf.mxu2  ;;  %7929 = vtanh.f32 %v3736_v47 }
 0x50e   : > { %v3649_v54 = vadd.f32 %v3648_v58, %v9759_v48  ;;  %v3737_v45 = vpop.f32.mrf.mxu3 }
 0x50f   : > { %v3473_v38 = vpop.f32.mrf.mxu0 }
 0x510   : > { %v3738_v63 = vadd.f32 %v3737_v45, %v3649_v54  ;;  %v3474_v15 = vadd.f32 %v3473_v38, %v9753_v41  ;;  %v3562_v27 = vpop.f32.mrf.mxu1  ;;  %v6842_v54 = vld [vmem:[#allocation3 + $0x5c0] sm:$0xf]  ;;  %v7188_v38 = vld [vmem:[#allocation3 + $0x5c4] sm:$0xf0] }
 0x512   : > { %v7928_v57 = vpop.eup %7927  ;;  %7931 = vtanh.f32 %v3738_v63  ;;  %v3563_v39 = vadd.f32 %v3562_v27, %v3474_v15  ;;  %4084 = vmatmul.bf16.gmra.mxu0 %v9811_v11  ;;  %4262 = vmatmul.bf16.gmra.mxu2 %v9811_v11  ;;  %v6843_v27 = vor.u32 %v7188_v38, %v6842_v54 }
 0x513   : > { %4173 = vmatmul.bf16.gmra.mxu1 %v9815_v17  ;;  %4351 = vmatmul.bf16.gmra.mxu3 %v9815_v17  ;;  %v9895_v14 = vpack.c.bf16 %v7928_v57, %v7926_v36  ;;  %v7930_v13 = vpop.eup %7929 }
 0x514   : > { %7933 = vtanh.f32 %v3563_v39  ;;  %4805 = vmatpush.bf16.msrb.mxu1 %v6843_v27 }
 0x515   : > { %v3651_v12 = vpop.f32.mrf.mxu2 }
 0x516   : > { %v3652_v18 = vadd.f32 %v3651_v12, %v9759_v48  ;;  %v3740_v3 = vpop.f32.mrf.mxu3 }
 0x517   : > { %v3475_v32 = vpop.f32.mrf.mxu0 }
 0x518   : > { %v7932_v33 = vpop.eup %7931  ;;  %v3741_v10 = vadd.f32 %v3740_v3, %v3652_v18  ;;  %v3476_v20 = vadd.f32 %v3475_v32, %v9753_v41  ;;  %v3564_v28 = vpop.f32.mrf.mxu1 }
 0x519   : > { %v9899_v8 = vpack.c.bf16 %v7932_v33, %v7930_v13 }
 0x51a   : > { %v3565_v11 = vadd.f32 %v3564_v28, %v3476_v20  ;;  %v7934_v21 = vpop.eup %7933 }
 0x51c   : > { %7935 = vtanh.f32 %v3565_v11 }
 0x51d   : > { %v3653_v55 = vpop.f32.mrf.mxu2  ;;  %7937 = vtanh.f32 %v3741_v10 }
 0x51e   : > { %v3654_v17 = vadd.f32 %v3653_v55, %v9759_v48  ;;  %v3742_v25 = vpop.f32.mrf.mxu3 }
 0x51f   : > { %v3478_v22 = vpop.f32.mrf.mxu0 }
 0x520   : > { %v3743_v24 = vadd.f32 %v3742_v25, %v3654_v17  ;;  %v3479_v31 = vadd.f32 %v3478_v22, %v9753_v41  ;;  %v3567_v34 = vpop.f32.mrf.mxu1 }
 0x522   : > { %v7936_v35 = vpop.eup %7935  ;;  %7939 = vtanh.f32 %v3743_v24  ;;  %v3568_v9 = vadd.f32 %v3567_v34, %v3479_v31  ;;  %4089 = vmatmul.bf16.gmra.mxu0 %v9823_v7  ;;  %4267 = vmatmul.bf16.gmra.mxu2 %v9823_v7 }
 0x523   : > { %4178 = vmatmul.bf16.gmra.mxu1 %v9827_v30  ;;  %4356 = vmatmul.bf16.gmra.mxu3 %v9827_v30  ;;  %v9907_v51 = vpack.c.bf16 %v7936_v35, %v7934_v21  ;;  %v7938_v61 = vpop.eup %7937 }
 0x524   : > { %7941 = vtanh.f32 %v3568_v9 }
 0x525   : > { %v3656_v46 = vpop.f32.mrf.mxu2 }
 0x526   : > { %v3657_v44 = vadd.f32 %v3656_v46, %v9759_v48  ;;  %v3745_v47 = vpop.f32.mrf.mxu3 }
 0x527   : > { %v3480_v59 = vpop.f32.mrf.mxu0 }
 0x528   : > { %v7940_v7 = vpop.eup %7939  ;;  %v3746_v16 = vadd.f32 %v3745_v47, %v3657_v44  ;;  %v3481_v49 = vadd.f32 %v3480_v59, %v9753_v41  ;;  %v3569_v30 = vpop.f32.mrf.mxu1  ;;  %v6772_v44 = vld [vmem:[#allocation3 + $0x538] sm:$0xf0]  ;;  %v7185_v47 = vld [vmem:[#allocation3 + $0x5b4] sm:$0xf] }
 0x529   : > { %v9911_v2 = vpack.c.bf16 %v7940_v7, %v7938_v61  ;;  %v6775_v61 = vor.u32 %v7169_v19, %v6772_v44  ;;  %v6836_v59 = vld [vmem:[#allocation3 + $0x5b8] sm:$0xf0] }
 0x52a   : > { %v3570_v58 = vadd.f32 %v3569_v30, %v3481_v49  ;;  %v7942_v18 = vpop.eup %7941  ;;  %v6839_v49 = vor.u32 %v7185_v47, %v6836_v59 }
 0x52b   : > { %4895 = vmatpush.bf16.msrb.mxu2 %v6775_v61 }
 0x52c   : > { %7943 = vtanh.f32 %v3570_v58  ;;  %4984 = vmatpush.bf16.msrb.mxu3 %v6839_v49  ;;  %v7183_v49 = vld [vmem:[#allocation3 + $0x5a4] sm:$0xf] }
 0x52d   : > { %v3658_v45 = vpop.f32.mrf.mxu2  ;;  %7945 = vtanh.f32 %v3746_v16 }
 0x52e   : > { %v3659_v63 = vadd.f32 %v3658_v45, %v9759_v48  ;;  %v3747_v15 = vpop.f32.mrf.mxu3 }
 0x52f   : > { %v3483_v36 = vpop.f32.mrf.mxu0 }
 0x530   : > { %v3748_v57 = vadd.f32 %v3747_v15, %v3659_v63  ;;  %v3484_v39 = vadd.f32 %v3483_v36, %v9753_v41  ;;  %v3572_v12 = vpop.f32.mrf.mxu1 }
 0x532   : > { %v7944_v3 = vpop.eup %7943  ;;  %7947 = vtanh.f32 %v3748_v57  ;;  %v3573_v13 = vadd.f32 %v3572_v12, %v3484_v39  ;;  %4094 = vmatmul.bf16.gmra.mxu0 %v9835_v60  ;;  %4272 = vmatmul.bf16.gmra.mxu2 %v9835_v60 }
 0x533   : > { %4183 = vmatmul.bf16.gmra.mxu1 %v9839_v26  ;;  %4361 = vmatmul.bf16.gmra.mxu3 %v9839_v26  ;;  %v9919_v32 = vpack.c.bf16 %v7944_v3, %v7942_v18  ;;  %v7946_v28 = vpop.eup %7945  ;;  %v6770_v3 = vld [vmem:[#allocation3 + $0x530] sm:$0xf] }
 0x534   : > { %7949 = vtanh.f32 %v3573_v13  ;;  %v7170_v13 = vld [vmem:[#allocation3 + $0x534] sm:$0xf0] }
 0x535   : > { %v3661_v33 = vpop.f32.mrf.mxu2 }
 0x536   : > { %v3662_v10 = vadd.f32 %v3661_v33, %v9759_v48  ;;  %v3750_v20 = vpop.f32.mrf.mxu3  ;;  %v6834_v33 = vld [vmem:[#allocation3 + $0x5b0] sm:$0xf] }
 0x537   : > { %v3485_v11 = vpop.f32.mrf.mxu0 }
 0x538   : > { %v7948_v55 = vpop.eup %7947  ;;  %v3751_v17 = vadd.f32 %v3750_v20, %v3662_v10  ;;  %v3486_v25 = vadd.f32 %v3485_v11, %v9753_v41  ;;  %v3574_v22 = vpop.f32.mrf.mxu1  ;;  %v6771_v20 = vor.u32 %v7170_v13, %v6770_v3  ;;  %v7184_v3 = vld [vmem:[#allocation3 + $0x5a4] sm:$0xf0] }
 0x539   : > { %v9923_v24 = vpack.c.bf16 %v7948_v55, %v7946_v28  ;;  %v7186_v28 = vld [vmem:[#allocation3 + $0x5b4] sm:$0xf0] }
 0x53a   : > { %v3575_v60 = vadd.f32 %v3574_v22, %v3486_v25  ;;  %v7950_v56 = vpop.eup %7949  ;;  %v6835_v55 = vor.u32 %v7186_v28, %v6834_v33  ;;  %4717 = vmatpush.bf16.msrb.mxu0 %v6771_v20 }
 0x53c   : > { %7951 = vtanh.f32 %v3575_v60  ;;  %4806 = vmatpush.bf16.msrb.mxu1 %v6835_v55 }
 0x53d   : > { %v3663_v31 = vpop.f32.mrf.mxu2  ;;  %7953 = vtanh.f32 %v3751_v17 }
 0x53e   : > { %v3664_v26 = vadd.f32 %v3663_v31, %v9759_v48  ;;  %v3752_v34 = vpop.f32.mrf.mxu3 }
 0x53f   : > { %v3488_v21 = vpop.f32.mrf.mxu0 }
 0x540   : > { %v3753_v35 = vadd.f32 %v3752_v34, %v3664_v26  ;;  %v3489_v9 = vadd.f32 %v3488_v21, %v9753_v41  ;;  %v3577_v29 = vpop.f32.mrf.mxu1  ;;  %v6614_v34 = vld [vmem:[%s10638_s4 + $0x8] sm:$0x3] }
 0x541   : > { %v9958_v59 = vperm.slane %v6614_v34, 1 }
 0x542   : > { %v7952_v40 = vpop.eup %7951  ;;  %7955 = vtanh.f32 %v3753_v35  ;;  %v3578_v46 = vadd.f32 %v3577_v29, %v3489_v9  ;;  %4099 = vmatmul.bf16.gmra.mxu0 %v9847_v37  ;;  %4277 = vmatmul.bf16.gmra.mxu2 %v9847_v37  ;;  %v9952_v9 = vperm.slane %v6614_v34, 0 }
 0x543   : > { %4188 = vmatmul.bf16.gmra.mxu1 %v9851_v42  ;;  %4366 = vmatmul.bf16.gmra.mxu3 %v9851_v42  ;;  %v9931_v0 = vpack.c.bf16 %v7952_v40, %v7950_v56  ;;  %v7954_v30 = vpop.eup %7953 }
 0x544   : > { %7957 = vtanh.f32 %v3578_v46 }
 0x545   : > { %v3666_v6 = vpop.f32.mrf.mxu2 }
 0x546   : > { %v3667_v7 = vadd.f32 %v3666_v6, %v9759_v48  ;;  %v3755_v16 = vpop.f32.mrf.mxu3 }
 0x547   : > { %v3490_v58 = vpop.f32.mrf.mxu0 }
 0x548   : > { %v7956_v37 = vpop.eup %7955  ;;  %v3756_v4 = vadd.f32 %v3755_v16, %v3667_v7  ;;  %v3491_v62 = vadd.f32 %v3490_v58, %v9753_v41  ;;  %v3579_v42 = vpop.f32.mrf.mxu1  ;;  %v7167_v7 = vld [vmem:[#allocation3 + $0x524] sm:$0xf]  ;;  %v6764_v16 = vld [vmem:[#allocation3 + $0x528] sm:$0xf0] }
 0x549   : > { %v9935_v54 = vpack.c.bf16 %v7956_v37, %v7954_v30  ;;  %v6767_v58 = vor.u32 %v7167_v7, %v6764_v16  ;;  %v6828_v37 = vld [vmem:[#allocation3 + $0x5a8] sm:$0xf0] }
 0x54a   : > { %v3580_v45 = vadd.f32 %v3579_v42, %v3491_v62  ;;  %v7958_v39 = vpop.eup %7957  ;;  %v6831_v42 = vor.u32 %v7183_v49, %v6828_v37  ;;  %v7165_v37 = vld [vmem:[#allocation3 + $0x514] sm:$0xf] }
 0x54b   : > { %4896 = vmatpush.bf16.msrb.mxu2 %v6767_v58 }
 0x54c   : > { %7959 = vtanh.f32 %v3580_v45  ;;  %4985 = vmatpush.bf16.msrb.mxu3 %v6831_v42 }
 0x54d   : > { %v3668_v1 = vpop.f32.mrf.mxu2  ;;  %7961 = vtanh.f32 %v3756_v4 }
 0x54e   : > { %v3669_v38 = vadd.f32 %v3668_v1, %v9759_v48  ;;  %v3757_v63 = vpop.f32.mrf.mxu3 }
 0x54f   : > { %v3493_v15 = vpop.f32.mrf.mxu0 }
 0x550   : > { %v3758_v27 = vadd.f32 %v3757_v63, %v3669_v38  ;;  %v3494_v36 = vadd.f32 %v3493_v15, %v9753_v41  ;;  %v3582_v57 = vpop.f32.mrf.mxu1 }
 0x552   : > { %v7960_v12 = vpop.eup %7959  ;;  %7963 = vtanh.f32 %v3758_v27  ;;  %v3583_v18 = vadd.f32 %v3582_v57, %v3494_v36  ;;  %4104 = vmatmul.bf16.gmra.mxu0 %v9859_v53  ;;  %4282 = vmatmul.bf16.gmra.mxu2 %v9859_v53  ;;  %v6762_v36 = vld [vmem:[#allocation3 + $0x520] sm:$0xf]  ;;  %v7168_v57 = vld [vmem:[#allocation3 + $0x524] sm:$0xf0] }
 0x553   : > { %4193 = vmatmul.bf16.gmra.mxu1 %v9863_v23  ;;  %4371 = vmatmul.bf16.gmra.mxu3 %v9863_v23  ;;  %v9943_v10 = vpack.c.bf16 %v7960_v12, %v7958_v39  ;;  %v7962_v22 = vpop.eup %7961  ;;  %v6826_v39 = vld [vmem:[#allocation3 + $0x5a0] sm:$0xf] }
 0x554   : > { %7965 = vtanh.f32 %v3583_v18  ;;  %v6763_v18 = vor.u32 %v7168_v57, %v6762_v36  ;;  %v6827_v20 = vor.u32 %v7184_v3, %v6826_v39  ;;  %v7166_v3 = vld [vmem:[#allocation3 + $0x514] sm:$0xf0] }
 0x555   : > { %v3671_v11 = vpop.f32.mrf.mxu2 }
 0x556   : > { %v3672_v17 = vadd.f32 %v3671_v11, %v9759_v48  ;;  %v3760_v25 = vpop.f32.mrf.mxu3  ;;  %4718 = vmatpush.bf16.msrb.mxu0 %v6763_v18  ;;  %4807 = vmatpush.bf16.msrb.mxu1 %v6827_v20  ;;  %v6754_v18 = vld [vmem:[#allocation3 + $0x510] sm:$0xf] }
 0x557   : > { %v3495_v60 = vpop.f32.mrf.mxu0  ;;  %v6755_v20 = vor.u32 %v7166_v3, %v6754_v18 }
 0x558   : > { %v7964_v53 = vpop.eup %7963  ;;  %v3761_v31 = vadd.f32 %v3760_v25, %v3672_v17  ;;  %v3496_v23 = vadd.f32 %v3495_v60, %v9753_v41  ;;  %v3584_v26 = vpop.f32.mrf.mxu1 }
 0x559   : > { %v9950_v21 = vpack.c.bf16 %v7964_v53, %v7962_v22 }
 0x55a   : > { %v3585_v35 = vadd.f32 %v3584_v26, %v3496_v23  ;;  %v7966_v47 = vpop.eup %7965  ;;  %4719 = vmatpush.bf16.msrb.mxu0 %v6755_v20  ;;  %v6746_v20 = vld [vmem:[#allocation3 + $0x500] sm:$0xf] }
 0x55c   : > { %7967 = vtanh.f32 %v3585_v35 }
 0x55d   : > { %v3673_v29 = vpop.f32.mrf.mxu2  ;;  %7969 = vtanh.f32 %v3761_v31 }
 0x55e   : > { %v3674_v56 = vadd.f32 %v3673_v29, %v9759_v48  ;;  %v3762_v40 = vpop.f32.mrf.mxu3 }
 0x55f   : > { %v4070_v46 = vpop.f32.mrf.mxu0 }
 0x560   : > { %v3763_v19 = vadd.f32 %v3762_v40, %v3674_v56  ;;  %v4071_v41 = vadd.f32 %v4070_v46, %v9952_v9  ;;  %v4159_v44 = vpop.f32.mrf.mxu1 }
 0x562   : > { %v7968_v6 = vpop.eup %7967  ;;  %7971 = vtanh.f32 %v3763_v19  ;;  %v4160_v61 = vadd.f32 %v4159_v44, %v4071_v41  ;;  %4109 = vmatmul.bf16.gmra.mxu0 %v9871_v43  ;;  %4287 = vmatmul.bf16.gmra.mxu2 %v9871_v43 }
 0x563   : > { %4198 = vmatmul.bf16.gmra.mxu1 %v9875_v5  ;;  %4376 = vmatmul.bf16.gmra.mxu3 %v9875_v5  ;;  %v9962_v48 = vpack.c.bf16 %v7968_v6, %v7966_v47  ;;  %v7970_v45 = vpop.eup %7969 }
 0x564   : > { %7973 = vtanh.f32 %v4160_v61 }
 0x565   : > { %v4248_v30 = vpop.f32.mrf.mxu2 }
 0x566   : > { %v4249_v4 = vadd.f32 %v4248_v30, %v9958_v59  ;;  %v4337_v62 = vpop.f32.mrf.mxu3 }
 0x567   : > { %v4072_v43 = vpop.f32.mrf.mxu0 }
 0x568   : > { %v7972_v1 = vpop.eup %7971  ;;  %v4338_v38 = vadd.f32 %v4337_v62, %v4249_v4  ;;  %v4073_v63 = vadd.f32 %v4072_v43, %v9952_v9  ;;  %v4161_v5 = vpop.f32.mrf.mxu1  ;;  %v6756_v4 = vld [vmem:[#allocation3 + $0x518] sm:$0xf0]  ;;  %v7181_v62 = vld [vmem:[#allocation3 + $0x594] sm:$0xf] }
 0x569   : > { %v9966_v15 = vpack.c.bf16 %v7972_v1, %v7970_v45  ;;  %v6759_v45 = vor.u32 %v7165_v37, %v6756_v4  ;;  %v6820_v43 = vld [vmem:[#allocation3 + $0x598] sm:$0xf0] }
 0x56a   : > { %v4162_v27 = vadd.f32 %v4161_v5, %v4073_v63  ;;  %v7974_v25 = vpop.eup %7973  ;;  %v6823_v63 = vor.u32 %v7181_v62, %v6820_v43  ;;  %v7163_v43 = vld [vmem:[#allocation3 + $0x504] sm:$0xf] }
 0x56b   : > { %4897 = vmatpush.bf16.msrb.mxu2 %v6759_v45 }
 0x56c   : > { %7975 = vtanh.f32 %v4162_v27  ;;  %4986 = vmatpush.bf16.msrb.mxu3 %v6823_v63 }
 0x56d   : > { %v4250_v12 = vpop.f32.mrf.mxu2  ;;  %7977 = vtanh.f32 %v4338_v38 }
 0x56e   : > { %v4251_v13 = vadd.f32 %v4250_v12, %v9958_v59  ;;  %v4339_v33 = vpop.f32.mrf.mxu3 }
 0x56f   : > { %v4075_v28 = vpop.f32.mrf.mxu0 }
 0x570   : > { %v4340_v11 = vadd.f32 %v4339_v33, %v4251_v13  ;;  %v4076_v55 = vadd.f32 %v4075_v28, %v9952_v9  ;;  %v4164_v17 = vpop.f32.mrf.mxu1  ;;  %v6818_v13 = vld [vmem:[#allocation3 + $0x590] sm:$0xf]  ;;  %v7182_v28 = vld [vmem:[#allocation3 + $0x594] sm:$0xf0] }
 0x572   : > { %v7976_v22 = vpop.eup %7975  ;;  %7979 = vtanh.f32 %v4340_v11  ;;  %v4165_v60 = vadd.f32 %v4164_v17, %v4076_v55  ;;  %4114 = vmatmul.bf16.gmra.mxu0 %v9883_v50  ;;  %4292 = vmatmul.bf16.gmra.mxu2 %v9883_v50  ;;  %v6819_v17 = vor.u32 %v7182_v28, %v6818_v13  ;;  %v7164_v28 = vld [vmem:[#allocation3 + $0x504] sm:$0xf0] }
 0x573   : > { %v9972_v53 = vpack.c.bf16 %v7976_v22, %v7974_v25  ;;  %4203 = vmatmul.bf16.gmra.mxu1 %v9887_v52  ;;  %4381 = vmatmul.bf16.gmra.mxu3 %v9887_v52  ;;  %v7978_v34 = vpop.eup %7977 }
 0x574   : > { %7981 = vtanh.f32 %v4165_v60  ;;  %4808 = vmatpush.bf16.msrb.mxu1 %v6819_v17  ;;  %v6747_v17 = vor.u32 %v7164_v28, %v6746_v20 }
 0x575   : > { %v4253_v31 = vpop.f32.mrf.mxu2 }
 0x576   : > { %v4254_v23 = vadd.f32 %v4253_v31, %v9958_v59  ;;  %v4342_v26 = vpop.f32.mrf.mxu3  ;;  %4720 = vmatpush.bf16.msrb.mxu0 %v6747_v17  ;;  %v6931_v17 = vld [vmem:[#allocation3 + $0x670] sm:$0xf] }
 0x577   : > { %v4077_v35 = vpop.f32.mrf.mxu0 }
 0x578   : > { %v7980_v29 = vpop.eup %7979  ;;  %v4343_v56 = vadd.f32 %v4342_v26, %v4254_v23  ;;  %v4078_v40 = vadd.f32 %v4077_v35, %v9952_v9  ;;  %v4166_v46 = vpop.f32.mrf.mxu1 }
 0x579   : > { %v9978_v19 = vpack.c.bf16 %v7980_v29, %v7978_v34 }
 0x57a   : > { %v4167_v50 = vadd.f32 %v4166_v46, %v4078_v40  ;;  %v7982_v16 = vpop.eup %7981 }
 0x57c   : > { %7983 = vtanh.f32 %v4167_v50 }
 0x57d   : > { %v4255_v41 = vpop.f32.mrf.mxu2  ;;  %7985 = vtanh.f32 %v4343_v56 }
 0x57e   : > { %v4256_v44 = vadd.f32 %v4255_v41, %v9958_v59  ;;  %v4344_v52 = vpop.f32.mrf.mxu3 }
 0x57f   : > { %v4080_v47 = vpop.f32.mrf.mxu0 }
 0x580   : > { %v4345_v6 = vadd.f32 %v4344_v52, %v4256_v44  ;;  %v4081_v61 = vadd.f32 %v4080_v47, %v9952_v9  ;;  %v4169_v7 = vpop.f32.mrf.mxu1 }
 0x582   : > { %v7984_v49 = vpop.eup %7983  ;;  %7987 = vtanh.f32 %v4345_v6  ;;  %v4170_v30 = vadd.f32 %v4169_v7, %v4081_v61  ;;  %4119 = vmatmul.bf16.gmra.mxu0 %v9895_v14  ;;  %4297 = vmatmul.bf16.gmra.mxu2 %v9895_v14 }
 0x583   : > { %4208 = vmatmul.bf16.gmra.mxu1 %v9899_v8  ;;  %4386 = vmatmul.bf16.gmra.mxu3 %v9899_v8  ;;  %v9986_v58 = vpack.c.bf16 %v7984_v49, %v7982_v16  ;;  %v7986_v5 = vpop.eup %7985 }
 0x584   : > { %7989 = vtanh.f32 %v4170_v30 }
 0x585   : > { %v4258_v42 = vpop.f32.mrf.mxu2 }
 0x586   : > { %v4259_v1 = vadd.f32 %v4258_v42, %v9958_v59  ;;  %v4347_v38 = vpop.f32.mrf.mxu3 }
 0x587   : > { %v4082_v27 = vpop.f32.mrf.mxu0 }
 0x588   : > { %v7988_v14 = vpop.eup %7987  ;;  %v4348_v36 = vadd.f32 %v4347_v38, %v4259_v1  ;;  %v4083_v57 = vadd.f32 %v4082_v27, %v9952_v9  ;;  %v4171_v8 = vpop.f32.mrf.mxu1  ;;  %v6748_v1 = vld [vmem:[#allocation3 + $0x508] sm:$0xf0]  ;;  %v7179_v38 = vld [vmem:[#allocation3 + $0x584] sm:$0xf] }
 0x589   : > { %v9990_v39 = vpack.c.bf16 %v7988_v14, %v7986_v5  ;;  %v6751_v5 = vor.u32 %v7163_v43, %v6748_v1  ;;  %v6812_v27 = vld [vmem:[#allocation3 + $0x588] sm:$0xf0] }
 0x58a   : > { %v4172_v12 = vadd.f32 %v4171_v8, %v4083_v57  ;;  %v7990_v23 = vpop.eup %7989  ;;  %v6815_v57 = vor.u32 %v7179_v38, %v6812_v27  ;;  %v7209_v27 = vld [vmem:[#allocation3 + $0x674] sm:$0xf] }
 0x58b   : > { %4898 = vmatpush.bf16.msrb.mxu2 %v6751_v5 }
 0x58c   : > { %7991 = vtanh.f32 %v4172_v12  ;;  %4987 = vmatpush.bf16.msrb.mxu3 %v6815_v57 }
 0x58d   : > { %v4260_v33 = vpop.f32.mrf.mxu2  ;;  %7993 = vtanh.f32 %v4348_v36 }
 0x58e   : > { %v4261_v11 = vadd.f32 %v4260_v33, %v9958_v59  ;;  %v4349_v55 = vpop.f32.mrf.mxu3 }
 0x58f   : > { %v4085_v25 = vpop.f32.mrf.mxu0 }
 0x590   : > { %v4350_v22 = vadd.f32 %v4349_v55, %v4261_v11  ;;  %v4086_v60 = vadd.f32 %v4085_v25, %v9952_v9  ;;  %v4174_v31 = vpop.f32.mrf.mxu1  ;;  %v6810_v11 = vld [vmem:[#allocation3 + $0x580] sm:$0xf]  ;;  %v7180_v25 = vld [vmem:[#allocation3 + $0x584] sm:$0xf0] }
 0x592   : > { %v7992_v26 = vpop.eup %7991  ;;  %7995 = vtanh.f32 %v4350_v22  ;;  %v4175_v34 = vadd.f32 %v4174_v31, %v4086_v60  ;;  %4124 = vmatmul.bf16.gmra.mxu0 %v9907_v51  ;;  %4302 = vmatmul.bf16.gmra.mxu2 %v9907_v51  ;;  %v6811_v31 = vor.u32 %v7180_v25, %v6810_v11  ;;  %v7210_v25 = vld [vmem:[#allocation3 + $0x674] sm:$0xf0] }
 0x593   : > { %4213 = vmatmul.bf16.gmra.mxu1 %v9911_v2  ;;  %4391 = vmatmul.bf16.gmra.mxu3 %v9911_v2  ;;  %v9998_v35 = vpack.c.bf16 %v7992_v26, %v7990_v23  ;;  %v7994_v46 = vpop.eup %7993 }
 0x594   : > { %7997 = vtanh.f32 %v4175_v34  ;;  %4809 = vmatpush.bf16.msrb.mxu1 %v6811_v31  ;;  %v6932_v31 = vor.u32 %v7210_v25, %v6931_v17 }
 0x595   : > { %v4263_v29 = vpop.f32.mrf.mxu2 }
 0x596   : > { %v4264_v56 = vadd.f32 %v4263_v29, %v9958_v59  ;;  %v4352_v40 = vpop.f32.mrf.mxu3  ;;  %5365 = vmatpush.bf16.msra.mxu0 %v6932_v31  ;;  %v6923_v31 = vld [vmem:[#allocation3 + $0x660] sm:$0xf] }
 0x597   : > { %v4087_v50 = vpop.f32.mrf.mxu0 }
 0x598   : > { %v7996_v41 = vpop.eup %7995  ;;  %v4353_v44 = vadd.f32 %v4352_v40, %v4264_v56  ;;  %v4088_v52 = vadd.f32 %v4087_v50, %v9952_v9  ;;  %v4176_v47 = vpop.f32.mrf.mxu1 }
 0x599   : > { %v10002_v6 = vpack.c.bf16 %v7996_v41, %v7994_v46 }
 0x59a   : > { %v4177_v51 = vadd.f32 %v4176_v47, %v4088_v52  ;;  %v7998_v4 = vpop.eup %7997 }
 0x59c   : > { %7999 = vtanh.f32 %v4177_v51 }
 0x59d   : > { %v4265_v61 = vpop.f32.mrf.mxu2  ;;  %8001 = vtanh.f32 %v4353_v44 }
 0x59e   : > { %v4266_v2 = vadd.f32 %v4265_v61, %v9958_v59  ;;  %v4354_v7 = vpop.f32.mrf.mxu3 }
 0x59f   : > { %v4090_v16 = vpop.f32.mrf.mxu0 }
 0x5a0   : > { %v4355_v49 = vadd.f32 %v4354_v7, %v4266_v2  ;;  %v4091_v30 = vadd.f32 %v4090_v16, %v9952_v9  ;;  %v4179_v37 = vpop.f32.mrf.mxu1 }
 0x5a2   : > { %v8000_v62 = vpop.eup %7999  ;;  %8003 = vtanh.f32 %v4355_v49  ;;  %v4180_v42 = vadd.f32 %v4179_v37, %v4091_v30  ;;  %4129 = vmatmul.bf16.gmra.mxu0 %v9919_v32  ;;  %4307 = vmatmul.bf16.gmra.mxu2 %v9919_v32 }
 0x5a3   : > { %4218 = vmatmul.bf16.gmra.mxu1 %v9923_v24  ;;  %4396 = vmatmul.bf16.gmra.mxu3 %v9923_v24  ;;  %v10010_v45 = vpack.c.bf16 %v8000_v62, %v7998_v4  ;;  %v8002_v8 = vpop.eup %8001 }
 0x5a4   : > { %8005 = vtanh.f32 %v4180_v42 }
 0x5a5   : > { %v4268_v63 = vpop.f32.mrf.mxu2 }
 0x5a6   : > { %v4269_v14 = vadd.f32 %v4268_v63, %v9958_v59  ;;  %v4357_v36 = vpop.f32.mrf.mxu3 }
 0x5a7   : > { %v4092_v12 = vpop.f32.mrf.mxu0 }
 0x5a8   : > { %v8004_v32 = vpop.eup %8003  ;;  %v4358_v18 = vadd.f32 %v4357_v36, %v4269_v14  ;;  %v4093_v3 = vadd.f32 %v4092_v12, %v9952_v9  ;;  %v4181_v24 = vpop.f32.mrf.mxu1  ;;  %v6933_v14 = vld [vmem:[#allocation3 + $0x678] sm:$0xf0]  ;;  %v7225_v36 = vld [vmem:[#allocation3 + $0x6f4] sm:$0xf] }
 0x5a9   : > { %v10014_v13 = vpack.c.bf16 %v8004_v32, %v8002_v8  ;;  %v6936_v8 = vor.u32 %v7209_v27, %v6933_v14  ;;  %v6997_v12 = vld [vmem:[#allocation3 + $0x6f8] sm:$0xf0] }
 0x5aa   : > { %v4182_v33 = vadd.f32 %v4181_v24, %v4093_v3  ;;  %v8006_v56 = vpop.eup %8005  ;;  %v7000_v3 = vor.u32 %v7225_v36, %v6997_v12  ;;  %v7207_v12 = vld [vmem:[#allocation3 + $0x664] sm:$0xf] }
 0x5ab   : > { %5543 = vmatpush.bf16.msra.mxu2 %v6936_v8 }
 0x5ac   : > { %8007 = vtanh.f32 %v4182_v33  ;;  %5632 = vmatpush.bf16.msra.mxu3 %v7000_v3 }
 0x5ad   : > { %v4270_v55 = vpop.f32.mrf.mxu2  ;;  %8009 = vtanh.f32 %v4358_v18 }
 0x5ae   : > { %v4271_v22 = vadd.f32 %v4270_v55, %v9958_v59  ;;  %v4359_v60 = vpop.f32.mrf.mxu3 }
 0x5af   : > { %v4095_v23 = vpop.f32.mrf.mxu0 }
 0x5b0   : > { %v4360_v26 = vadd.f32 %v4359_v60, %v4271_v22  ;;  %v4096_v34 = vadd.f32 %v4095_v23, %v9952_v9  ;;  %v4184_v29 = vpop.f32.mrf.mxu1  ;;  %v6995_v22 = vld [vmem:[#allocation3 + $0x6f0] sm:$0xf]  ;;  %v7226_v23 = vld [vmem:[#allocation3 + $0x6f4] sm:$0xf0] }
 0x5b2   : > { %v8008_v40 = vpop.eup %8007  ;;  %8011 = vtanh.f32 %v4360_v26  ;;  %v4185_v46 = vadd.f32 %v4184_v29, %v4096_v34  ;;  %4134 = vmatmul.bf16.gmra.mxu0 %v9931_v0  ;;  %4312 = vmatmul.bf16.gmra.mxu2 %v9931_v0  ;;  %v6996_v29 = vor.u32 %v7226_v23, %v6995_v22  ;;  %v7208_v23 = vld [vmem:[#allocation3 + $0x664] sm:$0xf0] }
 0x5b3   : > { %4223 = vmatmul.bf16.gmra.mxu1 %v9935_v54  ;;  %4401 = vmatmul.bf16.gmra.mxu3 %v9935_v54  ;;  %v10022_v50 = vpack.c.bf16 %v8008_v40, %v8006_v56  ;;  %v8010_v47 = vpop.eup %8009 }
 0x5b4   : > { %8013 = vtanh.f32 %v4185_v46  ;;  %5454 = vmatpush.bf16.msra.mxu1 %v6996_v29  ;;  %v6924_v29 = vor.u32 %v7208_v23, %v6923_v31 }
 0x5b5   : > { %v4273_v41 = vpop.f32.mrf.mxu2 }
 0x5b6   : > { %v4274_v44 = vadd.f32 %v4273_v41, %v9958_v59  ;;  %v4362_v52 = vpop.f32.mrf.mxu3  ;;  %5366 = vmatpush.bf16.msra.mxu0 %v6924_v29  ;;  %v6915_v29 = vld [vmem:[#allocation3 + $0x650] sm:$0xf] }
 0x5b7   : > { %v4097_v51 = vpop.f32.mrf.mxu0 }
 0x5b8   : > { %v8012_v61 = vpop.eup %8011  ;;  %v4363_v2 = vadd.f32 %v4362_v52, %v4274_v44  ;;  %v4098_v7 = vadd.f32 %v4097_v51, %v9952_v9  ;;  %v4186_v16 = vpop.f32.mrf.mxu1 }
 0x5b9   : > { %v10026_v49 = vpack.c.bf16 %v8012_v61, %v8010_v47 }
 0x5ba   : > { %v4187_v0 = vadd.f32 %v4186_v16, %v4098_v7  ;;  %v8014_v1 = vpop.eup %8013 }
 0x5bc   : > { %8015 = vtanh.f32 %v4187_v0 }
 0x5bd   : > { %v4275_v30 = vpop.f32.mrf.mxu2  ;;  %8017 = vtanh.f32 %v4363_v2 }
 0x5be   : > { %v4276_v54 = vadd.f32 %v4275_v30, %v9958_v59  ;;  %v4364_v37 = vpop.f32.mrf.mxu3 }
 0x5bf   : > { %v4100_v4 = vpop.f32.mrf.mxu0 }
 0x5c0   : > { %v4365_v62 = vadd.f32 %v4364_v37, %v4276_v54  ;;  %v4101_v42 = vadd.f32 %v4100_v4, %v9952_v9  ;;  %v4189_v43 = vpop.f32.mrf.mxu1 }
 0x5c2   : > { %v8016_v38 = vpop.eup %8015  ;;  %8019 = vtanh.f32 %v4365_v62  ;;  %v4190_v63 = vadd.f32 %v4189_v43, %v4101_v42  ;;  %4139 = vmatmul.bf16.gmra.mxu0 %v9943_v10  ;;  %4317 = vmatmul.bf16.gmra.mxu2 %v9943_v10 }
 0x5c3   : > { %4228 = vmatmul.bf16.gmra.mxu1 %v9950_v21  ;;  %4406 = vmatmul.bf16.gmra.mxu3 %v9950_v21  ;;  %v10034_v5 = vpack.c.bf16 %v8016_v38, %v8014_v1  ;;  %v8018_v24 = vpop.eup %8017 }
 0x5c4   : > { %8021 = vtanh.f32 %v4190_v63 }
 0x5c5   : > { %v4278_v57 = vpop.f32.mrf.mxu2 }
 0x5c6   : > { %v4279_v32 = vadd.f32 %v4278_v57, %v9958_v59  ;;  %v4367_v18 = vpop.f32.mrf.mxu3 }
 0x5c7   : > { %v4102_v33 = vpop.f32.mrf.mxu0 }
 0x5c8   : > { %v8020_v10 = vpop.eup %8019  ;;  %v4368_v20 = vadd.f32 %v4367_v18, %v4279_v32  ;;  %v4103_v28 = vadd.f32 %v4102_v33, %v9952_v9  ;;  %v4191_v21 = vpop.f32.mrf.mxu1  ;;  %v6925_v32 = vld [vmem:[#allocation3 + $0x668] sm:$0xf0]  ;;  %v7223_v18 = vld [vmem:[#allocation3 + $0x6e4] sm:$0xf] }
 0x5c9   : > { %v10038_v11 = vpack.c.bf16 %v8020_v10, %v8018_v24  ;;  %v6928_v24 = vor.u32 %v7207_v12, %v6925_v32  ;;  %v6989_v33 = vld [vmem:[#allocation3 + $0x6e8] sm:$0xf0] }
 0x5ca   : > { %v4192_v55 = vadd.f32 %v4191_v21, %v4103_v28  ;;  %v8022_v44 = vpop.eup %8021  ;;  %v6992_v28 = vor.u32 %v7223_v18, %v6989_v33  ;;  %v7205_v33 = vld [vmem:[#allocation3 + $0x654] sm:$0xf] }
 0x5cb   : > { %5544 = vmatpush.bf16.msra.mxu2 %v6928_v24 }
 0x5cc   : > { %8023 = vtanh.f32 %v4192_v55  ;;  %5633 = vmatpush.bf16.msra.mxu3 %v6992_v28 }
 0x5cd   : > { %v4280_v60 = vpop.f32.mrf.mxu2  ;;  %8025 = vtanh.f32 %v4368_v20 }
 0x5ce   : > { %v4281_v26 = vadd.f32 %v4280_v60, %v9958_v59  ;;  %v4369_v34 = vpop.f32.mrf.mxu3 }
 0x5cf   : > { %v4105_v56 = vpop.f32.mrf.mxu0 }
 0x5d0   : > { %v4370_v40 = vadd.f32 %v4369_v34, %v4281_v26  ;;  %v4106_v46 = vadd.f32 %v4105_v56, %v9952_v9  ;;  %v4194_v41 = vpop.f32.mrf.mxu1  ;;  %v6987_v26 = vld [vmem:[#allocation3 + $0x6e0] sm:$0xf]  ;;  %v7224_v56 = vld [vmem:[#allocation3 + $0x6e4] sm:$0xf0] }
 0x5d2   : > { %v8024_v52 = vpop.eup %8023  ;;  %8027 = vtanh.f32 %v4370_v40  ;;  %v4195_v47 = vadd.f32 %v4194_v41, %v4106_v46  ;;  %4144 = vmatmul.bf16.gmra.mxu0 %v9962_v48  ;;  %4322 = vmatmul.bf16.gmra.mxu2 %v9962_v48  ;;  %v6988_v41 = vor.u32 %v7224_v56, %v6987_v26  ;;  %v7206_v56 = vld [vmem:[#allocation3 + $0x654] sm:$0xf0] }
 0x5d3   : > { %4233 = vmatmul.bf16.gmra.mxu1 %v9966_v15  ;;  %4411 = vmatmul.bf16.gmra.mxu3 %v9966_v15  ;;  %v10046_v51 = vpack.c.bf16 %v8024_v52, %v8022_v44  ;;  %v8026_v16 = vpop.eup %8025 }
 0x5d4   : > { %8029 = vtanh.f32 %v4195_v47  ;;  %5455 = vmatpush.bf16.msra.mxu1 %v6988_v41  ;;  %v6916_v41 = vor.u32 %v7206_v56, %v6915_v29 }
 0x5d5   : > { %v4283_v61 = vpop.f32.mrf.mxu2 }
 0x5d6   : > { %v4284_v2 = vadd.f32 %v4283_v61, %v9958_v59  ;;  %v4372_v7 = vpop.f32.mrf.mxu3  ;;  %5367 = vmatpush.bf16.msra.mxu0 %v6916_v41  ;;  %v6907_v41 = vld [vmem:[#allocation3 + $0x640] sm:$0xf] }
 0x5d7   : > { %v4107_v0 = vpop.f32.mrf.mxu0 }
 0x5d8   : > { %v8028_v30 = vpop.eup %8027  ;;  %v4373_v54 = vadd.f32 %v4372_v7, %v4284_v2  ;;  %v4108_v37 = vadd.f32 %v4107_v0, %v9952_v9  ;;  %v4196_v4 = vpop.f32.mrf.mxu1 }
 0x5d9   : > { %v10050_v62 = vpack.c.bf16 %v8028_v30, %v8026_v16 }
 0x5da   : > { %v4197_v48 = vadd.f32 %v4196_v4, %v4108_v37  ;;  %v8030_v14 = vpop.eup %8029 }
 0x5dc   : > { %8031 = vtanh.f32 %v4197_v48 }
 0x5dd   : > { %v4285_v42 = vpop.f32.mrf.mxu2  ;;  %8033 = vtanh.f32 %v4373_v54 }
 0x5de   : > { %v4286_v15 = vadd.f32 %v4285_v42, %v9958_v59  ;;  %v4374_v43 = vpop.f32.mrf.mxu3 }
 0x5df   : > { %v4110_v1 = vpop.f32.mrf.mxu0 }
 0x5e0   : > { %v4375_v38 = vadd.f32 %v4374_v43, %v4286_v15  ;;  %v4111_v63 = vadd.f32 %v4110_v1, %v9952_v9  ;;  %v4199_v27 = vpop.f32.mrf.mxu1 }
 0x5e2   : > { %v8032_v36 = vpop.eup %8031  ;;  %8035 = vtanh.f32 %v4375_v38  ;;  %v4200_v57 = vadd.f32 %v4199_v27, %v4111_v63  ;;  %4721 = vmatmul.bf16.vlgmr.msrb.gmra.mxu0 %v9972_v53  ;;  %4899 = vmatmul.bf16.vlgmr.msrb.gmra.mxu2 %v9972_v53 }
 0x5e3   : > { %4810 = vmatmul.bf16.vlgmr.msrb.gmra.mxu1 %v9978_v19  ;;  %4988 = vmatmul.bf16.vlgmr.msrb.gmra.mxu3 %v9978_v19  ;;  %v10058_v8 = vpack.c.bf16 %v8032_v36, %v8030_v14  ;;  %v8034_v21 = vpop.eup %8033 }
 0x5e4   : > { %8037 = vtanh.f32 %v4200_v57 }
 0x5e5   : > { %v4288_v3 = vpop.f32.mrf.mxu2 }
 0x5e6   : > { %v4289_v10 = vadd.f32 %v4288_v3, %v9958_v59  ;;  %v4377_v20 = vpop.f32.mrf.mxu3 }
 0x5e7   : > { %v4112_v55 = vpop.f32.mrf.mxu0 }
 0x5e8   : > { %v8036_v53 = vpop.eup %8035  ;;  %v4378_v17 = vadd.f32 %v4377_v20, %v4289_v10  ;;  %v4113_v25 = vadd.f32 %v4112_v55, %v9952_v9  ;;  %v4201_v19 = vpop.f32.mrf.mxu1  ;;  %v6917_v10 = vld [vmem:[#allocation3 + $0x658] sm:$0xf0]  ;;  %v7221_v20 = vld [vmem:[#allocation3 + $0x6d4] sm:$0xf] }
 0x5e9   : > { %v10062_v22 = vpack.c.bf16 %v8036_v53, %v8034_v21  ;;  %v6920_v21 = vor.u32 %v7205_v33, %v6917_v10  ;;  %v6981_v55 = vld [vmem:[#allocation3 + $0x6d8] sm:$0xf0] }
 0x5ea   : > { %v4202_v60 = vadd.f32 %v4201_v19, %v4113_v25  ;;  %v8038_v2 = vpop.eup %8037  ;;  %v6984_v25 = vor.u32 %v7221_v20, %v6981_v55  ;;  %v7203_v55 = vld [vmem:[#allocation3 + $0x644] sm:$0xf] }
 0x5eb   : > { %5545 = vmatpush.bf16.msra.mxu2 %v6920_v21 }
 0x5ec   : > { %8039 = vtanh.f32 %v4202_v60  ;;  %5634 = vmatpush.bf16.msra.mxu3 %v6984_v25 }
 0x5ed   : > { %v4290_v34 = vpop.f32.mrf.mxu2  ;;  %8041 = vtanh.f32 %v4378_v17 }
 0x5ee   : > { %v4291_v40 = vadd.f32 %v4290_v34, %v9958_v59  ;;  %v4379_v46 = vpop.f32.mrf.mxu3 }
 0x5ef   : > { %v4115_v44 = vpop.f32.mrf.mxu0 }
 0x5f0   : > { %v4380_v52 = vadd.f32 %v4379_v46, %v4291_v40  ;;  %v4116_v47 = vadd.f32 %v4115_v44, %v9952_v9  ;;  %v4204_v61 = vpop.f32.mrf.mxu1  ;;  %v6979_v40 = vld [vmem:[#allocation3 + $0x6d0] sm:$0xf]  ;;  %v7222_v44 = vld [vmem:[#allocation3 + $0x6d4] sm:$0xf0] }
 0x5f2   : > { %v8040_v7 = vpop.eup %8039  ;;  %8043 = vtanh.f32 %v4380_v52  ;;  %v4205_v16 = vadd.f32 %v4204_v61, %v4116_v47  ;;  %4726 = vmatmul.bf16.gmra.mxu0 %v9986_v58  ;;  %4904 = vmatmul.bf16.gmra.mxu2 %v9986_v58  ;;  %v6980_v61 = vor.u32 %v7222_v44, %v6979_v40  ;;  %v7204_v44 = vld [vmem:[#allocation3 + $0x644] sm:$0xf0] }
 0x5f3   : > { %4815 = vmatmul.bf16.gmra.mxu1 %v9990_v39  ;;  %4993 = vmatmul.bf16.gmra.mxu3 %v9990_v39  ;;  %v10070_v0 = vpack.c.bf16 %v8040_v7, %v8038_v2  ;;  %v8042_v4 = vpop.eup %8041 }
 0x5f4   : > { %8045 = vtanh.f32 %v4205_v16  ;;  %5456 = vmatpush.bf16.msra.mxu1 %v6980_v61  ;;  %v6908_v61 = vor.u32 %v7204_v44, %v6907_v41 }
 0x5f5   : > { %v4293_v30 = vpop.f32.mrf.mxu2 }
 0x5f6   : > { %v4294_v54 = vadd.f32 %v4293_v30, %v9958_v59  ;;  %v4382_v37 = vpop.f32.mrf.mxu3  ;;  %5368 = vmatpush.bf16.msra.mxu0 %v6908_v61 }
 0x5f7   : > { %v4117_v48 = vpop.f32.mrf.mxu0 }
 0x5f8   : > { %v8044_v42 = vpop.eup %8043  ;;  %v4383_v15 = vadd.f32 %v4382_v37, %v4294_v54  ;;  %v4118_v43 = vadd.f32 %v4117_v48, %v9952_v9  ;;  %v4206_v1 = vpop.f32.mrf.mxu1 }
 0x5f9   : > { %v10074_v38 = vpack.c.bf16 %v8044_v42, %v8042_v4 }
 0x5fa   : > { %v4207_v58 = vadd.f32 %v4206_v1, %v4118_v43  ;;  %v8046_v32 = vpop.eup %8045 }
 0x5fc   : > { %8047 = vtanh.f32 %v4207_v58 }
 0x5fd   : > { %v4295_v63 = vpop.f32.mrf.mxu2  ;;  %8049 = vtanh.f32 %v4383_v15 }
 0x5fe   : > { %v4296_v39 = vadd.f32 %v4295_v63, %v9958_v59  ;;  %v4384_v27 = vpop.f32.mrf.mxu3 }
 0x5ff   : > { %v4120_v14 = vpop.f32.mrf.mxu0 }
 0x600   : > { %v4385_v36 = vadd.f32 %v4384_v27, %v4296_v39  ;;  %v4121_v57 = vadd.f32 %v4120_v14, %v9952_v9  ;;  %v4209_v12 = vpop.f32.mrf.mxu1 }
 0x602   : > { %v8048_v18 = vpop.eup %8047  ;;  %8051 = vtanh.f32 %v4385_v36  ;;  %v4210_v3 = vadd.f32 %v4209_v12, %v4121_v57  ;;  %4731 = vmatmul.bf16.gmra.mxu0 %v9998_v35  ;;  %4909 = vmatmul.bf16.gmra.mxu2 %v9998_v35 }
 0x603   : > { %4820 = vmatmul.bf16.gmra.mxu1 %v10002_v6  ;;  %4998 = vmatmul.bf16.gmra.mxu3 %v10002_v6  ;;  %v10082_v24 = vpack.c.bf16 %v8048_v18, %v8046_v32  ;;  %v8050_v19 = vpop.eup %8049 }
 0x604   : > { %8053 = vtanh.f32 %v4210_v3 }
 0x605   : > { %v4298_v28 = vpop.f32.mrf.mxu2 }
 0x606   : > { %v4299_v53 = vadd.f32 %v4298_v28, %v9958_v59  ;;  %v4387_v17 = vpop.f32.mrf.mxu3 }
 0x607   : > { %v4122_v60 = vpop.f32.mrf.mxu0 }
 0x608   : > { %v8052_v35 = vpop.eup %8051  ;;  %v4388_v31 = vadd.f32 %v4387_v17, %v4299_v53  ;;  %v4123_v23 = vadd.f32 %v4122_v60, %v9952_v9  ;;  %v4211_v6 = vpop.f32.mrf.mxu1  ;;  %v6909_v53 = vld [vmem:[#allocation3 + $0x648] sm:$0xf0]  ;;  %v7219_v17 = vld [vmem:[#allocation3 + $0x6c4] sm:$0xf] }
 0x609   : > { %v10086_v26 = vpack.c.bf16 %v8052_v35, %v8050_v19  ;;  %v6912_v19 = vor.u32 %v7203_v55, %v6909_v53  ;;  %v6973_v60 = vld [vmem:[#allocation3 + $0x6c8] sm:$0xf0] }
 0x60a   : > { %v4212_v34 = vadd.f32 %v4211_v6, %v4123_v23  ;;  %v8054_v54 = vpop.eup %8053  ;;  %v6976_v23 = vor.u32 %v7219_v17, %v6973_v60  ;;  %v7201_v60 = vld [vmem:[#allocation3 + $0x634] sm:$0xf] }
 0x60b   : > { %5546 = vmatpush.bf16.msra.mxu2 %v6912_v19 }
 0x60c   : > { %8055 = vtanh.f32 %v4212_v34  ;;  %5635 = vmatpush.bf16.msra.mxu3 %v6976_v23 }
 0x60d   : > { %v4300_v46 = vpop.f32.mrf.mxu2  ;;  %8057 = vtanh.f32 %v4388_v31 }
 0x60e   : > { %v4301_v52 = vadd.f32 %v4300_v46, %v9958_v59  ;;  %v4389_v47 = vpop.f32.mrf.mxu3 }
 0x60f   : > { %v4125_v2 = vpop.f32.mrf.mxu0 }
 0x610   : > { %v4390_v7 = vadd.f32 %v4389_v47, %v4301_v52  ;;  %v4126_v16 = vadd.f32 %v4125_v2, %v9952_v9  ;;  %v4214_v30 = vpop.f32.mrf.mxu1  ;;  %v6971_v52 = vld [vmem:[#allocation3 + $0x6c0] sm:$0xf]  ;;  %v7220_v2 = vld [vmem:[#allocation3 + $0x6c4] sm:$0xf0] }
 0x612   : > { %v8056_v37 = vpop.eup %8055  ;;  %8059 = vtanh.f32 %v4390_v7  ;;  %v4215_v4 = vadd.f32 %v4214_v30, %v4126_v16  ;;  %4736 = vmatmul.bf16.gmra.mxu0 %v10010_v45  ;;  %4914 = vmatmul.bf16.gmra.mxu2 %v10010_v45  ;;  %v6972_v30 = vor.u32 %v7220_v2, %v6971_v52 }
 0x613   : > { %4825 = vmatmul.bf16.gmra.mxu1 %v10014_v13  ;;  %5003 = vmatmul.bf16.gmra.mxu3 %v10014_v13  ;;  %v10094_v48 = vpack.c.bf16 %v8056_v37, %v8054_v54  ;;  %v8058_v1 = vpop.eup %8057 }
 0x614   : > { %8061 = vtanh.f32 %v4215_v4  ;;  %5457 = vmatpush.bf16.msra.mxu1 %v6972_v30 }
 0x615   : > { %v4303_v42 = vpop.f32.mrf.mxu2 }
 0x616   : > { %v4304_v15 = vadd.f32 %v4303_v42, %v9958_v59  ;;  %v4392_v43 = vpop.f32.mrf.mxu3 }
 0x617   : > { %v4127_v58 = vpop.f32.mrf.mxu0 }
 0x618   : > { %v8060_v63 = vpop.eup %8059  ;;  %v4393_v39 = vadd.f32 %v4392_v43, %v4304_v15  ;;  %v4128_v27 = vadd.f32 %v4127_v58, %v9952_v9  ;;  %v4216_v14 = vpop.f32.mrf.mxu1 }
 0x619   : > { %v10098_v36 = vpack.c.bf16 %v8060_v63, %v8058_v1 }
 0x61a   : > { %v4217_v45 = vadd.f32 %v4216_v14, %v4128_v27  ;;  %v8062_v10 = vpop.eup %8061 }
 0x61c   : > { %8063 = vtanh.f32 %v4217_v45 }
 0x61d   : > { %v4305_v57 = vpop.f32.mrf.mxu2  ;;  %8065 = vtanh.f32 %v4393_v39 }
 0x61e   : > { %v4306_v13 = vadd.f32 %v4305_v57, %v9958_v59  ;;  %v4394_v12 = vpop.f32.mrf.mxu3 }
 0x61f   : > { %v4130_v32 = vpop.f32.mrf.mxu0 }
 0x620   : > { %v4395_v18 = vadd.f32 %v4394_v12, %v4306_v13  ;;  %v4131_v3 = vadd.f32 %v4130_v32, %v9952_v9  ;;  %v4219_v33 = vpop.f32.mrf.mxu1 }
 0x622   : > { %v8064_v20 = vpop.eup %8063  ;;  %8067 = vtanh.f32 %v4395_v18  ;;  %v4220_v28 = vadd.f32 %v4219_v33, %v4131_v3  ;;  %4741 = vmatmul.bf16.gmra.mxu0 %v10022_v50  ;;  %4919 = vmatmul.bf16.gmra.mxu2 %v10022_v50 }
 0x623   : > { %4830 = vmatmul.bf16.gmra.mxu1 %v10026_v49  ;;  %5008 = vmatmul.bf16.gmra.mxu3 %v10026_v49  ;;  %v10106_v21 = vpack.c.bf16 %v8064_v20, %v8062_v10  ;;  %v8066_v6 = vpop.eup %8065 }
 0x624   : > { %8069 = vtanh.f32 %v4220_v28 }
 0x625   : > { %v4308_v25 = vpop.f32.mrf.mxu2 }
 0x626   : > { %v4309_v35 = vadd.f32 %v4308_v25, %v9958_v59  ;;  %v4397_v31 = vpop.f32.mrf.mxu3 }
 0x627   : > { %v4132_v34 = vpop.f32.mrf.mxu0 }
 0x628   : > { %v8068_v50 = vpop.eup %8067  ;;  %v4398_v29 = vadd.f32 %v4397_v31, %v4309_v35  ;;  %v4133_v56 = vadd.f32 %v4132_v34, %v9952_v9  ;;  %v4221_v49 = vpop.f32.mrf.mxu1  ;;  %v6901_v35 = vld [vmem:[#allocation3 + $0x638] sm:$0xf0]  ;;  %v7217_v31 = vld [vmem:[#allocation3 + $0x6b4] sm:$0xf] }
 0x629   : > { %v10110_v40 = vpack.c.bf16 %v8068_v50, %v8066_v6  ;;  %v6904_v6 = vor.u32 %v7201_v60, %v6901_v35  ;;  %v6965_v34 = vld [vmem:[#allocation3 + $0x6b8] sm:$0xf0] }
 0x62a   : > { %v4222_v46 = vadd.f32 %v4221_v49, %v4133_v56  ;;  %v8070_v15 = vpop.eup %8069  ;;  %v6968_v56 = vor.u32 %v7217_v31, %v6965_v34 }
 0x62b   : > { %5547 = vmatpush.bf16.msra.mxu2 %v6904_v6 }
 0x62c   : > { %8071 = vtanh.f32 %v4222_v46  ;;  %5636 = vmatpush.bf16.msra.mxu3 %v6968_v56  ;;  %v7215_v56 = vld [vmem:[#allocation3 + $0x6a4] sm:$0xf] }
 0x62d   : > { %v4310_v47 = vpop.f32.mrf.mxu2  ;;  %8073 = vtanh.f32 %v4398_v29 }
 0x62e   : > { %v4311_v7 = vadd.f32 %v4310_v47, %v9958_v59  ;;  %v4399_v16 = vpop.f32.mrf.mxu3 }
 0x62f   : > { %v4135_v54 = vpop.f32.mrf.mxu0 }
 0x630   : > { %v4400_v37 = vadd.f32 %v4399_v16, %v4311_v7  ;;  %v4136_v4 = vadd.f32 %v4135_v54, %v9952_v9  ;;  %v4224_v42 = vpop.f32.mrf.mxu1 }
 0x632   : > { %v8072_v43 = vpop.eup %8071  ;;  %8075 = vtanh.f32 %v4400_v37  ;;  %v4225_v1 = vadd.f32 %v4224_v42, %v4136_v4  ;;  %4746 = vmatmul.bf16.gmra.mxu0 %v10034_v5  ;;  %4924 = vmatmul.bf16.gmra.mxu2 %v10034_v5 }
 0x633   : > { %4835 = vmatmul.bf16.gmra.mxu1 %v10038_v11  ;;  %5013 = vmatmul.bf16.gmra.mxu3 %v10038_v11  ;;  %v10118_v58 = vpack.c.bf16 %v8072_v43, %v8070_v15  ;;  %v8074_v14 = vpop.eup %8073  ;;  %v6899_v43 = vld [vmem:[#allocation3 + $0x630] sm:$0xf] }
 0x634   : > { %8077 = vtanh.f32 %v4225_v1  ;;  %v7202_v1 = vld [vmem:[#allocation3 + $0x634] sm:$0xf0] }
 0x635   : > { %v4313_v63 = vpop.f32.mrf.mxu2 }
 0x636   : > { %v4314_v39 = vadd.f32 %v4313_v63, %v9958_v59  ;;  %v4402_v27 = vpop.f32.mrf.mxu3  ;;  %v6963_v63 = vld [vmem:[#allocation3 + $0x6b0] sm:$0xf] }
 0x637   : > { %v4137_v45 = vpop.f32.mrf.mxu0 }
 0x638   : > { %v8076_v57 = vpop.eup %8075  ;;  %v4403_v13 = vadd.f32 %v4402_v27, %v4314_v39  ;;  %v4138_v12 = vadd.f32 %v4137_v45, %v9952_v9  ;;  %v4226_v32 = vpop.f32.mrf.mxu1  ;;  %v6900_v27 = vor.u32 %v7202_v1, %v6899_v43  ;;  %v7216_v43 = vld [vmem:[#allocation3 + $0x6a4] sm:$0xf0] }
 0x639   : > { %v10122_v18 = vpack.c.bf16 %v8076_v57, %v8074_v14  ;;  %v7218_v14 = vld [vmem:[#allocation3 + $0x6b4] sm:$0xf0] }
 0x63a   : > { %v4227_v5 = vadd.f32 %v4226_v32, %v4138_v12  ;;  %v8078_v53 = vpop.eup %8077  ;;  %v6964_v57 = vor.u32 %v7218_v14, %v6963_v63  ;;  %5369 = vmatpush.bf16.msra.mxu0 %v6900_v27 }
 0x63c   : > { %8079 = vtanh.f32 %v4227_v5  ;;  %5458 = vmatpush.bf16.msra.mxu1 %v6964_v57 }
 0x63d   : > { %v4315_v3 = vpop.f32.mrf.mxu2  ;;  %8081 = vtanh.f32 %v4403_v13 }
 0x63e   : > { %v4316_v11 = vadd.f32 %v4315_v3, %v9958_v59  ;;  %v4404_v33 = vpop.f32.mrf.mxu3 }
 0x63f   : > { %v4140_v10 = vpop.f32.mrf.mxu0 }
 0x640   : > { %v4405_v20 = vadd.f32 %v4404_v33, %v4316_v11  ;;  %v4141_v28 = vadd.f32 %v4140_v10, %v9952_v9  ;;  %v4229_v55 = vpop.f32.mrf.mxu1  ;;  %v6743_v33 = vld [vmem:[%s10638_s4 + $0xa] sm:$0x3] }
 0x641   : > { %v10157_v34 = vperm.slane %v6743_v33, 1 }
 0x642   : > { %v8080_v17 = vpop.eup %8079  ;;  %8083 = vtanh.f32 %v4405_v20  ;;  %v4230_v25 = vadd.f32 %v4229_v55, %v4141_v28  ;;  %4751 = vmatmul.bf16.gmra.mxu0 %v10046_v51  ;;  %4929 = vmatmul.bf16.gmra.mxu2 %v10046_v51  ;;  %v10151_v28 = vperm.slane %v6743_v33, 0 }
 0x643   : > { %4840 = vmatmul.bf16.gmra.mxu1 %v10050_v62  ;;  %5018 = vmatmul.bf16.gmra.mxu3 %v10050_v62  ;;  %v10130_v19 = vpack.c.bf16 %v8080_v17, %v8078_v53  ;;  %v8082_v49 = vpop.eup %8081 }
 0x644   : > { %8085 = vtanh.f32 %v4230_v25 }
 0x645   : > { %v4318_v23 = vpop.f32.mrf.mxu2 }
 0x646   : > { %v4319_v50 = vadd.f32 %v4318_v23, %v9958_v59  ;;  %v4407_v29 = vpop.f32.mrf.mxu3 }
 0x647   : > { %v4142_v46 = vpop.f32.mrf.mxu0 }
 0x648   : > { %v8084_v51 = vpop.eup %8083  ;;  %v4408_v41 = vadd.f32 %v4407_v29, %v4319_v50  ;;  %v4143_v44 = vadd.f32 %v4142_v46, %v9952_v9  ;;  %v4231_v62 = vpop.f32.mrf.mxu1  ;;  %v7199_v50 = vld [vmem:[#allocation3 + $0x624] sm:$0xf]  ;;  %v6893_v29 = vld [vmem:[#allocation3 + $0x628] sm:$0xf0] }
 0x649   : > { %v10134_v52 = vpack.c.bf16 %v8084_v51, %v8082_v49  ;;  %v6896_v46 = vor.u32 %v7199_v50, %v6893_v29  ;;  %v6957_v51 = vld [vmem:[#allocation3 + $0x6a8] sm:$0xf0] }
 0x64a   : > { %v4232_v47 = vadd.f32 %v4231_v62, %v4143_v44  ;;  %v8086_v4 = vpop.eup %8085  ;;  %v6960_v62 = vor.u32 %v7215_v56, %v6957_v51  ;;  %v7197_v51 = vld [vmem:[#allocation3 + $0x614] sm:$0xf] }
 0x64b   : > { %5548 = vmatpush.bf16.msra.mxu2 %v6896_v46 }
 0x64c   : > { %8087 = vtanh.f32 %v4232_v47  ;;  %5637 = vmatpush.bf16.msra.mxu3 %v6960_v62 }
 0x64d   : > { %v4320_v61 = vpop.f32.mrf.mxu2  ;;  %8089 = vtanh.f32 %v4408_v41 }
 0x64e   : > { %v4321_v2 = vadd.f32 %v4320_v61, %v9958_v59  ;;  %v4409_v7 = vpop.f32.mrf.mxu3 }
 0x64f   : > { %v4145_v16 = vpop.f32.mrf.mxu0 }
 0x650   : > { %v4410_v30 = vadd.f32 %v4409_v7, %v4321_v2  ;;  %v4146_v54 = vadd.f32 %v4145_v16, %v9952_v9  ;;  %v4234_v37 = vpop.f32.mrf.mxu1 }
 0x652   : > { %v8088_v42 = vpop.eup %8087  ;;  %8091 = vtanh.f32 %v4410_v30  ;;  %v4235_v15 = vadd.f32 %v4234_v37, %v4146_v54  ;;  %4756 = vmatmul.bf16.gmra.mxu0 %v10058_v8  ;;  %4934 = vmatmul.bf16.gmra.mxu2 %v10058_v8  ;;  %v6891_v54 = vld [vmem:[#allocation3 + $0x620] sm:$0xf]  ;;  %v7200_v37 = vld [vmem:[#allocation3 + $0x624] sm:$0xf0] }
 0x653   : > { %4845 = vmatmul.bf16.gmra.mxu1 %v10062_v22  ;;  %5023 = vmatmul.bf16.gmra.mxu3 %v10062_v22  ;;  %v10142_v39 = vpack.c.bf16 %v8088_v42, %v8086_v4  ;;  %v8090_v32 = vpop.eup %8089  ;;  %v6955_v4 = vld [vmem:[#allocation3 + $0x6a0] sm:$0xf] }
 0x654   : > { %8093 = vtanh.f32 %v4235_v15  ;;  %v6892_v15 = vor.u32 %v7200_v37, %v6891_v54  ;;  %v6956_v27 = vor.u32 %v7216_v43, %v6955_v4  ;;  %v7198_v43 = vld [vmem:[#allocation3 + $0x614] sm:$0xf0] }
 0x655   : > { %v4323_v45 = vpop.f32.mrf.mxu2 }
 0x656   : > { %v4324_v13 = vadd.f32 %v4323_v45, %v9958_v59  ;;  %v4412_v12 = vpop.f32.mrf.mxu3  ;;  %5370 = vmatpush.bf16.msra.mxu0 %v6892_v15  ;;  %5459 = vmatpush.bf16.msra.mxu1 %v6956_v27  ;;  %v6883_v15 = vld [vmem:[#allocation3 + $0x610] sm:$0xf] }
 0x657   : > { %v4147_v5 = vpop.f32.mrf.mxu0  ;;  %v6884_v27 = vor.u32 %v7198_v43, %v6883_v15 }
 0x658   : > { %v8092_v8 = vpop.eup %8091  ;;  %v4413_v3 = vadd.f32 %v4412_v12, %v4324_v13  ;;  %v4148_v22 = vadd.f32 %v4147_v5, %v9952_v9  ;;  %v4236_v11 = vpop.f32.mrf.mxu1 }
 0x659   : > { %v10149_v10 = vpack.c.bf16 %v8092_v8, %v8090_v32 }
 0x65a   : > { %v4237_v20 = vadd.f32 %v4236_v11, %v4148_v22  ;;  %v8094_v31 = vpop.eup %8093  ;;  %5371 = vmatpush.bf16.msra.mxu0 %v6884_v27  ;;  %v6875_v27 = vld [vmem:[#allocation3 + $0x600] sm:$0xf] }
 0x65c   : > { %8095 = vtanh.f32 %v4237_v20 }
 0x65d   : > { %v4325_v55 = vpop.f32.mrf.mxu2  ;;  %8097 = vtanh.f32 %v4413_v3 }
 0x65e   : > { %v4326_v53 = vadd.f32 %v4325_v55, %v9958_v59  ;;  %v4414_v17 = vpop.f32.mrf.mxu3 }
 0x65f   : > { %v4722_v25 = vpop.f32.mrf.mxu0 }
 0x660   : > { %v4415_v60 = vadd.f32 %v4414_v17, %v4326_v53  ;;  %v4723_v9 = vadd.f32 %v4722_v25, %v10151_v28  ;;  %v4811_v35 = vpop.f32.mrf.mxu1 }
 0x662   : > { %v8096_v23 = vpop.eup %8095  ;;  %8099 = vtanh.f32 %v4415_v60  ;;  %v4812_v6 = vadd.f32 %v4811_v35, %v4723_v9  ;;  %4761 = vmatmul.bf16.gmra.mxu0 %v10070_v0  ;;  %4939 = vmatmul.bf16.gmra.mxu2 %v10070_v0 }
 0x663   : > { %4850 = vmatmul.bf16.gmra.mxu1 %v10074_v38  ;;  %5028 = vmatmul.bf16.gmra.mxu3 %v10074_v38  ;;  %v10161_v59 = vpack.c.bf16 %v8096_v23, %v8094_v31  ;;  %v8098_v47 = vpop.eup %8097 }
 0x664   : > { %8101 = vtanh.f32 %v4812_v6 }
 0x665   : > { %v4900_v49 = vpop.f32.mrf.mxu2 }
 0x666   : > { %v4901_v41 = vadd.f32 %v4900_v49, %v10157_v34  ;;  %v4989_v44 = vpop.f32.mrf.mxu3 }
 0x667   : > { %v4724_v0 = vpop.f32.mrf.mxu0 }
 0x668   : > { %v8100_v61 = vpop.eup %8099  ;;  %v4990_v2 = vadd.f32 %v4989_v44, %v4901_v41  ;;  %v4725_v7 = vadd.f32 %v4724_v0, %v10151_v28  ;;  %v4813_v38 = vpop.f32.mrf.mxu1  ;;  %v6885_v41 = vld [vmem:[#allocation3 + $0x618] sm:$0xf0]  ;;  %v7213_v44 = vld [vmem:[#allocation3 + $0x694] sm:$0xf] }
 0x669   : > { %v10165_v16 = vpack.c.bf16 %v8100_v61, %v8098_v47  ;;  %v6888_v47 = vor.u32 %v7197_v51, %v6885_v41  ;;  %v6949_v0 = vld [vmem:[#allocation3 + $0x698] sm:$0xf0] }
 0x66a   : > { %v4814_v30 = vadd.f32 %v4813_v38, %v4725_v7  ;;  %v8102_v12 = vpop.eup %8101  ;;  %v6952_v7 = vor.u32 %v7213_v44, %v6949_v0  ;;  %v7195_v0 = vld [vmem:[#allocation3 + $0x604] sm:$0xf] }
 0x66b   : > { %5549 = vmatpush.bf16.msra.mxu2 %v6888_v47 }
 0x66c   : > { %8103 = vtanh.f32 %v4814_v30  ;;  %5638 = vmatpush.bf16.msra.mxu3 %v6952_v7 }
 0x66d   : > { %v4902_v42 = vpop.f32.mrf.mxu2  ;;  %8105 = vtanh.f32 %v4990_v2 }
 0x66e   : > { %v4903_v1 = vadd.f32 %v4902_v42, %v10157_v34  ;;  %v4991_v63 = vpop.f32.mrf.mxu3 }
 0x66f   : > { %v4727_v14 = vpop.f32.mrf.mxu0 }
 0x670   : > { %v4992_v45 = vadd.f32 %v4991_v63, %v4903_v1  ;;  %v4728_v57 = vadd.f32 %v4727_v14, %v10151_v28  ;;  %v4816_v13 = vpop.f32.mrf.mxu1  ;;  %v6947_v1 = vld [vmem:[#allocation3 + $0x690] sm:$0xf]  ;;  %v7214_v14 = vld [vmem:[#allocation3 + $0x694] sm:$0xf0] }
 0x672   : > { %v8104_v32 = vpop.eup %8103  ;;  %8107 = vtanh.f32 %v4992_v45  ;;  %v4817_v5 = vadd.f32 %v4816_v13, %v4728_v57  ;;  %4766 = vmatmul.bf16.gmra.mxu0 %v10082_v24  ;;  %4944 = vmatmul.bf16.gmra.mxu2 %v10082_v24  ;;  %v6948_v13 = vor.u32 %v7214_v14, %v6947_v1  ;;  %v7196_v14 = vld [vmem:[#allocation3 + $0x604] sm:$0xf0] }
 0x673   : > { %v10171_v8 = vpack.c.bf16 %v8104_v32, %v8102_v12  ;;  %4855 = vmatmul.bf16.gmra.mxu1 %v10086_v26  ;;  %5033 = vmatmul.bf16.gmra.mxu3 %v10086_v26  ;;  %v8106_v33 = vpop.eup %8105 }
 0x674   : > { %8109 = vtanh.f32 %v4817_v5  ;;  %5460 = vmatpush.bf16.msra.mxu1 %v6948_v13  ;;  %v6876_v13 = vor.u32 %v7196_v14, %v6875_v27 }
 0x675   : > { %v4905_v3 = vpop.f32.mrf.mxu2 }
 0x676   : > { %v4906_v22 = vadd.f32 %v4905_v3, %v10157_v34  ;;  %v4994_v11 = vpop.f32.mrf.mxu3  ;;  %5372 = vmatpush.bf16.msra.mxu0 %v6876_v13 }
 0x677   : > { %v4729_v20 = vpop.f32.mrf.mxu0 }
 0x678   : > { %v8108_v55 = vpop.eup %8107  ;;  %v4995_v53 = vadd.f32 %v4994_v11, %v4906_v22  ;;  %v4730_v17 = vadd.f32 %v4729_v20, %v10151_v28  ;;  %v4818_v25 = vpop.f32.mrf.mxu1 }
 0x679   : > { %v10177_v60 = vpack.c.bf16 %v8108_v55, %v8106_v33 }
 0x67a   : > { %v4819_v24 = vadd.f32 %v4818_v25, %v4730_v17  ;;  %v8110_v29 = vpop.eup %8109 }
 0x67c   : > { %8111 = vtanh.f32 %v4819_v24 }
 0x67d   : > { %v4907_v9 = vpop.f32.mrf.mxu2  ;;  %8113 = vtanh.f32 %v4995_v53 }
 0x67e   : > { %v4908_v35 = vadd.f32 %v4907_v9, %v10157_v34  ;;  %v4996_v26 = vpop.f32.mrf.mxu3 }
 0x67f   : > { %v4732_v31 = vpop.f32.mrf.mxu0 }
 0x680   : > { %v4997_v23 = vadd.f32 %v4996_v26, %v4908_v35  ;;  %v4733_v6 = vadd.f32 %v4732_v31, %v10151_v28  ;;  %v4821_v50 = vpop.f32.mrf.mxu1 }
 0x682   : > { %v8112_v56 = vpop.eup %8111  ;;  %8115 = vtanh.f32 %v4997_v23  ;;  %v4822_v49 = vadd.f32 %v4821_v50, %v4733_v6  ;;  %4771 = vmatmul.bf16.gmra.mxu0 %v10094_v48  ;;  %4949 = vmatmul.bf16.gmra.mxu2 %v10094_v48 }
 0x683   : > { %4860 = vmatmul.bf16.gmra.mxu1 %v10098_v36  ;;  %5038 = vmatmul.bf16.gmra.mxu3 %v10098_v36  ;;  %v10185_v46 = vpack.c.bf16 %v8112_v56, %v8110_v29  ;;  %v8114_v38 = vpop.eup %8113 }
 0x684   : > { %8117 = vtanh.f32 %v4822_v49 }
 0x685   : > { %v4910_v62 = vpop.f32.mrf.mxu2 }
 0x686   : > { %v4911_v61 = vadd.f32 %v4910_v62, %v10157_v34  ;;  %v4999_v2 = vpop.f32.mrf.mxu3 }
 0x687   : > { %v4734_v30 = vpop.f32.mrf.mxu0 }
 0x688   : > { %v8116_v48 = vpop.eup %8115  ;;  %v5000_v54 = vadd.f32 %v4999_v2, %v4911_v61  ;;  %v4735_v37 = vadd.f32 %v4734_v30, %v10151_v28  ;;  %v4823_v36 = vpop.f32.mrf.mxu1  ;;  %v6877_v61 = vld [vmem:[#allocation3 + $0x608] sm:$0xf0]  ;;  %v7211_v2 = vld [vmem:[#allocation3 + $0x684] sm:$0xf] }
 0x689   : > { %v10189_v4 = vpack.c.bf16 %v8116_v48, %v8114_v38  ;;  %v6880_v38 = vor.u32 %v7195_v0, %v6877_v61  ;;  %v6941_v30 = vld [vmem:[#allocation3 + $0x688] sm:$0xf0] }
 0x68a   : > { %v4824_v42 = vadd.f32 %v4823_v36, %v4735_v37  ;;  %v8118_v22 = vpop.eup %8117  ;;  %v6944_v37 = vor.u32 %v7211_v2, %v6941_v30 }
 0x68b   : > { %5550 = vmatpush.bf16.msra.mxu2 %v6880_v38 }
 0x68c   : > { %8119 = vtanh.f32 %v4824_v42  ;;  %5639 = vmatpush.bf16.msra.mxu3 %v6944_v37 }
 0x68d   : > { %v4912_v63 = vpop.f32.mrf.mxu2  ;;  %8121 = vtanh.f32 %v5000_v54 }
 0x68e   : > { %v4913_v45 = vadd.f32 %v4912_v63, %v10157_v34  ;;  %v5001_v57 = vpop.f32.mrf.mxu3 }
 0x68f   : > { %v4737_v12 = vpop.f32.mrf.mxu0 }
 0x690   : > { %v5002_v32 = vadd.f32 %v5001_v57, %v4913_v45  ;;  %v4738_v5 = vadd.f32 %v4737_v12, %v10151_v28  ;;  %v4826_v3 = vpop.f32.mrf.mxu1  ;;  %v6939_v45 = vld [vmem:[#allocation3 + $0x680] sm:$0xf]  ;;  %v7212_v12 = vld [vmem:[#allocation3 + $0x684] sm:$0xf0] }
 0x692   : > { %v8120_v11 = vpop.eup %8119  ;;  %8123 = vtanh.f32 %v5002_v32  ;;  %v4827_v33 = vadd.f32 %v4826_v3, %v4738_v5  ;;  %4776 = vmatmul.bf16.gmra.mxu0 %v10106_v21  ;;  %4954 = vmatmul.bf16.gmra.mxu2 %v10106_v21  ;;  %v6940_v3 = vor.u32 %v7212_v12, %v6939_v45 }
 0x693   : > { %4865 = vmatmul.bf16.gmra.mxu1 %v10110_v40  ;;  %5043 = vmatmul.bf16.gmra.mxu3 %v10110_v40  ;;  %v10197_v20 = vpack.c.bf16 %v8120_v11, %v8118_v22  ;;  %v8122_v25 = vpop.eup %8121 }
 0x694   : > { %8125 = vtanh.f32 %v4827_v33  ;;  %5461 = vmatpush.bf16.msra.mxu1 %v6940_v3 }
 0x695   : > { %v4915_v55 = vpop.f32.mrf.mxu2 }
 0x696   : > { %v4916_v53 = vadd.f32 %v4915_v55, %v10157_v34  ;;  %v5004_v17 = vpop.f32.mrf.mxu3 }
 0x697   : > { %v4739_v24 = vpop.f32.mrf.mxu0 }
 0x698   : > { %v8124_v9 = vpop.eup %8123  ;;  %v5005_v35 = vadd.f32 %v5004_v17, %v4916_v53  ;;  %v4740_v26 = vadd.f32 %v4739_v24, %v10151_v28  ;;  %v4828_v31 = vpop.f32.mrf.mxu1 }
 0x699   : > { %v10201_v23 = vpack.c.bf16 %v8124_v9, %v8122_v25 }
 0x69a   : > { %v4829_v21 = vadd.f32 %v4828_v31, %v4740_v26  ;;  %v8126_v41 = vpop.eup %8125 }
 0x69c   : > { %8127 = vtanh.f32 %v4829_v21 }
 0x69d   : > { %v4917_v6 = vpop.f32.mrf.mxu2  ;;  %8129 = vtanh.f32 %v5005_v35 }
 0x69e   : > { %v4918_v40 = vadd.f32 %v4917_v6, %v10157_v34  ;;  %v5006_v50 = vpop.f32.mrf.mxu3 }
 0x69f   : > { %v4742_v29 = vpop.f32.mrf.mxu0 }
 0x6a0   : > { %v5007_v56 = vadd.f32 %v5006_v50, %v4918_v40  ;;  %v4743_v49 = vadd.f32 %v4742_v29, %v10151_v28  ;;  %v4831_v51 = vpop.f32.mrf.mxu1 }
 0x6a2   : > { %v8128_v44 = vpop.eup %8127  ;;  %8131 = vtanh.f32 %v5007_v56  ;;  %v4832_v62 = vadd.f32 %v4831_v51, %v4743_v49  ;;  %4781 = vmatmul.bf16.gmra.mxu0 %v10118_v58  ;;  %4959 = vmatmul.bf16.gmra.mxu2 %v10118_v58 }
 0x6a3   : > { %4870 = vmatmul.bf16.gmra.mxu1 %v10122_v18  ;;  %5048 = vmatmul.bf16.gmra.mxu3 %v10122_v18  ;;  %v10209_v47 = vpack.c.bf16 %v8128_v44, %v8126_v41  ;;  %v8130_v36 = vpop.eup %8129 }
 0x6a4   : > { %8133 = vtanh.f32 %v4832_v62 }
 0x6a5   : > { %v4920_v7 = vpop.f32.mrf.mxu2 }
 0x6a6   : > { %v4921_v48 = vadd.f32 %v4920_v7, %v10157_v34  ;;  %v5009_v54 = vpop.f32.mrf.mxu3 }
 0x6a7   : > { %v4744_v42 = vpop.f32.mrf.mxu0 }
 0x6a8   : > { %v8132_v58 = vpop.eup %8131  ;;  %v5010_v15 = vadd.f32 %v5009_v54, %v4921_v48  ;;  %v4745_v43 = vadd.f32 %v4744_v42, %v10151_v28  ;;  %v4833_v18 = vpop.f32.mrf.mxu1 }
 0x6a9   : > { %v10213_v1 = vpack.c.bf16 %v8132_v58, %v8130_v36 }
 0x6aa   : > { %v4834_v63 = vadd.f32 %v4833_v18, %v4745_v43  ;;  %v8134_v53 = vpop.eup %8133 }
 0x6ac   : > { %8135 = vtanh.f32 %v4834_v63 }
 0x6ad   : > { %v4922_v57 = vpop.f32.mrf.mxu2  ;;  %8137 = vtanh.f32 %v5010_v15 }
 0x6ae   : > { %v4923_v32 = vadd.f32 %v4922_v57, %v10157_v34  ;;  %v5011_v5 = vpop.f32.mrf.mxu3 }
 0x6af   : > { %v4747_v22 = vpop.f32.mrf.mxu0 }
 0x6b0   : > { %v5012_v11 = vadd.f32 %v5011_v5, %v4923_v32  ;;  %v4748_v33 = vadd.f32 %v4747_v22, %v10151_v28  ;;  %v4836_v55 = vpop.f32.mrf.mxu1 }
 0x6b2   : > { %v8136_v17 = vpop.eup %8135  ;;  %8139 = vtanh.f32 %v5012_v11  ;;  %v4837_v25 = vadd.f32 %v4836_v55, %v4748_v33  ;;  %4786 = vmatmul.bf16.gmra.mxu0 %v10130_v19  ;;  %4964 = vmatmul.bf16.gmra.mxu2 %v10130_v19 }
 0x6b3   : > { %4875 = vmatmul.bf16.gmra.mxu1 %v10134_v52  ;;  %5053 = vmatmul.bf16.gmra.mxu3 %v10134_v52  ;;  %v10221_v24 = vpack.c.bf16 %v8136_v17, %v8134_v53  ;;  %v8138_v31 = vpop.eup %8137 }
 0x6b4   : > { %8141 = vtanh.f32 %v4837_v25 }
 0x6b5   : > { %v4925_v9 = vpop.f32.mrf.mxu2 }
 0x6b6   : > { %v4926_v35 = vadd.f32 %v4925_v9, %v10157_v34  ;;  %v5014_v26 = vpop.f32.mrf.mxu3 }
 0x6b7   : > { %v4749_v21 = vpop.f32.mrf.mxu0 }
 0x6b8   : > { %v8140_v6 = vpop.eup %8139  ;;  %v5015_v40 = vadd.f32 %v5014_v26, %v4926_v35  ;;  %v4750_v50 = vadd.f32 %v4749_v21, %v10151_v28  ;;  %v4838_v29 = vpop.f32.mrf.mxu1 }
 0x6b9   : > { %v10225_v56 = vpack.c.bf16 %v8140_v6, %v8138_v31 }
 0x6ba   : > { %v4839_v19 = vadd.f32 %v4838_v29, %v4750_v50  ;;  %v8142_v61 = vpop.eup %8141 }
 0x6bc   : > { %8143 = vtanh.f32 %v4839_v19 }
 0x6bd   : > { %v4927_v49 = vpop.f32.mrf.mxu2  ;;  %8145 = vtanh.f32 %v5015_v40 }
 0x6be   : > { %v4928_v52 = vadd.f32 %v4927_v49, %v10157_v34  ;;  %v5016_v51 = vpop.f32.mrf.mxu3 }
 0x6bf   : > { %v4752_v41 = vpop.f32.mrf.mxu0 }
 0x6c0   : > { %v5017_v44 = vadd.f32 %v5016_v51, %v4928_v52  ;;  %v4753_v62 = vadd.f32 %v4752_v41, %v10151_v28  ;;  %v4841_v0 = vpop.f32.mrf.mxu1 }
 0x6c2   : > { %v8144_v2 = vpop.eup %8143  ;;  %8147 = vtanh.f32 %v5017_v44  ;;  %v4842_v7 = vadd.f32 %v4841_v0, %v4753_v62  ;;  %4791 = vmatmul.bf16.gmra.mxu0 %v10142_v39  ;;  %4969 = vmatmul.bf16.gmra.mxu2 %v10142_v39 }
 0x6c3   : > { %4880 = vmatmul.bf16.gmra.mxu1 %v10149_v10  ;;  %5058 = vmatmul.bf16.gmra.mxu3 %v10149_v10  ;;  %v10233_v38 = vpack.c.bf16 %v8144_v2, %v8142_v61  ;;  %v8146_v37 = vpop.eup %8145 }
 0x6c4   : > { %8149 = vtanh.f32 %v4842_v7 }
 0x6c5   : > { %v4930_v30 = vpop.f32.mrf.mxu2 }
 0x6c6   : > { %v4931_v48 = vadd.f32 %v4930_v30, %v10157_v34  ;;  %v5019_v54 = vpop.f32.mrf.mxu3 }
 0x6c7   : > { %v4754_v36 = vpop.f32.mrf.mxu0 }
 0x6c8   : > { %v8148_v42 = vpop.eup %8147  ;;  %v5020_v58 = vadd.f32 %v5019_v54, %v4931_v48  ;;  %v4755_v15 = vadd.f32 %v4754_v36, %v10151_v28  ;;  %v4843_v43 = vpop.f32.mrf.mxu1 }
 0x6c9   : > { %v10237_v18 = vpack.c.bf16 %v8148_v42, %v8146_v37 }
 0x6ca   : > { %v4844_v39 = vadd.f32 %v4843_v43, %v4755_v15  ;;  %v8150_v12 = vpop.eup %8149 }
 0x6cc   : > { %8151 = vtanh.f32 %v4844_v39 }
 0x6cd   : > { %v4932_v63 = vpop.f32.mrf.mxu2  ;;  %8153 = vtanh.f32 %v5020_v58 }
 0x6ce   : > { %v4933_v10 = vadd.f32 %v4932_v63, %v10157_v34  ;;  %v5021_v27 = vpop.f32.mrf.mxu3 }
 0x6cf   : > { %v4757_v14 = vpop.f32.mrf.mxu0 }
 0x6d0   : > { %v5022_v45 = vadd.f32 %v5021_v27, %v4933_v10  ;;  %v4758_v57 = vadd.f32 %v4757_v14, %v10151_v28  ;;  %v4846_v13 = vpop.f32.mrf.mxu1 }
 0x6d2   : > { %v8152_v32 = vpop.eup %8151  ;;  %8155 = vtanh.f32 %v5022_v45  ;;  %v4847_v5 = vadd.f32 %v4846_v13, %v4758_v57  ;;  %4796 = vmatmul.bf16.gmra.mxu0 %v10161_v59  ;;  %4974 = vmatmul.bf16.gmra.mxu2 %v10161_v59 }
 0x6d3   : > { %4885 = vmatmul.bf16.gmra.mxu1 %v10165_v16  ;;  %5063 = vmatmul.bf16.gmra.mxu3 %v10165_v16  ;;  %v10245_v3 = vpack.c.bf16 %v8152_v32, %v8150_v12  ;;  %v8154_v55 = vpop.eup %8153 }
 0x6d4   : > { %8157 = vtanh.f32 %v4847_v5 }
 0x6d5   : > { %v4935_v22 = vpop.f32.mrf.mxu2 }
 0x6d6   : > { %v4936_v11 = vadd.f32 %v4935_v22, %v10157_v34  ;;  %v5024_v33 = vpop.f32.mrf.mxu3 }
 0x6d7   : > { %v4759_v53 = vpop.f32.mrf.mxu0 }
 0x6d8   : > { %v8156_v17 = vpop.eup %8155  ;;  %v5025_v25 = vadd.f32 %v5024_v33, %v4936_v11  ;;  %v4760_v9 = vadd.f32 %v4759_v53, %v10151_v28  ;;  %v4848_v35 = vpop.f32.mrf.mxu1 }
 0x6d9   : > { %v10249_v26 = vpack.c.bf16 %v8156_v17, %v8154_v55 }
 0x6da   : > { %v4849_v59 = vadd.f32 %v4848_v35, %v4760_v9  ;;  %v8158_v19 = vpop.eup %8157 }
 0x6dc   : > { %8159 = vtanh.f32 %v4849_v59 }
 0x6dd   : > { %v4937_v31 = vpop.f32.mrf.mxu2  ;;  %8161 = vtanh.f32 %v5025_v25 }
 0x6de   : > { %v4938_v16 = vadd.f32 %v4937_v31, %v10157_v34  ;;  %v5026_v21 = vpop.f32.mrf.mxu3 }
 0x6df   : > { %v4762_v6 = vpop.f32.mrf.mxu0 }
 0x6e0   : > { %v5027_v40 = vadd.f32 %v5026_v21, %v4938_v16  ;;  %v4763_v50 = vadd.f32 %v4762_v6, %v10151_v28  ;;  %v4851_v29 = vpop.f32.mrf.mxu1 }
 0x6e2   : > { %v8160_v49 = vpop.eup %8159  ;;  %8163 = vtanh.f32 %v5027_v40  ;;  %v4852_v52 = vadd.f32 %v4851_v29, %v4763_v50  ;;  %5373 = vmatmul.bf16.vlgmr.msra.gmra.mxu0 %v10171_v8  ;;  %5551 = vmatmul.bf16.vlgmr.msra.gmra.mxu2 %v10171_v8 }
 0x6e3   : > { %5462 = vmatmul.bf16.vlgmr.msra.gmra.mxu1 %v10177_v60  ;;  %5640 = vmatmul.bf16.vlgmr.msra.gmra.mxu3 %v10177_v60  ;;  %v10257_v51 = vpack.c.bf16 %v8160_v49, %v8158_v19  ;;  %v8162_v0 = vpop.eup %8161 }
 0x6e4   : > { %8165 = vtanh.f32 %v4852_v52 }
 0x6e5   : > { %v4940_v41 = vpop.f32.mrf.mxu2 }
 0x6e6   : > { %v4941_v44 = vadd.f32 %v4940_v41, %v10157_v34  ;;  %v5029_v62 = vpop.f32.mrf.mxu3 }
 0x6e7   : > { %v4764_v61 = vpop.f32.mrf.mxu0 }
 0x6e8   : > { %v8164_v2 = vpop.eup %8163  ;;  %v5030_v7 = vadd.f32 %v5029_v62, %v4941_v44  ;;  %v4765_v30 = vadd.f32 %v4764_v61, %v10151_v28  ;;  %v4853_v48 = vpop.f32.mrf.mxu1 }
 0x6e9   : > { %v10261_v54 = vpack.c.bf16 %v8164_v2, %v8162_v0 }
 0x6ea   : > { %v4854_v8 = vadd.f32 %v4853_v48, %v4765_v30  ;;  %v8166_v39 = vpop.eup %8165 }
 0x6ec   : > { %8167 = vtanh.f32 %v4854_v8 }
 0x6ed   : > { %v4942_v37 = vpop.f32.mrf.mxu2  ;;  %8169 = vtanh.f32 %v5030_v7 }
 0x6ee   : > { %v4943_v60 = vadd.f32 %v4942_v37, %v10157_v34  ;;  %v5031_v36 = vpop.f32.mrf.mxu3 }
 0x6ef   : > { %v4767_v42 = vpop.f32.mrf.mxu0 }
 0x6f0   : > { %v5032_v58 = vadd.f32 %v5031_v36, %v4943_v60  ;;  %v4768_v15 = vadd.f32 %v4767_v42, %v10151_v28  ;;  %v4856_v43 = vpop.f32.mrf.mxu1 }
 0x6f2   : > { %v8168_v63 = vpop.eup %8167  ;;  %8171 = vtanh.f32 %v5032_v58  ;;  %v4857_v10 = vadd.f32 %v4856_v43, %v4768_v15  ;;  %5378 = vmatmul.bf16.gmra.mxu0 %v10185_v46  ;;  %5556 = vmatmul.bf16.gmra.mxu2 %v10185_v46 }
 0x6f3   : > { %5467 = vmatmul.bf16.gmra.mxu1 %v10189_v4  ;;  %5645 = vmatmul.bf16.gmra.mxu3 %v10189_v4  ;;  %v10269_v27 = vpack.c.bf16 %v8168_v63, %v8166_v39  ;;  %v8170_v13 = vpop.eup %8169 }
 0x6f4   : > { %8173 = vtanh.f32 %v4857_v10 }
 0x6f5   : > { %v4945_v14 = vpop.f32.mrf.mxu2 }
 0x6f6   : > { %v4946_v45 = vadd.f32 %v4945_v14, %v10157_v34  ;;  %v5034_v57 = vpop.f32.mrf.mxu3 }
 0x6f7   : > { %v4769_v12 = vpop.f32.mrf.mxu0 }
 0x6f8   : > { %v8172_v32 = vpop.eup %8171  ;;  %v5035_v5 = vadd.f32 %v5034_v57, %v4946_v45  ;;  %v4770_v22 = vadd.f32 %v4769_v12, %v10151_v28  ;;  %v4858_v11 = vpop.f32.mrf.mxu1 }
 0x6f9   : > { %v10273_v33 = vpack.c.bf16 %v8172_v32, %v8170_v13 }
 0x6fa   : > { %v4859_v46 = vadd.f32 %v4858_v11, %v4770_v22  ;;  %v8174_v59 = vpop.eup %8173 }
 0x6fc   : > { %8175 = vtanh.f32 %v4859_v46 }
 0x6fd   : > { %v4947_v55 = vpop.f32.mrf.mxu2  ;;  %8177 = vtanh.f32 %v5035_v5 }
 0x6fe   : > { %v4948_v4 = vadd.f32 %v4947_v55, %v10157_v34  ;;  %v5036_v53 = vpop.f32.mrf.mxu3 }
 0x6ff   : > { %v4772_v17 = vpop.f32.mrf.mxu0 }
 0x700   : > { %v5037_v25 = vadd.f32 %v5036_v53, %v4948_v4  ;;  %v4773_v9 = vadd.f32 %v4772_v17, %v10151_v28  ;;  %v4861_v35 = vpop.f32.mrf.mxu1 }
 0x702   : > { %v8176_v31 = vpop.eup %8175  ;;  %8179 = vtanh.f32 %v5037_v25  ;;  %v4862_v16 = vadd.f32 %v4861_v35, %v4773_v9  ;;  %5383 = vmatmul.bf16.gmra.mxu0 %v10197_v20  ;;  %5561 = vmatmul.bf16.gmra.mxu2 %v10197_v20 }
 0x703   : > { %5472 = vmatmul.bf16.gmra.mxu1 %v10201_v23  ;;  %5650 = vmatmul.bf16.gmra.mxu3 %v10201_v23  ;;  %v10281_v21 = vpack.c.bf16 %v8176_v31, %v8174_v59  ;;  %v8178_v29 = vpop.eup %8177 }
 0x704   : > { %8181 = vtanh.f32 %v4862_v16 }
 0x705   : > { %v4950_v6 = vpop.f32.mrf.mxu2 }
 0x706   : > { %v4951_v40 = vadd.f32 %v4950_v6, %v10157_v34  ;;  %v5039_v50 = vpop.f32.mrf.mxu3 }
 0x707   : > { %v4774_v19 = vpop.f32.mrf.mxu0 }
 0x708   : > { %v8180_v49 = vpop.eup %8179  ;;  %v5040_v52 = vadd.f32 %v5039_v50, %v4951_v40  ;;  %v4775_v41 = vadd.f32 %v4774_v19, %v10151_v28  ;;  %v4863_v44 = vpop.f32.mrf.mxu1 }
 0x709   : > { %v10285_v62 = vpack.c.bf16 %v8180_v49, %v8178_v29 }
 0x70a   : > { %v4864_v20 = vadd.f32 %v4863_v44, %v4775_v41  ;;  %v8182_v8 = vpop.eup %8181 }
 0x70c   : > { %8183 = vtanh.f32 %v4864_v20 }
 0x70d   : > { %v4952_v0 = vpop.f32.mrf.mxu2  ;;  %8185 = vtanh.f32 %v5040_v52 }
 0x70e   : > { %v4953_v23 = vadd.f32 %v4952_v0, %v10157_v34  ;;  %v5041_v61 = vpop.f32.mrf.mxu3 }
 0x70f   : > { %v4777_v2 = vpop.f32.mrf.mxu0 }
 0x710   : > { %v5042_v7 = vadd.f32 %v5041_v61, %v4953_v23  ;;  %v4778_v30 = vadd.f32 %v4777_v2, %v10151_v28  ;;  %v4866_v48 = vpop.f32.mrf.mxu1 }
 0x712   : > { %v8184_v37 = vpop.eup %8183  ;;  %8187 = vtanh.f32 %v5042_v7  ;;  %v4867_v60 = vadd.f32 %v4866_v48, %v4778_v30  ;;  %5388 = vmatmul.bf16.gmra.mxu0 %v10209_v47  ;;  %5566 = vmatmul.bf16.gmra.mxu2 %v10209_v47 }
 0x713   : > { %5477 = vmatmul.bf16.gmra.mxu1 %v10213_v1  ;;  %5655 = vmatmul.bf16.gmra.mxu3 %v10213_v1  ;;  %v10293_v36 = vpack.c.bf16 %v8184_v37, %v8182_v8  ;;  %v8186_v43 = vpop.eup %8185 }
 0x714   : > { %8189 = vtanh.f32 %v4867_v60 }
 0x715   : > { %v4955_v42 = vpop.f32.mrf.mxu2 }
 0x716   : > { %v4956_v58 = vadd.f32 %v4955_v42, %v10157_v34  ;;  %v5044_v15 = vpop.f32.mrf.mxu3 }
 0x717   : > { %v4779_v39 = vpop.f32.mrf.mxu0 }
 0x718   : > { %v8188_v63 = vpop.eup %8187  ;;  %v5045_v10 = vadd.f32 %v5044_v15, %v4956_v58  ;;  %v4780_v14 = vadd.f32 %v4779_v39, %v10151_v28  ;;  %v4868_v45 = vpop.f32.mrf.mxu1 }
 0x719   : > { %v10297_v57 = vpack.c.bf16 %v8188_v63, %v8186_v43 }
 0x71a   : > { %v4869_v47 = vadd.f32 %v4868_v45, %v4780_v14  ;;  %v8190_v46 = vpop.eup %8189 }
 0x71c   : > { %8191 = vtanh.f32 %v4869_v47 }
 0x71d   : > { %v4957_v13 = vpop.f32.mrf.mxu2  ;;  %8193 = vtanh.f32 %v5045_v10 }
 0x71e   : > { %v4958_v1 = vadd.f32 %v4957_v13, %v10157_v34  ;;  %v5046_v12 = vpop.f32.mrf.mxu3 }
 0x71f   : > { %v4782_v32 = vpop.f32.mrf.mxu0 }
 0x720   : > { %v5047_v5 = vadd.f32 %v5046_v12, %v4958_v1  ;;  %v4783_v22 = vadd.f32 %v4782_v32, %v10151_v28  ;;  %v4871_v11 = vpop.f32.mrf.mxu1 }
 0x722   : > { %v8192_v55 = vpop.eup %8191  ;;  %8195 = vtanh.f32 %v5047_v5  ;;  %v4872_v4 = vadd.f32 %v4871_v11, %v4783_v22  ;;  %5393 = vmatmul.bf16.gmra.mxu0 %v10221_v24  ;;  %5571 = vmatmul.bf16.gmra.mxu2 %v10221_v24 }
 0x723   : > { %5482 = vmatmul.bf16.gmra.mxu1 %v10225_v56  ;;  %5660 = vmatmul.bf16.gmra.mxu3 %v10225_v56  ;;  %v10305_v53 = vpack.c.bf16 %v8192_v55, %v8190_v46  ;;  %v8194_v35 = vpop.eup %8193 }
 0x724   : > { %8197 = vtanh.f32 %v4872_v4 }
 0x725   : > { %v4960_v17 = vpop.f32.mrf.mxu2 }
 0x726   : > { %v4961_v25 = vadd.f32 %v4960_v17, %v10157_v34  ;;  %v5049_v9 = vpop.f32.mrf.mxu3 }
 0x727   : > { %v4784_v59 = vpop.f32.mrf.mxu0 }
 0x728   : > { %v8196_v31 = vpop.eup %8195  ;;  %v5050_v16 = vadd.f32 %v5049_v9, %v4961_v25  ;;  %v4785_v6 = vadd.f32 %v4784_v59, %v10151_v28  ;;  %v4873_v40 = vpop.f32.mrf.mxu1 }
 0x729   : > { %v10309_v50 = vpack.c.bf16 %v8196_v31, %v8194_v35 }
 0x72a   : > { %v4874_v24 = vadd.f32 %v4873_v40, %v4785_v6  ;;  %v8198_v20 = vpop.eup %8197 }
 0x72c   : > { %8199 = vtanh.f32 %v4874_v24 }
 0x72d   : > { %v4962_v29 = vpop.f32.mrf.mxu2  ;;  %8201 = vtanh.f32 %v5050_v16 }
 0x72e   : > { %v4963_v56 = vadd.f32 %v4962_v29, %v10157_v34  ;;  %v5051_v19 = vpop.f32.mrf.mxu3 }
 0x72f   : > { %v4787_v49 = vpop.f32.mrf.mxu0 }
 0x730   : > { %v5052_v52 = vadd.f32 %v5051_v19, %v4963_v56  ;;  %v4788_v41 = vadd.f32 %v4787_v49, %v10151_v28  ;;  %v4876_v44 = vpop.f32.mrf.mxu1 }
 0x732   : > { %v8200_v0 = vpop.eup %8199  ;;  %8203 = vtanh.f32 %v5052_v52  ;;  %v4877_v23 = vadd.f32 %v4876_v44, %v4788_v41  ;;  %5398 = vmatmul.bf16.gmra.mxu0 %v10233_v38  ;;  %5576 = vmatmul.bf16.gmra.mxu2 %v10233_v38 }
 0x733   : > { %5487 = vmatmul.bf16.gmra.mxu1 %v10237_v18  ;;  %5665 = vmatmul.bf16.gmra.mxu3 %v10237_v18  ;;  %v10317_v61 = vpack.c.bf16 %v8200_v0, %v8198_v20  ;;  %v8202_v48 = vpop.eup %8201 }
 0x734   : > { %8205 = vtanh.f32 %v4877_v23 }
 0x735   : > { %v4965_v2 = vpop.f32.mrf.mxu2 }
 0x736   : > { %v4966_v7 = vadd.f32 %v4965_v2, %v10157_v34  ;;  %v5054_v30 = vpop.f32.mrf.mxu3 }
 0x737   : > { %v4789_v8 = vpop.f32.mrf.mxu0 }
 0x738   : > { %v8204_v37 = vpop.eup %8203  ;;  %v5055_v60 = vadd.f32 %v5054_v30, %v4966_v7  ;;  %v4790_v42 = vadd.f32 %v4789_v8, %v10151_v28  ;;  %v4878_v58 = vpop.f32.mrf.mxu1 }
 0x739   : > { %v10321_v15 = vpack.c.bf16 %v8204_v37, %v8202_v48 }
 0x73a   : > { %v4879_v38 = vadd.f32 %v4878_v58, %v4790_v42  ;;  %v8206_v47 = vpop.eup %8205 }
 0x73c   : > { %8207 = vtanh.f32 %v4879_v38 }
 0x73d   : > { %v4967_v43 = vpop.f32.mrf.mxu2  ;;  %8209 = vtanh.f32 %v5055_v60 }
 0x73e   : > { %v4968_v18 = vadd.f32 %v4967_v43, %v10157_v34  ;;  %v5056_v39 = vpop.f32.mrf.mxu3 }
 0x73f   : > { %v4792_v63 = vpop.f32.mrf.mxu0 }
 0x740   : > { %v5057_v10 = vadd.f32 %v5056_v39, %v4968_v18  ;;  %v4793_v14 = vadd.f32 %v4792_v63, %v10151_v28  ;;  %v4881_v45 = vpop.f32.mrf.mxu1 }
 0x742   : > { %v8208_v13 = vpop.eup %8207  ;;  %8211 = vtanh.f32 %v5057_v10  ;;  %v4882_v1 = vadd.f32 %v4881_v45, %v4793_v14  ;;  %5403 = vmatmul.bf16.gmra.mxu0 %v10245_v3  ;;  %5581 = vmatmul.bf16.gmra.mxu2 %v10245_v3 }
 0x743   : > { %5492 = vmatmul.bf16.gmra.mxu1 %v10249_v26  ;;  %5670 = vmatmul.bf16.gmra.mxu3 %v10249_v26  ;;  %v10329_v12 = vpack.c.bf16 %v8208_v13, %v8206_v47  ;;  %v8210_v11 = vpop.eup %8209 }
 0x744   : > { %8213 = vtanh.f32 %v4882_v1 }
 0x745   : > { %v4970_v32 = vpop.f32.mrf.mxu2 }
 0x746   : > { %v4971_v5 = vadd.f32 %v4970_v32, %v10157_v34  ;;  %v5059_v22 = vpop.f32.mrf.mxu3 }
 0x747   : > { %v4794_v46 = vpop.f32.mrf.mxu0 }
 0x748   : > { %v8212_v55 = vpop.eup %8211  ;;  %v5060_v4 = vadd.f32 %v5059_v22, %v4971_v5  ;;  %v4795_v17 = vadd.f32 %v4794_v46, %v10151_v28  ;;  %v4883_v25 = vpop.f32.mrf.mxu1 }
 0x749   : > { %v10333_v9 = vpack.c.bf16 %v8212_v55, %v8210_v11 }
 0x74a   : > { %v4884_v3 = vadd.f32 %v4883_v25, %v4795_v17  ;;  %v8214_v24 = vpop.eup %8213 }
 0x74c   : > { %8215 = vtanh.f32 %v4884_v3 }
 0x74d   : > { %v4972_v35 = vpop.f32.mrf.mxu2  ;;  %8217 = vtanh.f32 %v5060_v4 }
 0x74e   : > { %v4973_v26 = vadd.f32 %v4972_v35, %v10157_v34  ;;  %v5061_v59 = vpop.f32.mrf.mxu3 }
 0x74f   : > { %v4797_v31 = vpop.f32.mrf.mxu0 }
 0x750   : > { %v5062_v16 = vadd.f32 %v5061_v59, %v4973_v26  ;;  %v4798_v6 = vadd.f32 %v4797_v31, %v10151_v28  ;;  %v4886_v40 = vpop.f32.mrf.mxu1 }
 0x752   : > { %v8216_v29 = vpop.eup %8215  ;;  %8219 = vtanh.f32 %v5062_v16  ;;  %v4887_v56 = vadd.f32 %v4886_v40, %v4798_v6  ;;  %5408 = vmatmul.bf16.gmra.mxu0 %v10257_v51  ;;  %5586 = vmatmul.bf16.gmra.mxu2 %v10257_v51  ;;  %v6872_v51 = vld [vmem:[%s10638_s4 + $0xc] sm:$0x3] }
 0x753   : > { %5497 = vmatmul.bf16.gmra.mxu1 %v10261_v54  ;;  %5675 = vmatmul.bf16.gmra.mxu3 %v10261_v54  ;;  %v10341_v19 = vpack.c.bf16 %v8216_v29, %v8214_v24  ;;  %v8218_v44 = vpop.eup %8217  ;;  %v10350_v48 = vperm.slane %v6872_v51, 0  ;;  %v10356_v39 = vperm.slane %v6872_v51, 1 }
 0x754   : > { %8221 = vtanh.f32 %v4887_v56 }
 0x755   : > { %v4975_v49 = vpop.f32.mrf.mxu2 }
 0x756   : > { %v4976_v52 = vadd.f32 %v4975_v49, %v10157_v34  ;;  %v5064_v41 = vpop.f32.mrf.mxu3 }
 0x757   : > { %v4799_v20 = vpop.f32.mrf.mxu0 }
 0x758   : > { %v8220_v0 = vpop.eup %8219  ;;  %v5065_v23 = vadd.f32 %v5064_v41, %v4976_v52  ;;  %v4800_v2 = vadd.f32 %v4799_v20, %v10151_v28  ;;  %v4888_v7 = vpop.f32.mrf.mxu1 }
 0x759   : > { %v10348_v30 = vpack.c.bf16 %v8220_v0, %v8218_v44 }
 0x75a   : > { %v4889_v54 = vadd.f32 %v4888_v7, %v4800_v2  ;;  %v8222_v43 = vpop.eup %8221 }
 0x75c   : > { %8223 = vtanh.f32 %v4889_v54 }
 0x75d   : > { %v4977_v8 = vpop.f32.mrf.mxu2  ;;  %8225 = vtanh.f32 %v5065_v23 }
 0x75e   : > { %v4978_v37 = vadd.f32 %v4977_v8, %v10157_v34  ;;  %v5066_v60 = vpop.f32.mrf.mxu3 }
 0x75f   : > { %v5374_v42 = vpop.f32.mrf.mxu0 }
 0x760   : > { %v5067_v58 = vadd.f32 %v5066_v60, %v4978_v37  ;;  %v5375_v28 = vadd.f32 %v5374_v42, %v10350_v48  ;;  %v5463_v38 = vpop.f32.mrf.mxu1 }
 0x762   : > { %v8224_v18 = vpop.eup %8223  ;;  %8227 = vtanh.f32 %v5067_v58  ;;  %5413 = vmatmul.bf16.gmra.mxu0 %v10269_v27  ;;  %5591 = vmatmul.bf16.gmra.mxu2 %v10269_v27  ;;  %v5464_v63 = vadd.f32 %v5463_v38, %v5375_v28 }
 0x763   : > { %5502 = vmatmul.bf16.gmra.mxu1 %v10273_v33  ;;  %5680 = vmatmul.bf16.gmra.mxu3 %v10273_v33  ;;  %v10360_v34 = vpack.c.bf16 %v8224_v18, %v8222_v43  ;;  %v8226_v47 = vpop.eup %8225  ;;  %v5785_v33 = vld [vmem:[%s10639_s5] sm:$0x3] }
 0x764   : > { %8229 = vtanh.f32 %v5464_v63  ;;  %v10369_v55 = vperm.slane %v5785_v33, 0  ;;  %v10371_v4 = vperm.slane %v5785_v33, 1 }
 0x765   : > { %v5552_v10 = vpop.f32.mrf.mxu2 }
 0x766   : > { %v5553_v14 = vadd.f32 %v5552_v10, %v10356_v39  ;;  %v5641_v45 = vpop.f32.mrf.mxu3 }
 0x767   : > { %v5376_v13 = vpop.f32.mrf.mxu0 }
 0x768   : > { %v8228_v1 = vpop.eup %8227  ;;  %v5642_v32 = vadd.f32 %v5641_v45, %v5553_v14  ;;  %v5377_v27 = vadd.f32 %v5376_v13, %v10350_v48  ;;  %v5465_v5 = vpop.f32.mrf.mxu1 }
 0x769   : > { %v10364_v22 = vpack.c.bf16 %v8228_v1, %v8226_v47 }
 0x76a   : > { %8231 = vtanh.f32 %v5642_v32  ;;  %v5466_v11 = vadd.f32 %v5465_v5, %v5377_v27  ;;  %v8230_v17 = vpop.eup %8229 }
 0x76b   : > { %v5791_v6 = vmul.f32 %v8230_v17, %v10369_v55 }
 0x76c   : > { %8233 = vtanh.f32 %v5466_v11 }
 0x76d   : > { %v5554_v46 = vpop.f32.mrf.mxu2 }
 0x76e   : > { %v5555_v25 = vadd.f32 %v5554_v46, %v10356_v39  ;;  %v5643_v3 = vpop.f32.mrf.mxu3 }
 0x76f   : > { %v5379_v35 = vpop.f32.mrf.mxu0 }
 0x770   : > { %v8232_v26 = vpop.eup %8231  ;;  %v5644_v59 = vadd.f32 %v5643_v3, %v5555_v25  ;;  %v5380_v31 = vadd.f32 %v5379_v35, %v10350_v48  ;;  %v5468_v16 = vpop.f32.mrf.mxu1 }
 0x771   : > { %v5792_v40 = vmul.f32 %v8232_v26, %v10371_v4 }
 0x772   : > { %8235 = vtanh.f32 %v5644_v59  ;;  %5418 = vmatmul.bf16.gmra.mxu0 %v10281_v21  ;;  %5596 = vmatmul.bf16.gmra.mxu2 %v10281_v21  ;;  %v5469_v29 = vadd.f32 %v5468_v16, %v5380_v31  ;;  %v8234_v49 = vpop.eup %8233 }
 0x773   : > { %5507 = vmatmul.bf16.gmra.mxu1 %v10285_v62  ;;  %5685 = vmatmul.bf16.gmra.mxu3 %v10285_v62  ;;  %v5855_v24 = vadd.f32 %v5792_v40, %v5791_v6  ;;  %v5793_v21 = vmul.f32 %v8234_v49, %v10369_v55 }
 0x774   : > { %8237 = vtanh.f32 %v5469_v29 }
 0x775   : > { %v5557_v56 = vpop.f32.mrf.mxu2  ;;  %5856 = vadd.xlane.f32.xlu2 %v5855_v24 }
 0x776   : > { %v5558_v52 = vadd.f32 %v5557_v56, %v10356_v39  ;;  %v5646_v41 = vpop.f32.mrf.mxu3 }
 0x777   : > { %v5381_v44 = vpop.f32.mrf.mxu0 }
 0x778   : > { %v8236_v20 = vpop.eup %8235  ;;  %v5647_v0 = vadd.f32 %v5646_v41, %v5558_v52  ;;  %v5382_v23 = vadd.f32 %v5381_v44, %v10350_v48  ;;  %v5470_v2 = vpop.f32.mrf.mxu1 }
 0x779   : > { %v5794_v7 = vmul.f32 %v8236_v20, %v10371_v4 }
 0x77a   : > { %8239 = vtanh.f32 %v5647_v0  ;;  %v5471_v51 = vadd.f32 %v5470_v2, %v5382_v23  ;;  %v8238_v8 = vpop.eup %8237 }
 0x77b   : > { %v5858_v62 = vadd.f32 %v5794_v7, %v5793_v21  ;;  %v5795_v18 = vmul.f32 %v8238_v8, %v10369_v55 }
 0x77c   : > { %8241 = vtanh.f32 %v5471_v51 }
 0x77d   : > { %v5559_v54 = vpop.f32.mrf.mxu2  ;;  %5859 = vadd.xlane.f32.xlu0 %v5858_v62 }
 0x77e   : > { %v5560_v37 = vadd.f32 %v5559_v54, %v10356_v39  ;;  %v5648_v60 = vpop.f32.mrf.mxu3 }
 0x77f   : > { %v5384_v42 = vpop.f32.mrf.mxu0 }
 0x780   : > { %v8240_v58 = vpop.eup %8239  ;;  %v5649_v28 = vadd.f32 %v5648_v60, %v5560_v37  ;;  %v5385_v38 = vadd.f32 %v5384_v42, %v10350_v48  ;;  %v5473_v43 = vpop.f32.mrf.mxu1 }
 0x781   : > { %v5796_v63 = vmul.f32 %v8240_v58, %v10371_v4 }
 0x782   : > { %8243 = vtanh.f32 %v5649_v28  ;;  %5423 = vmatmul.bf16.gmra.mxu0 %v10293_v36  ;;  %5601 = vmatmul.bf16.gmra.mxu2 %v10293_v36  ;;  %v5474_v14 = vadd.f32 %v5473_v43, %v5385_v38  ;;  %v8242_v47 = vpop.eup %8241 }
 0x783   : > { %5512 = vmatmul.bf16.gmra.mxu1 %v10297_v57  ;;  %5690 = vmatmul.bf16.gmra.mxu3 %v10297_v57  ;;  %v5861_v10 = vadd.f32 %v5796_v63, %v5795_v18  ;;  %v5797_v36 = vmul.f32 %v8242_v47, %v10369_v55 }
 0x784   : > { %8245 = vtanh.f32 %v5474_v14 }
 0x785   : > { %v5562_v45 = vpop.f32.mrf.mxu2  ;;  %5862 = vadd.xlane.f32.xlu1 %v5861_v10 }
 0x786   : > { %v5563_v13 = vadd.f32 %v5562_v45, %v10356_v39  ;;  %v5651_v1 = vpop.f32.mrf.mxu3 }
 0x787   : > { %v5386_v32 = vpop.f32.mrf.mxu0 }
 0x788   : > { %v8244_v27 = vpop.eup %8243  ;;  %v5652_v5 = vadd.f32 %v5651_v1, %v5563_v13  ;;  %v5387_v33 = vadd.f32 %v5386_v32, %v10350_v48  ;;  %v5475_v11 = vpop.f32.mrf.mxu1 }
 0x789   : > { %v5798_v46 = vmul.f32 %v8244_v27, %v10371_v4 }
 0x78a   : > { %8247 = vtanh.f32 %v5652_v5  ;;  %v5476_v17 = vadd.f32 %v5475_v11, %v5387_v33  ;;  %v8246_v3 = vpop.eup %8245 }
 0x78b   : > { %v5864_v57 = vadd.f32 %v5798_v46, %v5797_v36  ;;  %v5799_v24 = vmul.f32 %v8246_v3, %v10369_v55 }
 0x78c   : > { %8249 = vtanh.f32 %v5476_v17 }
 0x78d   : > { %v5564_v25 = vpop.f32.mrf.mxu2  ;;  %5865 = vadd.xlane.f32.xlu2 %v5864_v57 }
 0x78e   : > { %v5565_v35 = vadd.f32 %v5564_v25, %v10356_v39  ;;  %v5653_v26 = vpop.f32.mrf.mxu3 }
 0x78f   : > { %v5389_v59 = vpop.f32.mrf.mxu0 }
 0x790   : > { %v8248_v31 = vpop.eup %8247  ;;  %v5654_v16 = vadd.f32 %v5653_v26, %v5565_v35  ;;  %v5390_v6 = vadd.f32 %v5389_v59, %v10350_v48  ;;  %v5478_v40 = vpop.f32.mrf.mxu1 }
 0x791   : > { %v5800_v29 = vmul.f32 %v8248_v31, %v10371_v4 }
 0x792   : > { %8251 = vtanh.f32 %v5654_v16  ;;  %5428 = vmatmul.bf16.gmra.mxu0 %v10305_v53  ;;  %5606 = vmatmul.bf16.gmra.mxu2 %v10305_v53  ;;  %v5479_v49 = vadd.f32 %v5478_v40, %v5390_v6  ;;  %v8250_v41 = vpop.eup %8249 }
 0x793   : > { %5517 = vmatmul.bf16.gmra.mxu1 %v10309_v50  ;;  %5695 = vmatmul.bf16.gmra.mxu3 %v10309_v50  ;;  %v5867_v56 = vadd.f32 %v5800_v29, %v5799_v24  ;;  %v5801_v53 = vmul.f32 %v8250_v41, %v10369_v55 }
 0x794   : > { %8253 = vtanh.f32 %v5479_v49 }
 0x795   : > { %v5567_v52 = vpop.f32.mrf.mxu2  ;;  %5868 = vadd.xlane.f32.xlu2 %v5867_v56 }
 0x796   : > { %v5568_v44 = vadd.f32 %v5567_v52, %v10356_v39  ;;  %v5656_v20 = vpop.f32.mrf.mxu3 }
 0x797   : > { %v5391_v0 = vpop.f32.mrf.mxu0 }
 0x798   : > { %v8252_v23 = vpop.eup %8251  ;;  %v5657_v2 = vadd.f32 %v5656_v20, %v5568_v44  ;;  %v5392_v21 = vadd.f32 %v5391_v0, %v10350_v48  ;;  %v5480_v7 = vpop.f32.mrf.mxu1 }
 0x799   : > { %v5802_v62 = vmul.f32 %v8252_v23, %v10371_v4 }
 0x79a   : > { %8255 = vtanh.f32 %v5657_v2  ;;  %v5481_v51 = vadd.f32 %v5480_v7, %v5392_v21  ;;  %v8254_v8 = vpop.eup %8253 }
 0x79b   : > { %v5870_v50 = vadd.f32 %v5802_v62, %v5801_v53  ;;  %v5803_v18 = vmul.f32 %v8254_v8, %v10369_v55 }
 0x79c   : > { %8257 = vtanh.f32 %v5481_v51 }
 0x79d   : > { %v5569_v54 = vpop.f32.mrf.mxu2  ;;  %5871 = vadd.xlane.f32.xlu0 %v5870_v50 }
 0x79e   : > { %v5570_v37 = vadd.f32 %v5569_v54, %v10356_v39  ;;  %v5658_v60 = vpop.f32.mrf.mxu3 }
 0x79f   : > { %v5394_v42 = vpop.f32.mrf.mxu0 }
 0x7a0   : > { %v8256_v58 = vpop.eup %8255  ;;  %v5659_v28 = vadd.f32 %v5658_v60, %v5570_v37  ;;  %v5395_v38 = vadd.f32 %v5394_v42, %v10350_v48  ;;  %v5483_v43 = vpop.f32.mrf.mxu1 }
 0x7a1   : > { %v5804_v63 = vmul.f32 %v8256_v58, %v10371_v4 }
 0x7a2   : > { %8259 = vtanh.f32 %v5659_v28  ;;  %5433 = vmatmul.bf16.gmra.mxu0 %v10317_v61  ;;  %5611 = vmatmul.bf16.gmra.mxu2 %v10317_v61  ;;  %v5484_v14 = vadd.f32 %v5483_v43, %v5395_v38  ;;  %v8258_v47 = vpop.eup %8257 }
 0x7a3   : > { %5522 = vmatmul.bf16.gmra.mxu1 %v10321_v15  ;;  %5700 = vmatmul.bf16.gmra.mxu3 %v10321_v15  ;;  %v5873_v10 = vadd.f32 %v5804_v63, %v5803_v18  ;;  %v5805_v61 = vmul.f32 %v8258_v47, %v10369_v55 }
 0x7a4   : > { %8261 = vtanh.f32 %v5484_v14 }
 0x7a5   : > { %v5572_v45 = vpop.f32.mrf.mxu2  ;;  %5874 = vadd.xlane.f32.xlu1 %v5873_v10 }
 0x7a6   : > { %v5573_v13 = vadd.f32 %v5572_v45, %v10356_v39  ;;  %v5661_v1 = vpop.f32.mrf.mxu3 }
 0x7a7   : > { %v5396_v32 = vpop.f32.mrf.mxu0 }
 0x7a8   : > { %v8260_v27 = vpop.eup %8259  ;;  %v5662_v5 = vadd.f32 %v5661_v1, %v5573_v13  ;;  %v5397_v33 = vadd.f32 %v5396_v32, %v10350_v48  ;;  %v5485_v11 = vpop.f32.mrf.mxu1 }
 0x7a9   : > { %v5806_v36 = vmul.f32 %v8260_v27, %v10371_v4 }
 0x7aa   : > { %8263 = vtanh.f32 %v5662_v5  ;;  %v5486_v46 = vadd.f32 %v5485_v11, %v5397_v33  ;;  %v8262_v17 = vpop.eup %8261 }
 0x7ab   : > { %v5876_v15 = vadd.f32 %v5806_v36, %v5805_v61  ;;  %v5807_v6 = vmul.f32 %v8262_v17, %v10369_v55 }
 0x7ac   : > { %8265 = vtanh.f32 %v5486_v46 }
 0x7ad   : > { %v5574_v57 = vpop.f32.mrf.mxu2  ;;  %5877 = vadd.xlane.f32.xlu2 %v5876_v15 }
 0x7ae   : > { %v5575_v25 = vadd.f32 %v5574_v57, %v10356_v39  ;;  %v5663_v3 = vpop.f32.mrf.mxu3 }
 0x7af   : > { %v5399_v35 = vpop.f32.mrf.mxu0 }
 0x7b0   : > { %v8264_v26 = vpop.eup %8263  ;;  %v5664_v59 = vadd.f32 %v5663_v3, %v5575_v25  ;;  %v5400_v31 = vadd.f32 %v5399_v35, %v10350_v48  ;;  %v5488_v16 = vpop.f32.mrf.mxu1 }
 0x7b1   : > { %v5808_v40 = vmul.f32 %v8264_v26, %v10371_v4 }
 0x7b2   : > { %8267 = vtanh.f32 %v5664_v59  ;;  %5438 = vmatmul.bf16.gmra.mxu0 %v10329_v12  ;;  %5616 = vmatmul.bf16.gmra.mxu2 %v10329_v12  ;;  %v5489_v29 = vadd.f32 %v5488_v16, %v5400_v31  ;;  %v8266_v49 = vpop.eup %8265 }
 0x7b3   : > { %5527 = vmatmul.bf16.gmra.mxu1 %v10333_v9  ;;  %5705 = vmatmul.bf16.gmra.mxu3 %v10333_v9  ;;  %v5879_v24 = vadd.f32 %v5808_v40, %v5807_v6  ;;  %v5809_v12 = vmul.f32 %v8266_v49, %v10369_v55 }
 0x7b4   : > { %8269 = vtanh.f32 %v5489_v29 }
 0x7b5   : > { %v5577_v56 = vpop.f32.mrf.mxu2  ;;  %5880 = vadd.xlane.f32.xlu0 %v5879_v24 }
 0x7b6   : > { %v5578_v52 = vadd.f32 %v5577_v56, %v10356_v39  ;;  %v5666_v41 = vpop.f32.mrf.mxu3 }
 0x7b7   : > { %v5401_v44 = vpop.f32.mrf.mxu0 }
 0x7b8   : > { %v8268_v20 = vpop.eup %8267  ;;  %v5667_v0 = vadd.f32 %v5666_v41, %v5578_v52  ;;  %v5402_v23 = vadd.f32 %v5401_v44, %v10350_v48  ;;  %v5490_v2 = vpop.f32.mrf.mxu1 }
 0x7b9   : > { %v5810_v21 = vmul.f32 %v8268_v20, %v10371_v4 }
 0x7ba   : > { %8271 = vtanh.f32 %v5667_v0  ;;  %v5491_v7 = vadd.f32 %v5490_v2, %v5402_v23  ;;  %v8270_v62 = vpop.eup %8269 }
 0x7bb   : > { %v5882_v9 = vadd.f32 %v5810_v21, %v5809_v12  ;;  %v5811_v58 = vmul.f32 %v8270_v62, %v10369_v55 }
 0x7bc   : > { %8273 = vtanh.f32 %v5491_v7 }
 0x7bd   : > { %v5579_v53 = vpop.f32.mrf.mxu2  ;;  %5883 = vadd.xlane.f32.xlu1 %v5882_v9 }
 0x7be   : > { %v5580_v50 = vadd.f32 %v5579_v53, %v10356_v39  ;;  %v5668_v51 = vpop.f32.mrf.mxu3 }
 0x7bf   : > { %v5404_v54 = vpop.f32.mrf.mxu0 }
 0x7c0   : > { %v8272_v8 = vpop.eup %8271  ;;  %v5669_v37 = vadd.f32 %v5668_v51, %v5580_v50  ;;  %v5405_v60 = vadd.f32 %v5404_v54, %v10350_v48  ;;  %v5493_v42 = vpop.f32.mrf.mxu1 }
 0x7c1   : > { %v5812_v28 = vmul.f32 %v8272_v8, %v10371_v4 }
 0x7c2   : > { %8275 = vtanh.f32 %v5669_v37  ;;  %5443 = vmatmul.bf16.gmra.mxu0 %v10341_v19  ;;  %5621 = vmatmul.bf16.gmra.mxu2 %v10341_v19  ;;  %v5494_v43 = vadd.f32 %v5493_v42, %v5405_v60  ;;  %v8274_v63 = vpop.eup %8273  ;;  %v10461_v37 = vld [vmem:[#allocation2] ss:$0 sm:$0xff] }
 0x7c3   : > { %5532 = vmatmul.bf16.gmra.mxu1 %v10348_v30  ;;  %5710 = vmatmul.bf16.gmra.mxu3 %v10348_v30  ;;  %v5885_v38 = vadd.f32 %v5812_v28, %v5811_v58  ;;  %v5813_v19 = vmul.f32 %v8274_v63, %v10369_v55 }
 0x7c4   : > { %8277 = vtanh.f32 %v5494_v43 }
 0x7c5   : > { %v5582_v18 = vpop.f32.mrf.mxu2  ;;  %5886 = vadd.xlane.f32.xlu2 %v5885_v38 }
 0x7c6   : > { %v5583_v10 = vadd.f32 %v5582_v18, %v10356_v39  ;;  %v5671_v14 = vpop.f32.mrf.mxu3 }
 0x7c7   : > { %v5406_v45 = vpop.f32.mrf.mxu0 }
 0x7c8   : > { %v8276_v47 = vpop.eup %8275  ;;  %v5672_v13 = vadd.f32 %v5671_v14, %v5583_v10  ;;  %v5407_v1 = vadd.f32 %v5406_v45, %v10350_v48  ;;  %v5495_v32 = vpop.f32.mrf.mxu1 }
 0x7c9   : > { %v5814_v27 = vmul.f32 %v8276_v47, %v10371_v4 }
 0x7ca   : > { %8279 = vtanh.f32 %v5672_v13  ;;  %v5496_v5 = vadd.f32 %v5495_v32, %v5407_v1  ;;  %v8278_v11 = vpop.eup %8277 }
 0x7cb   : > { %v5888_v30 = vadd.f32 %v5814_v27, %v5813_v19  ;;  %v5815_v3 = vmul.f32 %v8278_v11, %v10369_v55 }
 0x7cc   : > { %8281 = vtanh.f32 %v5496_v5 }
 0x7cd   : > { %v5584_v33 = vpop.f32.mrf.mxu2  ;;  %5889 = vadd.xlane.f32.xlu0 %v5888_v30 }
 0x7ce   : > { %v5585_v61 = vadd.f32 %v5584_v33, %v10356_v39  ;;  %v5673_v36 = vpop.f32.mrf.mxu3 }
 0x7cf   : > { %v5409_v15 = vpop.f32.mrf.mxu0 }
 0x7d0   : > { %v8280_v46 = vpop.eup %8279  ;;  %v5674_v57 = vadd.f32 %v5673_v36, %v5585_v61  ;;  %v5410_v17 = vadd.f32 %v5409_v15, %v10350_v48  ;;  %v5498_v25 = vpop.f32.mrf.mxu1 }
 0x7d1   : > { %v5816_v35 = vmul.f32 %v8280_v46, %v10371_v4 }
 0x7d2   : > { %8283 = vtanh.f32 %v5674_v57  ;;  %5448 = vmatmul.bf16.gmra.mxu0 %v10360_v34  ;;  %5626 = vmatmul.bf16.gmra.mxu2 %v10360_v34  ;;  %v5499_v59 = vadd.f32 %v5498_v25, %v5410_v17  ;;  %v8282_v16 = vpop.eup %8281 }
 0x7d3   : > { %5537 = vmatmul.bf16.gmra.mxu1 %v10364_v22  ;;  %5715 = vmatmul.bf16.gmra.mxu3 %v10364_v22  ;;  %v5891_v26 = vadd.f32 %v5816_v35, %v5815_v3  ;;  %v5817_v34 = vmul.f32 %v8282_v16, %v10369_v55 }
 0x7d4   : > { %8285 = vtanh.f32 %v5499_v59 }
 0x7d5   : > { %v5587_v31 = vpop.f32.mrf.mxu2  ;;  %5892 = vadd.xlane.f32.xlu1 %v5891_v26 }
 0x7d6   : > { %v5588_v6 = vadd.f32 %v5587_v31, %v10356_v39  ;;  %v5676_v40 = vpop.f32.mrf.mxu3 }
 0x7d7   : > { %v5411_v24 = vpop.f32.mrf.mxu0 }
 0x7d8   : > { %v8284_v29 = vpop.eup %8283  ;;  %v5677_v56 = vadd.f32 %v5676_v40, %v5588_v6  ;;  %v5412_v49 = vadd.f32 %v5411_v24, %v10350_v48  ;;  %v5500_v52 = vpop.f32.mrf.mxu1 }
 0x7d9   : > { %v5818_v41 = vmul.f32 %v8284_v29, %v10371_v4 }
 0x7da   : > { %8287 = vtanh.f32 %v5677_v56  ;;  %v5501_v44 = vadd.f32 %v5500_v52, %v5412_v49  ;;  %v8286_v0 = vpop.eup %8285 }
 0x7db   : > { %v5894_v22 = vadd.f32 %v5818_v41, %v5817_v34  ;;  %v5819_v62 = vmul.f32 %v8286_v0, %v10369_v55 }
 0x7dc   : > { %8289 = vtanh.f32 %v5501_v44 }
 0x7dd   : > { %v5589_v20 = vpop.f32.mrf.mxu2  ;;  %5895 = vadd.xlane.f32.xlu2 %v5894_v22 }
 0x7de   : > { %v5590_v23 = vadd.f32 %v5589_v20, %v10356_v39  ;;  %v5678_v2 = vpop.f32.mrf.mxu3 }
 0x7df   : > { %v5414_v12 = vpop.f32.mrf.mxu0 }
 0x7e0   : > { %v8288_v21 = vpop.eup %8287  ;;  %v5679_v9 = vadd.f32 %v5678_v2, %v5590_v23  ;;  %v5415_v7 = vadd.f32 %v5414_v12, %v10350_v48  ;;  %v5503_v53 = vpop.f32.mrf.mxu1 }
 0x7e1   : > { %v5820_v50 = vmul.f32 %v8288_v21, %v10371_v4 }
 0x7e2   : > { %8291 = vtanh.f32 %v5679_v9  ;;  %v5504_v54 = vadd.f32 %v5503_v53, %v5415_v7  ;;  %v8290_v60 = vpop.eup %8289 }
 0x7e3   : > { %v5897_v51 = vadd.f32 %v5820_v50, %v5819_v62  ;;  %v5821_v45 = vmul.f32 %v8290_v60, %v10369_v55 }
 0x7e4   : > { %8293 = vtanh.f32 %v5504_v54 }
 0x7e5   : > { %v5592_v8 = vpop.f32.mrf.mxu2  ;;  %5898 = vadd.xlane.f32.xlu0 %v5897_v51 }
 0x7e6   : > { %v5593_v42 = vadd.f32 %v5592_v8, %v10356_v39  ;;  %v5681_v58 = vpop.f32.mrf.mxu3 }
 0x7e7   : > { %v5416_v28 = vpop.f32.mrf.mxu0 }
 0x7e8   : > { %v8292_v38 = vpop.eup %8291  ;;  %v5682_v43 = vadd.f32 %v5681_v58, %v5593_v42  ;;  %v5417_v18 = vadd.f32 %v5416_v28, %v10350_v48  ;;  %v5505_v63 = vpop.f32.mrf.mxu1 }
 0x7e9   : > { %v5857_v10 = vpop.xlane.xlu2 %5856  ;;  %v5822_v47 = vmul.f32 %v8292_v38, %v10371_v4 }
 0x7ea   : > { %v5955_v14 = vadd.f32 %v10461_v37, %v5857_v10  ;;  %8295 = vtanh.f32 %v5682_v43  ;;  %v5506_v1 = vadd.f32 %v5505_v63, %v5417_v18  ;;  %v8294_v19 = vpop.eup %8293 }
 0x7eb   : > { %v5900_v13 = vadd.f32 %v5822_v47, %v5821_v45  ;;  %v5823_v57 = vmul.f32 %v8294_v19, %v10369_v55 }
 0x7ec   : > { %5988 = vst.msk [vmem:[%s10470_s17] sm:$0xff] %vm5987_vm0, %v5955_v14  ;;  %8297 = vtanh.f32 %v5506_v1 }
 0x7ed   : > { %v5594_v32 = vpop.f32.mrf.mxu2  ;;  %5901 = vadd.xlane.f32.xlu1 %v5900_v13 }
 0x7ee   : > { %v5595_v27 = vadd.f32 %v5594_v32, %v10356_v39  ;;  %v5683_v30 = vpop.f32.mrf.mxu3 }
 0x7ef   : > { %v5419_v5 = vpop.f32.mrf.mxu0 }
 0x7f0   : > { %v8296_v33 = vpop.eup %8295  ;;  %v5684_v11 = vadd.f32 %v5683_v30, %v5595_v27  ;;  %v5420_v61 = vadd.f32 %v5419_v5, %v10350_v48  ;;  %v5508_v36 = vpop.f32.mrf.mxu1 }
 0x7f1   : > { %v5860_v15 = vpop.xlane.xlu0 %5859  ;;  %v5824_v17 = vmul.f32 %v8296_v33, %v10371_v4 }
 0x7f2   : > { %v5956_v46 = vadd.f32 %v10461_v37, %v5860_v15  ;;  %8299 = vtanh.f32 %v5684_v11  ;;  %v5509_v3 = vadd.f32 %v5508_v36, %v5420_v61  ;;  %v8298_v26 = vpop.eup %8297 }
 0x7f3   : > { %v5903_v25 = vadd.f32 %v5824_v17, %v5823_v57  ;;  %v5825_v52 = vmul.f32 %v8298_v26, %v10369_v55 }
 0x7f4   : > { %5989 = vst.msk [vmem:[%s10470_s17 + $0x8] sm:$0xff] %vm5987_vm0, %v5956_v46  ;;  %8301 = vtanh.f32 %v5509_v3 }
 0x7f5   : > { %v5597_v35 = vpop.f32.mrf.mxu2  ;;  %5904 = vadd.xlane.f32.xlu2 %v5903_v25 }
 0x7f6   : > { %v5598_v59 = vadd.f32 %v5597_v35, %v10356_v39  ;;  %v5686_v31 = vpop.f32.mrf.mxu3 }
 0x7f7   : > { %v5421_v16 = vpop.f32.mrf.mxu0 }
 0x7f8   : > { %v8300_v6 = vpop.eup %8299  ;;  %v5687_v40 = vadd.f32 %v5686_v31, %v5598_v59  ;;  %v5422_v24 = vadd.f32 %v5421_v16, %v10350_v48  ;;  %v5510_v29 = vpop.f32.mrf.mxu1 }
 0x7f9   : > { %v5863_v56 = vpop.xlane.xlu1 %5862  ;;  %v5826_v34 = vmul.f32 %v8300_v6, %v10371_v4 }
 0x7fa   : > { %v5957_v49 = vadd.f32 %v10461_v37, %v5863_v56  ;;  %8303 = vtanh.f32 %v5687_v40  ;;  %v5511_v22 = vadd.f32 %v5510_v29, %v5422_v24  ;;  %v8302_v20 = vpop.eup %8301 }
 0x7fb   : > { %v5906_v41 = vadd.f32 %v5826_v34, %v5825_v52  ;;  %v5827_v50 = vmul.f32 %v8302_v20, %v10369_v55 }
 0x7fc   : > { %5990 = vst.msk [vmem:[%s10470_s17 + $0x10] sm:$0xff] %vm5987_vm0, %v5957_v49  ;;  %8305 = vtanh.f32 %v5511_v22 }
 0x7fd   : > { %v5599_v44 = vpop.f32.mrf.mxu2  ;;  %5907 = vadd.xlane.f32.xlu0 %v5906_v41 }
 0x7fe   : > { %v5600_v0 = vadd.f32 %v5599_v44, %v10356_v39  ;;  %v5688_v23 = vpop.f32.mrf.mxu3 }
 0x7ff   : > { %v5424_v2 = vpop.f32.mrf.mxu0 }
 0x800   : > { %v8304_v12 = vpop.eup %8303  ;;  %v5689_v21 = vadd.f32 %v5688_v23, %v5600_v0  ;;  %v5425_v9 = vadd.f32 %v5424_v2, %v10350_v48  ;;  %v5513_v7 = vpop.f32.mrf.mxu1 }
 0x801   : > { %v5866_v53 = vpop.xlane.xlu2 %5865  ;;  %v5828_v51 = vmul.f32 %v8304_v12, %v10371_v4 }
 0x802   : > { %v5958_v62 = vadd.f32 %v10461_v37, %v5866_v53  ;;  %8307 = vtanh.f32 %v5689_v21  ;;  %v5514_v8 = vadd.f32 %v5513_v7, %v5425_v9  ;;  %v8306_v42 = vpop.eup %8305 }
 0x803   : > { %v5909_v54 = vadd.f32 %v5828_v51, %v5827_v50  ;;  %v5829_v47 = vmul.f32 %v8306_v42, %v10369_v55 }
 0x804   : > { %5991 = vst.msk [vmem:[%s10470_s17 + $0x18] sm:$0xff] %vm5987_vm0, %v5958_v62  ;;  %8309 = vtanh.f32 %v5514_v8 }
 0x805   : > { %v5602_v60 = vpop.f32.mrf.mxu2  ;;  %5910 = vadd.xlane.f32.xlu1 %v5909_v54 }
 0x806   : > { %v5603_v58 = vadd.f32 %v5602_v60, %v10356_v39  ;;  %v5691_v28 = vpop.f32.mrf.mxu3 }
 0x807   : > { %v5426_v38 = vpop.f32.mrf.mxu0 }
 0x808   : > { %v8308_v43 = vpop.eup %8307  ;;  %v5692_v18 = vadd.f32 %v5691_v28, %v5603_v58  ;;  %v5427_v63 = vadd.f32 %v5426_v38, %v10350_v48  ;;  %v5515_v10 = vpop.f32.mrf.mxu1 }
 0x809   : > { %v5869_v14 = vpop.xlane.xlu2 %5868  ;;  %v5830_v13 = vmul.f32 %v8308_v43, %v10371_v4 }
 0x80a   : > { %v5959_v45 = vadd.f32 %v10461_v37, %v5869_v14  ;;  %8311 = vtanh.f32 %v5692_v18  ;;  %v5516_v32 = vadd.f32 %v5515_v10, %v5427_v63  ;;  %v8310_v27 = vpop.eup %8309 }
 0x80b   : > { %v5912_v1 = vadd.f32 %v5830_v13, %v5829_v47  ;;  %v5831_v17 = vmul.f32 %v8310_v27, %v10369_v55 }
 0x80c   : > { %5992 = vst.msk [vmem:[%s10470_s17 + $0x20] sm:$0xff] %vm5987_vm0, %v5959_v45  ;;  %8313 = vtanh.f32 %v5516_v32 }
 0x80d   : > { %v5604_v19 = vpop.f32.mrf.mxu2  ;;  %5913 = vadd.xlane.f32.xlu2 %v5912_v1 }
 0x80e   : > { %v5605_v30 = vadd.f32 %v5604_v19, %v10356_v39  ;;  %v5693_v5 = vpop.f32.mrf.mxu3 }
 0x80f   : > { %v5429_v33 = vpop.f32.mrf.mxu0 }
 0x810   : > { %v8312_v11 = vpop.eup %8311  ;;  %v5694_v61 = vadd.f32 %v5693_v5, %v5605_v30  ;;  %v5430_v36 = vadd.f32 %v5429_v33, %v10350_v48  ;;  %v5518_v15 = vpop.f32.mrf.mxu1 }
 0x811   : > { %v5872_v46 = vpop.xlane.xlu0 %5871  ;;  %v5832_v25 = vmul.f32 %v8312_v11, %v10371_v4 }
 0x812   : > { %v5960_v57 = vadd.f32 %v10461_v37, %v5872_v46  ;;  %8315 = vtanh.f32 %v5694_v61  ;;  %v5519_v35 = vadd.f32 %v5518_v15, %v5430_v36  ;;  %v8314_v59 = vpop.eup %8313 }
 0x813   : > { %v5915_v3 = vadd.f32 %v5832_v25, %v5831_v17  ;;  %v5833_v34 = vmul.f32 %v8314_v59, %v10369_v55 }
 0x814   : > { %5993 = vst.msk [vmem:[%s10470_s17 + $0x28] sm:$0xff] %vm5987_vm0, %v5960_v57  ;;  %8317 = vtanh.f32 %v5519_v35 }
 0x815   : > { %v5607_v26 = vpop.f32.mrf.mxu2  ;;  %5916 = vadd.xlane.f32.xlu0 %v5915_v3 }
 0x816   : > { %v5608_v31 = vadd.f32 %v5607_v26, %v10356_v39  ;;  %v5696_v16 = vpop.f32.mrf.mxu3 }
 0x817   : > { %v5431_v6 = vpop.f32.mrf.mxu0 }
 0x818   : > { %v8316_v40 = vpop.eup %8315  ;;  %v5697_v24 = vadd.f32 %v5696_v16, %v5608_v31  ;;  %v5432_v29 = vadd.f32 %v5431_v6, %v10350_v48  ;;  %v5520_v56 = vpop.f32.mrf.mxu1 }
 0x819   : > { %v5875_v49 = vpop.xlane.xlu1 %5874  ;;  %v5834_v41 = vmul.f32 %v8316_v40, %v10371_v4 }
 0x81a   : > { %v5961_v52 = vadd.f32 %v10461_v37, %v5875_v49  ;;  %8319 = vtanh.f32 %v5697_v24  ;;  %v5521_v44 = vadd.f32 %v5520_v56, %v5432_v29  ;;  %v8318_v0 = vpop.eup %8317 }
 0x81b   : > { %v5918_v22 = vadd.f32 %v5834_v41, %v5833_v34  ;;  %v5835_v51 = vmul.f32 %v8318_v0, %v10369_v55 }
 0x81c   : > { %5994 = vst.msk [vmem:[%s10470_s17 + $0x30] sm:$0xff] %vm5987_vm0, %v5961_v52  ;;  %8321 = vtanh.f32 %v5521_v44 }
 0x81d   : > { %v5609_v20 = vpop.f32.mrf.mxu2  ;;  %5919 = vadd.xlane.f32.xlu1 %v5918_v22 }
 0x81e   : > { %v5610_v23 = vadd.f32 %v5609_v20, %v10356_v39  ;;  %v5698_v2 = vpop.f32.mrf.mxu3 }
 0x81f   : > { %v5434_v12 = vpop.f32.mrf.mxu0 }
 0x820   : > { %v8320_v21 = vpop.eup %8319  ;;  %v5699_v9 = vadd.f32 %v5698_v2, %v5610_v23  ;;  %v5435_v7 = vadd.f32 %v5434_v12, %v10350_v48  ;;  %v5523_v53 = vpop.f32.mrf.mxu1 }
 0x821   : > { %v5878_v62 = vpop.xlane.xlu2 %5877  ;;  %v5836_v54 = vmul.f32 %v8320_v21, %v10371_v4 }
 0x822   : > { %v5962_v50 = vadd.f32 %v10461_v37, %v5878_v62  ;;  %8323 = vtanh.f32 %v5699_v9  ;;  %v5524_v60 = vadd.f32 %v5523_v53, %v5435_v7  ;;  %v8322_v58 = vpop.eup %8321 }
 0x823   : > { %v5921_v8 = vadd.f32 %v5836_v54, %v5835_v51  ;;  %v5837_v13 = vmul.f32 %v8322_v58, %v10369_v55 }
 0x824   : > { %5995 = vst.msk [vmem:[%s10470_s17 + $0x38] sm:$0xff] %vm5987_vm0, %v5962_v50  ;;  %8325 = vtanh.f32 %v5524_v60 }
 0x825   : > { %v5612_v42 = vpop.f32.mrf.mxu2  ;;  %5922 = vadd.xlane.f32.xlu2 %v5921_v8 }
 0x826   : > { %v5613_v28 = vadd.f32 %v5612_v42, %v10356_v39  ;;  %v5701_v38 = vpop.f32.mrf.mxu3 }
 0x827   : > { %v5436_v43 = vpop.f32.mrf.mxu0 }
 0x828   : > { %v8324_v18 = vpop.eup %8323  ;;  %v5702_v63 = vadd.f32 %v5701_v38, %v5613_v28  ;;  %v5437_v10 = vadd.f32 %v5436_v43, %v10350_v48  ;;  %v5525_v14 = vpop.f32.mrf.mxu1 }
 0x829   : > { %v5881_v45 = vpop.xlane.xlu0 %5880  ;;  %v5838_v1 = vmul.f32 %v8324_v18, %v10371_v4 }
 0x82a   : > { %v5963_v47 = vadd.f32 %v10461_v37, %v5881_v45  ;;  %8327 = vtanh.f32 %v5702_v63  ;;  %v5526_v19 = vadd.f32 %v5525_v14, %v5437_v10  ;;  %v8326_v30 = vpop.eup %8325 }
 0x82b   : > { %v5924_v32 = vadd.f32 %v5838_v1, %v5837_v13  ;;  %v5839_v25 = vmul.f32 %v8326_v30, %v10369_v55 }
 0x82c   : > { %5996 = vst.msk [vmem:[%s10470_s17 + $0x40] sm:$0xff] %vm5987_vm0, %v5963_v47  ;;  %8329 = vtanh.f32 %v5526_v19 }
 0x82d   : > { %v5614_v27 = vpop.f32.mrf.mxu2  ;;  %5925 = vadd.xlane.f32.xlu0 %v5924_v32 }
 0x82e   : > { %v5615_v5 = vadd.f32 %v5614_v27, %v10356_v39  ;;  %v5703_v33 = vpop.f32.mrf.mxu3 }
 0x82f   : > { %v5439_v11 = vpop.f32.mrf.mxu0 }
 0x830   : > { %v8328_v61 = vpop.eup %8327  ;;  %v5704_v36 = vadd.f32 %v5703_v33, %v5615_v5  ;;  %v5440_v15 = vadd.f32 %v5439_v11, %v10350_v48  ;;  %v5528_v46 = vpop.f32.mrf.mxu1 }
 0x831   : > { %v5884_v57 = vpop.xlane.xlu1 %5883  ;;  %v5840_v3 = vmul.f32 %v8328_v61, %v10371_v4 }
 0x832   : > { %v5964_v17 = vadd.f32 %v10461_v37, %v5884_v57  ;;  %8331 = vtanh.f32 %v5704_v36  ;;  %v5529_v26 = vadd.f32 %v5528_v46, %v5440_v15  ;;  %v8330_v31 = vpop.eup %8329 }
 0x833   : > { %v5927_v35 = vadd.f32 %v5840_v3, %v5839_v25  ;;  %v5841_v41 = vmul.f32 %v8330_v31, %v10369_v55 }
 0x834   : > { %5997 = vst.msk [vmem:[%s10470_s17 + $0x48] sm:$0xff] %vm5987_vm0, %v5964_v17  ;;  %8333 = vtanh.f32 %v5529_v26 }
 0x835   : > { %v5617_v59 = vpop.f32.mrf.mxu2  ;;  %5928 = vadd.xlane.f32.xlu1 %v5927_v35 }
 0x836   : > { %v5618_v16 = vadd.f32 %v5617_v59, %v10356_v39  ;;  %v5706_v6 = vpop.f32.mrf.mxu3 }
 0x837   : > { %v5441_v40 = vpop.f32.mrf.mxu0 }
 0x838   : > { %v8332_v24 = vpop.eup %8331  ;;  %v5707_v29 = vadd.f32 %v5706_v6, %v5618_v16  ;;  %v5442_v56 = vadd.f32 %v5441_v40, %v10350_v48  ;;  %v5530_v49 = vpop.f32.mrf.mxu1 }
 0x839   : > { %v5887_v52 = vpop.xlane.xlu2 %5886  ;;  %v5842_v22 = vmul.f32 %v8332_v24, %v10371_v4 }
 0x83a   : > { %v5965_v34 = vadd.f32 %v10461_v37, %v5887_v52  ;;  %8335 = vtanh.f32 %v5707_v29  ;;  %v5531_v20 = vadd.f32 %v5530_v49, %v5442_v56  ;;  %v8334_v23 = vpop.eup %8333 }
 0x83b   : > { %v5930_v44 = vadd.f32 %v5842_v22, %v5841_v41  ;;  %v5843_v54 = vmul.f32 %v8334_v23, %v10369_v55 }
 0x83c   : > { %5998 = vst.msk [vmem:[%s10470_s17 + $0x50] sm:$0xff] %vm5987_vm0, %v5965_v34  ;;  %8337 = vtanh.f32 %v5531_v20 }
 0x83d   : > { %v5619_v0 = vpop.f32.mrf.mxu2  ;;  %5931 = vadd.xlane.f32.xlu2 %v5930_v44 }
 0x83e   : > { %v5620_v2 = vadd.f32 %v5619_v0, %v10356_v39  ;;  %v5708_v12 = vpop.f32.mrf.mxu3 }
 0x83f   : > { %v5444_v21 = vpop.f32.mrf.mxu0 }
 0x840   : > { %v8336_v9 = vpop.eup %8335  ;;  %v5709_v7 = vadd.f32 %v5708_v12, %v5620_v2  ;;  %v5445_v53 = vadd.f32 %v5444_v21, %v10350_v48  ;;  %v5533_v62 = vpop.f32.mrf.mxu1 }
 0x841   : > { %v5890_v50 = vpop.xlane.xlu0 %5889  ;;  %v5844_v8 = vmul.f32 %v8336_v9, %v10371_v4 }
 0x842   : > { %v5966_v51 = vadd.f32 %v10461_v37, %v5890_v50  ;;  %8339 = vtanh.f32 %v5709_v7  ;;  %v5534_v42 = vadd.f32 %v5533_v62, %v5445_v53  ;;  %v8338_v28 = vpop.eup %8337 }
 0x843   : > { %v5933_v60 = vadd.f32 %v5844_v8, %v5843_v54  ;;  %v5845_v1 = vmul.f32 %v8338_v28, %v10369_v55 }
 0x844   : > { %5999 = vst.msk [vmem:[%s10470_s17 + $0x58] sm:$0xff] %vm5987_vm0, %v5966_v51  ;;  %8341 = vtanh.f32 %v5534_v42 }
 0x845   : > { %v5622_v58 = vpop.f32.mrf.mxu2  ;;  %5934 = vadd.xlane.f32.xlu0 %v5933_v60 }
 0x846   : > { %v5623_v38 = vadd.f32 %v5622_v58, %v10356_v39  ;;  %v5711_v43 = vpop.f32.mrf.mxu3 }
 0x847   : > { %v5446_v18 = vpop.f32.mrf.mxu0 }
 0x848   : > { %v8340_v63 = vpop.eup %8339  ;;  %v5712_v10 = vadd.f32 %v5711_v43, %v5623_v38  ;;  %v5447_v14 = vadd.f32 %v5446_v18, %v10350_v48  ;;  %v5535_v45 = vpop.f32.mrf.mxu1 }
 0x849   : > { %v5893_v47 = vpop.xlane.xlu1 %5892  ;;  %v5846_v32 = vmul.f32 %v8340_v63, %v10371_v4 }
 0x84a   : > { %v5967_v13 = vadd.f32 %v10461_v37, %v5893_v47  ;;  %8343 = vtanh.f32 %v5712_v10  ;;  %v5536_v27 = vadd.f32 %v5535_v45, %v5447_v14  ;;  %v8342_v5 = vpop.eup %8341 }
 0x84b   : > { %v5936_v19 = vadd.f32 %v5846_v32, %v5845_v1  ;;  %v5847_v3 = vmul.f32 %v8342_v5, %v10369_v55 }
 0x84c   : > { %6000 = vst.msk [vmem:[%s10470_s17 + $0x60] sm:$0xff] %vm5987_vm0, %v5967_v13  ;;  %8345 = vtanh.f32 %v5536_v27 }
 0x84d   : > { %v5624_v30 = vpop.f32.mrf.mxu2  ;;  %5937 = vadd.xlane.f32.xlu1 %v5936_v19 }
 0x84e   : > { %v5625_v33 = vadd.f32 %v5624_v30, %v10356_v39  ;;  %v5713_v11 = vpop.f32.mrf.mxu3 }
 0x84f   : > { %v5449_v61 = vpop.f32.mrf.mxu0 }
 0x850   : > { %v8344_v36 = vpop.eup %8343  ;;  %v5714_v15 = vadd.f32 %v5713_v11, %v5625_v33  ;;  %v5450_v46 = vadd.f32 %v5449_v61, %v10350_v48  ;;  %v5896_v57 = vpop.xlane.xlu2 %5895 }
 0x851   : > { %v5538_v17 = vpop.f32.mrf.mxu1  ;;  %v5968_v25 = vadd.f32 %v10461_v37, %v5896_v57  ;;  %v5848_v35 = vmul.f32 %v8344_v36, %v10371_v4 }
 0x852   : > { %8347 = vtanh.f32 %v5714_v15  ;;  %v5539_v59 = vadd.f32 %v5538_v17, %v5450_v46  ;;  %v8346_v16 = vpop.eup %8345 }
 0x853   : > { %6001 = vst.msk [vmem:[%s10470_s17 + $0x68] sm:$0xff] %vm5987_vm0, %v5968_v25  ;;  %v5939_v26 = vadd.f32 %v5848_v35, %v5847_v3  ;;  %v5849_v41 = vmul.f32 %v8346_v16, %v10369_v55 }
 0x854   : > { %8349 = vtanh.f32 %v5539_v59 }
 0x855   : > { %5940 = vadd.xlane.f32.xlu2 %v5939_v26  ;;  %v5627_v31 = vpop.f32.mrf.mxu2 }
 0x856   : > { %v5716_v6 = vpop.f32.mrf.mxu3  ;;  %v5628_v40 = vadd.f32 %v5627_v31, %v10356_v39 }
 0x857   : > { %v5451_v24 = vpop.f32.mrf.mxu0 }
 0x858   : > { %v8348_v29 = vpop.eup %8347  ;;  %v5717_v56 = vadd.f32 %v5716_v6, %v5628_v40  ;;  %v5452_v49 = vadd.f32 %v5451_v24, %v10350_v48  ;;  %v5899_v52 = vpop.xlane.xlu0 %5898 }
 0x859   : > { %v5969_v34 = vadd.f32 %v10461_v37, %v5899_v52  ;;  %v5850_v22 = vmul.f32 %v8348_v29, %v10371_v4  ;;  %v5540_v44 = vpop.f32.mrf.mxu1 }
 0x85a   : > { %8351 = vtanh.f32 %v5717_v56  ;;  %v5541_v0 = vadd.f32 %v5540_v44, %v5452_v49  ;;  %v8350_v2 = vpop.eup %8349 }
 0x85b   : > { %6002 = vst.msk [vmem:[%s10470_s17 + $0x70] sm:$0xff] %vm5987_vm0, %v5969_v34  ;;  %v5942_v20 = vadd.f32 %v5850_v22, %v5849_v41  ;;  %v5851_v62 = vmul.f32 %v8350_v2, %v10369_v55 }
 0x85c   : > { %8353 = vtanh.f32 %v5541_v0 }
 0x85d   : > { %5943 = vadd.xlane.f32.xlu0 %v5942_v20  ;;  %v5629_v23 = vpop.f32.mrf.mxu2 }
 0x85e   : > { %v5630_v12 = vadd.f32 %v5629_v23, %v10356_v39  ;;  %v5718_v48 = vpop.f32.mrf.mxu3 }
 0x860   : > { %v8352_v21 = vpop.eup %8351  ;;  %v5719_v9 = vadd.f32 %v5718_v48, %v5630_v12  ;;  %v5902_v7 = vpop.xlane.xlu1 %5901 }
 0x861   : > { %v5970_v53 = vadd.f32 %v10461_v37, %v5902_v7  ;;  %v5852_v50 = vmul.f32 %v8352_v21, %v10371_v4 }
 0x862   : > { %8355 = vtanh.f32 %v5719_v9  ;;  %v8354_v39 = vpop.eup %8353 }
 0x863   : > { %6003 = vst.msk [vmem:[%s10470_s17 + $0x78] sm:$0xff] %vm5987_vm0, %v5970_v53  ;;  %v5945_v51 = vadd.f32 %v5852_v50, %v5851_v62  ;;  %v5853_v42 = vmul.f32 %v8354_v39, %v10369_v55 }
 0x865   : > { %5946 = vadd.xlane.f32.xlu1 %v5945_v51 }
 0x868   : > { %v8356_v54 = vpop.eup %8355  ;;  %v5905_v8 = vpop.xlane.xlu2 %5904 }
 0x869   : > { %v5971_v60 = vadd.f32 %v10461_v37, %v5905_v8  ;;  %v5854_v58 = vmul.f32 %v8356_v54, %v10371_v4 }
 0x86b   : > { %6004 = vst.msk [vmem:[%s10470_s17 + $0x80] sm:$0xff] %vm5987_vm0, %v5971_v60  ;;  %v5948_v28 = vadd.f32 %v5854_v58, %v5853_v42 }
 0x86d   : > { %5949 = vadd.xlane.f32.xlu2 %v5948_v28 }
 0x870   : > { %v5908_v38 = vpop.xlane.xlu0 %5907 }
 0x871   : > { %v5972_v43 = vadd.f32 %v10461_v37, %v5908_v38 }
 0x873   : > { %6005 = vst.msk [vmem:[%s10470_s17 + $0x88] sm:$0xff] %vm5987_vm0, %v5972_v43 }
 0x878   : > { %v5911_v18 = vpop.xlane.xlu1 %5910 }
 0x879   : > { %v5973_v63 = vadd.f32 %v10461_v37, %v5911_v18 }
 0x87b   : > { %6006 = vst.msk [vmem:[%s10470_s17 + $0x90] sm:$0xff] %vm5987_vm0, %v5973_v63 }
 0x880   : > { %v5914_v55 = vpop.xlane.xlu2 %5913 }
 0x881   : > { %v5974_v4 = vadd.f32 %v10461_v37, %v5914_v55 }
 0x883   : > { %6007 = vst.msk [vmem:[%s10470_s17 + $0x98] sm:$0xff] %vm5987_vm0, %v5974_v4 }
 0x888   : > { %v5917_v10 = vpop.xlane.xlu0 %5916 }
 0x889   : > { %v5975_v14 = vadd.f32 %v10461_v37, %v5917_v10 }
 0x88b   : > { %6008 = vst.msk [vmem:[%s10470_s17 + $0xa0] sm:$0xff] %vm5987_vm0, %v5975_v14 }
 0x890   : > { %v5920_v45 = vpop.xlane.xlu1 %5919 }
 0x891   : > { %v5976_v47 = vadd.f32 %v10461_v37, %v5920_v45 }
 0x893   : > { %6009 = vst.msk [vmem:[%s10470_s17 + $0xa8] sm:$0xff] %vm5987_vm0, %v5976_v47 }
 0x898   : > { %v5923_v13 = vpop.xlane.xlu2 %5922 }
 0x899   : > { %v5977_v1 = vadd.f32 %v10461_v37, %v5923_v13 }
 0x89b   : > { %6010 = vst.msk [vmem:[%s10470_s17 + $0xb0] sm:$0xff] %vm5987_vm0, %v5977_v1 }
 0x8a0   : > { %v5926_v32 = vpop.xlane.xlu0 %5925 }
 0x8a1   : > { %v5978_v19 = vadd.f32 %v10461_v37, %v5926_v32 }
 0x8a3   : > { %6011 = vst.msk [vmem:[%s10470_s17 + $0xb8] sm:$0xff] %vm5987_vm0, %v5978_v19 }
 0x8a8   : > { %v5929_v27 = vpop.xlane.xlu1 %5928 }
 0x8a9   : > { %v5979_v30 = vadd.f32 %v10461_v37, %v5929_v27 }
 0x8ab   : > { %6012 = vst.msk [vmem:[%s10470_s17 + $0xc0] sm:$0xff] %vm5987_vm0, %v5979_v30 }
 0x8b0   : > { %v5932_v5 = vpop.xlane.xlu2 %5931 }
 0x8b1   : > { %v5980_v33 = vadd.f32 %v10461_v37, %v5932_v5 }
 0x8b3   : > { %6013 = vst.msk [vmem:[%s10470_s17 + $0xc8] sm:$0xff] %vm5987_vm0, %v5980_v33 }
 0x8b8   : > { %v5935_v11 = vpop.xlane.xlu0 %5934 }
 0x8b9   : > { %v5981_v61 = vadd.f32 %v10461_v37, %v5935_v11 }
 0x8bb   : > { %6014 = vst.msk [vmem:[%s10470_s17 + $0xd0] sm:$0xff] %vm5987_vm0, %v5981_v61 }
 0x8c0   : > { %v5938_v36 = vpop.xlane.xlu1 %5937 }
 0x8c1   : > { %v5982_v15 = vadd.f32 %v10461_v37, %v5938_v36 }
 0x8c3   : > { %6015 = vst.msk [vmem:[%s10470_s17 + $0xd8] sm:$0xff] %vm5987_vm0, %v5982_v15 }
 0x8c8   : > { %v5941_v46 = vpop.xlane.xlu2 %5940 }
 0x8c9   : > { %v5983_v57 = vadd.f32 %v10461_v37, %v5941_v46 }
 0x8cb   : > { %6016 = vst.msk [vmem:[%s10470_s17 + $0xe0] sm:$0xff] %vm5987_vm0, %v5983_v57 }
 0x8d0   : > { %v5944_v17 = vpop.xlane.xlu0 %5943 }
 0x8d1   : > { %v5984_v25 = vadd.f32 %v10461_v37, %v5944_v17 }
 0x8d3   : > { %6017 = vst.msk [vmem:[%s10470_s17 + $0xe8] sm:$0xff] %vm5987_vm0, %v5984_v25 }
 0x8d8   : > { %v5947_v3 = vpop.xlane.xlu1 %5946 }
 0x8d9   : > { %v5985_v35 = vadd.f32 %v10461_v37, %v5947_v3 }
 0x8db   : > { %6018 = vst.msk [vmem:[%s10470_s17 + $0xf0] sm:$0xff] %vm5987_vm0, %v5985_v35 }
 0x8e0   : > { %v5950_v26 = vpop.xlane.xlu2 %5949 }
 0x8e1   : > { %v5986_v59 = vadd.f32 %v10461_v37, %v5950_v26 }
 0x8e3   : > { %6019 = vst.msk [vmem:[%s10470_s17 + $0xf8] sm:$0xff] %vm5987_vm0, %v5986_v59 }
 0x8e4 PF: > { %s20_s26 = sadd.s32 1, %s8397_s26  }
 0x8e5   : > { %p17_p7 = scmp.ge.s32.totalorder %s20_s26, 4  }
 0x8e7   :  { %19 = sbr.rel (!%p17_p7) target bundleno = 4 (0x4), region = 95 }
 0x8ec   :  { %6042 = vsyncpa [#allocation4], 1 }
 0x8ed   :  { %6044 = vsyncpa [#allocation4 + $0x1], 1 }

</bundles_post_ra>
